<compile_context>
chip_gen: v6e
topology: v6e:2x2x1
jax: 0.10.0
libtpu: 0.0.40
codegen_flags: <defaults>
</compile_context>

<pallas_src>
import math
from functools import partial

import jax
import jax.numpy as jnp
from jax import lax
from jax.experimental import pallas as pl
from jax.experimental.pallas import tpu as pltpu

_LN_EPS = 1e-5
_NEG = -1e20


# ------------------------------ in-kernel helpers ------------------------------

def _layer_norm(x, g, b):
    # nn.LayerNorm over the last dim: biased variance, affine.
    mean = jnp.mean(x, axis=-1, keepdims=True)
    xc = x - mean
    var = jnp.mean(xc * xc, axis=-1, keepdims=True)
    return xc * lax.rsqrt(var + jnp.float32(_LN_EPS)) * g + b


# ------------------------------ fused decoder-layer kernel ------------------------------

def _decoder_layer_kernel(x_ref, enc_ref, tmask_ref, smask_ref,
                          wq_s_ref, wk_s_ref, wv_s_ref, wo_s_ref, bo_s_ref,
                          g0_ref, b0_ref,
                          wq_c_ref, wk_c_ref, wv_c_ref, wo_c_ref, bo_c_ref,
                          g1_ref, b1_ref,
                          w1_ref, fb1_ref, w2_ref, fb2_ref,
                          g2_ref, b2_ref,
                          o_ref,
                          qh_scr, kh_scr, vh_scr, z_scr,
                          *, heads):
    """Whole DecoderBlock for one batch element (grid=(B,), axis 'parallel')."""
    Lt, E = x_ref.shape[1], x_ref.shape[2]
    Ls = enc_ref.shape[1]
    hd = E // heads

    x = x_ref[0]        # (Lt, E) f32
    enc = enc_ref[0]    # (Ls, E) f32

    def mha(q_src, kv_src, mask, wq_ref, wk_ref, wv_ref, wo_ref, bo_ref):
        """MultiHeadAttention with the raw PyTorch head split + fc_out, fully in-VMEM.

        wq/wk/wv refs hold block-diagonal (E,E) bf16 weights (per-head weight repeated on the
        diagonal, 1/sqrt(hd) folded into wq), so each projection covers all heads in one dot.
        `mask` is the additive {0,-1e20} mask, already permuted into the per-head row order.
        """
        Lq, Lk = q_src.shape[0], kv_src.shape[0]
        rq, rk = Lq // heads, Lk // heads

        # Batched (all-heads) Q/K/V projections: lane-dense (L,E) x (E,E) MXU dots.
        q_c = jnp.dot(q_src.astype(jnp.bfloat16), wq_ref[...],
                      preferred_element_type=jnp.float32)          # (Lq, E), scale folded
        k_c = jnp.dot(kv_src.astype(jnp.bfloat16), wk_ref[...],
                      preferred_element_type=jnp.float32)          # (Lk, E)
        v_c = jnp.dot(kv_src.astype(jnp.bfloat16), wv_ref[...],
                      preferred_element_type=jnp.float32)          # (Lk, E)

        for h in range(heads):                                     # static unroll (heads tiny)
            # Raw head split (permuted row order): lane-chunk c of coarse row block h
            # becomes sublane block c.  Done via scratch static-slice stores (robust).
            for c in range(heads):
                qh_scr[c * rq:(c + 1) * rq, :] = q_c[h * rq:(h + 1) * rq, c * hd:(c + 1) * hd]
                kh_scr[c * rk:(c + 1) * rk, :] = k_c[h * rk:(h + 1) * rk, c * hd:(c + 1) * hd]
                vh_scr[c * rk:(c + 1) * rk, :] = v_c[h * rk:(h + 1) * rk, c * hd:(c + 1) * hd]
            qp = qh_scr[0:Lq, :]                                   # (Lq, hd)
            kp = kh_scr[0:Lk, :]                                   # (Lk, hd)
            vp = vh_scr[0:Lk, :]                                   # (Lk, hd)

            energy = jnp.einsum('qd,kd->qk', qp, kp,
                                preferred_element_type=jnp.float32)  # (Lq, Lk), pre-scaled
            s = energy + mask                                      # masked_fill(-1e20)
            s = s - jnp.max(s, axis=-1, keepdims=True)             # stable softmax
            p = jnp.exp(s)
            p = p * pl.reciprocal(jnp.sum(p, axis=-1, keepdims=True), approx=True)
            o_h = jnp.dot(p, vp, preferred_element_type=jnp.float32)  # (Lq, hd)

            # Inverse raw reshape straight into the lane-dense (Lq, E) slab.
            for c in range(heads):
                z_scr[h * rq:(h + 1) * rq, c * hd:(c + 1) * hd] = o_h[c * rq:(c + 1) * rq, :]

        z = z_scr[...]                                             # (Lq, E)
        return jnp.dot(z.astype(jnp.bfloat16), wo_ref[...],
                       preferred_element_type=jnp.float32) + bo_ref[...]

    # ----- self-attention -> residual -> LayerNorm (DecoderBlock.norm) -----
    attn_s = mha(x, x, tmask_ref[0], wq_s_ref, wk_s_ref, wv_s_ref, wo_s_ref, bo_s_ref)
    query = _layer_norm(attn_s + x, g0_ref[...], b0_ref[...])

    # ----- cross-attention (K/V from encoder memory) -> residual -> LayerNorm (norm1) -----
    attn_c = mha(query, enc, smask_ref[0], wq_c_ref, wk_c_ref, wv_c_ref, wo_c_ref, bo_c_ref)
    y = _layer_norm(attn_c + query, g1_ref[...], b1_ref[...])

    # ----- feed-forward -> residual -> LayerNorm (norm2) -----
    hdn = jnp.dot(y.astype(jnp.bfloat16), w1_ref[...],
                  preferred_element_type=jnp.float32) + fb1_ref[...]
    hdn = jnp.maximum(hdn, jnp.float32(0.0))
    ff = jnp.dot(hdn.astype(jnp.bfloat16), w2_ref[...],
                 preferred_element_type=jnp.float32) + fb2_ref[...]
    o_ref[0] = _layer_norm(ff + y, g2_ref[...], b2_ref[...])


def _logits_kernel(x_ref, w_ref, b_ref, o_ref):
    # Final vocab projection; vocab padded to a lane-dense multiple of 128 and tiled.
    x = x_ref[0].astype(jnp.bfloat16)
    o_ref[0] = jnp.dot(x, w_ref[...], preferred_element_type=jnp.float32) + b_ref[...]


# ------------------------------ pallas_call wrappers ------------------------------

def _wspec(a):
    return pl.BlockSpec(a.shape, lambda b: (0,) * a.ndim)


_LAYER_WEIGHT_KEYS = ('wq_s', 'wk_s', 'wv_s', 'wo_s', 'bo_s', 'n0_g', 'n0_b',
                      'wq_c', 'wk_c', 'wv_c', 'wo_c', 'bo_c', 'n1_g', 'n1_b',
                      'ff_w1', 'ff_b1', 'ff_w2', 'ff_b2', 'n2_g', 'n2_b')


def decoder_layer(x, enc, tmask_add, smask_add, lw, *, heads):
    B, Lt, E = x.shape
    Ls = enc.shape[1]
    hd = E // heads
    weights = [lw[k] for k in _LAYER_WEIGHT_KEYS]
    # TODO(synk): at realistic E / L / forward_expansion the layer must additionally be tiled
    # over rows (and the FFN over its hidden dim) to respect v7x's 64 MiB VMEM; at this scale
    # the whole layer working set is a few KiB so full-array blocks are optimal.
    return pl.pallas_call(
        partial(_decoder_layer_kernel, heads=heads),
        out_shape=jax.ShapeDtypeStruct((B, Lt, E), jnp.float32),
        grid=(B,),
        in_specs=[
            pl.BlockSpec((1, Lt, E), lambda b: (b, 0, 0)),
            pl.BlockSpec((1, Ls, E), lambda b: (b, 0, 0)),
            pl.BlockSpec((1, Lt, Lt), lambda b: (b, 0, 0)),
            pl.BlockSpec((1, Lt, Ls), lambda b: (b, 0, 0)),
        ] + [_wspec(w) for w in weights],
        out_specs=pl.BlockSpec((1, Lt, E), lambda b: (b, 0, 0)),
        scratch_shapes=[
            pltpu.VMEM((Lt, hd), jnp.float32),               # per-head Q assembly
            pltpu.VMEM((max(Lt, Ls), hd), jnp.float32),      # per-head K assembly
            pltpu.VMEM((max(Lt, Ls), hd), jnp.float32),      # per-head V assembly
            pltpu.VMEM((Lt, E), jnp.float32),                # lane-dense attention output slab
        ],
        compiler_params=pltpu.CompilerParams(dimension_semantics=("parallel",)),
    )(x, enc, tmask_add, smask_add, *weights)


def logits_proj(x, fc_w_t_pad, fc_b_pad, vocab_size):
    B, L, E = x.shape
    Vp = fc_w_t_pad.shape[1]
    vt = Vp if Vp <= 512 else 512            # bound the VMEM-resident weight tile (v7x-safe)
    out = pl.pallas_call(
        _logits_kernel,
        out_shape=jax.ShapeDtypeStruct((B, L, Vp), jnp.float32),
        grid=(B, Vp // vt),
        in_specs=[
            pl.BlockSpec((1, L, E), lambda b, j: (b, 0, 0)),
            pl.BlockSpec((E, vt), lambda b, j: (0, j)),
            pl.BlockSpec((1, vt), lambda b, j: (0, j)),
        ],
        out_specs=pl.BlockSpec((1, L, vt), lambda b, j: (b, 0, j)),
        compiler_params=pltpu.CompilerParams(
            dimension_semantics=("parallel", "parallel")),
    )(x, fc_w_t_pad, fc_b_pad)
    return out[:, :, :vocab_size]            # strip vocab padding in the wrapper


# ------------------------------ model glue (plain JAX) ------------------------------

def transformer_decoder_forward(prep, X_tokens, enc_out, src_mask, trg_mask,
                                *, heads, vocab_size):
    B, Lt = X_tokens.shape
    Ls = enc_out.shape[1]
    assert Lt % heads == 0 and Ls % heads == 0, \
        "fused kernel assumes sequence lengths divisible by the number of heads"
    # TODO(synk): embedding gather + positional add stay in plain JAX (no Pallas gather win).
    out = prep['emb_table'][X_tokens] + prep['pos_emb'][:Lt, :][None, :, :]  # dropout = identity
    # Additive masks (0 keep / -1e20 drop), permuted once into the kernel's per-head row
    # order (the raw PyTorch head split applies the mask to *split* indices).
    perm_t = jnp.arange(Lt).reshape(Lt // heads, heads).T.reshape(-1)
    perm_s = jnp.arange(Ls).reshape(Ls // heads, heads).T.reshape(-1)
    tmask_add = jnp.where(trg_mask == 0, _NEG, 0.0).astype(jnp.float32)[:, perm_t][:, :, perm_t]
    smask_add = jnp.where(src_mask == 0, _NEG, 0.0).astype(jnp.float32)[:, perm_t][:, :, perm_s]
    for lw in prep['layers']:
        out = decoder_layer(out, enc_out, tmask_add, smask_add, lw, heads=heads)
    return logits_proj(out, prep['fc_w_t_pad'], prep['fc_b_pad'], vocab_size)


# ------------------------------ parameters ------------------------------

def init_params(key, vocab_size, max_seq_len, emb_size, n_layers, heads, forward_expansion):
    hd = emb_size // heads
    assert hd * heads == emb_size

    def rnd(k, shape, scale=0.02):
        return scale * jax.random.normal(k, shape, dtype=jnp.float32)

    keys = jax.random.split(key, 2 + n_layers)
    params = {'emb_table': rnd(keys[0], (vocab_size, emb_size))}

    # sinusoidal position embedding buffer
    position = jnp.arange(max_seq_len, dtype=jnp.float32)[:, None]
    div_term = jnp.exp(jnp.arange(0, emb_size, 2, dtype=jnp.float32)
                       * (-math.log(10000.0) / emb_size))
    pe = jnp.zeros((max_seq_len, emb_size), jnp.float32)
    pe = pe.at[:, 0::2].set(jnp.sin(position * div_term))
    pe = pe.at[:, 1::2].set(jnp.cos(position * div_term))
    params['pos_emb'] = pe

    def attn_params(ks):
        return {'wq': rnd(ks[0], (hd, hd)),
                'wk': rnd(ks[1], (hd, hd)),
                'wv': rnd(ks[2], (hd, hd)),
                'wo': rnd(ks[3], (emb_size, heads * hd)),
                'bo': jnp.zeros((1, emb_size), jnp.float32)}

    layers = []
    for li in range(n_layers):
        lk = jax.random.split(keys[2 + li], 10)
        layers.append({
            'self_attn': attn_params(lk[0:4]),
            'norm_g': jnp.ones((1, emb_size), jnp.float32),
            'norm_b': jnp.zeros((1, emb_size), jnp.float32),
            'cross_attn': attn_params(lk[4:8]),
            'tb_norm1_g': jnp.ones((1, emb_size), jnp.float32),
            'tb_norm1_b': jnp.zeros((1, emb_size), jnp.float32),
            'ff_w1': rnd(lk[8], (forward_expansion * emb_size, emb_size)),
            'ff_b1': jnp.zeros((1, forward_expansion * emb_size), jnp.float32),
            'ff_w2': rnd(lk[9], (emb_size, forward_expansion * emb_size)),
            'ff_b2': jnp.zeros((1, emb_size), jnp.float32),
            'tb_norm2_g': jnp.ones((1, emb_size), jnp.float32),
            'tb_norm2_b': jnp.zeros((1, emb_size), jnp.float32),
        })
    params['layers'] = layers

    fk = jax.random.split(keys[1], 2)
    params['fc_w'] = rnd(fk[0], (vocab_size, emb_size))
    params['fc_b'] = jnp.zeros((1, vocab_size), jnp.float32)
    return params


def prepare_params(params, heads):
    """Pre-transpose / pre-cast weights for the kernels.

    Per-head (hd,hd) q/k/v weights become block-diagonal (E,E) bf16 matrices so the kernel
    projects all heads with one dot; 1/sqrt(hd) is folded into the Q weights.
    """
    E = params['emb_table'].shape[1]
    hd = E // heads
    V = params['fc_w'].shape[0]
    inv_scale = 1.0 / math.sqrt(float(hd))
    eye = jnp.eye(heads, dtype=jnp.float32)

    def block_diag(w_t):                      # (hd, hd) -> (E, E), w_t on the diagonal blocks
        return jnp.kron(eye, w_t)

    def prep_attn(a, tag):
        return {
            f'wq_{tag}': block_diag(a['wq'].T * inv_scale).astype(jnp.bfloat16),
            f'wk_{tag}': block_diag(a['wk'].T).astype(jnp.bfloat16),
            f'wv_{tag}': block_diag(a['wv'].T).astype(jnp.bfloat16),
            f'wo_{tag}': a['wo'].T.astype(jnp.bfloat16),
            f'bo_{tag}': a['bo'],
        }

    layers = []
    for lp in params['layers']:
        lw = {}
        lw.update(prep_attn(lp['self_attn'], 's'))
        lw.update(prep_attn(lp['cross_attn'], 'c'))
        lw.update({
            'n0_g': lp['norm_g'], 'n0_b': lp['norm_b'],
            'n1_g': lp['tb_norm1_g'], 'n1_b': lp['tb_norm1_b'],
            'ff_w1': lp['ff_w1'].T.astype(jnp.bfloat16), 'ff_b1': lp['ff_b1'],
            'ff_w2': lp['ff_w2'].T.astype(jnp.bfloat16), 'ff_b2': lp['ff_b2'],
            'n2_g': lp['tb_norm2_g'], 'n2_b': lp['tb_norm2_b'],
        })
        layers.append(lw)

    Vp = ((V + 127) // 128) * 128
    if Vp > 512:
        Vp = ((V + 511) // 512) * 512
    fc_w_t = params['fc_w'].T                                   # (E, V)
    fc_w_t_pad = jnp.zeros((E, Vp), jnp.float32).at[:, :V].set(fc_w_t).astype(jnp.bfloat16)
    fc_b_pad = jnp.zeros((1, Vp), jnp.float32).at[:, :V].set(params['fc_b'])

    return {'emb_table': params['emb_table'],
            'pos_emb': params['pos_emb'],
            'layers': layers,
            'fc_w_t_pad': fc_w_t_pad,
            'fc_b_pad': fc_b_pad}


# ------------------------------ plain-JAX reference (PyTorch transcription) ------------------------------

def reference_forward(params, X_tokens, enc_out, src_mask, trg_mask, *, heads):
    emb = params['emb_table'][X_tokens] + params['pos_emb'][:X_tokens.shape[1]][None]

    def mha(values, keys, queries, mask, a):
        B, vl, E = values.shape
        kl, ql = keys.shape[1], queries.shape[1]
        hd = E // heads
        v = values.reshape(B, heads, vl, hd) @ a['wv'].T
        k = keys.reshape(B, heads, kl, hd) @ a['wk'].T
        q = queries.reshape(B, heads, ql, hd) @ a['wq'].T
        energy = jnp.einsum('bhqd,bhkd->bhqk', q, k)
        energy = jnp.where(mask[:, None, :, :] == 0, _NEG, energy)
        att = jax.nn.softmax(energy / (hd ** 0.5), axis=-1)
        out = jnp.einsum('bhqk,bhkd->bhqd', att, v).reshape(B, ql, heads * hd)
        return out @ a['wo'].T + a['bo']

    def ln(x, g, b):
        m = jnp.mean(x, -1, keepdims=True)
        va = jnp.mean((x - m) ** 2, -1, keepdims=True)
        return (x - m) / jnp.sqrt(va + _LN_EPS) * g + b

    out = emb
    for lp in params['layers']:
        att = mha(out, out, out, trg_mask, lp['self_attn'])
        query = ln(att + out, lp['norm_g'], lp['norm_b'])
        att2 = mha(enc_out, enc_out, query, src_mask, lp['cross_attn'])
        x1 = ln(att2 + query, lp['tb_norm1_g'], lp['tb_norm1_b'])
        ff = jnp.maximum(x1 @ lp['ff_w1'].T + lp['ff_b1'], 0.0) @ lp['ff_w2'].T + lp['ff_b2']
        out = ln(ff + x1, lp['tb_norm2_g'], lp['tb_norm2_b'])
    return out @ params['fc_w'].T + params['fc_b']


# ------------------------------ main ------------------------------

if __name__ == "__main__":
    vocab_size, max_seq_len, emb_size = 50, 16, 32
    n_layers, heads, forward_expansion = 2, 4, 2
    B, Lt, Ls = 2, 8, 8

    key = jax.random.PRNGKey(0)
    k_params, k_tok, k_enc = jax.random.split(key, 3)

    params = init_params(k_params, vocab_size, max_seq_len, emb_size,
                         n_layers, heads, forward_expansion)
    prep = prepare_params(params, heads)

    X = jax.random.randint(k_tok, (B, Lt), 0, vocab_size)                  # token ids
    enc_out = jax.random.normal(k_enc, (B, Ls, emb_size), dtype=jnp.float32)
    trg_mask = jnp.tile(jnp.tril(jnp.ones((Lt, Lt), jnp.float32))[None], (B, 1, 1))
    src_mask = jnp.ones((B, Lt, Ls), jnp.float32)

    fwd = jax.jit(partial(transformer_decoder_forward,
                          heads=heads, vocab_size=vocab_size))
    logits = jax.block_until_ready(fwd(prep, X, enc_out, src_mask, trg_mask))

    assert logits.shape == (B, Lt, vocab_size)
    assert bool(jnp.all(jnp.isfinite(logits)))

    # Correctness check against a plain-JAX (f32) transcription of the PyTorch module.
    ref = reference_forward(params, X, enc_out, src_mask, trg_mask, heads=heads)
    max_err = float(jnp.max(jnp.abs(logits - ref)))
    assert max_err < 5e-2, f"max abs error vs reference = {max_err}"

    print("KERNEL_OK")
</pallas_src>

<mosaic_0001>
module attributes {stable_mosaic.version = 11 : i64} {
  func.func @_logits_kernel(%arg0: i32, %arg1: i32, %arg2: memref<1x8x32xf32, #tpu.memory_space<vmem>>, %arg3: memref<32x128xbf16, #tpu.memory_space<vmem>>, %arg4: memref<1x128xf32, #tpu.memory_space<vmem>>, %arg5: memref<1x8x128xf32, #tpu.memory_space<vmem>>) attributes {dimension_semantics = [#tpu.dimension_semantics<parallel>, #tpu.dimension_semantics<parallel>], iteration_bounds = array<i64: 2, 1>, scalar_prefetch = 0 : i64, scratch_operands = 0 : i64, tpu.core_type = #tpu.core_type<tc>, window_params = [{transform_indices = @transform_0, window_bounds = array<i64: 1, 8, 32>}, {transform_indices = @transform_1, window_bounds = array<i64: 32, 128>}, {transform_indices = @transform_2, window_bounds = array<i64: 1, 128>}, {transform_indices = @transform_3, window_bounds = array<i64: 1, 8, 128>}]} {
    %c0 = arith.constant 0 : index
    %c0_0 = arith.constant 0 : index
    %c0_1 = arith.constant 0 : index
    %0 = vector.load %arg2[%c0, %c0_0, %c0_1] : memref<1x8x32xf32, #tpu.memory_space<vmem>>, vector<1x8x32xf32>
    %1 = vector.shape_cast %0 : vector<1x8x32xf32> to vector<8x32xf32>
    %2 = arith.truncf %1 : vector<8x32xf32> to vector<8x32xbf16>
    %c0_2 = arith.constant 0 : index
    %c0_3 = arith.constant 0 : index
    %3 = vector.load %arg3[%c0_2, %c0_3] : memref<32x128xbf16, #tpu.memory_space<vmem>>, vector<32x128xbf16>
    %cst = arith.constant dense<0.000000e+00> : vector<8x128xf32>
    %4 = tpu.matmul %2, %3, %cst {dimension_numbers = #tpu.dot_dimension_numbers<[1], [0], [0], [1], [0, 0, 1, 1], [], []>} : vector<8x32xbf16>, vector<32x128xbf16>, vector<8x128xf32> -> vector<8x128xf32>
    %c0_4 = arith.constant 0 : index
    %c0_5 = arith.constant 0 : index
    %5 = vector.load %arg4[%c0_4, %c0_5] : memref<1x128xf32, #tpu.memory_space<vmem>>, vector<1x128xf32>
    %6 = vector.broadcast %5 : vector<1x128xf32> to vector<8x128xf32>
    %7 = arith.addf %4, %6 : vector<8x128xf32>
    %c0_6 = arith.constant 0 : index
    %c0_7 = arith.constant 0 : index
    %c0_8 = arith.constant 0 : index
    %8 = vector.load %arg5[%c0_6, %c0_7, %c0_8] : memref<1x8x128xf32, #tpu.memory_space<vmem>>, vector<1x8x128xf32>
    %9 = vector.shape_cast %8 : vector<1x8x128xf32> to vector<8x128xf32>
    %10 = vector.shape_cast %7 : vector<8x128xf32> to vector<1x8x128xf32>
    tpu.vector_store %arg5[%c0_6, %c0_7, %c0_8], %10 {strides = array<i32>} : memref<1x8x128xf32, #tpu.memory_space<vmem>>, vector<1x8x128xf32>,
    return
  }
  func.func @transform_0(%arg0: i32, %arg1: i32) -> (i32, i32, i32) {
    %c0_i32 = arith.constant 0 : i32
    %c0_i32_0 = arith.constant 0 : i32
    %c0_i32_1 = arith.constant 0 : i32
    return %arg0, %c0_i32, %c0_i32_0 : i32, i32, i32
  }
  func.func @transform_1(%arg0: i32, %arg1: i32) -> (i32, i32) {
    %c0_i32 = arith.constant 0 : i32
    %c0_i32_0 = arith.constant 0 : i32
    return %c0_i32, %arg1 : i32, i32
  }
  func.func @transform_2(%arg0: i32, %arg1: i32) -> (i32, i32) {
    %c0_i32 = arith.constant 0 : i32
    %c0_i32_0 = arith.constant 0 : i32
    return %c0_i32, %arg1 : i32, i32
  }
  func.func @transform_3(%arg0: i32, %arg1: i32) -> (i32, i32, i32) {
    %c0_i32 = arith.constant 0 : i32
    %c0_i32_0 = arith.constant 0 : i32
    return %arg0, %c0_i32, %arg1 : i32, i32, i32
  }
}

module attributes {stable_mosaic.version = 11 : i64} {
  func.func @_decoder_layer_kernel(%arg0: i32, %arg1: memref<1x8x32xf32, #tpu.memory_space<vmem>>, %arg2: memref<1x8x32xf32, #tpu.memory_space<vmem>>, %arg3: memref<1x8x8xf32, #tpu.memory_space<vmem>>, %arg4: memref<1x8x8xf32, #tpu.memory_space<vmem>>, %arg5: memref<32x32xbf16, #tpu.memory_space<vmem>>, %arg6: memref<32x32xbf16, #tpu.memory_space<vmem>>, %arg7: memref<32x32xbf16, #tpu.memory_space<vmem>>, %arg8: memref<32x32xbf16, #tpu.memory_space<vmem>>, %arg9: memref<1x32xf32, #tpu.memory_space<vmem>>, %arg10: memref<1x32xf32, #tpu.memory_space<vmem>>, %arg11: memref<1x32xf32, #tpu.memory_space<vmem>>, %arg12: memref<32x32xbf16, #tpu.memory_space<vmem>>, %arg13: memref<32x32xbf16, #tpu.memory_space<vmem>>, %arg14: memref<32x32xbf16, #tpu.memory_space<vmem>>, %arg15: memref<32x32xbf16, #tpu.memory_space<vmem>>, %arg16: memref<1x32xf32, #tpu.memory_space<vmem>>, %arg17: memref<1x32xf32, #tpu.memory_space<vmem>>, %arg18: memref<1x32xf32, #tpu.memory_space<vmem>>, %arg19: memref<32x64xbf16, #tpu.memory_space<vmem>>, %arg20: memref<1x64xf32, #tpu.memory_space<vmem>>, %arg21: memref<64x32xbf16, #tpu.memory_space<vmem>>, %arg22: memref<1x32xf32, #tpu.memory_space<vmem>>, %arg23: memref<1x32xf32, #tpu.memory_space<vmem>>, %arg24: memref<1x32xf32, #tpu.memory_space<vmem>>, %arg25: memref<1x8x32xf32, #tpu.memory_space<vmem>>, %arg26: memref<8x8xf32, #tpu.memory_space<vmem>>, %arg27: memref<8x8xf32, #tpu.memory_space<vmem>>, %arg28: memref<8x8xf32, #tpu.memory_space<vmem>>, %arg29: memref<8x32xf32, #tpu.memory_space<vmem>>) attributes {dimension_semantics = [#tpu.dimension_semantics<parallel>], iteration_bounds = array<i64: 2>, scalar_prefetch = 0 : i64, scratch_operands = 4 : i64, tpu.core_type = #tpu.core_type<tc>, window_params = [{transform_indices = @transform_0, window_bounds = array<i64: 1, 8, 32>}, {transform_indices = @transform_1, window_bounds = array<i64: 1, 8, 32>}, {transform_indices = @transform_2, window_bounds = array<i64: 1, 8, 8>}, {transform_indices = @transform_3, window_bounds = array<i64: 1, 8, 8>}, {pipeline_mode = #tpu.pipeline_mode<synchronous>, transform_indices = @transform_4, window_bounds = array<i64: 32, 32>}, {pipeline_mode = #tpu.pipeline_mode<synchronous>, transform_indices = @transform_5, window_bounds = array<i64: 32, 32>}, {pipeline_mode = #tpu.pipeline_mode<synchronous>, transform_indices = @transform_6, window_bounds = array<i64: 32, 32>}, {pipeline_mode = #tpu.pipeline_mode<synchronous>, transform_indices = @transform_7, window_bounds = array<i64: 32, 32>}, {pipeline_mode = #tpu.pipeline_mode<synchronous>, transform_indices = @transform_8, window_bounds = array<i64: 1, 32>}, {pipeline_mode = #tpu.pipeline_mode<synchronous>, transform_indices = @transform_9, window_bounds = array<i64: 1, 32>}, {pipeline_mode = #tpu.pipeline_mode<synchronous>, transform_indices = @transform_10, window_bounds = array<i64: 1, 32>}, {pipeline_mode = #tpu.pipeline_mode<synchronous>, transform_indices = @transform_11, window_bounds = array<i64: 32, 32>}, {pipeline_mode = #tpu.pipeline_mode<synchronous>, transform_indices = @transform_12, window_bounds = array<i64: 32, 32>}, {pipeline_mode = #tpu.pipeline_mode<synchronous>, transform_indices = @transform_13, window_bounds = array<i64: 32, 32>}, {pipeline_mode = #tpu.pipeline_mode<synchronous>, transform_indices = @transform_14, window_bounds = array<i64: 32, 32>}, {pipeline_mode = #tpu.pipeline_mode<synchronous>, transform_indices = @transform_15, window_bounds = array<i64: 1, 32>}, {pipeline_mode = #tpu.pipeline_mode<synchronous>, transform_indices = @transform_16, window_bounds = array<i64: 1, 32>}, {pipeline_mode = #tpu.pipeline_mode<synchronous>, transform_indices = @transform_17, window_bounds = array<i64: 1, 32>}, {pipeline_mode = #tpu.pipeline_mode<synchronous>, transform_indices = @transform_18, window_bounds = array<i64: 32, 64>}, {pipeline_mode = #tpu.pipeline_mode<synchronous>, transform_indices = @transform_19, window_bounds = array<i64: 1, 64>}, {pipeline_mode = #tpu.pipeline_mode<synchronous>, transform_indices = @transform_20, window_bounds = array<i64: 64, 32>}, {pipeline_mode = #tpu.pipeline_mode<synchronous>, transform_indices = @transform_21, window_bounds = array<i64: 1, 32>}, {pipeline_mode = #tpu.pipeline_mode<synchronous>, transform_indices = @transform_22, window_bounds = array<i64: 1, 32>}, {pipeline_mode = #tpu.pipeline_mode<synchronous>, transform_indices = @transform_23, window_bounds = array<i64: 1, 32>}, {transform_indices = @transform_24, window_bounds = array<i64: 1, 8, 32>}]} {
    %c0 = arith.constant 0 : index
    %c0_0 = arith.constant 0 : index
    %c0_1 = arith.constant 0 : index
    %0 = vector.load %arg1[%c0, %c0_0, %c0_1] : memref<1x8x32xf32, #tpu.memory_space<vmem>>, vector<1x8x32xf32>
    %1 = vector.shape_cast %0 : vector<1x8x32xf32> to vector<8x32xf32>
    %c0_2 = arith.constant 0 : index
    %c0_3 = arith.constant 0 : index
    %c0_4 = arith.constant 0 : index
    %2 = vector.load %arg2[%c0_2, %c0_3, %c0_4] : memref<1x8x32xf32, #tpu.memory_space<vmem>>, vector<1x8x32xf32>
    %3 = vector.shape_cast %2 : vector<1x8x32xf32> to vector<8x32xf32>
    %c0_5 = arith.constant 0 : index
    %c0_6 = arith.constant 0 : index
    %c0_7 = arith.constant 0 : index
    %4 = vector.load %arg3[%c0_5, %c0_6, %c0_7] : memref<1x8x8xf32, #tpu.memory_space<vmem>>, vector<1x8x8xf32>
    %5 = vector.shape_cast %4 : vector<1x8x8xf32> to vector<8x8xf32>
    %6 = arith.truncf %1 : vector<8x32xf32> to vector<8x32xbf16>
    %c0_8 = arith.constant 0 : index
    %c0_9 = arith.constant 0 : index
    %7 = vector.load %arg5[%c0_8, %c0_9] : memref<32x32xbf16, #tpu.memory_space<vmem>>, vector<32x32xbf16>
    %cst = arith.constant dense<0.000000e+00> : vector<8x32xf32>
    %8 = tpu.matmul %6, %7, %cst {dimension_numbers = #tpu.dot_dimension_numbers<[1], [0], [0], [1], [0, 0, 1, 1], [], []>} : vector<8x32xbf16>, vector<32x32xbf16>, vector<8x32xf32> -> vector<8x32xf32>
    %9 = arith.truncf %1 : vector<8x32xf32> to vector<8x32xbf16>
    %c0_10 = arith.constant 0 : index
    %c0_11 = arith.constant 0 : index
    %10 = vector.load %arg6[%c0_10, %c0_11] : memref<32x32xbf16, #tpu.memory_space<vmem>>, vector<32x32xbf16>
    %cst_12 = arith.constant dense<0.000000e+00> : vector<8x32xf32>
    %11 = tpu.matmul %9, %10, %cst_12 {dimension_numbers = #tpu.dot_dimension_numbers<[1], [0], [0], [1], [0, 0, 1, 1], [], []>} : vector<8x32xbf16>, vector<32x32xbf16>, vector<8x32xf32> -> vector<8x32xf32>
    %12 = arith.truncf %1 : vector<8x32xf32> to vector<8x32xbf16>
    %c0_13 = arith.constant 0 : index
    %c0_14 = arith.constant 0 : index
    %13 = vector.load %arg7[%c0_13, %c0_14] : memref<32x32xbf16, #tpu.memory_space<vmem>>, vector<32x32xbf16>
    %cst_15 = arith.constant dense<0.000000e+00> : vector<8x32xf32>
    %14 = tpu.matmul %12, %13, %cst_15 {dimension_numbers = #tpu.dot_dimension_numbers<[1], [0], [0], [1], [0, 0, 1, 1], [], []>} : vector<8x32xbf16>, vector<32x32xbf16>, vector<8x32xf32> -> vector<8x32xf32>
    %15 = vector.extract_strided_slice %8 {offsets = [0, 0], sizes = [2, 8], strides = [1, 1]} : vector<8x32xf32> to vector<2x8xf32>
    %c0_16 = arith.constant 0 : index
    %c0_17 = arith.constant 0 : index
    %16 = vector.load %arg26[%c0_16, %c0_17] : memref<8x8xf32, #tpu.memory_space<vmem>>, vector<2x8xf32>
    tpu.vector_store %arg26[%c0_16, %c0_17], %15 {strides = array<i32>} : memref<8x8xf32, #tpu.memory_space<vmem>>, vector<2x8xf32>,
    %17 = vector.extract_strided_slice %11 {offsets = [0, 0], sizes = [2, 8], strides = [1, 1]} : vector<8x32xf32> to vector<2x8xf32>
    %c0_18 = arith.constant 0 : index
    %c0_19 = arith.constant 0 : index
    %18 = vector.load %arg27[%c0_18, %c0_19] : memref<8x8xf32, #tpu.memory_space<vmem>>, vector<2x8xf32>
    tpu.vector_store %arg27[%c0_18, %c0_19], %17 {strides = array<i32>} : memref<8x8xf32, #tpu.memory_space<vmem>>, vector<2x8xf32>,
    %19 = vector.extract_strided_slice %14 {offsets = [0, 0], sizes = [2, 8], strides = [1, 1]} : vector<8x32xf32> to vector<2x8xf32>
    %c0_20 = arith.constant 0 : index
    %c0_21 = arith.constant 0 : index
    %20 = vector.load %arg28[%c0_20, %c0_21] : memref<8x8xf32, #tpu.memory_space<vmem>>, vector<2x8xf32>
    tpu.vector_store %arg28[%c0_20, %c0_21], %19 {strides = array<i32>} : memref<8x8xf32, #tpu.memory_space<vmem>>, vector<2x8xf32>,
    %21 = vector.extract_strided_slice %8 {offsets = [0, 8], sizes = [2, 8], strides = [1, 1]} : vector<8x32xf32> to vector<2x8xf32>
    %c2 = arith.constant 2 : index
    %c0_22 = arith.constant 0 : index
    %22 = vector.load %arg26[%c2, %c0_22] : memref<8x8xf32, #tpu.memory_space<vmem>>, vector<2x8xf32>
    tpu.vector_store %arg26[%c2, %c0_22], %21 {strides = array<i32>} : memref<8x8xf32, #tpu.memory_space<vmem>>, vector<2x8xf32>,
    %23 = vector.extract_strided_slice %11 {offsets = [0, 8], sizes = [2, 8], strides = [1, 1]} : vector<8x32xf32> to vector<2x8xf32>
    %c2_23 = arith.constant 2 : index
    %c0_24 = arith.constant 0 : index
    %24 = vector.load %arg27[%c2_23, %c0_24] : memref<8x8xf32, #tpu.memory_space<vmem>>, vector<2x8xf32>
    tpu.vector_store %arg27[%c2_23, %c0_24], %23 {strides = array<i32>} : memref<8x8xf32, #tpu.memory_space<vmem>>, vector<2x8xf32>,
    %25 = vector.extract_strided_slice %14 {offsets = [0, 8], sizes = [2, 8], strides = [1, 1]} : vector<8x32xf32> to vector<2x8xf32>
    %c2_25 = arith.constant 2 : index
    %c0_26 = arith.constant 0 : index
    %26 = vector.load %arg28[%c2_25, %c0_26] : memref<8x8xf32, #tpu.memory_space<vmem>>, vector<2x8xf32>
    tpu.vector_store %arg28[%c2_25, %c0_26], %25 {strides = array<i32>} : memref<8x8xf32, #tpu.memory_space<vmem>>, vector<2x8xf32>,
    %27 = vector.extract_strided_slice %8 {offsets = [0, 16], sizes = [2, 8], strides = [1, 1]} : vector<8x32xf32> to vector<2x8xf32>
    %c4 = arith.constant 4 : index
    %c0_27 = arith.constant 0 : index
    %28 = vector.load %arg26[%c4, %c0_27] : memref<8x8xf32, #tpu.memory_space<vmem>>, vector<2x8xf32>
    tpu.vector_store %arg26[%c4, %c0_27], %27 {strides = array<i32>} : memref<8x8xf32, #tpu.memory_space<vmem>>, vector<2x8xf32>,
    %29 = vector.extract_strided_slice %11 {offsets = [0, 16], sizes = [2, 8], strides = [1, 1]} : vector<8x32xf32> to vector<2x8xf32>
    %c4_28 = arith.constant 4 : index
    %c0_29 = arith.constant 0 : index
    %30 = vector.load %arg27[%c4_28, %c0_29] : memref<8x8xf32, #tpu.memory_space<vmem>>, vector<2x8xf32>
    tpu.vector_store %arg27[%c4_28, %c0_29], %29 {strides = array<i32>} : memref<8x8xf32, #tpu.memory_space<vmem>>, vector<2x8xf32>,
    %31 = vector.extract_strided_slice %14 {offsets = [0, 16], sizes = [2, 8], strides = [1, 1]} : vector<8x32xf32> to vector<2x8xf32>
    %c4_30 = arith.constant 4 : index
    %c0_31 = arith.constant 0 : index
    %32 = vector.load %arg28[%c4_30, %c0_31] : memref<8x8xf32, #tpu.memory_space<vmem>>, vector<2x8xf32>
    tpu.vector_store %arg28[%c4_30, %c0_31], %31 {strides = array<i32>} : memref<8x8xf32, #tpu.memory_space<vmem>>, vector<2x8xf32>,
    %33 = vector.extract_strided_slice %8 {offsets = [0, 24], sizes = [2, 8], strides = [1, 1]} : vector<8x32xf32> to vector<2x8xf32>
    %c6 = arith.constant 6 : index
    %c0_32 = arith.constant 0 : index
    %34 = vector.load %arg26[%c6, %c0_32] : memref<8x8xf32, #tpu.memory_space<vmem>>, vector<2x8xf32>
    tpu.vector_store %arg26[%c6, %c0_32], %33 {strides = array<i32>} : memref<8x8xf32, #tpu.memory_space<vmem>>, vector<2x8xf32>,
    %35 = vector.extract_strided_slice %11 {offsets = [0, 24], sizes = [2, 8], strides = [1, 1]} : vector<8x32xf32> to vector<2x8xf32>
    %c6_33 = arith.constant 6 : index
    %c0_34 = arith.constant 0 : index
    %36 = vector.load %arg27[%c6_33, %c0_34] : memref<8x8xf32, #tpu.memory_space<vmem>>, vector<2x8xf32>
    tpu.vector_store %arg27[%c6_33, %c0_34], %35 {strides = array<i32>} : memref<8x8xf32, #tpu.memory_space<vmem>>, vector<2x8xf32>,
    %37 = vector.extract_strided_slice %14 {offsets = [0, 24], sizes = [2, 8], strides = [1, 1]} : vector<8x32xf32> to vector<2x8xf32>
    %c6_35 = arith.constant 6 : index
    %c0_36 = arith.constant 0 : index
    %38 = vector.load %arg28[%c6_35, %c0_36] : memref<8x8xf32, #tpu.memory_space<vmem>>, vector<2x8xf32>
    tpu.vector_store %arg28[%c6_35, %c0_36], %37 {strides = array<i32>} : memref<8x8xf32, #tpu.memory_space<vmem>>, vector<2x8xf32>,
    %c0_37 = arith.constant 0 : index
    %c0_38 = arith.constant 0 : index
    %39 = vector.load %arg26[%c0_37, %c0_38] : memref<8x8xf32, #tpu.memory_space<vmem>>, vector<8x8xf32>
    %c0_39 = arith.constant 0 : index
    %c0_40 = arith.constant 0 : index
    %40 = vector.load %arg27[%c0_39, %c0_40] : memref<8x8xf32, #tpu.memory_space<vmem>>, vector<8x8xf32>
    %c0_41 = arith.constant 0 : index
    %c0_42 = arith.constant 0 : index
    %41 = vector.load %arg28[%c0_41, %c0_42] : memref<8x8xf32, #tpu.memory_space<vmem>>, vector<8x8xf32>
    "tpu.trace_start"() <{level = 10 : i32, message = "qd,kd->qk"}> : () -> ()
    %cst_43 = arith.constant dense<0.000000e+00> : vector<8x8xf32>
    %42 = tpu.matmul %39, %40, %cst_43 {dimension_numbers = #tpu.dot_dimension_numbers<[1], [1], [0], [0], [0, 0, 1, 0], [], []>} : vector<8x8xf32>, vector<8x8xf32>, vector<8x8xf32> -> vector<8x8xf32>
    "tpu.trace_stop"() : () -> ()
    %43 = arith.addf %42, %5 : vector<8x8xf32>
    %cst_44 = arith.constant dense<0xFF800000> : vector<8xf32>
    %44 = vector.multi_reduction <maximumf>, %43, %cst_44 [1] : vector<8x8xf32> to vector<8xf32>
    %45 = vector.shape_cast %44 : vector<8xf32> to vector<8x1xf32>
    %46 = vector.broadcast %45 : vector<8x1xf32> to vector<8x8xf32>
    %47 = arith.subf %43, %46 : vector<8x8xf32>
    %48 = math.exp %47 : vector<8x8xf32>
    %cst_45 = arith.constant dense<0.000000e+00> : vector<8xf32>
    %49 = vector.multi_reduction <add>, %48, %cst_45 [1] : vector<8x8xf32> to vector<8xf32>
    %50 = vector.shape_cast %49 : vector<8xf32> to vector<8x1xf32>
    %51 = tpu.reciprocal %50 {approx = true} : vector<8x1xf32> -> vector<8x1xf32>
    %52 = vector.broadcast %51 : vector<8x1xf32> to vector<8x8xf32>
    %53 = arith.mulf %48, %52 : vector<8x8xf32>
    %cst_46 = arith.constant dense<0.000000e+00> : vector<8x8xf32>
    %54 = tpu.matmul %53, %41, %cst_46 {dimension_numbers = #tpu.dot_dimension_numbers<[1], [0], [0], [1], [0, 0, 1, 1], [], []>} : vector<8x8xf32>, vector<8x8xf32>, vector<8x8xf32> -> vector<8x8xf32>
    %55 = vector.extract_strided_slice %54 {offsets = [0, 0], sizes = [2, 8], strides = [1, 1]} : vector<8x8xf32> to vector<2x8xf32>
    %c0_47 = arith.constant 0 : index
    %c0_48 = arith.constant 0 : index
    %56 = vector.load %arg29[%c0_47, %c0_48] : memref<8x32xf32, #tpu.memory_space<vmem>>, vector<2x8xf32>
    tpu.vector_store %arg29[%c0_47, %c0_48], %55 {strides = array<i32>} : memref<8x32xf32, #tpu.memory_space<vmem>>, vector<2x8xf32>,
    %57 = vector.extract_strided_slice %54 {offsets = [2, 0], sizes = [2, 8], strides = [1, 1]} : vector<8x8xf32> to vector<2x8xf32>
    %c0_49 = arith.constant 0 : index
    %c8 = arith.constant 8 : index
    %58 = vector.load %arg29[%c0_49, %c8] : memref<8x32xf32, #tpu.memory_space<vmem>>, vector<2x8xf32>
    tpu.vector_store %arg29[%c0_49, %c8], %57 {strides = array<i32>} : memref<8x32xf32, #tpu.memory_space<vmem>>, vector<2x8xf32>,
    %59 = vector.extract_strided_slice %54 {offsets = [4, 0], sizes = [2, 8], strides = [1, 1]} : vector<8x8xf32> to vector<2x8xf32>
    %c0_50 = arith.constant 0 : index
    %c16 = arith.constant 16 : index
    %60 = vector.load %arg29[%c0_50, %c16] : memref<8x32xf32, #tpu.memory_space<vmem>>, vector<2x8xf32>
    tpu.vector_store %arg29[%c0_50, %c16], %59 {strides = array<i32>} : memref<8x32xf32, #tpu.memory_space<vmem>>, vector<2x8xf32>,
    %61 = vector.extract_strided_slice %54 {offsets = [6, 0], sizes = [2, 8], strides = [1, 1]} : vector<8x8xf32> to vector<2x8xf32>
    %c0_51 = arith.constant 0 : index
    %c24 = arith.constant 24 : index
    %62 = vector.load %arg29[%c0_51, %c24] : memref<8x32xf32, #tpu.memory_space<vmem>>, vector<2x8xf32>
    tpu.vector_store %arg29[%c0_51, %c24], %61 {strides = array<i32>} : memref<8x32xf32, #tpu.memory_space<vmem>>, vector<2x8xf32>,
    %63 = vector.extract_strided_slice %8 {offsets = [2, 0], sizes = [2, 8], strides = [1, 1]} : vector<8x32xf32> to vector<2x8xf32>
    %c0_52 = arith.constant 0 : index
    %c0_53 = arith.constant 0 : index
    %64 = vector.load %arg26[%c0_52, %c0_53] : memref<8x8xf32, #tpu.memory_space<vmem>>, vector<2x8xf32>
    tpu.vector_store %arg26[%c0_52, %c0_53], %63 {strides = array<i32>} : memref<8x8xf32, #tpu.memory_space<vmem>>, vector<2x8xf32>,
    %65 = vector.extract_strided_slice %11 {offsets = [2, 0], sizes = [2, 8], strides = [1, 1]} : vector<8x32xf32> to vector<2x8xf32>
    %c0_54 = arith.constant 0 : index
    %c0_55 = arith.constant 0 : index
    %66 = vector.load %arg27[%c0_54, %c0_55] : memref<8x8xf32, #tpu.memory_space<vmem>>, vector<2x8xf32>
    tpu.vector_store %arg27[%c0_54, %c0_55], %65 {strides = array<i32>} : memref<8x8xf32, #tpu.memory_space<vmem>>, vector<2x8xf32>,
    %67 = vector.extract_strided_slice %14 {offsets = [2, 0], sizes = [2, 8], strides = [1, 1]} : vector<8x32xf32> to vector<2x8xf32>
    %c0_56 = arith.constant 0 : index
    %c0_57 = arith.constant 0 : index
    %68 = vector.load %arg28[%c0_56, %c0_57] : memref<8x8xf32, #tpu.memory_space<vmem>>, vector<2x8xf32>
    tpu.vector_store %arg28[%c0_56, %c0_57], %67 {strides = array<i32>} : memref<8x8xf32, #tpu.memory_space<vmem>>, vector<2x8xf32>,
    %69 = vector.extract_strided_slice %8 {offsets = [2, 8], sizes = [2, 8], strides = [1, 1]} : vector<8x32xf32> to vector<2x8xf32>
    %c2_58 = arith.constant 2 : index
    %c0_59 = arith.constant 0 : index
    %70 = vector.load %arg26[%c2_58, %c0_59] : memref<8x8xf32, #tpu.memory_space<vmem>>, vector<2x8xf32>
    tpu.vector_store %arg26[%c2_58, %c0_59], %69 {strides = array<i32>} : memref<8x8xf32, #tpu.memory_space<vmem>>, vector<2x8xf32>,
    %71 = vector.extract_strided_slice %11 {offsets = [2, 8], sizes = [2, 8], strides = [1, 1]} : vector<8x32xf32> to vector<2x8xf32>
    %c2_60 = arith.constant 2 : index
    %c0_61 = arith.constant 0 : index
    %72 = vector.load %arg27[%c2_60, %c0_61] : memref<8x8xf32, #tpu.memory_space<vmem>>, vector<2x8xf32>
    tpu.vector_store %arg27[%c2_60, %c0_61], %71 {strides = array<i32>} : memref<8x8xf32, #tpu.memory_space<vmem>>, vector<2x8xf32>,
    %73 = vector.extract_strided_slice %14 {offsets = [2, 8], sizes = [2, 8], strides = [1, 1]} : vector<8x32xf32> to vector<2x8xf32>
    %c2_62 = arith.constant 2 : index
    %c0_63 = arith.constant 0 : index
    %74 = vector.load %arg28[%c2_62, %c0_63] : memref<8x8xf32, #tpu.memory_space<vmem>>, vector<2x8xf32>
    tpu.vector_store %arg28[%c2_62, %c0_63], %73 {strides = array<i32>} : memref<8x8xf32, #tpu.memory_space<vmem>>, vector<2x8xf32>,
    %75 = vector.extract_strided_slice %8 {offsets = [2, 16], sizes = [2, 8], strides = [1, 1]} : vector<8x32xf32> to vector<2x8xf32>
    %c4_64 = arith.constant 4 : index
    %c0_65 = arith.constant 0 : index
    %76 = vector.load %arg26[%c4_64, %c0_65] : memref<8x8xf32, #tpu.memory_space<vmem>>, vector<2x8xf32>
    tpu.vector_store %arg26[%c4_64, %c0_65], %75 {strides = array<i32>} : memref<8x8xf32, #tpu.memory_space<vmem>>, vector<2x8xf32>,
    %77 = vector.extract_strided_slice %11 {offsets = [2, 16], sizes = [2, 8], strides = [1, 1]} : vector<8x32xf32> to vector<2x8xf32>
    %c4_66 = arith.constant 4 : index
    %c0_67 = arith.constant 0 : index
    %78 = vector.load %arg27[%c4_66, %c0_67] : memref<8x8xf32, #tpu.memory_space<vmem>>, vector<2x8xf32>
    tpu.vector_store %arg27[%c4_66, %c0_67], %77 {strides = array<i32>} : memref<8x8xf32, #tpu.memory_space<vmem>>, vector<2x8xf32>,
    %79 = vector.extract_strided_slice %14 {offsets = [2, 16], sizes = [2, 8], strides = [1, 1]} : vector<8x32xf32> to vector<2x8xf32>
    %c4_68 = arith.constant 4 : index
    %c0_69 = arith.constant 0 : index
    %80 = vector.load %arg28[%c4_68, %c0_69] : memref<8x8xf32, #tpu.memory_space<vmem>>, vector<2x8xf32>
    tpu.vector_store %arg28[%c4_68, %c0_69], %79 {strides = array<i32>} : memref<8x8xf32, #tpu.memory_space<vmem>>, vector<2x8xf32>,
    %81 = vector.extract_strided_slice %8 {offsets = [2, 24], sizes = [2, 8], strides = [1, 1]} : vector<8x32xf32> to vector<2x8xf32>
    %c6_70 = arith.constant 6 : index
    %c0_71 = arith.constant 0 : index
    %82 = vector.load %arg26[%c6_70, %c0_71] : memref<8x8xf32, #tpu.memory_space<vmem>>, vector<2x8xf32>
    tpu.vector_store %arg26[%c6_70, %c0_71], %81 {strides = array<i32>} : memref<8x8xf32, #tpu.memory_space<vmem>>, vector<2x8xf32>,
    %83 = vector.extract_strided_slice %11 {offsets = [2, 24], sizes = [2, 8], strides = [1, 1]} : vector<8x32xf32> to vector<2x8xf32>
    %c6_72 = arith.constant 6 : index
    %c0_73 = arith.constant 0 : index
    %84 = vector.load %arg27[%c6_72, %c0_73] : memref<8x8xf32, #tpu.memory_space<vmem>>, vector<2x8xf32>
    tpu.vector_store %arg27[%c6_72, %c0_73], %83 {strides = array<i32>} : memref<8x8xf32, #tpu.memory_space<vmem>>, vector<2x8xf32>,
    %85 = vector.extract_strided_slice %14 {offsets = [2, 24], sizes = [2, 8], strides = [1, 1]} : vector<8x32xf32> to vector<2x8xf32>
    %c6_74 = arith.constant 6 : index
    %c0_75 = arith.constant 0 : index
    %86 = vector.load %arg28[%c6_74, %c0_75] : memref<8x8xf32, #tpu.memory_space<vmem>>, vector<2x8xf32>
    tpu.vector_store %arg28[%c6_74, %c0_75], %85 {strides = array<i32>} : memref<8x8xf32, #tpu.memory_space<vmem>>, vector<2x8xf32>,
    %c0_76 = arith.constant 0 : index
    %c0_77 = arith.constant 0 : index
    %87 = vector.load %arg26[%c0_76, %c0_77] : memref<8x8xf32, #tpu.memory_space<vmem>>, vector<8x8xf32>
    %c0_78 = arith.constant 0 : index
    %c0_79 = arith.constant 0 : index
    %88 = vector.load %arg27[%c0_78, %c0_79] : memref<8x8xf32, #tpu.memory_space<vmem>>, vector<8x8xf32>
    %c0_80 = arith.constant 0 : index
    %c0_81 = arith.constant 0 : index
    %89 = vector.load %arg28[%c0_80, %c0_81] : memref<8x8xf32, #tpu.memory_space<vmem>>, vector<8x8xf32>
    "tpu.trace_start"() <{level = 10 : i32, message = "qd,kd->qk"}> : () -> ()
    %cst_82 = arith.constant dense<0.000000e+00> : vector<8x8xf32>
    %90 = tpu.matmul %87, %88, %cst_82 {dimension_numbers = #tpu.dot_dimension_numbers<[1], [1], [0], [0], [0, 0, 1, 0], [], []>} : vector<8x8xf32>, vector<8x8xf32>, vector<8x8xf32> -> vector<8x8xf32>
    "tpu.trace_stop"() : () -> ()
    %91 = arith.addf %90, %5 : vector<8x8xf32>
    %cst_83 = arith.constant dense<0xFF800000> : vector<8xf32>
    %92 = vector.multi_reduction <maximumf>, %91, %cst_83 [1] : vector<8x8xf32> to vector<8xf32>
    %93 = vector.shape_cast %92 : vector<8xf32> to vector<8x1xf32>
    %94 = vector.broadcast %93 : vector<8x1xf32> to vector<8x8xf32>
    %95 = arith.subf %91, %94 : vector<8x8xf32>
    %96 = math.exp %95 : vector<8x8xf32>
    %cst_84 = arith.constant dense<0.000000e+00> : vector<8xf32>
    %97 = vector.multi_reduction <add>, %96, %cst_84 [1] : vector<8x8xf32> to vector<8xf32>
    %98 = vector.shape_cast %97 : vector<8xf32> to vector<8x1xf32>
    %99 = tpu.reciprocal %98 {approx = true} : vector<8x1xf32> -> vector<8x1xf32>
    %100 = vector.broadcast %99 : vector<8x1xf32> to vector<8x8xf32>
    %101 = arith.mulf %96, %100 : vector<8x8xf32>
    %cst_85 = arith.constant dense<0.000000e+00> : vector<8x8xf32>
    %102 = tpu.matmul %101, %89, %cst_85 {dimension_numbers = #tpu.dot_dimension_numbers<[1], [0], [0], [1], [0, 0, 1, 1], [], []>} : vector<8x8xf32>, vector<8x8xf32>, vector<8x8xf32> -> vector<8x8xf32>
    %103 = vector.extract_strided_slice %102 {offsets = [0, 0], sizes = [2, 8], strides = [1, 1]} : vector<8x8xf32> to vector<2x8xf32>
    %c2_86 = arith.constant 2 : index
    %c0_87 = arith.constant 0 : index
    %104 = vector.load %arg29[%c2_86, %c0_87] : memref<8x32xf32, #tpu.memory_space<vmem>>, vector<2x8xf32>
    tpu.vector_store %arg29[%c2_86, %c0_87], %103 {strides = array<i32>} : memref<8x32xf32, #tpu.memory_space<vmem>>, vector<2x8xf32>,
    %105 = vector.extract_strided_slice %102 {offsets = [2, 0], sizes = [2, 8], strides = [1, 1]} : vector<8x8xf32> to vector<2x8xf32>
    %c2_88 = arith.constant 2 : index
    %c8_89 = arith.constant 8 : index
    %106 = vector.load %arg29[%c2_88, %c8_89] : memref<8x32xf32, #tpu.memory_space<vmem>>, vector<2x8xf32>
    tpu.vector_store %arg29[%c2_88, %c8_89], %105 {strides = array<i32>} : memref<8x32xf32, #tpu.memory_space<vmem>>, vector<2x8xf32>,
    %107 = vector.extract_strided_slice %102 {offsets = [4, 0], sizes = [2, 8], strides = [1, 1]} : vector<8x8xf32> to vector<2x8xf32>
    %c2_90 = arith.constant 2 : index
    %c16_91 = arith.constant 16 : index
    %108 = vector.load %arg29[%c2_90, %c16_91] : memref<8x32xf32, #tpu.memory_space<vmem>>, vector<2x8xf32>
    tpu.vector_store %arg29[%c2_90, %c16_91], %107 {strides = array<i32>} : memref<8x32xf32, #tpu.memory_space<vmem>>, vector<2x8xf32>,
    %109 = vector.extract_strided_slice %102 {offsets = [6, 0], sizes = [2, 8], strides = [1, 1]} : vector<8x8xf32> to vector<2x8xf32>
    %c2_92 = arith.constant 2 : index
    %c24_93 = arith.constant 24 : index
    %110 = vector.load %arg29[%c2_92, %c24_93] : memref<8x32xf32, #tpu.memory_space<vmem>>, vector<2x8xf32>
    tpu.vector_store %arg29[%c2_92, %c24_93], %109 {strides = array<i32>} : memref<8x32xf32, #tpu.memory_space<vmem>>, vector<2x8xf32>,
    %111 = vector.extract_strided_slice %8 {offsets = [4, 0], sizes = [2, 8], strides = [1, 1]} : vector<8x32xf32> to vector<2x8xf32>
    %c0_94 = arith.constant 0 : index
    %c0_95 = arith.constant 0 : index
    %112 = vector.load %arg26[%c0_94, %c0_95] : memref<8x8xf32, #tpu.memory_space<vmem>>, vector<2x8xf32>
    tpu.vector_store %arg26[%c0_94, %c0_95], %111 {strides = array<i32>} : memref<8x8xf32, #tpu.memory_space<vmem>>, vector<2x8xf32>,
    %113 = vector.extract_strided_slice %11 {offsets = [4, 0], sizes = [2, 8], strides = [1, 1]} : vector<8x32xf32> to vector<2x8xf32>
    %c0_96 = arith.constant 0 : index
    %c0_97 = arith.constant 0 : index
    %114 = vector.load %arg27[%c0_96, %c0_97] : memref<8x8xf32, #tpu.memory_space<vmem>>, vector<2x8xf32>
    tpu.vector_store %arg27[%c0_96, %c0_97], %113 {strides = array<i32>} : memref<8x8xf32, #tpu.memory_space<vmem>>, vector<2x8xf32>,
    %115 = vector.extract_strided_slice %14 {offsets = [4, 0], sizes = [2, 8], strides = [1, 1]} : vector<8x32xf32> to vector<2x8xf32>
    %c0_98 = arith.constant 0 : index
    %c0_99 = arith.constant 0 : index
    %116 = vector.load %arg28[%c0_98, %c0_99] : memref<8x8xf32, #tpu.memory_space<vmem>>, vector<2x8xf32>
    tpu.vector_store %arg28[%c0_98, %c0_99], %115 {strides = array<i32>} : memref<8x8xf32, #tpu.memory_space<vmem>>, vector<2x8xf32>,
    %117 = vector.extract_strided_slice %8 {offsets = [4, 8], sizes = [2, 8], strides = [1, 1]} : vector<8x32xf32> to vector<2x8xf32>
    %c2_100 = arith.constant 2 : index
    %c0_101 = arith.constant 0 : index
    %118 = vector.load %arg26[%c2_100, %c0_101] : memref<8x8xf32, #tpu.memory_space<vmem>>, vector<2x8xf32>
    tpu.vector_store %arg26[%c2_100, %c0_101], %117 {strides = array<i32>} : memref<8x8xf32, #tpu.memory_space<vmem>>, vector<2x8xf32>,
    %119 = vector.extract_strided_slice %11 {offsets = [4, 8], sizes = [2, 8], strides = [1, 1]} : vector<8x32xf32> to vector<2x8xf32>
    %c2_102 = arith.constant 2 : index
    %c0_103 = arith.constant 0 : index
    %120 = vector.load %arg27[%c2_102, %c0_103] : memref<8x8xf32, #tpu.memory_space<vmem>>, vector<2x8xf32>
    tpu.vector_store %arg27[%c2_102, %c0_103], %119 {strides = array<i32>} : memref<8x8xf32, #tpu.memory_space<vmem>>, vector<2x8xf32>,
    %121 = vector.extract_strided_slice %14 {offsets = [4, 8], sizes = [2, 8], strides = [1, 1]} : vector<8x32xf32> to vector<2x8xf32>
    %c2_104 = arith.constant 2 : index
    %c0_105 = arith.constant 0 : index
    %122 = vector.load %arg28[%c2_104, %c0_105] : memref<8x8xf32, #tpu.memory_space<vmem>>, vector<2x8xf32>
    tpu.vector_store %arg28[%c2_104, %c0_105], %121 {strides = array<i32>} : memref<8x8xf32, #tpu.memory_space<vmem>>, vector<2x8xf32>,
    %123 = vector.extract_strided_slice %8 {offsets = [4, 16], sizes = [2, 8], strides = [1, 1]} : vector<8x32xf32> to vector<2x8xf32>
    %c4_106 = arith.constant 4 : index
    %c0_107 = arith.constant 0 : index
    %124 = vector.load %arg26[%c4_106, %c0_107] : memref<8x8xf32, #tpu.memory_space<vmem>>, vector<2x8xf32>
    tpu.vector_store %arg26[%c4_106, %c0_107], %123 {strides = array<i32>} : memref<8x8xf32, #tpu.memory_space<vmem>>, vector<2x8xf32>,
    %125 = vector.extract_strided_slice %11 {offsets = [4, 16], sizes = [2, 8], strides = [1, 1]} : vector<8x32xf32> to vector<2x8xf32>
    %c4_108 = arith.constant 4 : index
    %c0_109 = arith.constant 0 : index
    %126 = vector.load %arg27[%c4_108, %c0_109] : memref<8x8xf32, #tpu.memory_space<vmem>>, vector<2x8xf32>
    tpu.vector_store %arg27[%c4_108, %c0_109], %125 {strides = array<i32>} : memref<8x8xf32, #tpu.memory_space<vmem>>, vector<2x8xf32>,
    %127 = vector.extract_strided_slice %14 {offsets = [4, 16], sizes = [2, 8], strides = [1, 1]} : vector<8x32xf32> to vector<2x8xf32>
    %c4_110 = arith.constant 4 : index
    %c0_111 = arith.constant 0 : index
    %128 = vector.load %arg28[%c4_110, %c0_111] : memref<8x8xf32, #tpu.memory_space<vmem>>, vector<2x8xf32>
    tpu.vector_store %arg28[%c4_110, %c0_111], %127 {strides = array<i32>} : memref<8x8xf32, #tpu.memory_space<vmem>>, vector<2x8xf32>,
    %129 = vector.extract_strided_slice %8 {offsets = [4, 24], sizes = [2, 8], strides = [1, 1]} : vector<8x32xf32> to vector<2x8xf32>
    %c6_112 = arith.constant 6 : index
    %c0_113 = arith.constant 0 : index
    %130 = vector.load %arg26[%c6_112, %c0_113] : memref<8x8xf32, #tpu.memory_space<vmem>>, vector<2x8xf32>
    tpu.vector_store %arg26[%c6_112, %c0_113], %129 {strides = array<i32>} : memref<8x8xf32, #tpu.memory_space<vmem>>, vector<2x8xf32>,
    %131 = vector.extract_strided_slice %11 {offsets = [4, 24], sizes = [2, 8], strides = [1, 1]} : vector<8x32xf32> to vector<2x8xf32>
    %c6_114 = arith.constant 6 : index
    %c0_115 = arith.constant 0 : index
    %132 = vector.load %arg27[%c6_114, %c0_115] : memref<8x8xf32, #tpu.memory_space<vmem>>, vector<2x8xf32>
    tpu.vector_store %arg27[%c6_114, %c0_115], %131 {strides = array<i32>} : memref<8x8xf32, #tpu.memory_space<vmem>>, vector<2x8xf32>,
    %133 = vector.extract_strided_slice %14 {offsets = [4, 24], sizes = [2, 8], strides = [1, 1]} : vector<8x32xf32> to vector<2x8xf32>
    %c6_116 = arith.constant 6 : index
    %c0_117 = arith.constant 0 : index
    %134 = vector.load %arg28[%c6_116, %c0_117] : memref<8x8xf32, #tpu.memory_space<vmem>>, vector<2x8xf32>
    tpu.vector_store %arg28[%c6_116, %c0_117], %133 {strides = array<i32>} : memref<8x8xf32, #tpu.memory_space<vmem>>, vector<2x8xf32>,
    %c0_118 = arith.constant 0 : index
    %c0_119 = arith.constant 0 : index
    %135 = vector.load %arg26[%c0_118, %c0_119] : memref<8x8xf32, #tpu.memory_space<vmem>>, vector<8x8xf32>
    %c0_120 = arith.constant 0 : index
    %c0_121 = arith.constant 0 : index
    %136 = vector.load %arg27[%c0_120, %c0_121] : memref<8x8xf32, #tpu.memory_space<vmem>>, vector<8x8xf32>
    %c0_122 = arith.constant 0 : index
    %c0_123 = arith.constant 0 : index
    %137 = vector.load %arg28[%c0_122, %c0_123] : memref<8x8xf32, #tpu.memory_space<vmem>>, vector<8x8xf32>
    "tpu.trace_start"() <{level = 10 : i32, message = "qd,kd->qk"}> : () -> ()
    %cst_124 = arith.constant dense<0.000000e+00> : vector<8x8xf32>
    %138 = tpu.matmul %135, %136, %cst_124 {dimension_numbers = #tpu.dot_dimension_numbers<[1], [1], [0], [0], [0, 0, 1, 0], [], []>} : vector<8x8xf32>, vector<8x8xf32>, vector<8x8xf32> -> vector<8x8xf32>
    "tpu.trace_stop"() : () -> ()
    %139 = arith.addf %138, %5 : vector<8x8xf32>
    %cst_125 = arith.constant dense<0xFF800000> : vector<8xf32>
    %140 = vector.multi_reduction <maximumf>, %139, %cst_125 [1] : vector<8x8xf32> to vector<8xf32>
    %141 = vector.shape_cast %140 : vector<8xf32> to vector<8x1xf32>
    %142 = vector.broadcast %141 : vector<8x1xf32> to vector<8x8xf32>
    %143 = arith.subf %139, %142 : vector<8x8xf32>
    %144 = math.exp %143 : vector<8x8xf32>
    %cst_126 = arith.constant dense<0.000000e+00> : vector<8xf32>
    %145 = vector.multi_reduction <add>, %144, %cst_126 [1] : vector<8x8xf32> to vector<8xf32>
    %146 = vector.shape_cast %145 : vector<8xf32> to vector<8x1xf32>
    %147 = tpu.reciprocal %146 {approx = true} : vector<8x1xf32> -> vector<8x1xf32>
    %148 = vector.broadcast %147 : vector<8x1xf32> to vector<8x8xf32>
    %149 = arith.mulf %144, %148 : vector<8x8xf32>
    %cst_127 = arith.constant dense<0.000000e+00> : vector<8x8xf32>
    %150 = tpu.matmul %149, %137, %cst_127 {dimension_numbers = #tpu.dot_dimension_numbers<[1], [0], [0], [1], [0, 0, 1, 1], [], []>} : vector<8x8xf32>, vector<8x8xf32>, vector<8x8xf32> -> vector<8x8xf32>
    %151 = vector.extract_strided_slice %150 {offsets = [0, 0], sizes = [2, 8], strides = [1, 1]} : vector<8x8xf32> to vector<2x8xf32>
    %c4_128 = arith.constant 4 : index
    %c0_129 = arith.constant 0 : index
    %152 = vector.load %arg29[%c4_128, %c0_129] : memref<8x32xf32, #tpu.memory_space<vmem>>, vector<2x8xf32>
    tpu.vector_store %arg29[%c4_128, %c0_129], %151 {strides = array<i32>} : memref<8x32xf32, #tpu.memory_space<vmem>>, vector<2x8xf32>,
    %153 = vector.extract_strided_slice %150 {offsets = [2, 0], sizes = [2, 8], strides = [1, 1]} : vector<8x8xf32> to vector<2x8xf32>
    %c4_130 = arith.constant 4 : index
    %c8_131 = arith.constant 8 : index
    %154 = vector.load %arg29[%c4_130, %c8_131] : memref<8x32xf32, #tpu.memory_space<vmem>>, vector<2x8xf32>
    tpu.vector_store %arg29[%c4_130, %c8_131], %153 {strides = array<i32>} : memref<8x32xf32, #tpu.memory_space<vmem>>, vector<2x8xf32>,
    %155 = vector.extract_strided_slice %150 {offsets = [4, 0], sizes = [2, 8], strides = [1, 1]} : vector<8x8xf32> to vector<2x8xf32>
    %c4_132 = arith.constant 4 : index
    %c16_133 = arith.constant 16 : index
    %156 = vector.load %arg29[%c4_132, %c16_133] : memref<8x32xf32, #tpu.memory_space<vmem>>, vector<2x8xf32>
    tpu.vector_store %arg29[%c4_132, %c16_133], %155 {strides = array<i32>} : memref<8x32xf32, #tpu.memory_space<vmem>>, vector<2x8xf32>,
    %157 = vector.extract_strided_slice %150 {offsets = [6, 0], sizes = [2, 8], strides = [1, 1]} : vector<8x8xf32> to vector<2x8xf32>
    %c4_134 = arith.constant 4 : index
    %c24_135 = arith.constant 24 : index
    %158 = vector.load %arg29[%c4_134, %c24_135] : memref<8x32xf32, #tpu.memory_space<vmem>>, vector<2x8xf32>
    tpu.vector_store %arg29[%c4_134, %c24_135], %157 {strides = array<i32>} : memref<8x32xf32, #tpu.memory_space<vmem>>, vector<2x8xf32>,
    %159 = vector.extract_strided_slice %8 {offsets = [6, 0], sizes = [2, 8], strides = [1, 1]} : vector<8x32xf32> to vector<2x8xf32>
    %c0_136 = arith.constant 0 : index
    %c0_137 = arith.constant 0 : index
    %160 = vector.load %arg26[%c0_136, %c0_137] : memref<8x8xf32, #tpu.memory_space<vmem>>, vector<2x8xf32>
    tpu.vector_store %arg26[%c0_136, %c0_137], %159 {strides = array<i32>} : memref<8x8xf32, #tpu.memory_space<vmem>>, vector<2x8xf32>,
    %161 = vector.extract_strided_slice %11 {offsets = [6, 0], sizes = [2, 8], strides = [1, 1]} : vector<8x32xf32> to vector<2x8xf32>
    %c0_138 = arith.constant 0 : index
    %c0_139 = arith.constant 0 : index
    %162 = vector.load %arg27[%c0_138, %c0_139] : memref<8x8xf32, #tpu.memory_space<vmem>>, vector<2x8xf32>
    tpu.vector_store %arg27[%c0_138, %c0_139], %161 {strides = array<i32>} : memref<8x8xf32, #tpu.memory_space<vmem>>, vector<2x8xf32>,
    %163 = vector.extract_strided_slice %14 {offsets = [6, 0], sizes = [2, 8], strides = [1, 1]} : vector<8x32xf32> to vector<2x8xf32>
    %c0_140 = arith.constant 0 : index
    %c0_141 = arith.constant 0 : index
    %164 = vector.load %arg28[%c0_140, %c0_141] : memref<8x8xf32, #tpu.memory_space<vmem>>, vector<2x8xf32>
    tpu.vector_store %arg28[%c0_140, %c0_141], %163 {strides = array<i32>} : memref<8x8xf32, #tpu.memory_space<vmem>>, vector<2x8xf32>,
    %165 = vector.extract_strided_slice %8 {offsets = [6, 8], sizes = [2, 8], strides = [1, 1]} : vector<8x32xf32> to vector<2x8xf32>
    %c2_142 = arith.constant 2 : index
    %c0_143 = arith.constant 0 : index
    %166 = vector.load %arg26[%c2_142, %c0_143] : memref<8x8xf32, #tpu.memory_space<vmem>>, vector<2x8xf32>
    tpu.vector_store %arg26[%c2_142, %c0_143], %165 {strides = array<i32>} : memref<8x8xf32, #tpu.memory_space<vmem>>, vector<2x8xf32>,
    %167 = vector.extract_strided_slice %11 {offsets = [6, 8], sizes = [2, 8], strides = [1, 1]} : vector<8x32xf32> to vector<2x8xf32>
    %c2_144 = arith.constant 2 : index
    %c0_145 = arith.constant 0 : index
    %168 = vector.load %arg27[%c2_144, %c0_145] : memref<8x8xf32, #tpu.memory_space<vmem>>, vector<2x8xf32>
    tpu.vector_store %arg27[%c2_144, %c0_145], %167 {strides = array<i32>} : memref<8x8xf32, #tpu.memory_space<vmem>>, vector<2x8xf32>,
    %169 = vector.extract_strided_slice %14 {offsets = [6, 8], sizes = [2, 8], strides = [1, 1]} : vector<8x32xf32> to vector<2x8xf32>
    %c2_146 = arith.constant 2 : index
    %c0_147 = arith.constant 0 : index
    %170 = vector.load %arg28[%c2_146, %c0_147] : memref<8x8xf32, #tpu.memory_space<vmem>>, vector<2x8xf32>
    tpu.vector_store %arg28[%c2_146, %c0_147], %169 {strides = array<i32>} : memref<8x8xf32, #tpu.memory_space<vmem>>, vector<2x8xf32>,
    %171 = vector.extract_strided_slice %8 {offsets = [6, 16], sizes = [2, 8], strides = [1, 1]} : vector<8x32xf32> to vector<2x8xf32>
    %c4_148 = arith.constant 4 : index
    %c0_149 = arith.constant 0 : index
    %172 = vector.load %arg26[%c4_148, %c0_149] : memref<8x8xf32, #tpu.memory_space<vmem>>, vector<2x8xf32>
    tpu.vector_store %arg26[%c4_148, %c0_149], %171 {strides = array<i32>} : memref<8x8xf32, #tpu.memory_space<vmem>>, vector<2x8xf32>,
    %173 = vector.extract_strided_slice %11 {offsets = [6, 16], sizes = [2, 8], strides = [1, 1]} : vector<8x32xf32> to vector<2x8xf32>
    %c4_150 = arith.constant 4 : index
    %c0_151 = arith.constant 0 : index
    %174 = vector.load %arg27[%c4_150, %c0_151] : memref<8x8xf32, #tpu.memory_space<vmem>>, vector<2x8xf32>
    tpu.vector_store %arg27[%c4_150, %c0_151], %173 {strides = array<i32>} : memref<8x8xf32, #tpu.memory_space<vmem>>, vector<2x8xf32>,
    %175 = vector.extract_strided_slice %14 {offsets = [6, 16], sizes = [2, 8], strides = [1, 1]} : vector<8x32xf32> to vector<2x8xf32>
    %c4_152 = arith.constant 4 : index
    %c0_153 = arith.constant 0 : index
    %176 = vector.load %arg28[%c4_152, %c0_153] : memref<8x8xf32, #tpu.memory_space<vmem>>, vector<2x8xf32>
    tpu.vector_store %arg28[%c4_152, %c0_153], %175 {strides = array<i32>} : memref<8x8xf32, #tpu.memory_space<vmem>>, vector<2x8xf32>,
    %177 = vector.extract_strided_slice %8 {offsets = [6, 24], sizes = [2, 8], strides = [1, 1]} : vector<8x32xf32> to vector<2x8xf32>
    %c6_154 = arith.constant 6 : index
    %c0_155 = arith.constant 0 : index
    %178 = vector.load %arg26[%c6_154, %c0_155] : memref<8x8xf32, #tpu.memory_space<vmem>>, vector<2x8xf32>
    tpu.vector_store %arg26[%c6_154, %c0_155], %177 {strides = array<i32>} : memref<8x8xf32, #tpu.memory_space<vmem>>, vector<2x8xf32>,
    %179 = vector.extract_strided_slice %11 {offsets = [6, 24], sizes = [2, 8], strides = [1, 1]} : vector<8x32xf32> to vector<2x8xf32>
    %c6_156 = arith.constant 6 : index
    %c0_157 = arith.constant 0 : index
    %180 = vector.load %arg27[%c6_156, %c0_157] : memref<8x8xf32, #tpu.memory_space<vmem>>, vector<2x8xf32>
    tpu.vector_store %arg27[%c6_156, %c0_157], %179 {strides = array<i32>} : memref<8x8xf32, #tpu.memory_space<vmem>>, vector<2x8xf32>,
    %181 = vector.extract_strided_slice %14 {offsets = [6, 24], sizes = [2, 8], strides = [1, 1]} : vector<8x32xf32> to vector<2x8xf32>
    %c6_158 = arith.constant 6 : index
    %c0_159 = arith.constant 0 : index
    %182 = vector.load %arg28[%c6_158, %c0_159] : memref<8x8xf32, #tpu.memory_space<vmem>>, vector<2x8xf32>
    tpu.vector_store %arg28[%c6_158, %c0_159], %181 {strides = array<i32>} : memref<8x8xf32, #tpu.memory_space<vmem>>, vector<2x8xf32>,
    %c0_160 = arith.constant 0 : index
    %c0_161 = arith.constant 0 : index
    %183 = vector.load %arg26[%c0_160, %c0_161] : memref<8x8xf32, #tpu.memory_space<vmem>>, vector<8x8xf32>
    %c0_162 = arith.constant 0 : index
    %c0_163 = arith.constant 0 : index
    %184 = vector.load %arg27[%c0_162, %c0_163] : memref<8x8xf32, #tpu.memory_space<vmem>>, vector<8x8xf32>
    %c0_164 = arith.constant 0 : index
    %c0_165 = arith.constant 0 : index
    %185 = vector.load %arg28[%c0_164, %c0_165] : memref<8x8xf32, #tpu.memory_space<vmem>>, vector<8x8xf32>
    "tpu.trace_start"() <{level = 10 : i32, message = "qd,kd->qk"}> : () -> ()
    %cst_166 = arith.constant dense<0.000000e+00> : vector<8x8xf32>
    %186 = tpu.matmul %183, %184, %cst_166 {dimension_numbers = #tpu.dot_dimension_numbers<[1], [1], [0], [0], [0, 0, 1, 0], [], []>} : vector<8x8xf32>, vector<8x8xf32>, vector<8x8xf32> -> vector<8x8xf32>
    "tpu.trace_stop"() : () -> ()
    %187 = arith.addf %186, %5 : vector<8x8xf32>
    %cst_167 = arith.constant dense<0xFF800000> : vector<8xf32>
    %188 = vector.multi_reduction <maximumf>, %187, %cst_167 [1] : vector<8x8xf32> to vector<8xf32>
    %189 = vector.shape_cast %188 : vector<8xf32> to vector<8x1xf32>
    %190 = vector.broadcast %189 : vector<8x1xf32> to vector<8x8xf32>
    %191 = arith.subf %187, %190 : vector<8x8xf32>
    %192 = math.exp %191 : vector<8x8xf32>
    %cst_168 = arith.constant dense<0.000000e+00> : vector<8xf32>
    %193 = vector.multi_reduction <add>, %192, %cst_168 [1] : vector<8x8xf32> to vector<8xf32>
    %194 = vector.shape_cast %193 : vector<8xf32> to vector<8x1xf32>
    %195 = tpu.reciprocal %194 {approx = true} : vector<8x1xf32> -> vector<8x1xf32>
    %196 = vector.broadcast %195 : vector<8x1xf32> to vector<8x8xf32>
    %197 = arith.mulf %192, %196 : vector<8x8xf32>
    %cst_169 = arith.constant dense<0.000000e+00> : vector<8x8xf32>
    %198 = tpu.matmul %197, %185, %cst_169 {dimension_numbers = #tpu.dot_dimension_numbers<[1], [0], [0], [1], [0, 0, 1, 1], [], []>} : vector<8x8xf32>, vector<8x8xf32>, vector<8x8xf32> -> vector<8x8xf32>
    %199 = vector.extract_strided_slice %198 {offsets = [0, 0], sizes = [2, 8], strides = [1, 1]} : vector<8x8xf32> to vector<2x8xf32>
    %c6_170 = arith.constant 6 : index
    %c0_171 = arith.constant 0 : index
    %200 = vector.load %arg29[%c6_170, %c0_171] : memref<8x32xf32, #tpu.memory_space<vmem>>, vector<2x8xf32>
    tpu.vector_store %arg29[%c6_170, %c0_171], %199 {strides = array<i32>} : memref<8x32xf32, #tpu.memory_space<vmem>>, vector<2x8xf32>,
    %201 = vector.extract_strided_slice %198 {offsets = [2, 0], sizes = [2, 8], strides = [1, 1]} : vector<8x8xf32> to vector<2x8xf32>
    %c6_172 = arith.constant 6 : index
    %c8_173 = arith.constant 8 : index
    %202 = vector.load %arg29[%c6_172, %c8_173] : memref<8x32xf32, #tpu.memory_space<vmem>>, vector<2x8xf32>
    tpu.vector_store %arg29[%c6_172, %c8_173], %201 {strides = array<i32>} : memref<8x32xf32, #tpu.memory_space<vmem>>, vector<2x8xf32>,
    %203 = vector.extract_strided_slice %198 {offsets = [4, 0], sizes = [2, 8], strides = [1, 1]} : vector<8x8xf32> to vector<2x8xf32>
    %c6_174 = arith.constant 6 : index
    %c16_175 = arith.constant 16 : index
    %204 = vector.load %arg29[%c6_174, %c16_175] : memref<8x32xf32, #tpu.memory_space<vmem>>, vector<2x8xf32>
    tpu.vector_store %arg29[%c6_174, %c16_175], %203 {strides = array<i32>} : memref<8x32xf32, #tpu.memory_space<vmem>>, vector<2x8xf32>,
    %205 = vector.extract_strided_slice %198 {offsets = [6, 0], sizes = [2, 8], strides = [1, 1]} : vector<8x8xf32> to vector<2x8xf32>
    %c6_176 = arith.constant 6 : index
    %c24_177 = arith.constant 24 : index
    %206 = vector.load %arg29[%c6_176, %c24_177] : memref<8x32xf32, #tpu.memory_space<vmem>>, vector<2x8xf32>
    tpu.vector_store %arg29[%c6_176, %c24_177], %205 {strides = array<i32>} : memref<8x32xf32, #tpu.memory_space<vmem>>, vector<2x8xf32>,
    %c0_178 = arith.constant 0 : index
    %c0_179 = arith.constant 0 : index
    %207 = vector.load %arg29[%c0_178, %c0_179] : memref<8x32xf32, #tpu.memory_space<vmem>>, vector<8x32xf32>
    %208 = arith.truncf %207 : vector<8x32xf32> to vector<8x32xbf16>
    %c0_180 = arith.constant 0 : index
    %c0_181 = arith.constant 0 : index
    %209 = vector.load %arg8[%c0_180, %c0_181] : memref<32x32xbf16, #tpu.memory_space<vmem>>, vector<32x32xbf16>
    %cst_182 = arith.constant dense<0.000000e+00> : vector<8x32xf32>
    %210 = tpu.matmul %208, %209, %cst_182 {dimension_numbers = #tpu.dot_dimension_numbers<[1], [0], [0], [1], [0, 0, 1, 1], [], []>} : vector<8x32xbf16>, vector<32x32xbf16>, vector<8x32xf32> -> vector<8x32xf32>
    %c0_183 = arith.constant 0 : index
    %c0_184 = arith.constant 0 : index
    %211 = vector.load %arg9[%c0_183, %c0_184] : memref<1x32xf32, #tpu.memory_space<vmem>>, vector<1x32xf32>
    %212 = vector.broadcast %211 : vector<1x32xf32> to vector<8x32xf32>
    %213 = arith.addf %210, %212 : vector<8x32xf32>
    %214 = arith.addf %213, %1 : vector<8x32xf32>
    %c0_185 = arith.constant 0 : index
    %c0_186 = arith.constant 0 : index
    %215 = vector.load %arg10[%c0_185, %c0_186] : memref<1x32xf32, #tpu.memory_space<vmem>>, vector<1x32xf32>
    %c0_187 = arith.constant 0 : index
    %c0_188 = arith.constant 0 : index
    %216 = vector.load %arg11[%c0_187, %c0_188] : memref<1x32xf32, #tpu.memory_space<vmem>>, vector<1x32xf32>
    %cst_189 = arith.constant dense<0.000000e+00> : vector<8xf32>
    %217 = vector.multi_reduction <add>, %214, %cst_189 [1] : vector<8x32xf32> to vector<8xf32>
    %218 = vector.shape_cast %217 : vector<8xf32> to vector<8x1xf32>
    %cst_190 = arith.constant 3.200000e+01 : f32
    %219 = vector.broadcast %cst_190 : f32 to vector<8x1xf32>
    %220 = arith.divf %218, %219 : vector<8x1xf32>
    %221 = vector.broadcast %220 : vector<8x1xf32> to vector<8x32xf32>
    %222 = arith.subf %214, %221 : vector<8x32xf32>
    %223 = arith.mulf %222, %222 : vector<8x32xf32>
    %cst_191 = arith.constant dense<0.000000e+00> : vector<8xf32>
    %224 = vector.multi_reduction <add>, %223, %cst_191 [1] : vector<8x32xf32> to vector<8xf32>
    %225 = vector.shape_cast %224 : vector<8xf32> to vector<8x1xf32>
    %cst_192 = arith.constant 3.200000e+01 : f32
    %226 = vector.broadcast %cst_192 : f32 to vector<8x1xf32>
    %227 = arith.divf %225, %226 : vector<8x1xf32>
    %cst_193 = arith.constant 9.99999974E-6 : f32
    %228 = vector.broadcast %cst_193 : f32 to vector<8x1xf32>
    %229 = arith.addf %227, %228 : vector<8x1xf32>
    %230 = math.rsqrt %229 : vector<8x1xf32>
    %231 = vector.broadcast %230 : vector<8x1xf32> to vector<8x32xf32>
    %232 = arith.mulf %222, %231 : vector<8x32xf32>
    %233 = vector.broadcast %215 : vector<1x32xf32> to vector<8x32xf32>
    %234 = arith.mulf %232, %233 : vector<8x32xf32>
    %235 = vector.broadcast %216 : vector<1x32xf32> to vector<8x32xf32>
    %236 = arith.addf %234, %235 : vector<8x32xf32>
    %c0_194 = arith.constant 0 : index
    %c0_195 = arith.constant 0 : index
    %c0_196 = arith.constant 0 : index
    %237 = vector.load %arg4[%c0_194, %c0_195, %c0_196] : memref<1x8x8xf32, #tpu.memory_space<vmem>>, vector<1x8x8xf32>
    %238 = vector.shape_cast %237 : vector<1x8x8xf32> to vector<8x8xf32>
    %239 = arith.truncf %236 : vector<8x32xf32> to vector<8x32xbf16>
    %c0_197 = arith.constant 0 : index
    %c0_198 = arith.constant 0 : index
    %240 = vector.load %arg12[%c0_197, %c0_198] : memref<32x32xbf16, #tpu.memory_space<vmem>>, vector<32x32xbf16>
    %cst_199 = arith.constant dense<0.000000e+00> : vector<8x32xf32>
    %241 = tpu.matmul %239, %240, %cst_199 {dimension_numbers = #tpu.dot_dimension_numbers<[1], [0], [0], [1], [0, 0, 1, 1], [], []>} : vector<8x32xbf16>, vector<32x32xbf16>, vector<8x32xf32> -> vector<8x32xf32>
    %242 = arith.truncf %3 : vector<8x32xf32> to vector<8x32xbf16>
    %c0_200 = arith.constant 0 : index
    %c0_201 = arith.constant 0 : index
    %243 = vector.load %arg13[%c0_200, %c0_201] : memref<32x32xbf16, #tpu.memory_space<vmem>>, vector<32x32xbf16>
    %cst_202 = arith.constant dense<0.000000e+00> : vector<8x32xf32>
    %244 = tpu.matmul %242, %243, %cst_202 {dimension_numbers = #tpu.dot_dimension_numbers<[1], [0], [0], [1], [0, 0, 1, 1], [], []>} : vector<8x32xbf16>, vector<32x32xbf16>, vector<8x32xf32> -> vector<8x32xf32>
    %245 = arith.truncf %3 : vector<8x32xf32> to vector<8x32xbf16>
    %c0_203 = arith.constant 0 : index
    %c0_204 = arith.constant 0 : index
    %246 = vector.load %arg14[%c0_203, %c0_204] : memref<32x32xbf16, #tpu.memory_space<vmem>>, vector<32x32xbf16>
    %cst_205 = arith.constant dense<0.000000e+00> : vector<8x32xf32>
    %247 = tpu.matmul %245, %246, %cst_205 {dimension_numbers = #tpu.dot_dimension_numbers<[1], [0], [0], [1], [0, 0, 1, 1], [], []>} : vector<8x32xbf16>, vector<32x32xbf16>, vector<8x32xf32> -> vector<8x32xf32>
    %248 = vector.extract_strided_slice %241 {offsets = [0, 0], sizes = [2, 8], strides = [1, 1]} : vector<8x32xf32> to vector<2x8xf32>
    %c0_206 = arith.constant 0 : index
    %c0_207 = arith.constant 0 : index
    %249 = vector.load %arg26[%c0_206, %c0_207] : memref<8x8xf32, #tpu.memory_space<vmem>>, vector<2x8xf32>
    tpu.vector_store %arg26[%c0_206, %c0_207], %248 {strides = array<i32>} : memref<8x8xf32, #tpu.memory_space<vmem>>, vector<2x8xf32>,
    %250 = vector.extract_strided_slice %244 {offsets = [0, 0], sizes = [2, 8], strides = [1, 1]} : vector<8x32xf32> to vector<2x8xf32>
    %c0_208 = arith.constant 0 : index
    %c0_209 = arith.constant 0 : index
    %251 = vector.load %arg27[%c0_208, %c0_209] : memref<8x8xf32, #tpu.memory_space<vmem>>, vector<2x8xf32>
    tpu.vector_store %arg27[%c0_208, %c0_209], %250 {strides = array<i32>} : memref<8x8xf32, #tpu.memory_space<vmem>>, vector<2x8xf32>,
    %252 = vector.extract_strided_slice %247 {offsets = [0, 0], sizes = [2, 8], strides = [1, 1]} : vector<8x32xf32> to vector<2x8xf32>
    %c0_210 = arith.constant 0 : index
    %c0_211 = arith.constant 0 : index
    %253 = vector.load %arg28[%c0_210, %c0_211] : memref<8x8xf32, #tpu.memory_space<vmem>>, vector<2x8xf32>
    tpu.vector_store %arg28[%c0_210, %c0_211], %252 {strides = array<i32>} : memref<8x8xf32, #tpu.memory_space<vmem>>, vector<2x8xf32>,
    %254 = vector.extract_strided_slice %241 {offsets = [0, 8], sizes = [2, 8], strides = [1, 1]} : vector<8x32xf32> to vector<2x8xf32>
    %c2_212 = arith.constant 2 : index
    %c0_213 = arith.constant 0 : index
    %255 = vector.load %arg26[%c2_212, %c0_213] : memref<8x8xf32, #tpu.memory_space<vmem>>, vector<2x8xf32>
    tpu.vector_store %arg26[%c2_212, %c0_213], %254 {strides = array<i32>} : memref<8x8xf32, #tpu.memory_space<vmem>>, vector<2x8xf32>,
    %256 = vector.extract_strided_slice %244 {offsets = [0, 8], sizes = [2, 8], strides = [1, 1]} : vector<8x32xf32> to vector<2x8xf32>
    %c2_214 = arith.constant 2 : index
    %c0_215 = arith.constant 0 : index
    %257 = vector.load %arg27[%c2_214, %c0_215] : memref<8x8xf32, #tpu.memory_space<vmem>>, vector<2x8xf32>
    tpu.vector_store %arg27[%c2_214, %c0_215], %256 {strides = array<i32>} : memref<8x8xf32, #tpu.memory_space<vmem>>, vector<2x8xf32>,
    %258 = vector.extract_strided_slice %247 {offsets = [0, 8], sizes = [2, 8], strides = [1, 1]} : vector<8x32xf32> to vector<2x8xf32>
    %c2_216 = arith.constant 2 : index
    %c0_217 = arith.constant 0 : index
    %259 = vector.load %arg28[%c2_216, %c0_217] : memref<8x8xf32, #tpu.memory_space<vmem>>, vector<2x8xf32>
    tpu.vector_store %arg28[%c2_216, %c0_217], %258 {strides = array<i32>} : memref<8x8xf32, #tpu.memory_space<vmem>>, vector<2x8xf32>,
    %260 = vector.extract_strided_slice %241 {offsets = [0, 16], sizes = [2, 8], strides = [1, 1]} : vector<8x32xf32> to vector<2x8xf32>
    %c4_218 = arith.constant 4 : index
    %c0_219 = arith.constant 0 : index
    %261 = vector.load %arg26[%c4_218, %c0_219] : memref<8x8xf32, #tpu.memory_space<vmem>>, vector<2x8xf32>
    tpu.vector_store %arg26[%c4_218, %c0_219], %260 {strides = array<i32>} : memref<8x8xf32, #tpu.memory_space<vmem>>, vector<2x8xf32>,
    %262 = vector.extract_strided_slice %244 {offsets = [0, 16], sizes = [2, 8], strides = [1, 1]} : vector<8x32xf32> to vector<2x8xf32>
    %c4_220 = arith.constant 4 : index
    %c0_221 = arith.constant 0 : index
    %263 = vector.load %arg27[%c4_220, %c0_221] : memref<8x8xf32, #tpu.memory_space<vmem>>, vector<2x8xf32>
    tpu.vector_store %arg27[%c4_220, %c0_221], %262 {strides = array<i32>} : memref<8x8xf32, #tpu.memory_space<vmem>>, vector<2x8xf32>,
    %264 = vector.extract_strided_slice %247 {offsets = [0, 16], sizes = [2, 8], strides = [1, 1]} : vector<8x32xf32> to vector<2x8xf32>
    %c4_222 = arith.constant 4 : index
    %c0_223 = arith.constant 0 : index
    %265 = vector.load %arg28[%c4_222, %c0_223] : memref<8x8xf32, #tpu.memory_space<vmem>>, vector<2x8xf32>
    tpu.vector_store %arg28[%c4_222, %c0_223], %264 {strides = array<i32>} : memref<8x8xf32, #tpu.memory_space<vmem>>, vector<2x8xf32>,
    %266 = vector.extract_strided_slice %241 {offsets = [0, 24], sizes = [2, 8], strides = [1, 1]} : vector<8x32xf32> to vector<2x8xf32>
    %c6_224 = arith.constant 6 : index
    %c0_225 = arith.constant 0 : index
    %267 = vector.load %arg26[%c6_224, %c0_225] : memref<8x8xf32, #tpu.memory_space<vmem>>, vector<2x8xf32>
    tpu.vector_store %arg26[%c6_224, %c0_225], %266 {strides = array<i32>} : memref<8x8xf32, #tpu.memory_space<vmem>>, vector<2x8xf32>,
    %268 = vector.extract_strided_slice %244 {offsets = [0, 24], sizes = [2, 8], strides = [1, 1]} : vector<8x32xf32> to vector<2x8xf32>
    %c6_226 = arith.constant 6 : index
    %c0_227 = arith.constant 0 : index
    %269 = vector.load %arg27[%c6_226, %c0_227] : memref<8x8xf32, #tpu.memory_space<vmem>>, vector<2x8xf32>
    tpu.vector_store %arg27[%c6_226, %c0_227], %268 {strides = array<i32>} : memref<8x8xf32, #tpu.memory_space<vmem>>, vector<2x8xf32>,
    %270 = vector.extract_strided_slice %247 {offsets = [0, 24], sizes = [2, 8], strides = [1, 1]} : vector<8x32xf32> to vector<2x8xf32>
    %c6_228 = arith.constant 6 : index
    %c0_229 = arith.constant 0 : index
    %271 = vector.load %arg28[%c6_228, %c0_229] : memref<8x8xf32, #tpu.memory_space<vmem>>, vector<2x8xf32>
    tpu.vector_store %arg28[%c6_228, %c0_229], %270 {strides = array<i32>} : memref<8x8xf32, #tpu.memory_space<vmem>>, vector<2x8xf32>,
    %c0_230 = arith.constant 0 : index
    %c0_231 = arith.constant 0 : index
    %272 = vector.load %arg26[%c0_230, %c0_231] : memref<8x8xf32, #tpu.memory_space<vmem>>, vector<8x8xf32>
    %c0_232 = arith.constant 0 : index
    %c0_233 = arith.constant 0 : index
    %273 = vector.load %arg27[%c0_232, %c0_233] : memref<8x8xf32, #tpu.memory_space<vmem>>, vector<8x8xf32>
    %c0_234 = arith.constant 0 : index
    %c0_235 = arith.constant 0 : index
    %274 = vector.load %arg28[%c0_234, %c0_235] : memref<8x8xf32, #tpu.memory_space<vmem>>, vector<8x8xf32>
    "tpu.trace_start"() <{level = 10 : i32, message = "qd,kd->qk"}> : () -> ()
    %cst_236 = arith.constant dense<0.000000e+00> : vector<8x8xf32>
    %275 = tpu.matmul %272, %273, %cst_236 {dimension_numbers = #tpu.dot_dimension_numbers<[1], [1], [0], [0], [0, 0, 1, 0], [], []>} : vector<8x8xf32>, vector<8x8xf32>, vector<8x8xf32> -> vector<8x8xf32>
    "tpu.trace_stop"() : () -> ()
    %276 = arith.addf %275, %238 : vector<8x8xf32>
    %cst_237 = arith.constant dense<0xFF800000> : vector<8xf32>
    %277 = vector.multi_reduction <maximumf>, %276, %cst_237 [1] : vector<8x8xf32> to vector<8xf32>
    %278 = vector.shape_cast %277 : vector<8xf32> to vector<8x1xf32>
    %279 = vector.broadcast %278 : vector<8x1xf32> to vector<8x8xf32>
    %280 = arith.subf %276, %279 : vector<8x8xf32>
    %281 = math.exp %280 : vector<8x8xf32>
    %cst_238 = arith.constant dense<0.000000e+00> : vector<8xf32>
    %282 = vector.multi_reduction <add>, %281, %cst_238 [1] : vector<8x8xf32> to vector<8xf32>
    %283 = vector.shape_cast %282 : vector<8xf32> to vector<8x1xf32>
    %284 = tpu.reciprocal %283 {approx = true} : vector<8x1xf32> -> vector<8x1xf32>
    %285 = vector.broadcast %284 : vector<8x1xf32> to vector<8x8xf32>
    %286 = arith.mulf %281, %285 : vector<8x8xf32>
    %cst_239 = arith.constant dense<0.000000e+00> : vector<8x8xf32>
    %287 = tpu.matmul %286, %274, %cst_239 {dimension_numbers = #tpu.dot_dimension_numbers<[1], [0], [0], [1], [0, 0, 1, 1], [], []>} : vector<8x8xf32>, vector<8x8xf32>, vector<8x8xf32> -> vector<8x8xf32>
    %288 = vector.extract_strided_slice %287 {offsets = [0, 0], sizes = [2, 8], strides = [1, 1]} : vector<8x8xf32> to vector<2x8xf32>
    %c0_240 = arith.constant 0 : index
    %c0_241 = arith.constant 0 : index
    %289 = vector.load %arg29[%c0_240, %c0_241] : memref<8x32xf32, #tpu.memory_space<vmem>>, vector<2x8xf32>
    tpu.vector_store %arg29[%c0_240, %c0_241], %288 {strides = array<i32>} : memref<8x32xf32, #tpu.memory_space<vmem>>, vector<2x8xf32>,
    %290 = vector.extract_strided_slice %287 {offsets = [2, 0], sizes = [2, 8], strides = [1, 1]} : vector<8x8xf32> to vector<2x8xf32>
    %c0_242 = arith.constant 0 : index
    %c8_243 = arith.constant 8 : index
    %291 = vector.load %arg29[%c0_242, %c8_243] : memref<8x32xf32, #tpu.memory_space<vmem>>, vector<2x8xf32>
    tpu.vector_store %arg29[%c0_242, %c8_243], %290 {strides = array<i32>} : memref<8x32xf32, #tpu.memory_space<vmem>>, vector<2x8xf32>,
    %292 = vector.extract_strided_slice %287 {offsets = [4, 0], sizes = [2, 8], strides = [1, 1]} : vector<8x8xf32> to vector<2x8xf32>
    %c0_244 = arith.constant 0 : index
    %c16_245 = arith.constant 16 : index
    %293 = vector.load %arg29[%c0_244, %c16_245] : memref<8x32xf32, #tpu.memory_space<vmem>>, vector<2x8xf32>
    tpu.vector_store %arg29[%c0_244, %c16_245], %292 {strides = array<i32>} : memref<8x32xf32, #tpu.memory_space<vmem>>, vector<2x8xf32>,
    %294 = vector.extract_strided_slice %287 {offsets = [6, 0], sizes = [2, 8], strides = [1, 1]} : vector<8x8xf32> to vector<2x8xf32>
    %c0_246 = arith.constant 0 : index
    %c24_247 = arith.constant 24 : index
    %295 = vector.load %arg29[%c0_246, %c24_247] : memref<8x32xf32, #tpu.memory_space<vmem>>, vector<2x8xf32>
    tpu.vector_store %arg29[%c0_246, %c24_247], %294 {strides = array<i32>} : memref<8x32xf32, #tpu.memory_space<vmem>>, vector<2x8xf32>,
    %296 = vector.extract_strided_slice %241 {offsets = [2, 0], sizes = [2, 8], strides = [1, 1]} : vector<8x32xf32> to vector<2x8xf32>
    %c0_248 = arith.constant 0 : index
    %c0_249 = arith.constant 0 : index
    %297 = vector.load %arg26[%c0_248, %c0_249] : memref<8x8xf32, #tpu.memory_space<vmem>>, vector<2x8xf32>
    tpu.vector_store %arg26[%c0_248, %c0_249], %296 {strides = array<i32>} : memref<8x8xf32, #tpu.memory_space<vmem>>, vector<2x8xf32>,
    %298 = vector.extract_strided_slice %244 {offsets = [2, 0], sizes = [2, 8], strides = [1, 1]} : vector<8x32xf32> to vector<2x8xf32>
    %c0_250 = arith.constant 0 : index
    %c0_251 = arith.constant 0 : index
    %299 = vector.load %arg27[%c0_250, %c0_251] : memref<8x8xf32, #tpu.memory_space<vmem>>, vector<2x8xf32>
    tpu.vector_store %arg27[%c0_250, %c0_251], %298 {strides = array<i32>} : memref<8x8xf32, #tpu.memory_space<vmem>>, vector<2x8xf32>,
    %300 = vector.extract_strided_slice %247 {offsets = [2, 0], sizes = [2, 8], strides = [1, 1]} : vector<8x32xf32> to vector<2x8xf32>
    %c0_252 = arith.constant 0 : index
    %c0_253 = arith.constant 0 : index
    %301 = vector.load %arg28[%c0_252, %c0_253] : memref<8x8xf32, #tpu.memory_space<vmem>>, vector<2x8xf32>
    tpu.vector_store %arg28[%c0_252, %c0_253], %300 {strides = array<i32>} : memref<8x8xf32, #tpu.memory_space<vmem>>, vector<2x8xf32>,
    %302 = vector.extract_strided_slice %241 {offsets = [2, 8], sizes = [2, 8], strides = [1, 1]} : vector<8x32xf32> to vector<2x8xf32>
    %c2_254 = arith.constant 2 : index
    %c0_255 = arith.constant 0 : index
    %303 = vector.load %arg26[%c2_254, %c0_255] : memref<8x8xf32, #tpu.memory_space<vmem>>, vector<2x8xf32>
    tpu.vector_store %arg26[%c2_254, %c0_255], %302 {strides = array<i32>} : memref<8x8xf32, #tpu.memory_space<vmem>>, vector<2x8xf32>,
    %304 = vector.extract_strided_slice %244 {offsets = [2, 8], sizes = [2, 8], strides = [1, 1]} : vector<8x32xf32> to vector<2x8xf32>
    %c2_256 = arith.constant 2 : index
    %c0_257 = arith.constant 0 : index
    %305 = vector.load %arg27[%c2_256, %c0_257] : memref<8x8xf32, #tpu.memory_space<vmem>>, vector<2x8xf32>
    tpu.vector_store %arg27[%c2_256, %c0_257], %304 {strides = array<i32>} : memref<8x8xf32, #tpu.memory_space<vmem>>, vector<2x8xf32>,
    %306 = vector.extract_strided_slice %247 {offsets = [2, 8], sizes = [2, 8], strides = [1, 1]} : vector<8x32xf32> to vector<2x8xf32>
    %c2_258 = arith.constant 2 : index
    %c0_259 = arith.constant 0 : index
    %307 = vector.load %arg28[%c2_258, %c0_259] : memref<8x8xf32, #tpu.memory_space<vmem>>, vector<2x8xf32>
    tpu.vector_store %arg28[%c2_258, %c0_259], %306 {strides = array<i32>} : memref<8x8xf32, #tpu.memory_space<vmem>>, vector<2x8xf32>,
    %308 = vector.extract_strided_slice %241 {offsets = [2, 16], sizes = [2, 8], strides = [1, 1]} : vector<8x32xf32> to vector<2x8xf32>
    %c4_260 = arith.constant 4 : index
    %c0_261 = arith.constant 0 : index
    %309 = vector.load %arg26[%c4_260, %c0_261] : memref<8x8xf32, #tpu.memory_space<vmem>>, vector<2x8xf32>
    tpu.vector_store %arg26[%c4_260, %c0_261], %308 {strides = array<i32>} : memref<8x8xf32, #tpu.memory_space<vmem>>, vector<2x8xf32>,
    %310 = vector.extract_strided_slice %244 {offsets = [2, 16], sizes = [2, 8], strides = [1, 1]} : vector<8x32xf32> to vector<2x8xf32>
    %c4_262 = arith.constant 4 : index
    %c0_263 = arith.constant 0 : index
    %311 = vector.load %arg27[%c4_262, %c0_263] : memref<8x8xf32, #tpu.memory_space<vmem>>, vector<2x8xf32>
    tpu.vector_store %arg27[%c4_262, %c0_263], %310 {strides = array<i32>} : memref<8x8xf32, #tpu.memory_space<vmem>>, vector<2x8xf32>,
    %312 = vector.extract_strided_slice %247 {offsets = [2, 16], sizes = [2, 8], strides = [1, 1]} : vector<8x32xf32> to vector<2x8xf32>
    %c4_264 = arith.constant 4 : index
    %c0_265 = arith.constant 0 : index
    %313 = vector.load %arg28[%c4_264, %c0_265] : memref<8x8xf32, #tpu.memory_space<vmem>>, vector<2x8xf32>
    tpu.vector_store %arg28[%c4_264, %c0_265], %312 {strides = array<i32>} : memref<8x8xf32, #tpu.memory_space<vmem>>, vector<2x8xf32>,
    %314 = vector.extract_strided_slice %241 {offsets = [2, 24], sizes = [2, 8], strides = [1, 1]} : vector<8x32xf32> to vector<2x8xf32>
    %c6_266 = arith.constant 6 : index
    %c0_267 = arith.constant 0 : index
    %315 = vector.load %arg26[%c6_266, %c0_267] : memref<8x8xf32, #tpu.memory_space<vmem>>, vector<2x8xf32>
    tpu.vector_store %arg26[%c6_266, %c0_267], %314 {strides = array<i32>} : memref<8x8xf32, #tpu.memory_space<vmem>>, vector<2x8xf32>,
    %316 = vector.extract_strided_slice %244 {offsets = [2, 24], sizes = [2, 8], strides = [1, 1]} : vector<8x32xf32> to vector<2x8xf32>
    %c6_268 = arith.constant 6 : index
    %c0_269 = arith.constant 0 : index
    %317 = vector.load %arg27[%c6_268, %c0_269] : memref<8x8xf32, #tpu.memory_space<vmem>>, vector<2x8xf32>
    tpu.vector_store %arg27[%c6_268, %c0_269], %316 {strides = array<i32>} : memref<8x8xf32, #tpu.memory_space<vmem>>, vector<2x8xf32>,
    %318 = vector.extract_strided_slice %247 {offsets = [2, 24], sizes = [2, 8], strides = [1, 1]} : vector<8x32xf32> to vector<2x8xf32>
    %c6_270 = arith.constant 6 : index
    %c0_271 = arith.constant 0 : index
    %319 = vector.load %arg28[%c6_270, %c0_271] : memref<8x8xf32, #tpu.memory_space<vmem>>, vector<2x8xf32>
    tpu.vector_store %arg28[%c6_270, %c0_271], %318 {strides = array<i32>} : memref<8x8xf32, #tpu.memory_space<vmem>>, vector<2x8xf32>,
    %c0_272 = arith.constant 0 : index
    %c0_273 = arith.constant 0 : index
    %320 = vector.load %arg26[%c0_272, %c0_273] : memref<8x8xf32, #tpu.memory_space<vmem>>, vector<8x8xf32>
    %c0_274 = arith.constant 0 : index
    %c0_275 = arith.constant 0 : index
    %321 = vector.load %arg27[%c0_274, %c0_275] : memref<8x8xf32, #tpu.memory_space<vmem>>, vector<8x8xf32>
    %c0_276 = arith.constant 0 : index
    %c0_277 = arith.constant 0 : index
    %322 = vector.load %arg28[%c0_276, %c0_277] : memref<8x8xf32, #tpu.memory_space<vmem>>, vector<8x8xf32>
    "tpu.trace_start"() <{level = 10 : i32, message = "qd,kd->qk"}> : () -> ()
    %cst_278 = arith.constant dense<0.000000e+00> : vector<8x8xf32>
    %323 = tpu.matmul %320, %321, %cst_278 {dimension_numbers = #tpu.dot_dimension_numbers<[1], [1], [0], [0], [0, 0, 1, 0], [], []>} : vector<8x8xf32>, vector<8x8xf32>, vector<8x8xf32> -> vector<8x8xf32>
    "tpu.trace_stop"() : () -> ()
    %324 = arith.addf %323, %238 : vector<8x8xf32>
    %cst_279 = arith.constant dense<0xFF800000> : vector<8xf32>
    %325 = vector.multi_reduction <maximumf>, %324, %cst_279 [1] : vector<8x8xf32> to vector<8xf32>
    %326 = vector.shape_cast %325 : vector<8xf32> to vector<8x1xf32>
    %327 = vector.broadcast %326 : vector<8x1xf32> to vector<8x8xf32>
    %328 = arith.subf %324, %327 : vector<8x8xf32>
    %329 = math.exp %328 : vector<8x8xf32>
    %cst_280 = arith.constant dense<0.000000e+00> : vector<8xf32>
    %330 = vector.multi_reduction <add>, %329, %cst_280 [1] : vector<8x8xf32> to vector<8xf32>
    %331 = vector.shape_cast %330 : vector<8xf32> to vector<8x1xf32>
    %332 = tpu.reciprocal %331 {approx = true} : vector<8x1xf32> -> vector<8x1xf32>
    %333 = vector.broadcast %332 : vector<8x1xf32> to vector<8x8xf32>
    %334 = arith.mulf %329, %333 : vector<8x8xf32>
    %cst_281 = arith.constant dense<0.000000e+00> : vector<8x8xf32>
    %335 = tpu.matmul %334, %322, %cst_281 {dimension_numbers = #tpu.dot_dimension_numbers<[1], [0], [0], [1], [0, 0, 1, 1], [], []>} : vector<8x8xf32>, vector<8x8xf32>, vector<8x8xf32> -> vector<8x8xf32>
    %336 = vector.extract_strided_slice %335 {offsets = [0, 0], sizes = [2, 8], strides = [1, 1]} : vector<8x8xf32> to vector<2x8xf32>
    %c2_282 = arith.constant 2 : index
    %c0_283 = arith.constant 0 : index
    %337 = vector.load %arg29[%c2_282, %c0_283] : memref<8x32xf32, #tpu.memory_space<vmem>>, vector<2x8xf32>
    tpu.vector_store %arg29[%c2_282, %c0_283], %336 {strides = array<i32>} : memref<8x32xf32, #tpu.memory_space<vmem>>, vector<2x8xf32>,
    %338 = vector.extract_strided_slice %335 {offsets = [2, 0], sizes = [2, 8], strides = [1, 1]} : vector<8x8xf32> to vector<2x8xf32>
    %c2_284 = arith.constant 2 : index
    %c8_285 = arith.constant 8 : index
    %339 = vector.load %arg29[%c2_284, %c8_285] : memref<8x32xf32, #tpu.memory_space<vmem>>, vector<2x8xf32>
    tpu.vector_store %arg29[%c2_284, %c8_285], %338 {strides = array<i32>} : memref<8x32xf32, #tpu.memory_space<vmem>>, vector<2x8xf32>,
    %340 = vector.extract_strided_slice %335 {offsets = [4, 0], sizes = [2, 8], strides = [1, 1]} : vector<8x8xf32> to vector<2x8xf32>
    %c2_286 = arith.constant 2 : index
    %c16_287 = arith.constant 16 : index
    %341 = vector.load %arg29[%c2_286, %c16_287] : memref<8x32xf32, #tpu.memory_space<vmem>>, vector<2x8xf32>
    tpu.vector_store %arg29[%c2_286, %c16_287], %340 {strides = array<i32>} : memref<8x32xf32, #tpu.memory_space<vmem>>, vector<2x8xf32>,
    %342 = vector.extract_strided_slice %335 {offsets = [6, 0], sizes = [2, 8], strides = [1, 1]} : vector<8x8xf32> to vector<2x8xf32>
    %c2_288 = arith.constant 2 : index
    %c24_289 = arith.constant 24 : index
    %343 = vector.load %arg29[%c2_288, %c24_289] : memref<8x32xf32, #tpu.memory_space<vmem>>, vector<2x8xf32>
    tpu.vector_store %arg29[%c2_288, %c24_289], %342 {strides = array<i32>} : memref<8x32xf32, #tpu.memory_space<vmem>>, vector<2x8xf32>,
    %344 = vector.extract_strided_slice %241 {offsets = [4, 0], sizes = [2, 8], strides = [1, 1]} : vector<8x32xf32> to vector<2x8xf32>
    %c0_290 = arith.constant 0 : index
    %c0_291 = arith.constant 0 : index
    %345 = vector.load %arg26[%c0_290, %c0_291] : memref<8x8xf32, #tpu.memory_space<vmem>>, vector<2x8xf32>
    tpu.vector_store %arg26[%c0_290, %c0_291], %344 {strides = array<i32>} : memref<8x8xf32, #tpu.memory_space<vmem>>, vector<2x8xf32>,
    %346 = vector.extract_strided_slice %244 {offsets = [4, 0], sizes = [2, 8], strides = [1, 1]} : vector<8x32xf32> to vector<2x8xf32>
    %c0_292 = arith.constant 0 : index
    %c0_293 = arith.constant 0 : index
    %347 = vector.load %arg27[%c0_292, %c0_293] : memref<8x8xf32, #tpu.memory_space<vmem>>, vector<2x8xf32>
    tpu.vector_store %arg27[%c0_292, %c0_293], %346 {strides = array<i32>} : memref<8x8xf32, #tpu.memory_space<vmem>>, vector<2x8xf32>,
    %348 = vector.extract_strided_slice %247 {offsets = [4, 0], sizes = [2, 8], strides = [1, 1]} : vector<8x32xf32> to vector<2x8xf32>
    %c0_294 = arith.constant 0 : index
    %c0_295 = arith.constant 0 : index
    %349 = vector.load %arg28[%c0_294, %c0_295] : memref<8x8xf32, #tpu.memory_space<vmem>>, vector<2x8xf32>
    tpu.vector_store %arg28[%c0_294, %c0_295], %348 {strides = array<i32>} : memref<8x8xf32, #tpu.memory_space<vmem>>, vector<2x8xf32>,
    %350 = vector.extract_strided_slice %241 {offsets = [4, 8], sizes = [2, 8], strides = [1, 1]} : vector<8x32xf32> to vector<2x8xf32>
    %c2_296 = arith.constant 2 : index
    %c0_297 = arith.constant 0 : index
    %351 = vector.load %arg26[%c2_296, %c0_297] : memref<8x8xf32, #tpu.memory_space<vmem>>, vector<2x8xf32>
    tpu.vector_store %arg26[%c2_296, %c0_297], %350 {strides = array<i32>} : memref<8x8xf32, #tpu.memory_space<vmem>>, vector<2x8xf32>,
    %352 = vector.extract_strided_slice %244 {offsets = [4, 8], sizes = [2, 8], strides = [1, 1]} : vector<8x32xf32> to vector<2x8xf32>
    %c2_298 = arith.constant 2 : index
    %c0_299 = arith.constant 0 : index
    %353 = vector.load %arg27[%c2_298, %c0_299] : memref<8x8xf32, #tpu.memory_space<vmem>>, vector<2x8xf32>
    tpu.vector_store %arg27[%c2_298, %c0_299], %352 {strides = array<i32>} : memref<8x8xf32, #tpu.memory_space<vmem>>, vector<2x8xf32>,
    %354 = vector.extract_strided_slice %247 {offsets = [4, 8], sizes = [2, 8], strides = [1, 1]} : vector<8x32xf32> to vector<2x8xf32>
    %c2_300 = arith.constant 2 : index
    %c0_301 = arith.constant 0 : index
    %355 = vector.load %arg28[%c2_300, %c0_301] : memref<8x8xf32, #tpu.memory_space<vmem>>, vector<2x8xf32>
    tpu.vector_store %arg28[%c2_300, %c0_301], %354 {strides = array<i32>} : memref<8x8xf32, #tpu.memory_space<vmem>>, vector<2x8xf32>,
    %356 = vector.extract_strided_slice %241 {offsets = [4, 16], sizes = [2, 8], strides = [1, 1]} : vector<8x32xf32> to vector<2x8xf32>
    %c4_302 = arith.constant 4 : index
    %c0_303 = arith.constant 0 : index
    %357 = vector.load %arg26[%c4_302, %c0_303] : memref<8x8xf32, #tpu.memory_space<vmem>>, vector<2x8xf32>
    tpu.vector_store %arg26[%c4_302, %c0_303], %356 {strides = array<i32>} : memref<8x8xf32, #tpu.memory_space<vmem>>, vector<2x8xf32>,
    %358 = vector.extract_strided_slice %244 {offsets = [4, 16], sizes = [2, 8], strides = [1, 1]} : vector<8x32xf32> to vector<2x8xf32>
    %c4_304 = arith.constant 4 : index
    %c0_305 = arith.constant 0 : index
    %359 = vector.load %arg27[%c4_304, %c0_305] : memref<8x8xf32, #tpu.memory_space<vmem>>, vector<2x8xf32>
    tpu.vector_store %arg27[%c4_304, %c0_305], %358 {strides = array<i32>} : memref<8x8xf32, #tpu.memory_space<vmem>>, vector<2x8xf32>,
    %360 = vector.extract_strided_slice %247 {offsets = [4, 16], sizes = [2, 8], strides = [1, 1]} : vector<8x32xf32> to vector<2x8xf32>
    %c4_306 = arith.constant 4 : index
    %c0_307 = arith.constant 0 : index
    %361 = vector.load %arg28[%c4_306, %c0_307] : memref<8x8xf32, #tpu.memory_space<vmem>>, vector<2x8xf32>
    tpu.vector_store %arg28[%c4_306, %c0_307], %360 {strides = array<i32>} : memref<8x8xf32, #tpu.memory_space<vmem>>, vector<2x8xf32>,
    %362 = vector.extract_strided_slice %241 {offsets = [4, 24], sizes = [2, 8], strides = [1, 1]} : vector<8x32xf32> to vector<2x8xf32>
    %c6_308 = arith.constant 6 : index
    %c0_309 = arith.constant 0 : index
    %363 = vector.load %arg26[%c6_308, %c0_309] : memref<8x8xf32, #tpu.memory_space<vmem>>, vector<2x8xf32>
    tpu.vector_store %arg26[%c6_308, %c0_309], %362 {strides = array<i32>} : memref<8x8xf32, #tpu.memory_space<vmem>>, vector<2x8xf32>,
    %364 = vector.extract_strided_slice %244 {offsets = [4, 24], sizes = [2, 8], strides = [1, 1]} : vector<8x32xf32> to vector<2x8xf32>
    %c6_310 = arith.constant 6 : index
    %c0_311 = arith.constant 0 : index
    %365 = vector.load %arg27[%c6_310, %c0_311] : memref<8x8xf32, #tpu.memory_space<vmem>>, vector<2x8xf32>
    tpu.vector_store %arg27[%c6_310, %c0_311], %364 {strides = array<i32>} : memref<8x8xf32, #tpu.memory_space<vmem>>, vector<2x8xf32>,
    %366 = vector.extract_strided_slice %247 {offsets = [4, 24], sizes = [2, 8], strides = [1, 1]} : vector<8x32xf32> to vector<2x8xf32>
    %c6_312 = arith.constant 6 : index
    %c0_313 = arith.constant 0 : index
    %367 = vector.load %arg28[%c6_312, %c0_313] : memref<8x8xf32, #tpu.memory_space<vmem>>, vector<2x8xf32>
    tpu.vector_store %arg28[%c6_312, %c0_313], %366 {strides = array<i32>} : memref<8x8xf32, #tpu.memory_space<vmem>>, vector<2x8xf32>,
    %c0_314 = arith.constant 0 : index
    %c0_315 = arith.constant 0 : index
    %368 = vector.load %arg26[%c0_314, %c0_315] : memref<8x8xf32, #tpu.memory_space<vmem>>, vector<8x8xf32>
    %c0_316 = arith.constant 0 : index
    %c0_317 = arith.constant 0 : index
    %369 = vector.load %arg27[%c0_316, %c0_317] : memref<8x8xf32, #tpu.memory_space<vmem>>, vector<8x8xf32>
    %c0_318 = arith.constant 0 : index
    %c0_319 = arith.constant 0 : index
    %370 = vector.load %arg28[%c0_318, %c0_319] : memref<8x8xf32, #tpu.memory_space<vmem>>, vector<8x8xf32>
    "tpu.trace_start"() <{level = 10 : i32, message = "qd,kd->qk"}> : () -> ()
    %cst_320 = arith.constant dense<0.000000e+00> : vector<8x8xf32>
    %371 = tpu.matmul %368, %369, %cst_320 {dimension_numbers = #tpu.dot_dimension_numbers<[1], [1], [0], [0], [0, 0, 1, 0], [], []>} : vector<8x8xf32>, vector<8x8xf32>, vector<8x8xf32> -> vector<8x8xf32>
    "tpu.trace_stop"() : () -> ()
    %372 = arith.addf %371, %238 : vector<8x8xf32>
    %cst_321 = arith.constant dense<0xFF800000> : vector<8xf32>
    %373 = vector.multi_reduction <maximumf>, %372, %cst_321 [1] : vector<8x8xf32> to vector<8xf32>
    %374 = vector.shape_cast %373 : vector<8xf32> to vector<8x1xf32>
    %375 = vector.broadcast %374 : vector<8x1xf32> to vector<8x8xf32>
    %376 = arith.subf %372, %375 : vector<8x8xf32>
    %377 = math.exp %376 : vector<8x8xf32>
    %cst_322 = arith.constant dense<0.000000e+00> : vector<8xf32>
    %378 = vector.multi_reduction <add>, %377, %cst_322 [1] : vector<8x8xf32> to vector<8xf32>
    %379 = vector.shape_cast %378 : vector<8xf32> to vector<8x1xf32>
    %380 = tpu.reciprocal %379 {approx = true} : vector<8x1xf32> -> vector<8x1xf32>
    %381 = vector.broadcast %380 : vector<8x1xf32> to vector<8x8xf32>
    %382 = arith.mulf %377, %381 : vector<8x8xf32>
    %cst_323 = arith.constant dense<0.000000e+00> : vector<8x8xf32>
    %383 = tpu.matmul %382, %370, %cst_323 {dimension_numbers = #tpu.dot_dimension_numbers<[1], [0], [0], [1], [0, 0, 1, 1], [], []>} : vector<8x8xf32>, vector<8x8xf32>, vector<8x8xf32> -> vector<8x8xf32>
    %384 = vector.extract_strided_slice %383 {offsets = [0, 0], sizes = [2, 8], strides = [1, 1]} : vector<8x8xf32> to vector<2x8xf32>
    %c4_324 = arith.constant 4 : index
    %c0_325 = arith.constant 0 : index
    %385 = vector.load %arg29[%c4_324, %c0_325] : memref<8x32xf32, #tpu.memory_space<vmem>>, vector<2x8xf32>
    tpu.vector_store %arg29[%c4_324, %c0_325], %384 {strides = array<i32>} : memref<8x32xf32, #tpu.memory_space<vmem>>, vector<2x8xf32>,
    %386 = vector.extract_strided_slice %383 {offsets = [2, 0], sizes = [2, 8], strides = [1, 1]} : vector<8x8xf32> to vector<2x8xf32>
    %c4_326 = arith.constant 4 : index
    %c8_327 = arith.constant 8 : index
    %387 = vector.load %arg29[%c4_326, %c8_327] : memref<8x32xf32, #tpu.memory_space<vmem>>, vector<2x8xf32>
    tpu.vector_store %arg29[%c4_326, %c8_327], %386 {strides = array<i32>} : memref<8x32xf32, #tpu.memory_space<vmem>>, vector<2x8xf32>,
    %388 = vector.extract_strided_slice %383 {offsets = [4, 0], sizes = [2, 8], strides = [1, 1]} : vector<8x8xf32> to vector<2x8xf32>
    %c4_328 = arith.constant 4 : index
    %c16_329 = arith.constant 16 : index
    %389 = vector.load %arg29[%c4_328, %c16_329] : memref<8x32xf32, #tpu.memory_space<vmem>>, vector<2x8xf32>
    tpu.vector_store %arg29[%c4_328, %c16_329], %388 {strides = array<i32>} : memref<8x32xf32, #tpu.memory_space<vmem>>, vector<2x8xf32>,
    %390 = vector.extract_strided_slice %383 {offsets = [6, 0], sizes = [2, 8], strides = [1, 1]} : vector<8x8xf32> to vector<2x8xf32>
    %c4_330 = arith.constant 4 : index
    %c24_331 = arith.constant 24 : index
    %391 = vector.load %arg29[%c4_330, %c24_331] : memref<8x32xf32, #tpu.memory_space<vmem>>, vector<2x8xf32>
    tpu.vector_store %arg29[%c4_330, %c24_331], %390 {strides = array<i32>} : memref<8x32xf32, #tpu.memory_space<vmem>>, vector<2x8xf32>,
    %392 = vector.extract_strided_slice %241 {offsets = [6, 0], sizes = [2, 8], strides = [1, 1]} : vector<8x32xf32> to vector<2x8xf32>
    %c0_332 = arith.constant 0 : index
    %c0_333 = arith.constant 0 : index
    %393 = vector.load %arg26[%c0_332, %c0_333] : memref<8x8xf32, #tpu.memory_space<vmem>>, vector<2x8xf32>
    tpu.vector_store %arg26[%c0_332, %c0_333], %392 {strides = array<i32>} : memref<8x8xf32, #tpu.memory_space<vmem>>, vector<2x8xf32>,
    %394 = vector.extract_strided_slice %244 {offsets = [6, 0], sizes = [2, 8], strides = [1, 1]} : vector<8x32xf32> to vector<2x8xf32>
    %c0_334 = arith.constant 0 : index
    %c0_335 = arith.constant 0 : index
    %395 = vector.load %arg27[%c0_334, %c0_335] : memref<8x8xf32, #tpu.memory_space<vmem>>, vector<2x8xf32>
    tpu.vector_store %arg27[%c0_334, %c0_335], %394 {strides = array<i32>} : memref<8x8xf32, #tpu.memory_space<vmem>>, vector<2x8xf32>,
    %396 = vector.extract_strided_slice %247 {offsets = [6, 0], sizes = [2, 8], strides = [1, 1]} : vector<8x32xf32> to vector<2x8xf32>
    %c0_336 = arith.constant 0 : index
    %c0_337 = arith.constant 0 : index
    %397 = vector.load %arg28[%c0_336, %c0_337] : memref<8x8xf32, #tpu.memory_space<vmem>>, vector<2x8xf32>
    tpu.vector_store %arg28[%c0_336, %c0_337], %396 {strides = array<i32>} : memref<8x8xf32, #tpu.memory_space<vmem>>, vector<2x8xf32>,
    %398 = vector.extract_strided_slice %241 {offsets = [6, 8], sizes = [2, 8], strides = [1, 1]} : vector<8x32xf32> to vector<2x8xf32>
    %c2_338 = arith.constant 2 : index
    %c0_339 = arith.constant 0 : index
    %399 = vector.load %arg26[%c2_338, %c0_339] : memref<8x8xf32, #tpu.memory_space<vmem>>, vector<2x8xf32>
    tpu.vector_store %arg26[%c2_338, %c0_339], %398 {strides = array<i32>} : memref<8x8xf32, #tpu.memory_space<vmem>>, vector<2x8xf32>,
    %400 = vector.extract_strided_slice %244 {offsets = [6, 8], sizes = [2, 8], strides = [1, 1]} : vector<8x32xf32> to vector<2x8xf32>
    %c2_340 = arith.constant 2 : index
    %c0_341 = arith.constant 0 : index
    %401 = vector.load %arg27[%c2_340, %c0_341] : memref<8x8xf32, #tpu.memory_space<vmem>>, vector<2x8xf32>
    tpu.vector_store %arg27[%c2_340, %c0_341], %400 {strides = array<i32>} : memref<8x8xf32, #tpu.memory_space<vmem>>, vector<2x8xf32>,
    %402 = vector.extract_strided_slice %247 {offsets = [6, 8], sizes = [2, 8], strides = [1, 1]} : vector<8x32xf32> to vector<2x8xf32>
    %c2_342 = arith.constant 2 : index
    %c0_343 = arith.constant 0 : index
    %403 = vector.load %arg28[%c2_342, %c0_343] : memref<8x8xf32, #tpu.memory_space<vmem>>, vector<2x8xf32>
    tpu.vector_store %arg28[%c2_342, %c0_343], %402 {strides = array<i32>} : memref<8x8xf32, #tpu.memory_space<vmem>>, vector<2x8xf32>,
    %404 = vector.extract_strided_slice %241 {offsets = [6, 16], sizes = [2, 8], strides = [1, 1]} : vector<8x32xf32> to vector<2x8xf32>
    %c4_344 = arith.constant 4 : index
    %c0_345 = arith.constant 0 : index
    %405 = vector.load %arg26[%c4_344, %c0_345] : memref<8x8xf32, #tpu.memory_space<vmem>>, vector<2x8xf32>
    tpu.vector_store %arg26[%c4_344, %c0_345], %404 {strides = array<i32>} : memref<8x8xf32, #tpu.memory_space<vmem>>, vector<2x8xf32>,
    %406 = vector.extract_strided_slice %244 {offsets = [6, 16], sizes = [2, 8], strides = [1, 1]} : vector<8x32xf32> to vector<2x8xf32>
    %c4_346 = arith.constant 4 : index
    %c0_347 = arith.constant 0 : index
    %407 = vector.load %arg27[%c4_346, %c0_347] : memref<8x8xf32, #tpu.memory_space<vmem>>, vector<2x8xf32>
    tpu.vector_store %arg27[%c4_346, %c0_347], %406 {strides = array<i32>} : memref<8x8xf32, #tpu.memory_space<vmem>>, vector<2x8xf32>,
    %408 = vector.extract_strided_slice %247 {offsets = [6, 16], sizes = [2, 8], strides = [1, 1]} : vector<8x32xf32> to vector<2x8xf32>
    %c4_348 = arith.constant 4 : index
    %c0_349 = arith.constant 0 : index
    %409 = vector.load %arg28[%c4_348, %c0_349] : memref<8x8xf32, #tpu.memory_space<vmem>>, vector<2x8xf32>
    tpu.vector_store %arg28[%c4_348, %c0_349], %408 {strides = array<i32>} : memref<8x8xf32, #tpu.memory_space<vmem>>, vector<2x8xf32>,
    %410 = vector.extract_strided_slice %241 {offsets = [6, 24], sizes = [2, 8], strides = [1, 1]} : vector<8x32xf32> to vector<2x8xf32>
    %c6_350 = arith.constant 6 : index
    %c0_351 = arith.constant 0 : index
    %411 = vector.load %arg26[%c6_350, %c0_351] : memref<8x8xf32, #tpu.memory_space<vmem>>, vector<2x8xf32>
    tpu.vector_store %arg26[%c6_350, %c0_351], %410 {strides = array<i32>} : memref<8x8xf32, #tpu.memory_space<vmem>>, vector<2x8xf32>,
    %412 = vector.extract_strided_slice %244 {offsets = [6, 24], sizes = [2, 8], strides = [1, 1]} : vector<8x32xf32> to vector<2x8xf32>
    %c6_352 = arith.constant 6 : index
    %c0_353 = arith.constant 0 : index
    %413 = vector.load %arg27[%c6_352, %c0_353] : memref<8x8xf32, #tpu.memory_space<vmem>>, vector<2x8xf32>
    tpu.vector_store %arg27[%c6_352, %c0_353], %412 {strides = array<i32>} : memref<8x8xf32, #tpu.memory_space<vmem>>, vector<2x8xf32>,
    %414 = vector.extract_strided_slice %247 {offsets = [6, 24], sizes = [2, 8], strides = [1, 1]} : vector<8x32xf32> to vector<2x8xf32>
    %c6_354 = arith.constant 6 : index
    %c0_355 = arith.constant 0 : index
    %415 = vector.load %arg28[%c6_354, %c0_355] : memref<8x8xf32, #tpu.memory_space<vmem>>, vector<2x8xf32>
    tpu.vector_store %arg28[%c6_354, %c0_355], %414 {strides = array<i32>} : memref<8x8xf32, #tpu.memory_space<vmem>>, vector<2x8xf32>,
    %c0_356 = arith.constant 0 : index
    %c0_357 = arith.constant 0 : index
    %416 = vector.load %arg26[%c0_356, %c0_357] : memref<8x8xf32, #tpu.memory_space<vmem>>, vector<8x8xf32>
    %c0_358 = arith.constant 0 : index
    %c0_359 = arith.constant 0 : index
    %417 = vector.load %arg27[%c0_358, %c0_359] : memref<8x8xf32, #tpu.memory_space<vmem>>, vector<8x8xf32>
    %c0_360 = arith.constant 0 : index
    %c0_361 = arith.constant 0 : index
    %418 = vector.load %arg28[%c0_360, %c0_361] : memref<8x8xf32, #tpu.memory_space<vmem>>, vector<8x8xf32>
    "tpu.trace_start"() <{level = 10 : i32, message = "qd,kd->qk"}> : () -> ()
    %cst_362 = arith.constant dense<0.000000e+00> : vector<8x8xf32>
    %419 = tpu.matmul %416, %417, %cst_362 {dimension_numbers = #tpu.dot_dimension_numbers<[1], [1], [0], [0], [0, 0, 1, 0], [], []>} : vector<8x8xf32>, vector<8x8xf32>, vector<8x8xf32> -> vector<8x8xf32>
    "tpu.trace_stop"() : () -> ()
    %420 = arith.addf %419, %238 : vector<8x8xf32>
    %cst_363 = arith.constant dense<0xFF800000> : vector<8xf32>
    %421 = vector.multi_reduction <maximumf>, %420, %cst_363 [1] : vector<8x8xf32> to vector<8xf32>
    %422 = vector.shape_cast %421 : vector<8xf32> to vector<8x1xf32>
    %423 = vector.broadcast %422 : vector<8x1xf32> to vector<8x8xf32>
    %424 = arith.subf %420, %423 : vector<8x8xf32>
    %425 = math.exp %424 : vector<8x8xf32>
    %cst_364 = arith.constant dense<0.000000e+00> : vector<8xf32>
    %426 = vector.multi_reduction <add>, %425, %cst_364 [1] : vector<8x8xf32> to vector<8xf32>
    %427 = vector.shape_cast %426 : vector<8xf32> to vector<8x1xf32>
    %428 = tpu.reciprocal %427 {approx = true} : vector<8x1xf32> -> vector<8x1xf32>
    %429 = vector.broadcast %428 : vector<8x1xf32> to vector<8x8xf32>
    %430 = arith.mulf %425, %429 : vector<8x8xf32>
    %cst_365 = arith.constant dense<0.000000e+00> : vector<8x8xf32>
    %431 = tpu.matmul %430, %418, %cst_365 {dimension_numbers = #tpu.dot_dimension_numbers<[1], [0], [0], [1], [0, 0, 1, 1], [], []>} : vector<8x8xf32>, vector<8x8xf32>, vector<8x8xf32> -> vector<8x8xf32>
    %432 = vector.extract_strided_slice %431 {offsets = [0, 0], sizes = [2, 8], strides = [1, 1]} : vector<8x8xf32> to vector<2x8xf32>
    %c6_366 = arith.constant 6 : index
    %c0_367 = arith.constant 0 : index
    %433 = vector.load %arg29[%c6_366, %c0_367] : memref<8x32xf32, #tpu.memory_space<vmem>>, vector<2x8xf32>
    tpu.vector_store %arg29[%c6_366, %c0_367], %432 {strides = array<i32>} : memref<8x32xf32, #tpu.memory_space<vmem>>, vector<2x8xf32>,
    %434 = vector.extract_strided_slice %431 {offsets = [2, 0], sizes = [2, 8], strides = [1, 1]} : vector<8x8xf32> to vector<2x8xf32>
    %c6_368 = arith.constant 6 : index
    %c8_369 = arith.constant 8 : index
    %435 = vector.load %arg29[%c6_368, %c8_369] : memref<8x32xf32, #tpu.memory_space<vmem>>, vector<2x8xf32>
    tpu.vector_store %arg29[%c6_368, %c8_369], %434 {strides = array<i32>} : memref<8x32xf32, #tpu.memory_space<vmem>>, vector<2x8xf32>,
    %436 = vector.extract_strided_slice %431 {offsets = [4, 0], sizes = [2, 8], strides = [1, 1]} : vector<8x8xf32> to vector<2x8xf32>
    %c6_370 = arith.constant 6 : index
    %c16_371 = arith.constant 16 : index
    %437 = vector.load %arg29[%c6_370, %c16_371] : memref<8x32xf32, #tpu.memory_space<vmem>>, vector<2x8xf32>
    tpu.vector_store %arg29[%c6_370, %c16_371], %436 {strides = array<i32>} : memref<8x32xf32, #tpu.memory_space<vmem>>, vector<2x8xf32>,
    %438 = vector.extract_strided_slice %431 {offsets = [6, 0], sizes = [2, 8], strides = [1, 1]} : vector<8x8xf32> to vector<2x8xf32>
    %c6_372 = arith.constant 6 : index
    %c24_373 = arith.constant 24 : index
    %439 = vector.load %arg29[%c6_372, %c24_373] : memref<8x32xf32, #tpu.memory_space<vmem>>, vector<2x8xf32>
    tpu.vector_store %arg29[%c6_372, %c24_373], %438 {strides = array<i32>} : memref<8x32xf32, #tpu.memory_space<vmem>>, vector<2x8xf32>,
    %c0_374 = arith.constant 0 : index
    %c0_375 = arith.constant 0 : index
    %440 = vector.load %arg29[%c0_374, %c0_375] : memref<8x32xf32, #tpu.memory_space<vmem>>, vector<8x32xf32>
    %441 = arith.truncf %440 : vector<8x32xf32> to vector<8x32xbf16>
    %c0_376 = arith.constant 0 : index
    %c0_377 = arith.constant 0 : index
    %442 = vector.load %arg15[%c0_376, %c0_377] : memref<32x32xbf16, #tpu.memory_space<vmem>>, vector<32x32xbf16>
    %cst_378 = arith.constant dense<0.000000e+00> : vector<8x32xf32>
    %443 = tpu.matmul %441, %442, %cst_378 {dimension_numbers = #tpu.dot_dimension_numbers<[1], [0], [0], [1], [0, 0, 1, 1], [], []>} : vector<8x32xbf16>, vector<32x32xbf16>, vector<8x32xf32> -> vector<8x32xf32>
    %c0_379 = arith.constant 0 : index
    %c0_380 = arith.constant 0 : index
    %444 = vector.load %arg16[%c0_379, %c0_380] : memref<1x32xf32, #tpu.memory_space<vmem>>, vector<1x32xf32>
    %445 = vector.broadcast %444 : vector<1x32xf32> to vector<8x32xf32>
    %446 = arith.addf %443, %445 : vector<8x32xf32>
    %447 = arith.addf %446, %236 : vector<8x32xf32>
    %c0_381 = arith.constant 0 : index
    %c0_382 = arith.constant 0 : index
    %448 = vector.load %arg17[%c0_381, %c0_382] : memref<1x32xf32, #tpu.memory_space<vmem>>, vector<1x32xf32>
    %c0_383 = arith.constant 0 : index
    %c0_384 = arith.constant 0 : index
    %449 = vector.load %arg18[%c0_383, %c0_384] : memref<1x32xf32, #tpu.memory_space<vmem>>, vector<1x32xf32>
    %cst_385 = arith.constant dense<0.000000e+00> : vector<8xf32>
    %450 = vector.multi_reduction <add>, %447, %cst_385 [1] : vector<8x32xf32> to vector<8xf32>
    %451 = vector.shape_cast %450 : vector<8xf32> to vector<8x1xf32>
    %cst_386 = arith.constant 3.200000e+01 : f32
    %452 = vector.broadcast %cst_386 : f32 to vector<8x1xf32>
    %453 = arith.divf %451, %452 : vector<8x1xf32>
    %454 = vector.broadcast %453 : vector<8x1xf32> to vector<8x32xf32>
    %455 = arith.subf %447, %454 : vector<8x32xf32>
    %456 = arith.mulf %455, %455 : vector<8x32xf32>
    %cst_387 = arith.constant dense<0.000000e+00> : vector<8xf32>
    %457 = vector.multi_reduction <add>, %456, %cst_387 [1] : vector<8x32xf32> to vector<8xf32>
    %458 = vector.shape_cast %457 : vector<8xf32> to vector<8x1xf32>
    %cst_388 = arith.constant 3.200000e+01 : f32
    %459 = vector.broadcast %cst_388 : f32 to vector<8x1xf32>
    %460 = arith.divf %458, %459 : vector<8x1xf32>
    %cst_389 = arith.constant 9.99999974E-6 : f32
    %461 = vector.broadcast %cst_389 : f32 to vector<8x1xf32>
    %462 = arith.addf %460, %461 : vector<8x1xf32>
    %463 = math.rsqrt %462 : vector<8x1xf32>
    %464 = vector.broadcast %463 : vector<8x1xf32> to vector<8x32xf32>
    %465 = arith.mulf %455, %464 : vector<8x32xf32>
    %466 = vector.broadcast %448 : vector<1x32xf32> to vector<8x32xf32>
    %467 = arith.mulf %465, %466 : vector<8x32xf32>
    %468 = vector.broadcast %449 : vector<1x32xf32> to vector<8x32xf32>
    %469 = arith.addf %467, %468 : vector<8x32xf32>
    %470 = arith.truncf %469 : vector<8x32xf32> to vector<8x32xbf16>
    %c0_390 = arith.constant 0 : index
    %c0_391 = arith.constant 0 : index
    %471 = vector.load %arg19[%c0_390, %c0_391] : memref<32x64xbf16, #tpu.memory_space<vmem>>, vector<32x64xbf16>
    %cst_392 = arith.constant dense<0.000000e+00> : vector<8x64xf32>
    %472 = tpu.matmul %470, %471, %cst_392 {dimension_numbers = #tpu.dot_dimension_numbers<[1], [0], [0], [1], [0, 0, 1, 1], [], []>} : vector<8x32xbf16>, vector<32x64xbf16>, vector<8x64xf32> -> vector<8x64xf32>
    %c0_393 = arith.constant 0 : index
    %c0_394 = arith.constant 0 : index
    %473 = vector.load %arg20[%c0_393, %c0_394] : memref<1x64xf32, #tpu.memory_space<vmem>>, vector<1x64xf32>
    %474 = vector.broadcast %473 : vector<1x64xf32> to vector<8x64xf32>
    %475 = arith.addf %472, %474 : vector<8x64xf32>
    %cst_395 = arith.constant 0.000000e+00 : f32
    %476 = vector.broadcast %cst_395 : f32 to vector<8x64xf32>
    %477 = arith.maximumf %475, %476 : vector<8x64xf32>
    %478 = arith.truncf %477 : vector<8x64xf32> to vector<8x64xbf16>
    %c0_396 = arith.constant 0 : index
    %c0_397 = arith.constant 0 : index
    %479 = vector.load %arg21[%c0_396, %c0_397] : memref<64x32xbf16, #tpu.memory_space<vmem>>, vector<64x32xbf16>
    %cst_398 = arith.constant dense<0.000000e+00> : vector<8x32xf32>
    %480 = tpu.matmul %478, %479, %cst_398 {dimension_numbers = #tpu.dot_dimension_numbers<[1], [0], [0], [1], [0, 0, 1, 1], [], []>} : vector<8x64xbf16>, vector<64x32xbf16>, vector<8x32xf32> -> vector<8x32xf32>
    %c0_399 = arith.constant 0 : index
    %c0_400 = arith.constant 0 : index
    %481 = vector.load %arg22[%c0_399, %c0_400] : memref<1x32xf32, #tpu.memory_space<vmem>>, vector<1x32xf32>
    %482 = vector.broadcast %481 : vector<1x32xf32> to vector<8x32xf32>
    %483 = arith.addf %480, %482 : vector<8x32xf32>
    %484 = arith.addf %483, %469 : vector<8x32xf32>
    %c0_401 = arith.constant 0 : index
    %c0_402 = arith.constant 0 : index
    %485 = vector.load %arg23[%c0_401, %c0_402] : memref<1x32xf32, #tpu.memory_space<vmem>>, vector<1x32xf32>
    %c0_403 = arith.constant 0 : index
    %c0_404 = arith.constant 0 : index
    %486 = vector.load %arg24[%c0_403, %c0_404] : memref<1x32xf32, #tpu.memory_space<vmem>>, vector<1x32xf32>
    %cst_405 = arith.constant dense<0.000000e+00> : vector<8xf32>
    %487 = vector.multi_reduction <add>, %484, %cst_405 [1] : vector<8x32xf32> to vector<8xf32>
    %488 = vector.shape_cast %487 : vector<8xf32> to vector<8x1xf32>
    %cst_406 = arith.constant 3.200000e+01 : f32
    %489 = vector.broadcast %cst_406 : f32 to vector<8x1xf32>
    %490 = arith.divf %488, %489 : vector<8x1xf32>
    %491 = vector.broadcast %490 : vector<8x1xf32> to vector<8x32xf32>
    %492 = arith.subf %484, %491 : vector<8x32xf32>
    %493 = arith.mulf %492, %492 : vector<8x32xf32>
    %cst_407 = arith.constant dense<0.000000e+00> : vector<8xf32>
    %494 = vector.multi_reduction <add>, %493, %cst_407 [1] : vector<8x32xf32> to vector<8xf32>
    %495 = vector.shape_cast %494 : vector<8xf32> to vector<8x1xf32>
    %cst_408 = arith.constant 3.200000e+01 : f32
    %496 = vector.broadcast %cst_408 : f32 to vector<8x1xf32>
    %497 = arith.divf %495, %496 : vector<8x1xf32>
    %cst_409 = arith.constant 9.99999974E-6 : f32
    %498 = vector.broadcast %cst_409 : f32 to vector<8x1xf32>
    %499 = arith.addf %497, %498 : vector<8x1xf32>
    %500 = math.rsqrt %499 : vector<8x1xf32>
    %501 = vector.broadcast %500 : vector<8x1xf32> to vector<8x32xf32>
    %502 = arith.mulf %492, %501 : vector<8x32xf32>
    %503 = vector.broadcast %485 : vector<1x32xf32> to vector<8x32xf32>
    %504 = arith.mulf %502, %503 : vector<8x32xf32>
    %505 = vector.broadcast %486 : vector<1x32xf32> to vector<8x32xf32>
    %506 = arith.addf %504, %505 : vector<8x32xf32>
    %c0_410 = arith.constant 0 : index
    %c0_411 = arith.constant 0 : index
    %c0_412 = arith.constant 0 : index
    %507 = vector.load %arg25[%c0_410, %c0_411, %c0_412] : memref<1x8x32xf32, #tpu.memory_space<vmem>>, vector<1x8x32xf32>
    %508 = vector.shape_cast %507 : vector<1x8x32xf32> to vector<8x32xf32>
    %509 = vector.shape_cast %506 : vector<8x32xf32> to vector<1x8x32xf32>
    tpu.vector_store %arg25[%c0_410, %c0_411, %c0_412], %509 {strides = array<i32>} : memref<1x8x32xf32, #tpu.memory_space<vmem>>, vector<1x8x32xf32>,
    return
  }
  func.func @transform_0(%arg0: i32) -> (i32, i32, i32) {
    %c0_i32 = arith.constant 0 : i32
    %c0_i32_0 = arith.constant 0 : i32
    %c0_i32_1 = arith.constant 0 : i32
    return %arg0, %c0_i32, %c0_i32_0 : i32, i32, i32
  }
  func.func @transform_1(%arg0: i32) -> (i32, i32, i32) {
    %c0_i32 = arith.constant 0 : i32
    %c0_i32_0 = arith.constant 0 : i32
    %c0_i32_1 = arith.constant 0 : i32
    return %arg0, %c0_i32, %c0_i32_0 : i32, i32, i32
  }
  func.func @transform_2(%arg0: i32) -> (i32, i32, i32) {
    %c0_i32 = arith.constant 0 : i32
    %c0_i32_0 = arith.constant 0 : i32
    %c0_i32_1 = arith.constant 0 : i32
    return %arg0, %c0_i32, %c0_i32_0 : i32, i32, i32
  }
  func.func @transform_3(%arg0: i32) -> (i32, i32, i32) {
    %c0_i32 = arith.constant 0 : i32
    %c0_i32_0 = arith.constant 0 : i32
    %c0_i32_1 = arith.constant 0 : i32
    return %arg0, %c0_i32, %c0_i32_0 : i32, i32, i32
  }
  func.func @transform_4(%arg0: i32) -> (i32, i32) {
    %c0_i32 = arith.constant 0 : i32
    %c0_i32_0 = arith.constant 0 : i32
    %c0_i32_1 = arith.constant 0 : i32
    return %c0_i32, %c0_i32_0 : i32, i32
  }
  func.func @transform_5(%arg0: i32) -> (i32, i32) {
    %c0_i32 = arith.constant 0 : i32
    %c0_i32_0 = arith.constant 0 : i32
    %c0_i32_1 = arith.constant 0 : i32
    return %c0_i32, %c0_i32_0 : i32, i32
  }
  func.func @transform_6(%arg0: i32) -> (i32, i32) {
    %c0_i32 = arith.constant 0 : i32
    %c0_i32_0 = arith.constant 0 : i32
    %c0_i32_1 = arith.constant 0 : i32
    return %c0_i32, %c0_i32_0 : i32, i32
  }
  func.func @transform_7(%arg0: i32) -> (i32, i32) {
    %c0_i32 = arith.constant 0 : i32
    %c0_i32_0 = arith.constant 0 : i32
    %c0_i32_1 = arith.constant 0 : i32
    return %c0_i32, %c0_i32_0 : i32, i32
  }
  func.func @transform_8(%arg0: i32) -> (i32, i32) {
    %c0_i32 = arith.constant 0 : i32
    %c0_i32_0 = arith.constant 0 : i32
    %c0_i32_1 = arith.constant 0 : i32
    return %c0_i32, %c0_i32_0 : i32, i32
  }
  func.func @transform_9(%arg0: i32) -> (i32, i32) {
    %c0_i32 = arith.constant 0 : i32
    %c0_i32_0 = arith.constant 0 : i32
    %c0_i32_1 = arith.constant 0 : i32
    return %c0_i32, %c0_i32_0 : i32, i32
  }
  func.func @transform_10(%arg0: i32) -> (i32, i32) {
    %c0_i32 = arith.constant 0 : i32
    %c0_i32_0 = arith.constant 0 : i32
    %c0_i32_1 = arith.constant 0 : i32
    return %c0_i32, %c0_i32_0 : i32, i32
  }
  func.func @transform_11(%arg0: i32) -> (i32, i32) {
    %c0_i32 = arith.constant 0 : i32
    %c0_i32_0 = arith.constant 0 : i32
    %c0_i32_1 = arith.constant 0 : i32
    return %c0_i32, %c0_i32_0 : i32, i32
  }
  func.func @transform_12(%arg0: i32) -> (i32, i32) {
    %c0_i32 = arith.constant 0 : i32
    %c0_i32_0 = arith.constant 0 : i32
    %c0_i32_1 = arith.constant 0 : i32
    return %c0_i32, %c0_i32_0 : i32, i32
  }
  func.func @transform_13(%arg0: i32) -> (i32, i32) {
    %c0_i32 = arith.constant 0 : i32
    %c0_i32_0 = arith.constant 0 : i32
    %c0_i32_1 = arith.constant 0 : i32
    return %c0_i32, %c0_i32_0 : i32, i32
  }
  func.func @transform_14(%arg0: i32) -> (i32, i32) {
    %c0_i32 = arith.constant 0 : i32
    %c0_i32_0 = arith.constant 0 : i32
    %c0_i32_1 = arith.constant 0 : i32
    return %c0_i32, %c0_i32_0 : i32, i32
  }
  func.func @transform_15(%arg0: i32) -> (i32, i32) {
    %c0_i32 = arith.constant 0 : i32
    %c0_i32_0 = arith.constant 0 : i32
    %c0_i32_1 = arith.constant 0 : i32
    return %c0_i32, %c0_i32_0 : i32, i32
  }
  func.func @transform_16(%arg0: i32) -> (i32, i32) {
    %c0_i32 = arith.constant 0 : i32
    %c0_i32_0 = arith.constant 0 : i32
    %c0_i32_1 = arith.constant 0 : i32
    return %c0_i32, %c0_i32_0 : i32, i32
  }
  func.func @transform_17(%arg0: i32) -> (i32, i32) {
    %c0_i32 = arith.constant 0 : i32
    %c0_i32_0 = arith.constant 0 : i32
    %c0_i32_1 = arith.constant 0 : i32
    return %c0_i32, %c0_i32_0 : i32, i32
  }
  func.func @transform_18(%arg0: i32) -> (i32, i32) {
    %c0_i32 = arith.constant 0 : i32
    %c0_i32_0 = arith.constant 0 : i32
    %c0_i32_1 = arith.constant 0 : i32
    return %c0_i32, %c0_i32_0 : i32, i32
  }
  func.func @transform_19(%arg0: i32) -> (i32, i32) {
    %c0_i32 = arith.constant 0 : i32
    %c0_i32_0 = arith.constant 0 : i32
    %c0_i32_1 = arith.constant 0 : i32
    return %c0_i32, %c0_i32_0 : i32, i32
  }
  func.func @transform_20(%arg0: i32) -> (i32, i32) {
    %c0_i32 = arith.constant 0 : i32
    %c0_i32_0 = arith.constant 0 : i32
    %c0_i32_1 = arith.constant 0 : i32
    return %c0_i32, %c0_i32_0 : i32, i32
  }
  func.func @transform_21(%arg0: i32) -> (i32, i32) {
    %c0_i32 = arith.constant 0 : i32
    %c0_i32_0 = arith.constant 0 : i32
    %c0_i32_1 = arith.constant 0 : i32
    return %c0_i32, %c0_i32_0 : i32, i32
  }
  func.func @transform_22(%arg0: i32) -> (i32, i32) {
    %c0_i32 = arith.constant 0 : i32
    %c0_i32_0 = arith.constant 0 : i32
    %c0_i32_1 = arith.constant 0 : i32
    return %c0_i32, %c0_i32_0 : i32, i32
  }
  func.func @transform_23(%arg0: i32) -> (i32, i32) {
    %c0_i32 = arith.constant 0 : i32
    %c0_i32_0 = arith.constant 0 : i32
    %c0_i32_1 = arith.constant 0 : i32
    return %c0_i32, %c0_i32_0 : i32, i32
  }
  func.func @transform_24(%arg0: i32) -> (i32, i32, i32) {
    %c0_i32 = arith.constant 0 : i32
    %c0_i32_0 = arith.constant 0 : i32
    %c0_i32_1 = arith.constant 0 : i32
    return %arg0, %c0_i32, %c0_i32_0 : i32, i32, i32
  }
}

module attributes {stable_mosaic.version = 11 : i64} {
  func.func @_decoder_layer_kernel(%arg0: i32, %arg1: memref<1x8x32xf32, #tpu.memory_space<vmem>>, %arg2: memref<1x8x32xf32, #tpu.memory_space<vmem>>, %arg3: memref<1x8x8xf32, #tpu.memory_space<vmem>>, %arg4: memref<1x8x8xf32, #tpu.memory_space<vmem>>, %arg5: memref<32x32xbf16, #tpu.memory_space<vmem>>, %arg6: memref<32x32xbf16, #tpu.memory_space<vmem>>, %arg7: memref<32x32xbf16, #tpu.memory_space<vmem>>, %arg8: memref<32x32xbf16, #tpu.memory_space<vmem>>, %arg9: memref<1x32xf32, #tpu.memory_space<vmem>>, %arg10: memref<1x32xf32, #tpu.memory_space<vmem>>, %arg11: memref<1x32xf32, #tpu.memory_space<vmem>>, %arg12: memref<32x32xbf16, #tpu.memory_space<vmem>>, %arg13: memref<32x32xbf16, #tpu.memory_space<vmem>>, %arg14: memref<32x32xbf16, #tpu.memory_space<vmem>>, %arg15: memref<32x32xbf16, #tpu.memory_space<vmem>>, %arg16: memref<1x32xf32, #tpu.memory_space<vmem>>, %arg17: memref<1x32xf32, #tpu.memory_space<vmem>>, %arg18: memref<1x32xf32, #tpu.memory_space<vmem>>, %arg19: memref<32x64xbf16, #tpu.memory_space<vmem>>, %arg20: memref<1x64xf32, #tpu.memory_space<vmem>>, %arg21: memref<64x32xbf16, #tpu.memory_space<vmem>>, %arg22: memref<1x32xf32, #tpu.memory_space<vmem>>, %arg23: memref<1x32xf32, #tpu.memory_space<vmem>>, %arg24: memref<1x32xf32, #tpu.memory_space<vmem>>, %arg25: memref<1x8x32xf32, #tpu.memory_space<vmem>>, %arg26: memref<8x8xf32, #tpu.memory_space<vmem>>, %arg27: memref<8x8xf32, #tpu.memory_space<vmem>>, %arg28: memref<8x8xf32, #tpu.memory_space<vmem>>, %arg29: memref<8x32xf32, #tpu.memory_space<vmem>>) attributes {dimension_semantics = [#tpu.dimension_semantics<parallel>], iteration_bounds = array<i64: 2>, scalar_prefetch = 0 : i64, scratch_operands = 4 : i64, tpu.core_type = #tpu.core_type<tc>, window_params = [{transform_indices = @transform_0, window_bounds = array<i64: 1, 8, 32>}, {transform_indices = @transform_1, window_bounds = array<i64: 1, 8, 32>}, {transform_indices = @transform_2, window_bounds = array<i64: 1, 8, 8>}, {transform_indices = @transform_3, window_bounds = array<i64: 1, 8, 8>}, {pipeline_mode = #tpu.pipeline_mode<synchronous>, transform_indices = @transform_4, window_bounds = array<i64: 32, 32>}, {pipeline_mode = #tpu.pipeline_mode<synchronous>, transform_indices = @transform_5, window_bounds = array<i64: 32, 32>}, {pipeline_mode = #tpu.pipeline_mode<synchronous>, transform_indices = @transform_6, window_bounds = array<i64: 32, 32>}, {pipeline_mode = #tpu.pipeline_mode<synchronous>, transform_indices = @transform_7, window_bounds = array<i64: 32, 32>}, {pipeline_mode = #tpu.pipeline_mode<synchronous>, transform_indices = @transform_8, window_bounds = array<i64: 1, 32>}, {pipeline_mode = #tpu.pipeline_mode<synchronous>, transform_indices = @transform_9, window_bounds = array<i64: 1, 32>}, {pipeline_mode = #tpu.pipeline_mode<synchronous>, transform_indices = @transform_10, window_bounds = array<i64: 1, 32>}, {pipeline_mode = #tpu.pipeline_mode<synchronous>, transform_indices = @transform_11, window_bounds = array<i64: 32, 32>}, {pipeline_mode = #tpu.pipeline_mode<synchronous>, transform_indices = @transform_12, window_bounds = array<i64: 32, 32>}, {pipeline_mode = #tpu.pipeline_mode<synchronous>, transform_indices = @transform_13, window_bounds = array<i64: 32, 32>}, {pipeline_mode = #tpu.pipeline_mode<synchronous>, transform_indices = @transform_14, window_bounds = array<i64: 32, 32>}, {pipeline_mode = #tpu.pipeline_mode<synchronous>, transform_indices = @transform_15, window_bounds = array<i64: 1, 32>}, {pipeline_mode = #tpu.pipeline_mode<synchronous>, transform_indices = @transform_16, window_bounds = array<i64: 1, 32>}, {pipeline_mode = #tpu.pipeline_mode<synchronous>, transform_indices = @transform_17, window_bounds = array<i64: 1, 32>}, {pipeline_mode = #tpu.pipeline_mode<synchronous>, transform_indices = @transform_18, window_bounds = array<i64: 32, 64>}, {pipeline_mode = #tpu.pipeline_mode<synchronous>, transform_indices = @transform_19, window_bounds = array<i64: 1, 64>}, {pipeline_mode = #tpu.pipeline_mode<synchronous>, transform_indices = @transform_20, window_bounds = array<i64: 64, 32>}, {pipeline_mode = #tpu.pipeline_mode<synchronous>, transform_indices = @transform_21, window_bounds = array<i64: 1, 32>}, {pipeline_mode = #tpu.pipeline_mode<synchronous>, transform_indices = @transform_22, window_bounds = array<i64: 1, 32>}, {pipeline_mode = #tpu.pipeline_mode<synchronous>, transform_indices = @transform_23, window_bounds = array<i64: 1, 32>}, {transform_indices = @transform_24, window_bounds = array<i64: 1, 8, 32>}]} {
    %c0 = arith.constant 0 : index
    %c0_0 = arith.constant 0 : index
    %c0_1 = arith.constant 0 : index
    %0 = vector.load %arg1[%c0, %c0_0, %c0_1] : memref<1x8x32xf32, #tpu.memory_space<vmem>>, vector<1x8x32xf32>
    %1 = vector.shape_cast %0 : vector<1x8x32xf32> to vector<8x32xf32>
    %c0_2 = arith.constant 0 : index
    %c0_3 = arith.constant 0 : index
    %c0_4 = arith.constant 0 : index
    %2 = vector.load %arg2[%c0_2, %c0_3, %c0_4] : memref<1x8x32xf32, #tpu.memory_space<vmem>>, vector<1x8x32xf32>
    %3 = vector.shape_cast %2 : vector<1x8x32xf32> to vector<8x32xf32>
    %c0_5 = arith.constant 0 : index
    %c0_6 = arith.constant 0 : index
    %c0_7 = arith.constant 0 : index
    %4 = vector.load %arg3[%c0_5, %c0_6, %c0_7] : memref<1x8x8xf32, #tpu.memory_space<vmem>>, vector<1x8x8xf32>
    %5 = vector.shape_cast %4 : vector<1x8x8xf32> to vector<8x8xf32>
    %6 = arith.truncf %1 : vector<8x32xf32> to vector<8x32xbf16>
    %c0_8 = arith.constant 0 : index
    %c0_9 = arith.constant 0 : index
    %7 = vector.load %arg5[%c0_8, %c0_9] : memref<32x32xbf16, #tpu.memory_space<vmem>>, vector<32x32xbf16>
    %cst = arith.constant dense<0.000000e+00> : vector<8x32xf32>
    %8 = tpu.matmul %6, %7, %cst {dimension_numbers = #tpu.dot_dimension_numbers<[1], [0], [0], [1], [0, 0, 1, 1], [], []>} : vector<8x32xbf16>, vector<32x32xbf16>, vector<8x32xf32> -> vector<8x32xf32>
    %9 = arith.truncf %1 : vector<8x32xf32> to vector<8x32xbf16>
    %c0_10 = arith.constant 0 : index
    %c0_11 = arith.constant 0 : index
    %10 = vector.load %arg6[%c0_10, %c0_11] : memref<32x32xbf16, #tpu.memory_space<vmem>>, vector<32x32xbf16>
    %cst_12 = arith.constant dense<0.000000e+00> : vector<8x32xf32>
    %11 = tpu.matmul %9, %10, %cst_12 {dimension_numbers = #tpu.dot_dimension_numbers<[1], [0], [0], [1], [0, 0, 1, 1], [], []>} : vector<8x32xbf16>, vector<32x32xbf16>, vector<8x32xf32> -> vector<8x32xf32>
    %12 = arith.truncf %1 : vector<8x32xf32> to vector<8x32xbf16>
    %c0_13 = arith.constant 0 : index
    %c0_14 = arith.constant 0 : index
    %13 = vector.load %arg7[%c0_13, %c0_14] : memref<32x32xbf16, #tpu.memory_space<vmem>>, vector<32x32xbf16>
    %cst_15 = arith.constant dense<0.000000e+00> : vector<8x32xf32>
    %14 = tpu.matmul %12, %13, %cst_15 {dimension_numbers = #tpu.dot_dimension_numbers<[1], [0], [0], [1], [0, 0, 1, 1], [], []>} : vector<8x32xbf16>, vector<32x32xbf16>, vector<8x32xf32> -> vector<8x32xf32>
    %15 = vector.extract_strided_slice %8 {offsets = [0, 0], sizes = [2, 8], strides = [1, 1]} : vector<8x32xf32> to vector<2x8xf32>
    %c0_16 = arith.constant 0 : index
    %c0_17 = arith.constant 0 : index
    %16 = vector.load %arg26[%c0_16, %c0_17] : memref<8x8xf32, #tpu.memory_space<vmem>>, vector<2x8xf32>
    tpu.vector_store %arg26[%c0_16, %c0_17], %15 {strides = array<i32>} : memref<8x8xf32, #tpu.memory_space<vmem>>, vector<2x8xf32>,
    %17 = vector.extract_strided_slice %11 {offsets = [0, 0], sizes = [2, 8], strides = [1, 1]} : vector<8x32xf32> to vector<2x8xf32>
    %c0_18 = arith.constant 0 : index
    %c0_19 = arith.constant 0 : index
    %18 = vector.load %arg27[%c0_18, %c0_19] : memref<8x8xf32, #tpu.memory_space<vmem>>, vector<2x8xf32>
    tpu.vector_store %arg27[%c0_18, %c0_19], %17 {strides = array<i32>} : memref<8x8xf32, #tpu.memory_space<vmem>>, vector<2x8xf32>,
    %19 = vector.extract_strided_slice %14 {offsets = [0, 0], sizes = [2, 8], strides = [1, 1]} : vector<8x32xf32> to vector<2x8xf32>
    %c0_20 = arith.constant 0 : index
    %c0_21 = arith.constant 0 : index
    %20 = vector.load %arg28[%c0_20, %c0_21] : memref<8x8xf32, #tpu.memory_space<vmem>>, vector<2x8xf32>
    tpu.vector_store %arg28[%c0_20, %c0_21], %19 {strides = array<i32>} : memref<8x8xf32, #tpu.memory_space<vmem>>, vector<2x8xf32>,
    %21 = vector.extract_strided_slice %8 {offsets = [0, 8], sizes = [2, 8], strides = [1, 1]} : vector<8x32xf32> to vector<2x8xf32>
    %c2 = arith.constant 2 : index
    %c0_22 = arith.constant 0 : index
    %22 = vector.load %arg26[%c2, %c0_22] : memref<8x8xf32, #tpu.memory_space<vmem>>, vector<2x8xf32>
    tpu.vector_store %arg26[%c2, %c0_22], %21 {strides = array<i32>} : memref<8x8xf32, #tpu.memory_space<vmem>>, vector<2x8xf32>,
    %23 = vector.extract_strided_slice %11 {offsets = [0, 8], sizes = [2, 8], strides = [1, 1]} : vector<8x32xf32> to vector<2x8xf32>
    %c2_23 = arith.constant 2 : index
    %c0_24 = arith.constant 0 : index
    %24 = vector.load %arg27[%c2_23, %c0_24] : memref<8x8xf32, #tpu.memory_space<vmem>>, vector<2x8xf32>
    tpu.vector_store %arg27[%c2_23, %c0_24], %23 {strides = array<i32>} : memref<8x8xf32, #tpu.memory_space<vmem>>, vector<2x8xf32>,
    %25 = vector.extract_strided_slice %14 {offsets = [0, 8], sizes = [2, 8], strides = [1, 1]} : vector<8x32xf32> to vector<2x8xf32>
    %c2_25 = arith.constant 2 : index
    %c0_26 = arith.constant 0 : index
    %26 = vector.load %arg28[%c2_25, %c0_26] : memref<8x8xf32, #tpu.memory_space<vmem>>, vector<2x8xf32>
    tpu.vector_store %arg28[%c2_25, %c0_26], %25 {strides = array<i32>} : memref<8x8xf32, #tpu.memory_space<vmem>>, vector<2x8xf32>,
    %27 = vector.extract_strided_slice %8 {offsets = [0, 16], sizes = [2, 8], strides = [1, 1]} : vector<8x32xf32> to vector<2x8xf32>
    %c4 = arith.constant 4 : index
    %c0_27 = arith.constant 0 : index
    %28 = vector.load %arg26[%c4, %c0_27] : memref<8x8xf32, #tpu.memory_space<vmem>>, vector<2x8xf32>
    tpu.vector_store %arg26[%c4, %c0_27], %27 {strides = array<i32>} : memref<8x8xf32, #tpu.memory_space<vmem>>, vector<2x8xf32>,
    %29 = vector.extract_strided_slice %11 {offsets = [0, 16], sizes = [2, 8], strides = [1, 1]} : vector<8x32xf32> to vector<2x8xf32>
    %c4_28 = arith.constant 4 : index
    %c0_29 = arith.constant 0 : index
    %30 = vector.load %arg27[%c4_28, %c0_29] : memref<8x8xf32, #tpu.memory_space<vmem>>, vector<2x8xf32>
    tpu.vector_store %arg27[%c4_28, %c0_29], %29 {strides = array<i32>} : memref<8x8xf32, #tpu.memory_space<vmem>>, vector<2x8xf32>,
    %31 = vector.extract_strided_slice %14 {offsets = [0, 16], sizes = [2, 8], strides = [1, 1]} : vector<8x32xf32> to vector<2x8xf32>
    %c4_30 = arith.constant 4 : index
    %c0_31 = arith.constant 0 : index
    %32 = vector.load %arg28[%c4_30, %c0_31] : memref<8x8xf32, #tpu.memory_space<vmem>>, vector<2x8xf32>
    tpu.vector_store %arg28[%c4_30, %c0_31], %31 {strides = array<i32>} : memref<8x8xf32, #tpu.memory_space<vmem>>, vector<2x8xf32>,
    %33 = vector.extract_strided_slice %8 {offsets = [0, 24], sizes = [2, 8], strides = [1, 1]} : vector<8x32xf32> to vector<2x8xf32>
    %c6 = arith.constant 6 : index
    %c0_32 = arith.constant 0 : index
    %34 = vector.load %arg26[%c6, %c0_32] : memref<8x8xf32, #tpu.memory_space<vmem>>, vector<2x8xf32>
    tpu.vector_store %arg26[%c6, %c0_32], %33 {strides = array<i32>} : memref<8x8xf32, #tpu.memory_space<vmem>>, vector<2x8xf32>,
    %35 = vector.extract_strided_slice %11 {offsets = [0, 24], sizes = [2, 8], strides = [1, 1]} : vector<8x32xf32> to vector<2x8xf32>
    %c6_33 = arith.constant 6 : index
    %c0_34 = arith.constant 0 : index
    %36 = vector.load %arg27[%c6_33, %c0_34] : memref<8x8xf32, #tpu.memory_space<vmem>>, vector<2x8xf32>
    tpu.vector_store %arg27[%c6_33, %c0_34], %35 {strides = array<i32>} : memref<8x8xf32, #tpu.memory_space<vmem>>, vector<2x8xf32>,
    %37 = vector.extract_strided_slice %14 {offsets = [0, 24], sizes = [2, 8], strides = [1, 1]} : vector<8x32xf32> to vector<2x8xf32>
    %c6_35 = arith.constant 6 : index
    %c0_36 = arith.constant 0 : index
    %38 = vector.load %arg28[%c6_35, %c0_36] : memref<8x8xf32, #tpu.memory_space<vmem>>, vector<2x8xf32>
    tpu.vector_store %arg28[%c6_35, %c0_36], %37 {strides = array<i32>} : memref<8x8xf32, #tpu.memory_space<vmem>>, vector<2x8xf32>,
    %c0_37 = arith.constant 0 : index
    %c0_38 = arith.constant 0 : index
    %39 = vector.load %arg26[%c0_37, %c0_38] : memref<8x8xf32, #tpu.memory_space<vmem>>, vector<8x8xf32>
    %c0_39 = arith.constant 0 : index
    %c0_40 = arith.constant 0 : index
    %40 = vector.load %arg27[%c0_39, %c0_40] : memref<8x8xf32, #tpu.memory_space<vmem>>, vector<8x8xf32>
    %c0_41 = arith.constant 0 : index
    %c0_42 = arith.constant 0 : index
    %41 = vector.load %arg28[%c0_41, %c0_42] : memref<8x8xf32, #tpu.memory_space<vmem>>, vector<8x8xf32>
    "tpu.trace_start"() <{level = 10 : i32, message = "qd,kd->qk"}> : () -> ()
    %cst_43 = arith.constant dense<0.000000e+00> : vector<8x8xf32>
    %42 = tpu.matmul %39, %40, %cst_43 {dimension_numbers = #tpu.dot_dimension_numbers<[1], [1], [0], [0], [0, 0, 1, 0], [], []>} : vector<8x8xf32>, vector<8x8xf32>, vector<8x8xf32> -> vector<8x8xf32>
    "tpu.trace_stop"() : () -> ()
    %43 = arith.addf %42, %5 : vector<8x8xf32>
    %cst_44 = arith.constant dense<0xFF800000> : vector<8xf32>
    %44 = vector.multi_reduction <maximumf>, %43, %cst_44 [1] : vector<8x8xf32> to vector<8xf32>
    %45 = vector.shape_cast %44 : vector<8xf32> to vector<8x1xf32>
    %46 = vector.broadcast %45 : vector<8x1xf32> to vector<8x8xf32>
    %47 = arith.subf %43, %46 : vector<8x8xf32>
    %48 = math.exp %47 : vector<8x8xf32>
    %cst_45 = arith.constant dense<0.000000e+00> : vector<8xf32>
    %49 = vector.multi_reduction <add>, %48, %cst_45 [1] : vector<8x8xf32> to vector<8xf32>
    %50 = vector.shape_cast %49 : vector<8xf32> to vector<8x1xf32>
    %51 = tpu.reciprocal %50 {approx = true} : vector<8x1xf32> -> vector<8x1xf32>
    %52 = vector.broadcast %51 : vector<8x1xf32> to vector<8x8xf32>
    %53 = arith.mulf %48, %52 : vector<8x8xf32>
    %cst_46 = arith.constant dense<0.000000e+00> : vector<8x8xf32>
    %54 = tpu.matmul %53, %41, %cst_46 {dimension_numbers = #tpu.dot_dimension_numbers<[1], [0], [0], [1], [0, 0, 1, 1], [], []>} : vector<8x8xf32>, vector<8x8xf32>, vector<8x8xf32> -> vector<8x8xf32>
    %55 = vector.extract_strided_slice %54 {offsets = [0, 0], sizes = [2, 8], strides = [1, 1]} : vector<8x8xf32> to vector<2x8xf32>
    %c0_47 = arith.constant 0 : index
    %c0_48 = arith.constant 0 : index
    %56 = vector.load %arg29[%c0_47, %c0_48] : memref<8x32xf32, #tpu.memory_space<vmem>>, vector<2x8xf32>
    tpu.vector_store %arg29[%c0_47, %c0_48], %55 {strides = array<i32>} : memref<8x32xf32, #tpu.memory_space<vmem>>, vector<2x8xf32>,
    %57 = vector.extract_strided_slice %54 {offsets = [2, 0], sizes = [2, 8], strides = [1, 1]} : vector<8x8xf32> to vector<2x8xf32>
    %c0_49 = arith.constant 0 : index
    %c8 = arith.constant 8 : index
    %58 = vector.load %arg29[%c0_49, %c8] : memref<8x32xf32, #tpu.memory_space<vmem>>, vector<2x8xf32>
    tpu.vector_store %arg29[%c0_49, %c8], %57 {strides = array<i32>} : memref<8x32xf32, #tpu.memory_space<vmem>>, vector<2x8xf32>,
    %59 = vector.extract_strided_slice %54 {offsets = [4, 0], sizes = [2, 8], strides = [1, 1]} : vector<8x8xf32> to vector<2x8xf32>
    %c0_50 = arith.constant 0 : index
    %c16 = arith.constant 16 : index
    %60 = vector.load %arg29[%c0_50, %c16] : memref<8x32xf32, #tpu.memory_space<vmem>>, vector<2x8xf32>
    tpu.vector_store %arg29[%c0_50, %c16], %59 {strides = array<i32>} : memref<8x32xf32, #tpu.memory_space<vmem>>, vector<2x8xf32>,
    %61 = vector.extract_strided_slice %54 {offsets = [6, 0], sizes = [2, 8], strides = [1, 1]} : vector<8x8xf32> to vector<2x8xf32>
    %c0_51 = arith.constant 0 : index
    %c24 = arith.constant 24 : index
    %62 = vector.load %arg29[%c0_51, %c24] : memref<8x32xf32, #tpu.memory_space<vmem>>, vector<2x8xf32>
    tpu.vector_store %arg29[%c0_51, %c24], %61 {strides = array<i32>} : memref<8x32xf32, #tpu.memory_space<vmem>>, vector<2x8xf32>,
    %63 = vector.extract_strided_slice %8 {offsets = [2, 0], sizes = [2, 8], strides = [1, 1]} : vector<8x32xf32> to vector<2x8xf32>
    %c0_52 = arith.constant 0 : index
    %c0_53 = arith.constant 0 : index
    %64 = vector.load %arg26[%c0_52, %c0_53] : memref<8x8xf32, #tpu.memory_space<vmem>>, vector<2x8xf32>
    tpu.vector_store %arg26[%c0_52, %c0_53], %63 {strides = array<i32>} : memref<8x8xf32, #tpu.memory_space<vmem>>, vector<2x8xf32>,
    %65 = vector.extract_strided_slice %11 {offsets = [2, 0], sizes = [2, 8], strides = [1, 1]} : vector<8x32xf32> to vector<2x8xf32>
    %c0_54 = arith.constant 0 : index
    %c0_55 = arith.constant 0 : index
    %66 = vector.load %arg27[%c0_54, %c0_55] : memref<8x8xf32, #tpu.memory_space<vmem>>, vector<2x8xf32>
    tpu.vector_store %arg27[%c0_54, %c0_55], %65 {strides = array<i32>} : memref<8x8xf32, #tpu.memory_space<vmem>>, vector<2x8xf32>,
    %67 = vector.extract_strided_slice %14 {offsets = [2, 0], sizes = [2, 8], strides = [1, 1]} : vector<8x32xf32> to vector<2x8xf32>
    %c0_56 = arith.constant 0 : index
    %c0_57 = arith.constant 0 : index
    %68 = vector.load %arg28[%c0_56, %c0_57] : memref<8x8xf32, #tpu.memory_space<vmem>>, vector<2x8xf32>
    tpu.vector_store %arg28[%c0_56, %c0_57], %67 {strides = array<i32>} : memref<8x8xf32, #tpu.memory_space<vmem>>, vector<2x8xf32>,
    %69 = vector.extract_strided_slice %8 {offsets = [2, 8], sizes = [2, 8], strides = [1, 1]} : vector<8x32xf32> to vector<2x8xf32>
    %c2_58 = arith.constant 2 : index
    %c0_59 = arith.constant 0 : index
    %70 = vector.load %arg26[%c2_58, %c0_59] : memref<8x8xf32, #tpu.memory_space<vmem>>, vector<2x8xf32>
    tpu.vector_store %arg26[%c2_58, %c0_59], %69 {strides = array<i32>} : memref<8x8xf32, #tpu.memory_space<vmem>>, vector<2x8xf32>,
    %71 = vector.extract_strided_slice %11 {offsets = [2, 8], sizes = [2, 8], strides = [1, 1]} : vector<8x32xf32> to vector<2x8xf32>
    %c2_60 = arith.constant 2 : index
    %c0_61 = arith.constant 0 : index
    %72 = vector.load %arg27[%c2_60, %c0_61] : memref<8x8xf32, #tpu.memory_space<vmem>>, vector<2x8xf32>
    tpu.vector_store %arg27[%c2_60, %c0_61], %71 {strides = array<i32>} : memref<8x8xf32, #tpu.memory_space<vmem>>, vector<2x8xf32>,
    %73 = vector.extract_strided_slice %14 {offsets = [2, 8], sizes = [2, 8], strides = [1, 1]} : vector<8x32xf32> to vector<2x8xf32>
    %c2_62 = arith.constant 2 : index
    %c0_63 = arith.constant 0 : index
    %74 = vector.load %arg28[%c2_62, %c0_63] : memref<8x8xf32, #tpu.memory_space<vmem>>, vector<2x8xf32>
    tpu.vector_store %arg28[%c2_62, %c0_63], %73 {strides = array<i32>} : memref<8x8xf32, #tpu.memory_space<vmem>>, vector<2x8xf32>,
    %75 = vector.extract_strided_slice %8 {offsets = [2, 16], sizes = [2, 8], strides = [1, 1]} : vector<8x32xf32> to vector<2x8xf32>
    %c4_64 = arith.constant 4 : index
    %c0_65 = arith.constant 0 : index
    %76 = vector.load %arg26[%c4_64, %c0_65] : memref<8x8xf32, #tpu.memory_space<vmem>>, vector<2x8xf32>
    tpu.vector_store %arg26[%c4_64, %c0_65], %75 {strides = array<i32>} : memref<8x8xf32, #tpu.memory_space<vmem>>, vector<2x8xf32>,
    %77 = vector.extract_strided_slice %11 {offsets = [2, 16], sizes = [2, 8], strides = [1, 1]} : vector<8x32xf32> to vector<2x8xf32>
    %c4_66 = arith.constant 4 : index
    %c0_67 = arith.constant 0 : index
    %78 = vector.load %arg27[%c4_66, %c0_67] : memref<8x8xf32, #tpu.memory_space<vmem>>, vector<2x8xf32>
    tpu.vector_store %arg27[%c4_66, %c0_67], %77 {strides = array<i32>} : memref<8x8xf32, #tpu.memory_space<vmem>>, vector<2x8xf32>,
    %79 = vector.extract_strided_slice %14 {offsets = [2, 16], sizes = [2, 8], strides = [1, 1]} : vector<8x32xf32> to vector<2x8xf32>
    %c4_68 = arith.constant 4 : index
    %c0_69 = arith.constant 0 : index
    %80 = vector.load %arg28[%c4_68, %c0_69] : memref<8x8xf32, #tpu.memory_space<vmem>>, vector<2x8xf32>
    tpu.vector_store %arg28[%c4_68, %c0_69], %79 {strides = array<i32>} : memref<8x8xf32, #tpu.memory_space<vmem>>, vector<2x8xf32>,
    %81 = vector.extract_strided_slice %8 {offsets = [2, 24], sizes = [2, 8], strides = [1, 1]} : vector<8x32xf32> to vector<2x8xf32>
    %c6_70 = arith.constant 6 : index
    %c0_71 = arith.constant 0 : index
    %82 = vector.load %arg26[%c6_70, %c0_71] : memref<8x8xf32, #tpu.memory_space<vmem>>, vector<2x8xf32>
    tpu.vector_store %arg26[%c6_70, %c0_71], %81 {strides = array<i32>} : memref<8x8xf32, #tpu.memory_space<vmem>>, vector<2x8xf32>,
    %83 = vector.extract_strided_slice %11 {offsets = [2, 24], sizes = [2, 8], strides = [1, 1]} : vector<8x32xf32> to vector<2x8xf32>
    %c6_72 = arith.constant 6 : index
    %c0_73 = arith.constant 0 : index
    %84 = vector.load %arg27[%c6_72, %c0_73] : memref<8x8xf32, #tpu.memory_space<vmem>>, vector<2x8xf32>
    tpu.vector_store %arg27[%c6_72, %c0_73], %83 {strides = array<i32>} : memref<8x8xf32, #tpu.memory_space<vmem>>, vector<2x8xf32>,
    %85 = vector.extract_strided_slice %14 {offsets = [2, 24], sizes = [2, 8], strides = [1, 1]} : vector<8x32xf32> to vector<2x8xf32>
    %c6_74 = arith.constant 6 : index
    %c0_75 = arith.constant 0 : index
    %86 = vector.load %arg28[%c6_74, %c0_75] : memref<8x8xf32, #tpu.memory_space<vmem>>, vector<2x8xf32>
    tpu.vector_store %arg28[%c6_74, %c0_75], %85 {strides = array<i32>} : memref<8x8xf32, #tpu.memory_space<vmem>>, vector<2x8xf32>,
    %c0_76 = arith.constant 0 : index
    %c0_77 = arith.constant 0 : index
    %87 = vector.load %arg26[%c0_76, %c0_77] : memref<8x8xf32, #tpu.memory_space<vmem>>, vector<8x8xf32>
    %c0_78 = arith.constant 0 : index
    %c0_79 = arith.constant 0 : index
    %88 = vector.load %arg27[%c0_78, %c0_79] : memref<8x8xf32, #tpu.memory_space<vmem>>, vector<8x8xf32>
    %c0_80 = arith.constant 0 : index
    %c0_81 = arith.constant 0 : index
    %89 = vector.load %arg28[%c0_80, %c0_81] : memref<8x8xf32, #tpu.memory_space<vmem>>, vector<8x8xf32>
    "tpu.trace_start"() <{level = 10 : i32, message = "qd,kd->qk"}> : () -> ()
    %cst_82 = arith.constant dense<0.000000e+00> : vector<8x8xf32>
    %90 = tpu.matmul %87, %88, %cst_82 {dimension_numbers = #tpu.dot_dimension_numbers<[1], [1], [0], [0], [0, 0, 1, 0], [], []>} : vector<8x8xf32>, vector<8x8xf32>, vector<8x8xf32> -> vector<8x8xf32>
    "tpu.trace_stop"() : () -> ()
    %91 = arith.addf %90, %5 : vector<8x8xf32>
    %cst_83 = arith.constant dense<0xFF800000> : vector<8xf32>
    %92 = vector.multi_reduction <maximumf>, %91, %cst_83 [1] : vector<8x8xf32> to vector<8xf32>
    %93 = vector.shape_cast %92 : vector<8xf32> to vector<8x1xf32>
    %94 = vector.broadcast %93 : vector<8x1xf32> to vector<8x8xf32>
    %95 = arith.subf %91, %94 : vector<8x8xf32>
    %96 = math.exp %95 : vector<8x8xf32>
    %cst_84 = arith.constant dense<0.000000e+00> : vector<8xf32>
    %97 = vector.multi_reduction <add>, %96, %cst_84 [1] : vector<8x8xf32> to vector<8xf32>
    %98 = vector.shape_cast %97 : vector<8xf32> to vector<8x1xf32>
    %99 = tpu.reciprocal %98 {approx = true} : vector<8x1xf32> -> vector<8x1xf32>
    %100 = vector.broadcast %99 : vector<8x1xf32> to vector<8x8xf32>
    %101 = arith.mulf %96, %100 : vector<8x8xf32>
    %cst_85 = arith.constant dense<0.000000e+00> : vector<8x8xf32>
    %102 = tpu.matmul %101, %89, %cst_85 {dimension_numbers = #tpu.dot_dimension_numbers<[1], [0], [0], [1], [0, 0, 1, 1], [], []>} : vector<8x8xf32>, vector<8x8xf32>, vector<8x8xf32> -> vector<8x8xf32>
    %103 = vector.extract_strided_slice %102 {offsets = [0, 0], sizes = [2, 8], strides = [1, 1]} : vector<8x8xf32> to vector<2x8xf32>
    %c2_86 = arith.constant 2 : index
    %c0_87 = arith.constant 0 : index
    %104 = vector.load %arg29[%c2_86, %c0_87] : memref<8x32xf32, #tpu.memory_space<vmem>>, vector<2x8xf32>
    tpu.vector_store %arg29[%c2_86, %c0_87], %103 {strides = array<i32>} : memref<8x32xf32, #tpu.memory_space<vmem>>, vector<2x8xf32>,
    %105 = vector.extract_strided_slice %102 {offsets = [2, 0], sizes = [2, 8], strides = [1, 1]} : vector<8x8xf32> to vector<2x8xf32>
    %c2_88 = arith.constant 2 : index
    %c8_89 = arith.constant 8 : index
    %106 = vector.load %arg29[%c2_88, %c8_89] : memref<8x32xf32, #tpu.memory_space<vmem>>, vector<2x8xf32>
    tpu.vector_store %arg29[%c2_88, %c8_89], %105 {strides = array<i32>} : memref<8x32xf32, #tpu.memory_space<vmem>>, vector<2x8xf32>,
    %107 = vector.extract_strided_slice %102 {offsets = [4, 0], sizes = [2, 8], strides = [1, 1]} : vector<8x8xf32> to vector<2x8xf32>
    %c2_90 = arith.constant 2 : index
    %c16_91 = arith.constant 16 : index
    %108 = vector.load %arg29[%c2_90, %c16_91] : memref<8x32xf32, #tpu.memory_space<vmem>>, vector<2x8xf32>
    tpu.vector_store %arg29[%c2_90, %c16_91], %107 {strides = array<i32>} : memref<8x32xf32, #tpu.memory_space<vmem>>, vector<2x8xf32>,
    %109 = vector.extract_strided_slice %102 {offsets = [6, 0], sizes = [2, 8], strides = [1, 1]} : vector<8x8xf32> to vector<2x8xf32>
    %c2_92 = arith.constant 2 : index
    %c24_93 = arith.constant 24 : index
    %110 = vector.load %arg29[%c2_92, %c24_93] : memref<8x32xf32, #tpu.memory_space<vmem>>, vector<2x8xf32>
    tpu.vector_store %arg29[%c2_92, %c24_93], %109 {strides = array<i32>} : memref<8x32xf32, #tpu.memory_space<vmem>>, vector<2x8xf32>,
    %111 = vector.extract_strided_slice %8 {offsets = [4, 0], sizes = [2, 8], strides = [1, 1]} : vector<8x32xf32> to vector<2x8xf32>
    %c0_94 = arith.constant 0 : index
    %c0_95 = arith.constant 0 : index
    %112 = vector.load %arg26[%c0_94, %c0_95] : memref<8x8xf32, #tpu.memory_space<vmem>>, vector<2x8xf32>
    tpu.vector_store %arg26[%c0_94, %c0_95], %111 {strides = array<i32>} : memref<8x8xf32, #tpu.memory_space<vmem>>, vector<2x8xf32>,
    %113 = vector.extract_strided_slice %11 {offsets = [4, 0], sizes = [2, 8], strides = [1, 1]} : vector<8x32xf32> to vector<2x8xf32>
    %c0_96 = arith.constant 0 : index
    %c0_97 = arith.constant 0 : index
    %114 = vector.load %arg27[%c0_96, %c0_97] : memref<8x8xf32, #tpu.memory_space<vmem>>, vector<2x8xf32>
    tpu.vector_store %arg27[%c0_96, %c0_97], %113 {strides = array<i32>} : memref<8x8xf32, #tpu.memory_space<vmem>>, vector<2x8xf32>,
    %115 = vector.extract_strided_slice %14 {offsets = [4, 0], sizes = [2, 8], strides = [1, 1]} : vector<8x32xf32> to vector<2x8xf32>
    %c0_98 = arith.constant 0 : index
    %c0_99 = arith.constant 0 : index
    %116 = vector.load %arg28[%c0_98, %c0_99] : memref<8x8xf32, #tpu.memory_space<vmem>>, vector<2x8xf32>
    tpu.vector_store %arg28[%c0_98, %c0_99], %115 {strides = array<i32>} : memref<8x8xf32, #tpu.memory_space<vmem>>, vector<2x8xf32>,
    %117 = vector.extract_strided_slice %8 {offsets = [4, 8], sizes = [2, 8], strides = [1, 1]} : vector<8x32xf32> to vector<2x8xf32>
    %c2_100 = arith.constant 2 : index
    %c0_101 = arith.constant 0 : index
    %118 = vector.load %arg26[%c2_100, %c0_101] : memref<8x8xf32, #tpu.memory_space<vmem>>, vector<2x8xf32>
    tpu.vector_store %arg26[%c2_100, %c0_101], %117 {strides = array<i32>} : memref<8x8xf32, #tpu.memory_space<vmem>>, vector<2x8xf32>,
    %119 = vector.extract_strided_slice %11 {offsets = [4, 8], sizes = [2, 8], strides = [1, 1]} : vector<8x32xf32> to vector<2x8xf32>
    %c2_102 = arith.constant 2 : index
    %c0_103 = arith.constant 0 : index
    %120 = vector.load %arg27[%c2_102, %c0_103] : memref<8x8xf32, #tpu.memory_space<vmem>>, vector<2x8xf32>
    tpu.vector_store %arg27[%c2_102, %c0_103], %119 {strides = array<i32>} : memref<8x8xf32, #tpu.memory_space<vmem>>, vector<2x8xf32>,
    %121 = vector.extract_strided_slice %14 {offsets = [4, 8], sizes = [2, 8], strides = [1, 1]} : vector<8x32xf32> to vector<2x8xf32>
    %c2_104 = arith.constant 2 : index
    %c0_105 = arith.constant 0 : index
    %122 = vector.load %arg28[%c2_104, %c0_105] : memref<8x8xf32, #tpu.memory_space<vmem>>, vector<2x8xf32>
    tpu.vector_store %arg28[%c2_104, %c0_105], %121 {strides = array<i32>} : memref<8x8xf32, #tpu.memory_space<vmem>>, vector<2x8xf32>,
    %123 = vector.extract_strided_slice %8 {offsets = [4, 16], sizes = [2, 8], strides = [1, 1]} : vector<8x32xf32> to vector<2x8xf32>
    %c4_106 = arith.constant 4 : index
    %c0_107 = arith.constant 0 : index
    %124 = vector.load %arg26[%c4_106, %c0_107] : memref<8x8xf32, #tpu.memory_space<vmem>>, vector<2x8xf32>
    tpu.vector_store %arg26[%c4_106, %c0_107], %123 {strides = array<i32>} : memref<8x8xf32, #tpu.memory_space<vmem>>, vector<2x8xf32>,
    %125 = vector.extract_strided_slice %11 {offsets = [4, 16], sizes = [2, 8], strides = [1, 1]} : vector<8x32xf32> to vector<2x8xf32>
    %c4_108 = arith.constant 4 : index
    %c0_109 = arith.constant 0 : index
    %126 = vector.load %arg27[%c4_108, %c0_109] : memref<8x8xf32, #tpu.memory_space<vmem>>, vector<2x8xf32>
    tpu.vector_store %arg27[%c4_108, %c0_109], %125 {strides = array<i32>} : memref<8x8xf32, #tpu.memory_space<vmem>>, vector<2x8xf32>,
    %127 = vector.extract_strided_slice %14 {offsets = [4, 16], sizes = [2, 8], strides = [1, 1]} : vector<8x32xf32> to vector<2x8xf32>
    %c4_110 = arith.constant 4 : index
    %c0_111 = arith.constant 0 : index
    %128 = vector.load %arg28[%c4_110, %c0_111] : memref<8x8xf32, #tpu.memory_space<vmem>>, vector<2x8xf32>
    tpu.vector_store %arg28[%c4_110, %c0_111], %127 {strides = array<i32>} : memref<8x8xf32, #tpu.memory_space<vmem>>, vector<2x8xf32>,
    %129 = vector.extract_strided_slice %8 {offsets = [4, 24], sizes = [2, 8], strides = [1, 1]} : vector<8x32xf32> to vector<2x8xf32>
    %c6_112 = arith.constant 6 : index
    %c0_113 = arith.constant 0 : index
    %130 = vector.load %arg26[%c6_112, %c0_113] : memref<8x8xf32, #tpu.memory_space<vmem>>, vector<2x8xf32>
    tpu.vector_store %arg26[%c6_112, %c0_113], %129 {strides = array<i32>} : memref<8x8xf32, #tpu.memory_space<vmem>>, vector<2x8xf32>,
    %131 = vector.extract_strided_slice %11 {offsets = [4, 24], sizes = [2, 8], strides = [1, 1]} : vector<8x32xf32> to vector<2x8xf32>
    %c6_114 = arith.constant 6 : index
    %c0_115 = arith.constant 0 : index
    %132 = vector.load %arg27[%c6_114, %c0_115] : memref<8x8xf32, #tpu.memory_space<vmem>>, vector<2x8xf32>
    tpu.vector_store %arg27[%c6_114, %c0_115], %131 {strides = array<i32>} : memref<8x8xf32, #tpu.memory_space<vmem>>, vector<2x8xf32>,
    %133 = vector.extract_strided_slice %14 {offsets = [4, 24], sizes = [2, 8], strides = [1, 1]} : vector<8x32xf32> to vector<2x8xf32>
    %c6_116 = arith.constant 6 : index
    %c0_117 = arith.constant 0 : index
    %134 = vector.load %arg28[%c6_116, %c0_117] : memref<8x8xf32, #tpu.memory_space<vmem>>, vector<2x8xf32>
    tpu.vector_store %arg28[%c6_116, %c0_117], %133 {strides = array<i32>} : memref<8x8xf32, #tpu.memory_space<vmem>>, vector<2x8xf32>,
    %c0_118 = arith.constant 0 : index
    %c0_119 = arith.constant 0 : index
    %135 = vector.load %arg26[%c0_118, %c0_119] : memref<8x8xf32, #tpu.memory_space<vmem>>, vector<8x8xf32>
    %c0_120 = arith.constant 0 : index
    %c0_121 = arith.constant 0 : index
    %136 = vector.load %arg27[%c0_120, %c0_121] : memref<8x8xf32, #tpu.memory_space<vmem>>, vector<8x8xf32>
    %c0_122 = arith.constant 0 : index
    %c0_123 = arith.constant 0 : index
    %137 = vector.load %arg28[%c0_122, %c0_123] : memref<8x8xf32, #tpu.memory_space<vmem>>, vector<8x8xf32>
    "tpu.trace_start"() <{level = 10 : i32, message = "qd,kd->qk"}> : () -> ()
    %cst_124 = arith.constant dense<0.000000e+00> : vector<8x8xf32>
    %138 = tpu.matmul %135, %136, %cst_124 {dimension_numbers = #tpu.dot_dimension_numbers<[1], [1], [0], [0], [0, 0, 1, 0], [], []>} : vector<8x8xf32>, vector<8x8xf32>, vector<8x8xf32> -> vector<8x8xf32>
    "tpu.trace_stop"() : () -> ()
    %139 = arith.addf %138, %5 : vector<8x8xf32>
    %cst_125 = arith.constant dense<0xFF800000> : vector<8xf32>
    %140 = vector.multi_reduction <maximumf>, %139, %cst_125 [1] : vector<8x8xf32> to vector<8xf32>
    %141 = vector.shape_cast %140 : vector<8xf32> to vector<8x1xf32>
    %142 = vector.broadcast %141 : vector<8x1xf32> to vector<8x8xf32>
    %143 = arith.subf %139, %142 : vector<8x8xf32>
    %144 = math.exp %143 : vector<8x8xf32>
    %cst_126 = arith.constant dense<0.000000e+00> : vector<8xf32>
    %145 = vector.multi_reduction <add>, %144, %cst_126 [1] : vector<8x8xf32> to vector<8xf32>
    %146 = vector.shape_cast %145 : vector<8xf32> to vector<8x1xf32>
    %147 = tpu.reciprocal %146 {approx = true} : vector<8x1xf32> -> vector<8x1xf32>
    %148 = vector.broadcast %147 : vector<8x1xf32> to vector<8x8xf32>
    %149 = arith.mulf %144, %148 : vector<8x8xf32>
    %cst_127 = arith.constant dense<0.000000e+00> : vector<8x8xf32>
    %150 = tpu.matmul %149, %137, %cst_127 {dimension_numbers = #tpu.dot_dimension_numbers<[1], [0], [0], [1], [0, 0, 1, 1], [], []>} : vector<8x8xf32>, vector<8x8xf32>, vector<8x8xf32> -> vector<8x8xf32>
    %151 = vector.extract_strided_slice %150 {offsets = [0, 0], sizes = [2, 8], strides = [1, 1]} : vector<8x8xf32> to vector<2x8xf32>
    %c4_128 = arith.constant 4 : index
    %c0_129 = arith.constant 0 : index
    %152 = vector.load %arg29[%c4_128, %c0_129] : memref<8x32xf32, #tpu.memory_space<vmem>>, vector<2x8xf32>
    tpu.vector_store %arg29[%c4_128, %c0_129], %151 {strides = array<i32>} : memref<8x32xf32, #tpu.memory_space<vmem>>, vector<2x8xf32>,
    %153 = vector.extract_strided_slice %150 {offsets = [2, 0], sizes = [2, 8], strides = [1, 1]} : vector<8x8xf32> to vector<2x8xf32>
    %c4_130 = arith.constant 4 : index
    %c8_131 = arith.constant 8 : index
    %154 = vector.load %arg29[%c4_130, %c8_131] : memref<8x32xf32, #tpu.memory_space<vmem>>, vector<2x8xf32>
    tpu.vector_store %arg29[%c4_130, %c8_131], %153 {strides = array<i32>} : memref<8x32xf32, #tpu.memory_space<vmem>>, vector<2x8xf32>,
    %155 = vector.extract_strided_slice %150 {offsets = [4, 0], sizes = [2, 8], strides = [1, 1]} : vector<8x8xf32> to vector<2x8xf32>
    %c4_132 = arith.constant 4 : index
    %c16_133 = arith.constant 16 : index
    %156 = vector.load %arg29[%c4_132, %c16_133] : memref<8x32xf32, #tpu.memory_space<vmem>>, vector<2x8xf32>
    tpu.vector_store %arg29[%c4_132, %c16_133], %155 {strides = array<i32>} : memref<8x32xf32, #tpu.memory_space<vmem>>, vector<2x8xf32>,
    %157 = vector.extract_strided_slice %150 {offsets = [6, 0], sizes = [2, 8], strides = [1, 1]} : vector<8x8xf32> to vector<2x8xf32>
    %c4_134 = arith.constant 4 : index
    %c24_135 = arith.constant 24 : index
    %158 = vector.load %arg29[%c4_134, %c24_135] : memref<8x32xf32, #tpu.memory_space<vmem>>, vector<2x8xf32>
    tpu.vector_store %arg29[%c4_134, %c24_135], %157 {strides = array<i32>} : memref<8x32xf32, #tpu.memory_space<vmem>>, vector<2x8xf32>,
    %159 = vector.extract_strided_slice %8 {offsets = [6, 0], sizes = [2, 8], strides = [1, 1]} : vector<8x32xf32> to vector<2x8xf32>
    %c0_136 = arith.constant 0 : index
    %c0_137 = arith.constant 0 : index
    %160 = vector.load %arg26[%c0_136, %c0_137] : memref<8x8xf32, #tpu.memory_space<vmem>>, vector<2x8xf32>
    tpu.vector_store %arg26[%c0_136, %c0_137], %159 {strides = array<i32>} : memref<8x8xf32, #tpu.memory_space<vmem>>, vector<2x8xf32>,
    %161 = vector.extract_strided_slice %11 {offsets = [6, 0], sizes = [2, 8], strides = [1, 1]} : vector<8x32xf32> to vector<2x8xf32>
    %c0_138 = arith.constant 0 : index
    %c0_139 = arith.constant 0 : index
    %162 = vector.load %arg27[%c0_138, %c0_139] : memref<8x8xf32, #tpu.memory_space<vmem>>, vector<2x8xf32>
    tpu.vector_store %arg27[%c0_138, %c0_139], %161 {strides = array<i32>} : memref<8x8xf32, #tpu.memory_space<vmem>>, vector<2x8xf32>,
    %163 = vector.extract_strided_slice %14 {offsets = [6, 0], sizes = [2, 8], strides = [1, 1]} : vector<8x32xf32> to vector<2x8xf32>
    %c0_140 = arith.constant 0 : index
    %c0_141 = arith.constant 0 : index
    %164 = vector.load %arg28[%c0_140, %c0_141] : memref<8x8xf32, #tpu.memory_space<vmem>>, vector<2x8xf32>
    tpu.vector_store %arg28[%c0_140, %c0_141], %163 {strides = array<i32>} : memref<8x8xf32, #tpu.memory_space<vmem>>, vector<2x8xf32>,
    %165 = vector.extract_strided_slice %8 {offsets = [6, 8], sizes = [2, 8], strides = [1, 1]} : vector<8x32xf32> to vector<2x8xf32>
    %c2_142 = arith.constant 2 : index
    %c0_143 = arith.constant 0 : index
    %166 = vector.load %arg26[%c2_142, %c0_143] : memref<8x8xf32, #tpu.memory_space<vmem>>, vector<2x8xf32>
    tpu.vector_store %arg26[%c2_142, %c0_143], %165 {strides = array<i32>} : memref<8x8xf32, #tpu.memory_space<vmem>>, vector<2x8xf32>,
    %167 = vector.extract_strided_slice %11 {offsets = [6, 8], sizes = [2, 8], strides = [1, 1]} : vector<8x32xf32> to vector<2x8xf32>
    %c2_144 = arith.constant 2 : index
    %c0_145 = arith.constant 0 : index
    %168 = vector.load %arg27[%c2_144, %c0_145] : memref<8x8xf32, #tpu.memory_space<vmem>>, vector<2x8xf32>
    tpu.vector_store %arg27[%c2_144, %c0_145], %167 {strides = array<i32>} : memref<8x8xf32, #tpu.memory_space<vmem>>, vector<2x8xf32>,
    %169 = vector.extract_strided_slice %14 {offsets = [6, 8], sizes = [2, 8], strides = [1, 1]} : vector<8x32xf32> to vector<2x8xf32>
    %c2_146 = arith.constant 2 : index
    %c0_147 = arith.constant 0 : index
    %170 = vector.load %arg28[%c2_146, %c0_147] : memref<8x8xf32, #tpu.memory_space<vmem>>, vector<2x8xf32>
    tpu.vector_store %arg28[%c2_146, %c0_147], %169 {strides = array<i32>} : memref<8x8xf32, #tpu.memory_space<vmem>>, vector<2x8xf32>,
    %171 = vector.extract_strided_slice %8 {offsets = [6, 16], sizes = [2, 8], strides = [1, 1]} : vector<8x32xf32> to vector<2x8xf32>
    %c4_148 = arith.constant 4 : index
    %c0_149 = arith.constant 0 : index
    %172 = vector.load %arg26[%c4_148, %c0_149] : memref<8x8xf32, #tpu.memory_space<vmem>>, vector<2x8xf32>
    tpu.vector_store %arg26[%c4_148, %c0_149], %171 {strides = array<i32>} : memref<8x8xf32, #tpu.memory_space<vmem>>, vector<2x8xf32>,
    %173 = vector.extract_strided_slice %11 {offsets = [6, 16], sizes = [2, 8], strides = [1, 1]} : vector<8x32xf32> to vector<2x8xf32>
    %c4_150 = arith.constant 4 : index
    %c0_151 = arith.constant 0 : index
    %174 = vector.load %arg27[%c4_150, %c0_151] : memref<8x8xf32, #tpu.memory_space<vmem>>, vector<2x8xf32>
    tpu.vector_store %arg27[%c4_150, %c0_151], %173 {strides = array<i32>} : memref<8x8xf32, #tpu.memory_space<vmem>>, vector<2x8xf32>,
    %175 = vector.extract_strided_slice %14 {offsets = [6, 16], sizes = [2, 8], strides = [1, 1]} : vector<8x32xf32> to vector<2x8xf32>
    %c4_152 = arith.constant 4 : index
    %c0_153 = arith.constant 0 : index
    %176 = vector.load %arg28[%c4_152, %c0_153] : memref<8x8xf32, #tpu.memory_space<vmem>>, vector<2x8xf32>
    tpu.vector_store %arg28[%c4_152, %c0_153], %175 {strides = array<i32>} : memref<8x8xf32, #tpu.memory_space<vmem>>, vector<2x8xf32>,
    %177 = vector.extract_strided_slice %8 {offsets = [6, 24], sizes = [2, 8], strides = [1, 1]} : vector<8x32xf32> to vector<2x8xf32>
    %c6_154 = arith.constant 6 : index
    %c0_155 = arith.constant 0 : index
    %178 = vector.load %arg26[%c6_154, %c0_155] : memref<8x8xf32, #tpu.memory_space<vmem>>, vector<2x8xf32>
    tpu.vector_store %arg26[%c6_154, %c0_155], %177 {strides = array<i32>} : memref<8x8xf32, #tpu.memory_space<vmem>>, vector<2x8xf32>,
    %179 = vector.extract_strided_slice %11 {offsets = [6, 24], sizes = [2, 8], strides = [1, 1]} : vector<8x32xf32> to vector<2x8xf32>
    %c6_156 = arith.constant 6 : index
    %c0_157 = arith.constant 0 : index
    %180 = vector.load %arg27[%c6_156, %c0_157] : memref<8x8xf32, #tpu.memory_space<vmem>>, vector<2x8xf32>
    tpu.vector_store %arg27[%c6_156, %c0_157], %179 {strides = array<i32>} : memref<8x8xf32, #tpu.memory_space<vmem>>, vector<2x8xf32>,
    %181 = vector.extract_strided_slice %14 {offsets = [6, 24], sizes = [2, 8], strides = [1, 1]} : vector<8x32xf32> to vector<2x8xf32>
    %c6_158 = arith.constant 6 : index
    %c0_159 = arith.constant 0 : index
    %182 = vector.load %arg28[%c6_158, %c0_159] : memref<8x8xf32, #tpu.memory_space<vmem>>, vector<2x8xf32>
    tpu.vector_store %arg28[%c6_158, %c0_159], %181 {strides = array<i32>} : memref<8x8xf32, #tpu.memory_space<vmem>>, vector<2x8xf32>,
    %c0_160 = arith.constant 0 : index
    %c0_161 = arith.constant 0 : index
    %183 = vector.load %arg26[%c0_160, %c0_161] : memref<8x8xf32, #tpu.memory_space<vmem>>, vector<8x8xf32>
    %c0_162 = arith.constant 0 : index
    %c0_163 = arith.constant 0 : index
    %184 = vector.load %arg27[%c0_162, %c0_163] : memref<8x8xf32, #tpu.memory_space<vmem>>, vector<8x8xf32>
    %c0_164 = arith.constant 0 : index
    %c0_165 = arith.constant 0 : index
    %185 = vector.load %arg28[%c0_164, %c0_165] : memref<8x8xf32, #tpu.memory_space<vmem>>, vector<8x8xf32>
    "tpu.trace_start"() <{level = 10 : i32, message = "qd,kd->qk"}> : () -> ()
    %cst_166 = arith.constant dense<0.000000e+00> : vector<8x8xf32>
    %186 = tpu.matmul %183, %184, %cst_166 {dimension_numbers = #tpu.dot_dimension_numbers<[1], [1], [0], [0], [0, 0, 1, 0], [], []>} : vector<8x8xf32>, vector<8x8xf32>, vector<8x8xf32> -> vector<8x8xf32>
    "tpu.trace_stop"() : () -> ()
    %187 = arith.addf %186, %5 : vector<8x8xf32>
    %cst_167 = arith.constant dense<0xFF800000> : vector<8xf32>
    %188 = vector.multi_reduction <maximumf>, %187, %cst_167 [1] : vector<8x8xf32> to vector<8xf32>
    %189 = vector.shape_cast %188 : vector<8xf32> to vector<8x1xf32>
    %190 = vector.broadcast %189 : vector<8x1xf32> to vector<8x8xf32>
    %191 = arith.subf %187, %190 : vector<8x8xf32>
    %192 = math.exp %191 : vector<8x8xf32>
    %cst_168 = arith.constant dense<0.000000e+00> : vector<8xf32>
    %193 = vector.multi_reduction <add>, %192, %cst_168 [1] : vector<8x8xf32> to vector<8xf32>
    %194 = vector.shape_cast %193 : vector<8xf32> to vector<8x1xf32>
    %195 = tpu.reciprocal %194 {approx = true} : vector<8x1xf32> -> vector<8x1xf32>
    %196 = vector.broadcast %195 : vector<8x1xf32> to vector<8x8xf32>
    %197 = arith.mulf %192, %196 : vector<8x8xf32>
    %cst_169 = arith.constant dense<0.000000e+00> : vector<8x8xf32>
    %198 = tpu.matmul %197, %185, %cst_169 {dimension_numbers = #tpu.dot_dimension_numbers<[1], [0], [0], [1], [0, 0, 1, 1], [], []>} : vector<8x8xf32>, vector<8x8xf32>, vector<8x8xf32> -> vector<8x8xf32>
    %199 = vector.extract_strided_slice %198 {offsets = [0, 0], sizes = [2, 8], strides = [1, 1]} : vector<8x8xf32> to vector<2x8xf32>
    %c6_170 = arith.constant 6 : index
    %c0_171 = arith.constant 0 : index
    %200 = vector.load %arg29[%c6_170, %c0_171] : memref<8x32xf32, #tpu.memory_space<vmem>>, vector<2x8xf32>
    tpu.vector_store %arg29[%c6_170, %c0_171], %199 {strides = array<i32>} : memref<8x32xf32, #tpu.memory_space<vmem>>, vector<2x8xf32>,
    %201 = vector.extract_strided_slice %198 {offsets = [2, 0], sizes = [2, 8], strides = [1, 1]} : vector<8x8xf32> to vector<2x8xf32>
    %c6_172 = arith.constant 6 : index
    %c8_173 = arith.constant 8 : index
    %202 = vector.load %arg29[%c6_172, %c8_173] : memref<8x32xf32, #tpu.memory_space<vmem>>, vector<2x8xf32>
    tpu.vector_store %arg29[%c6_172, %c8_173], %201 {strides = array<i32>} : memref<8x32xf32, #tpu.memory_space<vmem>>, vector<2x8xf32>,
    %203 = vector.extract_strided_slice %198 {offsets = [4, 0], sizes = [2, 8], strides = [1, 1]} : vector<8x8xf32> to vector<2x8xf32>
    %c6_174 = arith.constant 6 : index
    %c16_175 = arith.constant 16 : index
    %204 = vector.load %arg29[%c6_174, %c16_175] : memref<8x32xf32, #tpu.memory_space<vmem>>, vector<2x8xf32>
    tpu.vector_store %arg29[%c6_174, %c16_175], %203 {strides = array<i32>} : memref<8x32xf32, #tpu.memory_space<vmem>>, vector<2x8xf32>,
    %205 = vector.extract_strided_slice %198 {offsets = [6, 0], sizes = [2, 8], strides = [1, 1]} : vector<8x8xf32> to vector<2x8xf32>
    %c6_176 = arith.constant 6 : index
    %c24_177 = arith.constant 24 : index
    %206 = vector.load %arg29[%c6_176, %c24_177] : memref<8x32xf32, #tpu.memory_space<vmem>>, vector<2x8xf32>
    tpu.vector_store %arg29[%c6_176, %c24_177], %205 {strides = array<i32>} : memref<8x32xf32, #tpu.memory_space<vmem>>, vector<2x8xf32>,
    %c0_178 = arith.constant 0 : index
    %c0_179 = arith.constant 0 : index
    %207 = vector.load %arg29[%c0_178, %c0_179] : memref<8x32xf32, #tpu.memory_space<vmem>>, vector<8x32xf32>
    %208 = arith.truncf %207 : vector<8x32xf32> to vector<8x32xbf16>
    %c0_180 = arith.constant 0 : index
    %c0_181 = arith.constant 0 : index
    %209 = vector.load %arg8[%c0_180, %c0_181] : memref<32x32xbf16, #tpu.memory_space<vmem>>, vector<32x32xbf16>
    %cst_182 = arith.constant dense<0.000000e+00> : vector<8x32xf32>
    %210 = tpu.matmul %208, %209, %cst_182 {dimension_numbers = #tpu.dot_dimension_numbers<[1], [0], [0], [1], [0, 0, 1, 1], [], []>} : vector<8x32xbf16>, vector<32x32xbf16>, vector<8x32xf32> -> vector<8x32xf32>
    %c0_183 = arith.constant 0 : index
    %c0_184 = arith.constant 0 : index
    %211 = vector.load %arg9[%c0_183, %c0_184] : memref<1x32xf32, #tpu.memory_space<vmem>>, vector<1x32xf32>
    %212 = vector.broadcast %211 : vector<1x32xf32> to vector<8x32xf32>
    %213 = arith.addf %210, %212 : vector<8x32xf32>
    %214 = arith.addf %213, %1 : vector<8x32xf32>
    %c0_185 = arith.constant 0 : index
    %c0_186 = arith.constant 0 : index
    %215 = vector.load %arg10[%c0_185, %c0_186] : memref<1x32xf32, #tpu.memory_space<vmem>>, vector<1x32xf32>
    %c0_187 = arith.constant 0 : index
    %c0_188 = arith.constant 0 : index
    %216 = vector.load %arg11[%c0_187, %c0_188] : memref<1x32xf32, #tpu.memory_space<vmem>>, vector<1x32xf32>
    %cst_189 = arith.constant dense<0.000000e+00> : vector<8xf32>
    %217 = vector.multi_reduction <add>, %214, %cst_189 [1] : vector<8x32xf32> to vector<8xf32>
    %218 = vector.shape_cast %217 : vector<8xf32> to vector<8x1xf32>
    %cst_190 = arith.constant 3.200000e+01 : f32
    %219 = vector.broadcast %cst_190 : f32 to vector<8x1xf32>
    %220 = arith.divf %218, %219 : vector<8x1xf32>
    %221 = vector.broadcast %220 : vector<8x1xf32> to vector<8x32xf32>
    %222 = arith.subf %214, %221 : vector<8x32xf32>
    %223 = arith.mulf %222, %222 : vector<8x32xf32>
    %cst_191 = arith.constant dense<0.000000e+00> : vector<8xf32>
    %224 = vector.multi_reduction <add>, %223, %cst_191 [1] : vector<8x32xf32> to vector<8xf32>
    %225 = vector.shape_cast %224 : vector<8xf32> to vector<8x1xf32>
    %cst_192 = arith.constant 3.200000e+01 : f32
    %226 = vector.broadcast %cst_192 : f32 to vector<8x1xf32>
    %227 = arith.divf %225, %226 : vector<8x1xf32>
    %cst_193 = arith.constant 9.99999974E-6 : f32
    %228 = vector.broadcast %cst_193 : f32 to vector<8x1xf32>
    %229 = arith.addf %227, %228 : vector<8x1xf32>
    %230 = math.rsqrt %229 : vector<8x1xf32>
    %231 = vector.broadcast %230 : vector<8x1xf32> to vector<8x32xf32>
    %232 = arith.mulf %222, %231 : vector<8x32xf32>
    %233 = vector.broadcast %215 : vector<1x32xf32> to vector<8x32xf32>
    %234 = arith.mulf %232, %233 : vector<8x32xf32>
    %235 = vector.broadcast %216 : vector<1x32xf32> to vector<8x32xf32>
    %236 = arith.addf %234, %235 : vector<8x32xf32>
    %c0_194 = arith.constant 0 : index
    %c0_195 = arith.constant 0 : index
    %c0_196 = arith.constant 0 : index
    %237 = vector.load %arg4[%c0_194, %c0_195, %c0_196] : memref<1x8x8xf32, #tpu.memory_space<vmem>>, vector<1x8x8xf32>
    %238 = vector.shape_cast %237 : vector<1x8x8xf32> to vector<8x8xf32>
    %239 = arith.truncf %236 : vector<8x32xf32> to vector<8x32xbf16>
    %c0_197 = arith.constant 0 : index
    %c0_198 = arith.constant 0 : index
    %240 = vector.load %arg12[%c0_197, %c0_198] : memref<32x32xbf16, #tpu.memory_space<vmem>>, vector<32x32xbf16>
    %cst_199 = arith.constant dense<0.000000e+00> : vector<8x32xf32>
    %241 = tpu.matmul %239, %240, %cst_199 {dimension_numbers = #tpu.dot_dimension_numbers<[1], [0], [0], [1], [0, 0, 1, 1], [], []>} : vector<8x32xbf16>, vector<32x32xbf16>, vector<8x32xf32> -> vector<8x32xf32>
    %242 = arith.truncf %3 : vector<8x32xf32> to vector<8x32xbf16>
    %c0_200 = arith.constant 0 : index
    %c0_201 = arith.constant 0 : index
    %243 = vector.load %arg13[%c0_200, %c0_201] : memref<32x32xbf16, #tpu.memory_space<vmem>>, vector<32x32xbf16>
    %cst_202 = arith.constant dense<0.000000e+00> : vector<8x32xf32>
    %244 = tpu.matmul %242, %243, %cst_202 {dimension_numbers = #tpu.dot_dimension_numbers<[1], [0], [0], [1], [0, 0, 1, 1], [], []>} : vector<8x32xbf16>, vector<32x32xbf16>, vector<8x32xf32> -> vector<8x32xf32>
    %245 = arith.truncf %3 : vector<8x32xf32> to vector<8x32xbf16>
    %c0_203 = arith.constant 0 : index
    %c0_204 = arith.constant 0 : index
    %246 = vector.load %arg14[%c0_203, %c0_204] : memref<32x32xbf16, #tpu.memory_space<vmem>>, vector<32x32xbf16>
    %cst_205 = arith.constant dense<0.000000e+00> : vector<8x32xf32>
    %247 = tpu.matmul %245, %246, %cst_205 {dimension_numbers = #tpu.dot_dimension_numbers<[1], [0], [0], [1], [0, 0, 1, 1], [], []>} : vector<8x32xbf16>, vector<32x32xbf16>, vector<8x32xf32> -> vector<8x32xf32>
    %248 = vector.extract_strided_slice %241 {offsets = [0, 0], sizes = [2, 8], strides = [1, 1]} : vector<8x32xf32> to vector<2x8xf32>
    %c0_206 = arith.constant 0 : index
    %c0_207 = arith.constant 0 : index
    %249 = vector.load %arg26[%c0_206, %c0_207] : memref<8x8xf32, #tpu.memory_space<vmem>>, vector<2x8xf32>
    tpu.vector_store %arg26[%c0_206, %c0_207], %248 {strides = array<i32>} : memref<8x8xf32, #tpu.memory_space<vmem>>, vector<2x8xf32>,
    %250 = vector.extract_strided_slice %244 {offsets = [0, 0], sizes = [2, 8], strides = [1, 1]} : vector<8x32xf32> to vector<2x8xf32>
    %c0_208 = arith.constant 0 : index
    %c0_209 = arith.constant 0 : index
    %251 = vector.load %arg27[%c0_208, %c0_209] : memref<8x8xf32, #tpu.memory_space<vmem>>, vector<2x8xf32>
    tpu.vector_store %arg27[%c0_208, %c0_209], %250 {strides = array<i32>} : memref<8x8xf32, #tpu.memory_space<vmem>>, vector<2x8xf32>,
    %252 = vector.extract_strided_slice %247 {offsets = [0, 0], sizes = [2, 8], strides = [1, 1]} : vector<8x32xf32> to vector<2x8xf32>
    %c0_210 = arith.constant 0 : index
    %c0_211 = arith.constant 0 : index
    %253 = vector.load %arg28[%c0_210, %c0_211] : memref<8x8xf32, #tpu.memory_space<vmem>>, vector<2x8xf32>
    tpu.vector_store %arg28[%c0_210, %c0_211], %252 {strides = array<i32>} : memref<8x8xf32, #tpu.memory_space<vmem>>, vector<2x8xf32>,
    %254 = vector.extract_strided_slice %241 {offsets = [0, 8], sizes = [2, 8], strides = [1, 1]} : vector<8x32xf32> to vector<2x8xf32>
    %c2_212 = arith.constant 2 : index
    %c0_213 = arith.constant 0 : index
    %255 = vector.load %arg26[%c2_212, %c0_213] : memref<8x8xf32, #tpu.memory_space<vmem>>, vector<2x8xf32>
    tpu.vector_store %arg26[%c2_212, %c0_213], %254 {strides = array<i32>} : memref<8x8xf32, #tpu.memory_space<vmem>>, vector<2x8xf32>,
    %256 = vector.extract_strided_slice %244 {offsets = [0, 8], sizes = [2, 8], strides = [1, 1]} : vector<8x32xf32> to vector<2x8xf32>
    %c2_214 = arith.constant 2 : index
    %c0_215 = arith.constant 0 : index
    %257 = vector.load %arg27[%c2_214, %c0_215] : memref<8x8xf32, #tpu.memory_space<vmem>>, vector<2x8xf32>
    tpu.vector_store %arg27[%c2_214, %c0_215], %256 {strides = array<i32>} : memref<8x8xf32, #tpu.memory_space<vmem>>, vector<2x8xf32>,
    %258 = vector.extract_strided_slice %247 {offsets = [0, 8], sizes = [2, 8], strides = [1, 1]} : vector<8x32xf32> to vector<2x8xf32>
    %c2_216 = arith.constant 2 : index
    %c0_217 = arith.constant 0 : index
    %259 = vector.load %arg28[%c2_216, %c0_217] : memref<8x8xf32, #tpu.memory_space<vmem>>, vector<2x8xf32>
    tpu.vector_store %arg28[%c2_216, %c0_217], %258 {strides = array<i32>} : memref<8x8xf32, #tpu.memory_space<vmem>>, vector<2x8xf32>,
    %260 = vector.extract_strided_slice %241 {offsets = [0, 16], sizes = [2, 8], strides = [1, 1]} : vector<8x32xf32> to vector<2x8xf32>
    %c4_218 = arith.constant 4 : index
    %c0_219 = arith.constant 0 : index
    %261 = vector.load %arg26[%c4_218, %c0_219] : memref<8x8xf32, #tpu.memory_space<vmem>>, vector<2x8xf32>
    tpu.vector_store %arg26[%c4_218, %c0_219], %260 {strides = array<i32>} : memref<8x8xf32, #tpu.memory_space<vmem>>, vector<2x8xf32>,
    %262 = vector.extract_strided_slice %244 {offsets = [0, 16], sizes = [2, 8], strides = [1, 1]} : vector<8x32xf32> to vector<2x8xf32>
    %c4_220 = arith.constant 4 : index
    %c0_221 = arith.constant 0 : index
    %263 = vector.load %arg27[%c4_220, %c0_221] : memref<8x8xf32, #tpu.memory_space<vmem>>, vector<2x8xf32>
    tpu.vector_store %arg27[%c4_220, %c0_221], %262 {strides = array<i32>} : memref<8x8xf32, #tpu.memory_space<vmem>>, vector<2x8xf32>,
    %264 = vector.extract_strided_slice %247 {offsets = [0, 16], sizes = [2, 8], strides = [1, 1]} : vector<8x32xf32> to vector<2x8xf32>
    %c4_222 = arith.constant 4 : index
    %c0_223 = arith.constant 0 : index
    %265 = vector.load %arg28[%c4_222, %c0_223] : memref<8x8xf32, #tpu.memory_space<vmem>>, vector<2x8xf32>
    tpu.vector_store %arg28[%c4_222, %c0_223], %264 {strides = array<i32>} : memref<8x8xf32, #tpu.memory_space<vmem>>, vector<2x8xf32>,
    %266 = vector.extract_strided_slice %241 {offsets = [0, 24], sizes = [2, 8], strides = [1, 1]} : vector<8x32xf32> to vector<2x8xf32>
    %c6_224 = arith.constant 6 : index
    %c0_225 = arith.constant 0 : index
    %267 = vector.load %arg26[%c6_224, %c0_225] : memref<8x8xf32, #tpu.memory_space<vmem>>, vector<2x8xf32>
    tpu.vector_store %arg26[%c6_224, %c0_225], %266 {strides = array<i32>} : memref<8x8xf32, #tpu.memory_space<vmem>>, vector<2x8xf32>,
    %268 = vector.extract_strided_slice %244 {offsets = [0, 24], sizes = [2, 8], strides = [1, 1]} : vector<8x32xf32> to vector<2x8xf32>
    %c6_226 = arith.constant 6 : index
    %c0_227 = arith.constant 0 : index
    %269 = vector.load %arg27[%c6_226, %c0_227] : memref<8x8xf32, #tpu.memory_space<vmem>>, vector<2x8xf32>
    tpu.vector_store %arg27[%c6_226, %c0_227], %268 {strides = array<i32>} : memref<8x8xf32, #tpu.memory_space<vmem>>, vector<2x8xf32>,
    %270 = vector.extract_strided_slice %247 {offsets = [0, 24], sizes = [2, 8], strides = [1, 1]} : vector<8x32xf32> to vector<2x8xf32>
    %c6_228 = arith.constant 6 : index
    %c0_229 = arith.constant 0 : index
    %271 = vector.load %arg28[%c6_228, %c0_229] : memref<8x8xf32, #tpu.memory_space<vmem>>, vector<2x8xf32>
    tpu.vector_store %arg28[%c6_228, %c0_229], %270 {strides = array<i32>} : memref<8x8xf32, #tpu.memory_space<vmem>>, vector<2x8xf32>,
    %c0_230 = arith.constant 0 : index
    %c0_231 = arith.constant 0 : index
    %272 = vector.load %arg26[%c0_230, %c0_231] : memref<8x8xf32, #tpu.memory_space<vmem>>, vector<8x8xf32>
    %c0_232 = arith.constant 0 : index
    %c0_233 = arith.constant 0 : index
    %273 = vector.load %arg27[%c0_232, %c0_233] : memref<8x8xf32, #tpu.memory_space<vmem>>, vector<8x8xf32>
    %c0_234 = arith.constant 0 : index
    %c0_235 = arith.constant 0 : index
    %274 = vector.load %arg28[%c0_234, %c0_235] : memref<8x8xf32, #tpu.memory_space<vmem>>, vector<8x8xf32>
    "tpu.trace_start"() <{level = 10 : i32, message = "qd,kd->qk"}> : () -> ()
    %cst_236 = arith.constant dense<0.000000e+00> : vector<8x8xf32>
    %275 = tpu.matmul %272, %273, %cst_236 {dimension_numbers = #tpu.dot_dimension_numbers<[1], [1], [0], [0], [0, 0, 1, 0], [], []>} : vector<8x8xf32>, vector<8x8xf32>, vector<8x8xf32> -> vector<8x8xf32>
    "tpu.trace_stop"() : () -> ()
    %276 = arith.addf %275, %238 : vector<8x8xf32>
    %cst_237 = arith.constant dense<0xFF800000> : vector<8xf32>
    %277 = vector.multi_reduction <maximumf>, %276, %cst_237 [1] : vector<8x8xf32> to vector<8xf32>
    %278 = vector.shape_cast %277 : vector<8xf32> to vector<8x1xf32>
    %279 = vector.broadcast %278 : vector<8x1xf32> to vector<8x8xf32>
    %280 = arith.subf %276, %279 : vector<8x8xf32>
    %281 = math.exp %280 : vector<8x8xf32>
    %cst_238 = arith.constant dense<0.000000e+00> : vector<8xf32>
    %282 = vector.multi_reduction <add>, %281, %cst_238 [1] : vector<8x8xf32> to vector<8xf32>
    %283 = vector.shape_cast %282 : vector<8xf32> to vector<8x1xf32>
    %284 = tpu.reciprocal %283 {approx = true} : vector<8x1xf32> -> vector<8x1xf32>
    %285 = vector.broadcast %284 : vector<8x1xf32> to vector<8x8xf32>
    %286 = arith.mulf %281, %285 : vector<8x8xf32>
    %cst_239 = arith.constant dense<0.000000e+00> : vector<8x8xf32>
    %287 = tpu.matmul %286, %274, %cst_239 {dimension_numbers = #tpu.dot_dimension_numbers<[1], [0], [0], [1], [0, 0, 1, 1], [], []>} : vector<8x8xf32>, vector<8x8xf32>, vector<8x8xf32> -> vector<8x8xf32>
    %288 = vector.extract_strided_slice %287 {offsets = [0, 0], sizes = [2, 8], strides = [1, 1]} : vector<8x8xf32> to vector<2x8xf32>
    %c0_240 = arith.constant 0 : index
    %c0_241 = arith.constant 0 : index
    %289 = vector.load %arg29[%c0_240, %c0_241] : memref<8x32xf32, #tpu.memory_space<vmem>>, vector<2x8xf32>
    tpu.vector_store %arg29[%c0_240, %c0_241], %288 {strides = array<i32>} : memref<8x32xf32, #tpu.memory_space<vmem>>, vector<2x8xf32>,
    %290 = vector.extract_strided_slice %287 {offsets = [2, 0], sizes = [2, 8], strides = [1, 1]} : vector<8x8xf32> to vector<2x8xf32>
    %c0_242 = arith.constant 0 : index
    %c8_243 = arith.constant 8 : index
    %291 = vector.load %arg29[%c0_242, %c8_243] : memref<8x32xf32, #tpu.memory_space<vmem>>, vector<2x8xf32>
    tpu.vector_store %arg29[%c0_242, %c8_243], %290 {strides = array<i32>} : memref<8x32xf32, #tpu.memory_space<vmem>>, vector<2x8xf32>,
    %292 = vector.extract_strided_slice %287 {offsets = [4, 0], sizes = [2, 8], strides = [1, 1]} : vector<8x8xf32> to vector<2x8xf32>
    %c0_244 = arith.constant 0 : index
    %c16_245 = arith.constant 16 : index
    %293 = vector.load %arg29[%c0_244, %c16_245] : memref<8x32xf32, #tpu.memory_space<vmem>>, vector<2x8xf32>
    tpu.vector_store %arg29[%c0_244, %c16_245], %292 {strides = array<i32>} : memref<8x32xf32, #tpu.memory_space<vmem>>, vector<2x8xf32>,
    %294 = vector.extract_strided_slice %287 {offsets = [6, 0], sizes = [2, 8], strides = [1, 1]} : vector<8x8xf32> to vector<2x8xf32>
    %c0_246 = arith.constant 0 : index
    %c24_247 = arith.constant 24 : index
    %295 = vector.load %arg29[%c0_246, %c24_247] : memref<8x32xf32, #tpu.memory_space<vmem>>, vector<2x8xf32>
    tpu.vector_store %arg29[%c0_246, %c24_247], %294 {strides = array<i32>} : memref<8x32xf32, #tpu.memory_space<vmem>>, vector<2x8xf32>,
    %296 = vector.extract_strided_slice %241 {offsets = [2, 0], sizes = [2, 8], strides = [1, 1]} : vector<8x32xf32> to vector<2x8xf32>
    %c0_248 = arith.constant 0 : index
    %c0_249 = arith.constant 0 : index
    %297 = vector.load %arg26[%c0_248, %c0_249] : memref<8x8xf32, #tpu.memory_space<vmem>>, vector<2x8xf32>
    tpu.vector_store %arg26[%c0_248, %c0_249], %296 {strides = array<i32>} : memref<8x8xf32, #tpu.memory_space<vmem>>, vector<2x8xf32>,
    %298 = vector.extract_strided_slice %244 {offsets = [2, 0], sizes = [2, 8], strides = [1, 1]} : vector<8x32xf32> to vector<2x8xf32>
    %c0_250 = arith.constant 0 : index
    %c0_251 = arith.constant 0 : index
    %299 = vector.load %arg27[%c0_250, %c0_251] : memref<8x8xf32, #tpu.memory_space<vmem>>, vector<2x8xf32>
    tpu.vector_store %arg27[%c0_250, %c0_251], %298 {strides = array<i32>} : memref<8x8xf32, #tpu.memory_space<vmem>>, vector<2x8xf32>,
    %300 = vector.extract_strided_slice %247 {offsets = [2, 0], sizes = [2, 8], strides = [1, 1]} : vector<8x32xf32> to vector<2x8xf32>
    %c0_252 = arith.constant 0 : index
    %c0_253 = arith.constant 0 : index
    %301 = vector.load %arg28[%c0_252, %c0_253] : memref<8x8xf32, #tpu.memory_space<vmem>>, vector<2x8xf32>
    tpu.vector_store %arg28[%c0_252, %c0_253], %300 {strides = array<i32>} : memref<8x8xf32, #tpu.memory_space<vmem>>, vector<2x8xf32>,
    %302 = vector.extract_strided_slice %241 {offsets = [2, 8], sizes = [2, 8], strides = [1, 1]} : vector<8x32xf32> to vector<2x8xf32>
    %c2_254 = arith.constant 2 : index
    %c0_255 = arith.constant 0 : index
    %303 = vector.load %arg26[%c2_254, %c0_255] : memref<8x8xf32, #tpu.memory_space<vmem>>, vector<2x8xf32>
    tpu.vector_store %arg26[%c2_254, %c0_255], %302 {strides = array<i32>} : memref<8x8xf32, #tpu.memory_space<vmem>>, vector<2x8xf32>,
    %304 = vector.extract_strided_slice %244 {offsets = [2, 8], sizes = [2, 8], strides = [1, 1]} : vector<8x32xf32> to vector<2x8xf32>
    %c2_256 = arith.constant 2 : index
    %c0_257 = arith.constant 0 : index
    %305 = vector.load %arg27[%c2_256, %c0_257] : memref<8x8xf32, #tpu.memory_space<vmem>>, vector<2x8xf32>
    tpu.vector_store %arg27[%c2_256, %c0_257], %304 {strides = array<i32>} : memref<8x8xf32, #tpu.memory_space<vmem>>, vector<2x8xf32>,
    %306 = vector.extract_strided_slice %247 {offsets = [2, 8], sizes = [2, 8], strides = [1, 1]} : vector<8x32xf32> to vector<2x8xf32>
    %c2_258 = arith.constant 2 : index
    %c0_259 = arith.constant 0 : index
    %307 = vector.load %arg28[%c2_258, %c0_259] : memref<8x8xf32, #tpu.memory_space<vmem>>, vector<2x8xf32>
    tpu.vector_store %arg28[%c2_258, %c0_259], %306 {strides = array<i32>} : memref<8x8xf32, #tpu.memory_space<vmem>>, vector<2x8xf32>,
    %308 = vector.extract_strided_slice %241 {offsets = [2, 16], sizes = [2, 8], strides = [1, 1]} : vector<8x32xf32> to vector<2x8xf32>
    %c4_260 = arith.constant 4 : index
    %c0_261 = arith.constant 0 : index
    %309 = vector.load %arg26[%c4_260, %c0_261] : memref<8x8xf32, #tpu.memory_space<vmem>>, vector<2x8xf32>
    tpu.vector_store %arg26[%c4_260, %c0_261], %308 {strides = array<i32>} : memref<8x8xf32, #tpu.memory_space<vmem>>, vector<2x8xf32>,
    %310 = vector.extract_strided_slice %244 {offsets = [2, 16], sizes = [2, 8], strides = [1, 1]} : vector<8x32xf32> to vector<2x8xf32>
    %c4_262 = arith.constant 4 : index
    %c0_263 = arith.constant 0 : index
    %311 = vector.load %arg27[%c4_262, %c0_263] : memref<8x8xf32, #tpu.memory_space<vmem>>, vector<2x8xf32>
    tpu.vector_store %arg27[%c4_262, %c0_263], %310 {strides = array<i32>} : memref<8x8xf32, #tpu.memory_space<vmem>>, vector<2x8xf32>,
    %312 = vector.extract_strided_slice %247 {offsets = [2, 16], sizes = [2, 8], strides = [1, 1]} : vector<8x32xf32> to vector<2x8xf32>
    %c4_264 = arith.constant 4 : index
    %c0_265 = arith.constant 0 : index
    %313 = vector.load %arg28[%c4_264, %c0_265] : memref<8x8xf32, #tpu.memory_space<vmem>>, vector<2x8xf32>
    tpu.vector_store %arg28[%c4_264, %c0_265], %312 {strides = array<i32>} : memref<8x8xf32, #tpu.memory_space<vmem>>, vector<2x8xf32>,
    %314 = vector.extract_strided_slice %241 {offsets = [2, 24], sizes = [2, 8], strides = [1, 1]} : vector<8x32xf32> to vector<2x8xf32>
    %c6_266 = arith.constant 6 : index
    %c0_267 = arith.constant 0 : index
    %315 = vector.load %arg26[%c6_266, %c0_267] : memref<8x8xf32, #tpu.memory_space<vmem>>, vector<2x8xf32>
    tpu.vector_store %arg26[%c6_266, %c0_267], %314 {strides = array<i32>} : memref<8x8xf32, #tpu.memory_space<vmem>>, vector<2x8xf32>,
    %316 = vector.extract_strided_slice %244 {offsets = [2, 24], sizes = [2, 8], strides = [1, 1]} : vector<8x32xf32> to vector<2x8xf32>
    %c6_268 = arith.constant 6 : index
    %c0_269 = arith.constant 0 : index
    %317 = vector.load %arg27[%c6_268, %c0_269] : memref<8x8xf32, #tpu.memory_space<vmem>>, vector<2x8xf32>
    tpu.vector_store %arg27[%c6_268, %c0_269], %316 {strides = array<i32>} : memref<8x8xf32, #tpu.memory_space<vmem>>, vector<2x8xf32>,
    %318 = vector.extract_strided_slice %247 {offsets = [2, 24], sizes = [2, 8], strides = [1, 1]} : vector<8x32xf32> to vector<2x8xf32>
    %c6_270 = arith.constant 6 : index
    %c0_271 = arith.constant 0 : index
    %319 = vector.load %arg28[%c6_270, %c0_271] : memref<8x8xf32, #tpu.memory_space<vmem>>, vector<2x8xf32>
    tpu.vector_store %arg28[%c6_270, %c0_271], %318 {strides = array<i32>} : memref<8x8xf32, #tpu.memory_space<vmem>>, vector<2x8xf32>,
    %c0_272 = arith.constant 0 : index
    %c0_273 = arith.constant 0 : index
    %320 = vector.load %arg26[%c0_272, %c0_273] : memref<8x8xf32, #tpu.memory_space<vmem>>, vector<8x8xf32>
    %c0_274 = arith.constant 0 : index
    %c0_275 = arith.constant 0 : index
    %321 = vector.load %arg27[%c0_274, %c0_275] : memref<8x8xf32, #tpu.memory_space<vmem>>, vector<8x8xf32>
    %c0_276 = arith.constant 0 : index
    %c0_277 = arith.constant 0 : index
    %322 = vector.load %arg28[%c0_276, %c0_277] : memref<8x8xf32, #tpu.memory_space<vmem>>, vector<8x8xf32>
    "tpu.trace_start"() <{level = 10 : i32, message = "qd,kd->qk"}> : () -> ()
    %cst_278 = arith.constant dense<0.000000e+00> : vector<8x8xf32>
    %323 = tpu.matmul %320, %321, %cst_278 {dimension_numbers = #tpu.dot_dimension_numbers<[1], [1], [0], [0], [0, 0, 1, 0], [], []>} : vector<8x8xf32>, vector<8x8xf32>, vector<8x8xf32> -> vector<8x8xf32>
    "tpu.trace_stop"() : () -> ()
    %324 = arith.addf %323, %238 : vector<8x8xf32>
    %cst_279 = arith.constant dense<0xFF800000> : vector<8xf32>
    %325 = vector.multi_reduction <maximumf>, %324, %cst_279 [1] : vector<8x8xf32> to vector<8xf32>
    %326 = vector.shape_cast %325 : vector<8xf32> to vector<8x1xf32>
    %327 = vector.broadcast %326 : vector<8x1xf32> to vector<8x8xf32>
    %328 = arith.subf %324, %327 : vector<8x8xf32>
    %329 = math.exp %328 : vector<8x8xf32>
    %cst_280 = arith.constant dense<0.000000e+00> : vector<8xf32>
    %330 = vector.multi_reduction <add>, %329, %cst_280 [1] : vector<8x8xf32> to vector<8xf32>
    %331 = vector.shape_cast %330 : vector<8xf32> to vector<8x1xf32>
    %332 = tpu.reciprocal %331 {approx = true} : vector<8x1xf32> -> vector<8x1xf32>
    %333 = vector.broadcast %332 : vector<8x1xf32> to vector<8x8xf32>
    %334 = arith.mulf %329, %333 : vector<8x8xf32>
    %cst_281 = arith.constant dense<0.000000e+00> : vector<8x8xf32>
    %335 = tpu.matmul %334, %322, %cst_281 {dimension_numbers = #tpu.dot_dimension_numbers<[1], [0], [0], [1], [0, 0, 1, 1], [], []>} : vector<8x8xf32>, vector<8x8xf32>, vector<8x8xf32> -> vector<8x8xf32>
    %336 = vector.extract_strided_slice %335 {offsets = [0, 0], sizes = [2, 8], strides = [1, 1]} : vector<8x8xf32> to vector<2x8xf32>
    %c2_282 = arith.constant 2 : index
    %c0_283 = arith.constant 0 : index
    %337 = vector.load %arg29[%c2_282, %c0_283] : memref<8x32xf32, #tpu.memory_space<vmem>>, vector<2x8xf32>
    tpu.vector_store %arg29[%c2_282, %c0_283], %336 {strides = array<i32>} : memref<8x32xf32, #tpu.memory_space<vmem>>, vector<2x8xf32>,
    %338 = vector.extract_strided_slice %335 {offsets = [2, 0], sizes = [2, 8], strides = [1, 1]} : vector<8x8xf32> to vector<2x8xf32>
    %c2_284 = arith.constant 2 : index
    %c8_285 = arith.constant 8 : index
    %339 = vector.load %arg29[%c2_284, %c8_285] : memref<8x32xf32, #tpu.memory_space<vmem>>, vector<2x8xf32>
    tpu.vector_store %arg29[%c2_284, %c8_285], %338 {strides = array<i32>} : memref<8x32xf32, #tpu.memory_space<vmem>>, vector<2x8xf32>,
    %340 = vector.extract_strided_slice %335 {offsets = [4, 0], sizes = [2, 8], strides = [1, 1]} : vector<8x8xf32> to vector<2x8xf32>
    %c2_286 = arith.constant 2 : index
    %c16_287 = arith.constant 16 : index
    %341 = vector.load %arg29[%c2_286, %c16_287] : memref<8x32xf32, #tpu.memory_space<vmem>>, vector<2x8xf32>
    tpu.vector_store %arg29[%c2_286, %c16_287], %340 {strides = array<i32>} : memref<8x32xf32, #tpu.memory_space<vmem>>, vector<2x8xf32>,
    %342 = vector.extract_strided_slice %335 {offsets = [6, 0], sizes = [2, 8], strides = [1, 1]} : vector<8x8xf32> to vector<2x8xf32>
    %c2_288 = arith.constant 2 : index
    %c24_289 = arith.constant 24 : index
    %343 = vector.load %arg29[%c2_288, %c24_289] : memref<8x32xf32, #tpu.memory_space<vmem>>, vector<2x8xf32>
    tpu.vector_store %arg29[%c2_288, %c24_289], %342 {strides = array<i32>} : memref<8x32xf32, #tpu.memory_space<vmem>>, vector<2x8xf32>,
    %344 = vector.extract_strided_slice %241 {offsets = [4, 0], sizes = [2, 8], strides = [1, 1]} : vector<8x32xf32> to vector<2x8xf32>
    %c0_290 = arith.constant 0 : index
    %c0_291 = arith.constant 0 : index
    %345 = vector.load %arg26[%c0_290, %c0_291] : memref<8x8xf32, #tpu.memory_space<vmem>>, vector<2x8xf32>
    tpu.vector_store %arg26[%c0_290, %c0_291], %344 {strides = array<i32>} : memref<8x8xf32, #tpu.memory_space<vmem>>, vector<2x8xf32>,
    %346 = vector.extract_strided_slice %244 {offsets = [4, 0], sizes = [2, 8], strides = [1, 1]} : vector<8x32xf32> to vector<2x8xf32>
    %c0_292 = arith.constant 0 : index
    %c0_293 = arith.constant 0 : index
    %347 = vector.load %arg27[%c0_292, %c0_293] : memref<8x8xf32, #tpu.memory_space<vmem>>, vector<2x8xf32>
    tpu.vector_store %arg27[%c0_292, %c0_293], %346 {strides = array<i32>} : memref<8x8xf32, #tpu.memory_space<vmem>>, vector<2x8xf32>,
    %348 = vector.extract_strided_slice %247 {offsets = [4, 0], sizes = [2, 8], strides = [1, 1]} : vector<8x32xf32> to vector<2x8xf32>
    %c0_294 = arith.constant 0 : index
    %c0_295 = arith.constant 0 : index
    %349 = vector.load %arg28[%c0_294, %c0_295] : memref<8x8xf32, #tpu.memory_space<vmem>>, vector<2x8xf32>
    tpu.vector_store %arg28[%c0_294, %c0_295], %348 {strides = array<i32>} : memref<8x8xf32, #tpu.memory_space<vmem>>, vector<2x8xf32>,
    %350 = vector.extract_strided_slice %241 {offsets = [4, 8], sizes = [2, 8], strides = [1, 1]} : vector<8x32xf32> to vector<2x8xf32>
    %c2_296 = arith.constant 2 : index
    %c0_297 = arith.constant 0 : index
    %351 = vector.load %arg26[%c2_296, %c0_297] : memref<8x8xf32, #tpu.memory_space<vmem>>, vector<2x8xf32>
    tpu.vector_store %arg26[%c2_296, %c0_297], %350 {strides = array<i32>} : memref<8x8xf32, #tpu.memory_space<vmem>>, vector<2x8xf32>,
    %352 = vector.extract_strided_slice %244 {offsets = [4, 8], sizes = [2, 8], strides = [1, 1]} : vector<8x32xf32> to vector<2x8xf32>
    %c2_298 = arith.constant 2 : index
    %c0_299 = arith.constant 0 : index
    %353 = vector.load %arg27[%c2_298, %c0_299] : memref<8x8xf32, #tpu.memory_space<vmem>>, vector<2x8xf32>
    tpu.vector_store %arg27[%c2_298, %c0_299], %352 {strides = array<i32>} : memref<8x8xf32, #tpu.memory_space<vmem>>, vector<2x8xf32>,
    %354 = vector.extract_strided_slice %247 {offsets = [4, 8], sizes = [2, 8], strides = [1, 1]} : vector<8x32xf32> to vector<2x8xf32>
    %c2_300 = arith.constant 2 : index
    %c0_301 = arith.constant 0 : index
    %355 = vector.load %arg28[%c2_300, %c0_301] : memref<8x8xf32, #tpu.memory_space<vmem>>, vector<2x8xf32>
    tpu.vector_store %arg28[%c2_300, %c0_301], %354 {strides = array<i32>} : memref<8x8xf32, #tpu.memory_space<vmem>>, vector<2x8xf32>,
    %356 = vector.extract_strided_slice %241 {offsets = [4, 16], sizes = [2, 8], strides = [1, 1]} : vector<8x32xf32> to vector<2x8xf32>
    %c4_302 = arith.constant 4 : index
    %c0_303 = arith.constant 0 : index
    %357 = vector.load %arg26[%c4_302, %c0_303] : memref<8x8xf32, #tpu.memory_space<vmem>>, vector<2x8xf32>
    tpu.vector_store %arg26[%c4_302, %c0_303], %356 {strides = array<i32>} : memref<8x8xf32, #tpu.memory_space<vmem>>, vector<2x8xf32>,
    %358 = vector.extract_strided_slice %244 {offsets = [4, 16], sizes = [2, 8], strides = [1, 1]} : vector<8x32xf32> to vector<2x8xf32>
    %c4_304 = arith.constant 4 : index
    %c0_305 = arith.constant 0 : index
    %359 = vector.load %arg27[%c4_304, %c0_305] : memref<8x8xf32, #tpu.memory_space<vmem>>, vector<2x8xf32>
    tpu.vector_store %arg27[%c4_304, %c0_305], %358 {strides = array<i32>} : memref<8x8xf32, #tpu.memory_space<vmem>>, vector<2x8xf32>,
    %360 = vector.extract_strided_slice %247 {offsets = [4, 16], sizes = [2, 8], strides = [1, 1]} : vector<8x32xf32> to vector<2x8xf32>
    %c4_306 = arith.constant 4 : index
    %c0_307 = arith.constant 0 : index
    %361 = vector.load %arg28[%c4_306, %c0_307] : memref<8x8xf32, #tpu.memory_space<vmem>>, vector<2x8xf32>
    tpu.vector_store %arg28[%c4_306, %c0_307], %360 {strides = array<i32>} : memref<8x8xf32, #tpu.memory_space<vmem>>, vector<2x8xf32>,
    %362 = vector.extract_strided_slice %241 {offsets = [4, 24], sizes = [2, 8], strides = [1, 1]} : vector<8x32xf32> to vector<2x8xf32>
    %c6_308 = arith.constant 6 : index
    %c0_309 = arith.constant 0 : index
    %363 = vector.load %arg26[%c6_308, %c0_309] : memref<8x8xf32, #tpu.memory_space<vmem>>, vector<2x8xf32>
    tpu.vector_store %arg26[%c6_308, %c0_309], %362 {strides = array<i32>} : memref<8x8xf32, #tpu.memory_space<vmem>>, vector<2x8xf32>,
    %364 = vector.extract_strided_slice %244 {offsets = [4, 24], sizes = [2, 8], strides = [1, 1]} : vector<8x32xf32> to vector<2x8xf32>
    %c6_310 = arith.constant 6 : index
    %c0_311 = arith.constant 0 : index
    %365 = vector.load %arg27[%c6_310, %c0_311] : memref<8x8xf32, #tpu.memory_space<vmem>>, vector<2x8xf32>
    tpu.vector_store %arg27[%c6_310, %c0_311], %364 {strides = array<i32>} : memref<8x8xf32, #tpu.memory_space<vmem>>, vector<2x8xf32>,
    %366 = vector.extract_strided_slice %247 {offsets = [4, 24], sizes = [2, 8], strides = [1, 1]} : vector<8x32xf32> to vector<2x8xf32>
    %c6_312 = arith.constant 6 : index
    %c0_313 = arith.constant 0 : index
    %367 = vector.load %arg28[%c6_312, %c0_313] : memref<8x8xf32, #tpu.memory_space<vmem>>, vector<2x8xf32>
    tpu.vector_store %arg28[%c6_312, %c0_313], %366 {strides = array<i32>} : memref<8x8xf32, #tpu.memory_space<vmem>>, vector<2x8xf32>,
    %c0_314 = arith.constant 0 : index
    %c0_315 = arith.constant 0 : index
    %368 = vector.load %arg26[%c0_314, %c0_315] : memref<8x8xf32, #tpu.memory_space<vmem>>, vector<8x8xf32>
    %c0_316 = arith.constant 0 : index
    %c0_317 = arith.constant 0 : index
    %369 = vector.load %arg27[%c0_316, %c0_317] : memref<8x8xf32, #tpu.memory_space<vmem>>, vector<8x8xf32>
    %c0_318 = arith.constant 0 : index
    %c0_319 = arith.constant 0 : index
    %370 = vector.load %arg28[%c0_318, %c0_319] : memref<8x8xf32, #tpu.memory_space<vmem>>, vector<8x8xf32>
    "tpu.trace_start"() <{level = 10 : i32, message = "qd,kd->qk"}> : () -> ()
    %cst_320 = arith.constant dense<0.000000e+00> : vector<8x8xf32>
    %371 = tpu.matmul %368, %369, %cst_320 {dimension_numbers = #tpu.dot_dimension_numbers<[1], [1], [0], [0], [0, 0, 1, 0], [], []>} : vector<8x8xf32>, vector<8x8xf32>, vector<8x8xf32> -> vector<8x8xf32>
    "tpu.trace_stop"() : () -> ()
    %372 = arith.addf %371, %238 : vector<8x8xf32>
    %cst_321 = arith.constant dense<0xFF800000> : vector<8xf32>
    %373 = vector.multi_reduction <maximumf>, %372, %cst_321 [1] : vector<8x8xf32> to vector<8xf32>
    %374 = vector.shape_cast %373 : vector<8xf32> to vector<8x1xf32>
    %375 = vector.broadcast %374 : vector<8x1xf32> to vector<8x8xf32>
    %376 = arith.subf %372, %375 : vector<8x8xf32>
    %377 = math.exp %376 : vector<8x8xf32>
    %cst_322 = arith.constant dense<0.000000e+00> : vector<8xf32>
    %378 = vector.multi_reduction <add>, %377, %cst_322 [1] : vector<8x8xf32> to vector<8xf32>
    %379 = vector.shape_cast %378 : vector<8xf32> to vector<8x1xf32>
    %380 = tpu.reciprocal %379 {approx = true} : vector<8x1xf32> -> vector<8x1xf32>
    %381 = vector.broadcast %380 : vector<8x1xf32> to vector<8x8xf32>
    %382 = arith.mulf %377, %381 : vector<8x8xf32>
    %cst_323 = arith.constant dense<0.000000e+00> : vector<8x8xf32>
    %383 = tpu.matmul %382, %370, %cst_323 {dimension_numbers = #tpu.dot_dimension_numbers<[1], [0], [0], [1], [0, 0, 1, 1], [], []>} : vector<8x8xf32>, vector<8x8xf32>, vector<8x8xf32> -> vector<8x8xf32>
    %384 = vector.extract_strided_slice %383 {offsets = [0, 0], sizes = [2, 8], strides = [1, 1]} : vector<8x8xf32> to vector<2x8xf32>
    %c4_324 = arith.constant 4 : index
    %c0_325 = arith.constant 0 : index
    %385 = vector.load %arg29[%c4_324, %c0_325] : memref<8x32xf32, #tpu.memory_space<vmem>>, vector<2x8xf32>
    tpu.vector_store %arg29[%c4_324, %c0_325], %384 {strides = array<i32>} : memref<8x32xf32, #tpu.memory_space<vmem>>, vector<2x8xf32>,
    %386 = vector.extract_strided_slice %383 {offsets = [2, 0], sizes = [2, 8], strides = [1, 1]} : vector<8x8xf32> to vector<2x8xf32>
    %c4_326 = arith.constant 4 : index
    %c8_327 = arith.constant 8 : index
    %387 = vector.load %arg29[%c4_326, %c8_327] : memref<8x32xf32, #tpu.memory_space<vmem>>, vector<2x8xf32>
    tpu.vector_store %arg29[%c4_326, %c8_327], %386 {strides = array<i32>} : memref<8x32xf32, #tpu.memory_space<vmem>>, vector<2x8xf32>,
    %388 = vector.extract_strided_slice %383 {offsets = [4, 0], sizes = [2, 8], strides = [1, 1]} : vector<8x8xf32> to vector<2x8xf32>
    %c4_328 = arith.constant 4 : index
    %c16_329 = arith.constant 16 : index
    %389 = vector.load %arg29[%c4_328, %c16_329] : memref<8x32xf32, #tpu.memory_space<vmem>>, vector<2x8xf32>
    tpu.vector_store %arg29[%c4_328, %c16_329], %388 {strides = array<i32>} : memref<8x32xf32, #tpu.memory_space<vmem>>, vector<2x8xf32>,
    %390 = vector.extract_strided_slice %383 {offsets = [6, 0], sizes = [2, 8], strides = [1, 1]} : vector<8x8xf32> to vector<2x8xf32>
    %c4_330 = arith.constant 4 : index
    %c24_331 = arith.constant 24 : index
    %391 = vector.load %arg29[%c4_330, %c24_331] : memref<8x32xf32, #tpu.memory_space<vmem>>, vector<2x8xf32>
    tpu.vector_store %arg29[%c4_330, %c24_331], %390 {strides = array<i32>} : memref<8x32xf32, #tpu.memory_space<vmem>>, vector<2x8xf32>,
    %392 = vector.extract_strided_slice %241 {offsets = [6, 0], sizes = [2, 8], strides = [1, 1]} : vector<8x32xf32> to vector<2x8xf32>
    %c0_332 = arith.constant 0 : index
    %c0_333 = arith.constant 0 : index
    %393 = vector.load %arg26[%c0_332, %c0_333] : memref<8x8xf32, #tpu.memory_space<vmem>>, vector<2x8xf32>
    tpu.vector_store %arg26[%c0_332, %c0_333], %392 {strides = array<i32>} : memref<8x8xf32, #tpu.memory_space<vmem>>, vector<2x8xf32>,
    %394 = vector.extract_strided_slice %244 {offsets = [6, 0], sizes = [2, 8], strides = [1, 1]} : vector<8x32xf32> to vector<2x8xf32>
    %c0_334 = arith.constant 0 : index
    %c0_335 = arith.constant 0 : index
    %395 = vector.load %arg27[%c0_334, %c0_335] : memref<8x8xf32, #tpu.memory_space<vmem>>, vector<2x8xf32>
    tpu.vector_store %arg27[%c0_334, %c0_335], %394 {strides = array<i32>} : memref<8x8xf32, #tpu.memory_space<vmem>>, vector<2x8xf32>,
    %396 = vector.extract_strided_slice %247 {offsets = [6, 0], sizes = [2, 8], strides = [1, 1]} : vector<8x32xf32> to vector<2x8xf32>
    %c0_336 = arith.constant 0 : index
    %c0_337 = arith.constant 0 : index
    %397 = vector.load %arg28[%c0_336, %c0_337] : memref<8x8xf32, #tpu.memory_space<vmem>>, vector<2x8xf32>
    tpu.vector_store %arg28[%c0_336, %c0_337], %396 {strides = array<i32>} : memref<8x8xf32, #tpu.memory_space<vmem>>, vector<2x8xf32>,
    %398 = vector.extract_strided_slice %241 {offsets = [6, 8], sizes = [2, 8], strides = [1, 1]} : vector<8x32xf32> to vector<2x8xf32>
    %c2_338 = arith.constant 2 : index
    %c0_339 = arith.constant 0 : index
    %399 = vector.load %arg26[%c2_338, %c0_339] : memref<8x8xf32, #tpu.memory_space<vmem>>, vector<2x8xf32>
    tpu.vector_store %arg26[%c2_338, %c0_339], %398 {strides = array<i32>} : memref<8x8xf32, #tpu.memory_space<vmem>>, vector<2x8xf32>,
    %400 = vector.extract_strided_slice %244 {offsets = [6, 8], sizes = [2, 8], strides = [1, 1]} : vector<8x32xf32> to vector<2x8xf32>
    %c2_340 = arith.constant 2 : index
    %c0_341 = arith.constant 0 : index
    %401 = vector.load %arg27[%c2_340, %c0_341] : memref<8x8xf32, #tpu.memory_space<vmem>>, vector<2x8xf32>
    tpu.vector_store %arg27[%c2_340, %c0_341], %400 {strides = array<i32>} : memref<8x8xf32, #tpu.memory_space<vmem>>, vector<2x8xf32>,
    %402 = vector.extract_strided_slice %247 {offsets = [6, 8], sizes = [2, 8], strides = [1, 1]} : vector<8x32xf32> to vector<2x8xf32>
    %c2_342 = arith.constant 2 : index
    %c0_343 = arith.constant 0 : index
    %403 = vector.load %arg28[%c2_342, %c0_343] : memref<8x8xf32, #tpu.memory_space<vmem>>, vector<2x8xf32>
    tpu.vector_store %arg28[%c2_342, %c0_343], %402 {strides = array<i32>} : memref<8x8xf32, #tpu.memory_space<vmem>>, vector<2x8xf32>,
    %404 = vector.extract_strided_slice %241 {offsets = [6, 16], sizes = [2, 8], strides = [1, 1]} : vector<8x32xf32> to vector<2x8xf32>
    %c4_344 = arith.constant 4 : index
    %c0_345 = arith.constant 0 : index
    %405 = vector.load %arg26[%c4_344, %c0_345] : memref<8x8xf32, #tpu.memory_space<vmem>>, vector<2x8xf32>
    tpu.vector_store %arg26[%c4_344, %c0_345], %404 {strides = array<i32>} : memref<8x8xf32, #tpu.memory_space<vmem>>, vector<2x8xf32>,
    %406 = vector.extract_strided_slice %244 {offsets = [6, 16], sizes = [2, 8], strides = [1, 1]} : vector<8x32xf32> to vector<2x8xf32>
    %c4_346 = arith.constant 4 : index
    %c0_347 = arith.constant 0 : index
    %407 = vector.load %arg27[%c4_346, %c0_347] : memref<8x8xf32, #tpu.memory_space<vmem>>, vector<2x8xf32>
    tpu.vector_store %arg27[%c4_346, %c0_347], %406 {strides = array<i32>} : memref<8x8xf32, #tpu.memory_space<vmem>>, vector<2x8xf32>,
    %408 = vector.extract_strided_slice %247 {offsets = [6, 16], sizes = [2, 8], strides = [1, 1]} : vector<8x32xf32> to vector<2x8xf32>
    %c4_348 = arith.constant 4 : index
    %c0_349 = arith.constant 0 : index
    %409 = vector.load %arg28[%c4_348, %c0_349] : memref<8x8xf32, #tpu.memory_space<vmem>>, vector<2x8xf32>
    tpu.vector_store %arg28[%c4_348, %c0_349], %408 {strides = array<i32>} : memref<8x8xf32, #tpu.memory_space<vmem>>, vector<2x8xf32>,
    %410 = vector.extract_strided_slice %241 {offsets = [6, 24], sizes = [2, 8], strides = [1, 1]} : vector<8x32xf32> to vector<2x8xf32>
    %c6_350 = arith.constant 6 : index
    %c0_351 = arith.constant 0 : index
    %411 = vector.load %arg26[%c6_350, %c0_351] : memref<8x8xf32, #tpu.memory_space<vmem>>, vector<2x8xf32>
    tpu.vector_store %arg26[%c6_350, %c0_351], %410 {strides = array<i32>} : memref<8x8xf32, #tpu.memory_space<vmem>>, vector<2x8xf32>,
    %412 = vector.extract_strided_slice %244 {offsets = [6, 24], sizes = [2, 8], strides = [1, 1]} : vector<8x32xf32> to vector<2x8xf32>
    %c6_352 = arith.constant 6 : index
    %c0_353 = arith.constant 0 : index
    %413 = vector.load %arg27[%c6_352, %c0_353] : memref<8x8xf32, #tpu.memory_space<vmem>>, vector<2x8xf32>
    tpu.vector_store %arg27[%c6_352, %c0_353], %412 {strides = array<i32>} : memref<8x8xf32, #tpu.memory_space<vmem>>, vector<2x8xf32>,
    %414 = vector.extract_strided_slice %247 {offsets = [6, 24], sizes = [2, 8], strides = [1, 1]} : vector<8x32xf32> to vector<2x8xf32>
    %c6_354 = arith.constant 6 : index
    %c0_355 = arith.constant 0 : index
    %415 = vector.load %arg28[%c6_354, %c0_355] : memref<8x8xf32, #tpu.memory_space<vmem>>, vector<2x8xf32>
    tpu.vector_store %arg28[%c6_354, %c0_355], %414 {strides = array<i32>} : memref<8x8xf32, #tpu.memory_space<vmem>>, vector<2x8xf32>,
    %c0_356 = arith.constant 0 : index
    %c0_357 = arith.constant 0 : index
    %416 = vector.load %arg26[%c0_356, %c0_357] : memref<8x8xf32, #tpu.memory_space<vmem>>, vector<8x8xf32>
    %c0_358 = arith.constant 0 : index
    %c0_359 = arith.constant 0 : index
    %417 = vector.load %arg27[%c0_358, %c0_359] : memref<8x8xf32, #tpu.memory_space<vmem>>, vector<8x8xf32>
    %c0_360 = arith.constant 0 : index
    %c0_361 = arith.constant 0 : index
    %418 = vector.load %arg28[%c0_360, %c0_361] : memref<8x8xf32, #tpu.memory_space<vmem>>, vector<8x8xf32>
    "tpu.trace_start"() <{level = 10 : i32, message = "qd,kd->qk"}> : () -> ()
    %cst_362 = arith.constant dense<0.000000e+00> : vector<8x8xf32>
    %419 = tpu.matmul %416, %417, %cst_362 {dimension_numbers = #tpu.dot_dimension_numbers<[1], [1], [0], [0], [0, 0, 1, 0], [], []>} : vector<8x8xf32>, vector<8x8xf32>, vector<8x8xf32> -> vector<8x8xf32>
    "tpu.trace_stop"() : () -> ()
    %420 = arith.addf %419, %238 : vector<8x8xf32>
    %cst_363 = arith.constant dense<0xFF800000> : vector<8xf32>
    %421 = vector.multi_reduction <maximumf>, %420, %cst_363 [1] : vector<8x8xf32> to vector<8xf32>
    %422 = vector.shape_cast %421 : vector<8xf32> to vector<8x1xf32>
    %423 = vector.broadcast %422 : vector<8x1xf32> to vector<8x8xf32>
    %424 = arith.subf %420, %423 : vector<8x8xf32>
    %425 = math.exp %424 : vector<8x8xf32>
    %cst_364 = arith.constant dense<0.000000e+00> : vector<8xf32>
    %426 = vector.multi_reduction <add>, %425, %cst_364 [1] : vector<8x8xf32> to vector<8xf32>
    %427 = vector.shape_cast %426 : vector<8xf32> to vector<8x1xf32>
    %428 = tpu.reciprocal %427 {approx = true} : vector<8x1xf32> -> vector<8x1xf32>
    %429 = vector.broadcast %428 : vector<8x1xf32> to vector<8x8xf32>
    %430 = arith.mulf %425, %429 : vector<8x8xf32>
    %cst_365 = arith.constant dense<0.000000e+00> : vector<8x8xf32>
    %431 = tpu.matmul %430, %418, %cst_365 {dimension_numbers = #tpu.dot_dimension_numbers<[1], [0], [0], [1], [0, 0, 1, 1], [], []>} : vector<8x8xf32>, vector<8x8xf32>, vector<8x8xf32> -> vector<8x8xf32>
    %432 = vector.extract_strided_slice %431 {offsets = [0, 0], sizes = [2, 8], strides = [1, 1]} : vector<8x8xf32> to vector<2x8xf32>
    %c6_366 = arith.constant 6 : index
    %c0_367 = arith.constant 0 : index
    %433 = vector.load %arg29[%c6_366, %c0_367] : memref<8x32xf32, #tpu.memory_space<vmem>>, vector<2x8xf32>
    tpu.vector_store %arg29[%c6_366, %c0_367], %432 {strides = array<i32>} : memref<8x32xf32, #tpu.memory_space<vmem>>, vector<2x8xf32>,
    %434 = vector.extract_strided_slice %431 {offsets = [2, 0], sizes = [2, 8], strides = [1, 1]} : vector<8x8xf32> to vector<2x8xf32>
    %c6_368 = arith.constant 6 : index
    %c8_369 = arith.constant 8 : index
    %435 = vector.load %arg29[%c6_368, %c8_369] : memref<8x32xf32, #tpu.memory_space<vmem>>, vector<2x8xf32>
    tpu.vector_store %arg29[%c6_368, %c8_369], %434 {strides = array<i32>} : memref<8x32xf32, #tpu.memory_space<vmem>>, vector<2x8xf32>,
    %436 = vector.extract_strided_slice %431 {offsets = [4, 0], sizes = [2, 8], strides = [1, 1]} : vector<8x8xf32> to vector<2x8xf32>
    %c6_370 = arith.constant 6 : index
    %c16_371 = arith.constant 16 : index
    %437 = vector.load %arg29[%c6_370, %c16_371] : memref<8x32xf32, #tpu.memory_space<vmem>>, vector<2x8xf32>
    tpu.vector_store %arg29[%c6_370, %c16_371], %436 {strides = array<i32>} : memref<8x32xf32, #tpu.memory_space<vmem>>, vector<2x8xf32>,
    %438 = vector.extract_strided_slice %431 {offsets = [6, 0], sizes = [2, 8], strides = [1, 1]} : vector<8x8xf32> to vector<2x8xf32>
    %c6_372 = arith.constant 6 : index
    %c24_373 = arith.constant 24 : index
    %439 = vector.load %arg29[%c6_372, %c24_373] : memref<8x32xf32, #tpu.memory_space<vmem>>, vector<2x8xf32>
    tpu.vector_store %arg29[%c6_372, %c24_373], %438 {strides = array<i32>} : memref<8x32xf32, #tpu.memory_space<vmem>>, vector<2x8xf32>,
    %c0_374 = arith.constant 0 : index
    %c0_375 = arith.constant 0 : index
    %440 = vector.load %arg29[%c0_374, %c0_375] : memref<8x32xf32, #tpu.memory_space<vmem>>, vector<8x32xf32>
    %441 = arith.truncf %440 : vector<8x32xf32> to vector<8x32xbf16>
    %c0_376 = arith.constant 0 : index
    %c0_377 = arith.constant 0 : index
    %442 = vector.load %arg15[%c0_376, %c0_377] : memref<32x32xbf16, #tpu.memory_space<vmem>>, vector<32x32xbf16>
    %cst_378 = arith.constant dense<0.000000e+00> : vector<8x32xf32>
    %443 = tpu.matmul %441, %442, %cst_378 {dimension_numbers = #tpu.dot_dimension_numbers<[1], [0], [0], [1], [0, 0, 1, 1], [], []>} : vector<8x32xbf16>, vector<32x32xbf16>, vector<8x32xf32> -> vector<8x32xf32>
    %c0_379 = arith.constant 0 : index
    %c0_380 = arith.constant 0 : index
    %444 = vector.load %arg16[%c0_379, %c0_380] : memref<1x32xf32, #tpu.memory_space<vmem>>, vector<1x32xf32>
    %445 = vector.broadcast %444 : vector<1x32xf32> to vector<8x32xf32>
    %446 = arith.addf %443, %445 : vector<8x32xf32>
    %447 = arith.addf %446, %236 : vector<8x32xf32>
    %c0_381 = arith.constant 0 : index
    %c0_382 = arith.constant 0 : index
    %448 = vector.load %arg17[%c0_381, %c0_382] : memref<1x32xf32, #tpu.memory_space<vmem>>, vector<1x32xf32>
    %c0_383 = arith.constant 0 : index
    %c0_384 = arith.constant 0 : index
    %449 = vector.load %arg18[%c0_383, %c0_384] : memref<1x32xf32, #tpu.memory_space<vmem>>, vector<1x32xf32>
    %cst_385 = arith.constant dense<0.000000e+00> : vector<8xf32>
    %450 = vector.multi_reduction <add>, %447, %cst_385 [1] : vector<8x32xf32> to vector<8xf32>
    %451 = vector.shape_cast %450 : vector<8xf32> to vector<8x1xf32>
    %cst_386 = arith.constant 3.200000e+01 : f32
    %452 = vector.broadcast %cst_386 : f32 to vector<8x1xf32>
    %453 = arith.divf %451, %452 : vector<8x1xf32>
    %454 = vector.broadcast %453 : vector<8x1xf32> to vector<8x32xf32>
    %455 = arith.subf %447, %454 : vector<8x32xf32>
    %456 = arith.mulf %455, %455 : vector<8x32xf32>
    %cst_387 = arith.constant dense<0.000000e+00> : vector<8xf32>
    %457 = vector.multi_reduction <add>, %456, %cst_387 [1] : vector<8x32xf32> to vector<8xf32>
    %458 = vector.shape_cast %457 : vector<8xf32> to vector<8x1xf32>
    %cst_388 = arith.constant 3.200000e+01 : f32
    %459 = vector.broadcast %cst_388 : f32 to vector<8x1xf32>
    %460 = arith.divf %458, %459 : vector<8x1xf32>
    %cst_389 = arith.constant 9.99999974E-6 : f32
    %461 = vector.broadcast %cst_389 : f32 to vector<8x1xf32>
    %462 = arith.addf %460, %461 : vector<8x1xf32>
    %463 = math.rsqrt %462 : vector<8x1xf32>
    %464 = vector.broadcast %463 : vector<8x1xf32> to vector<8x32xf32>
    %465 = arith.mulf %455, %464 : vector<8x32xf32>
    %466 = vector.broadcast %448 : vector<1x32xf32> to vector<8x32xf32>
    %467 = arith.mulf %465, %466 : vector<8x32xf32>
    %468 = vector.broadcast %449 : vector<1x32xf32> to vector<8x32xf32>
    %469 = arith.addf %467, %468 : vector<8x32xf32>
    %470 = arith.truncf %469 : vector<8x32xf32> to vector<8x32xbf16>
    %c0_390 = arith.constant 0 : index
    %c0_391 = arith.constant 0 : index
    %471 = vector.load %arg19[%c0_390, %c0_391] : memref<32x64xbf16, #tpu.memory_space<vmem>>, vector<32x64xbf16>
    %cst_392 = arith.constant dense<0.000000e+00> : vector<8x64xf32>
    %472 = tpu.matmul %470, %471, %cst_392 {dimension_numbers = #tpu.dot_dimension_numbers<[1], [0], [0], [1], [0, 0, 1, 1], [], []>} : vector<8x32xbf16>, vector<32x64xbf16>, vector<8x64xf32> -> vector<8x64xf32>
    %c0_393 = arith.constant 0 : index
    %c0_394 = arith.constant 0 : index
    %473 = vector.load %arg20[%c0_393, %c0_394] : memref<1x64xf32, #tpu.memory_space<vmem>>, vector<1x64xf32>
    %474 = vector.broadcast %473 : vector<1x64xf32> to vector<8x64xf32>
    %475 = arith.addf %472, %474 : vector<8x64xf32>
    %cst_395 = arith.constant 0.000000e+00 : f32
    %476 = vector.broadcast %cst_395 : f32 to vector<8x64xf32>
    %477 = arith.maximumf %475, %476 : vector<8x64xf32>
    %478 = arith.truncf %477 : vector<8x64xf32> to vector<8x64xbf16>
    %c0_396 = arith.constant 0 : index
    %c0_397 = arith.constant 0 : index
    %479 = vector.load %arg21[%c0_396, %c0_397] : memref<64x32xbf16, #tpu.memory_space<vmem>>, vector<64x32xbf16>
    %cst_398 = arith.constant dense<0.000000e+00> : vector<8x32xf32>
    %480 = tpu.matmul %478, %479, %cst_398 {dimension_numbers = #tpu.dot_dimension_numbers<[1], [0], [0], [1], [0, 0, 1, 1], [], []>} : vector<8x64xbf16>, vector<64x32xbf16>, vector<8x32xf32> -> vector<8x32xf32>
    %c0_399 = arith.constant 0 : index
    %c0_400 = arith.constant 0 : index
    %481 = vector.load %arg22[%c0_399, %c0_400] : memref<1x32xf32, #tpu.memory_space<vmem>>, vector<1x32xf32>
    %482 = vector.broadcast %481 : vector<1x32xf32> to vector<8x32xf32>
    %483 = arith.addf %480, %482 : vector<8x32xf32>
    %484 = arith.addf %483, %469 : vector<8x32xf32>
    %c0_401 = arith.constant 0 : index
    %c0_402 = arith.constant 0 : index
    %485 = vector.load %arg23[%c0_401, %c0_402] : memref<1x32xf32, #tpu.memory_space<vmem>>, vector<1x32xf32>
    %c0_403 = arith.constant 0 : index
    %c0_404 = arith.constant 0 : index
    %486 = vector.load %arg24[%c0_403, %c0_404] : memref<1x32xf32, #tpu.memory_space<vmem>>, vector<1x32xf32>
    %cst_405 = arith.constant dense<0.000000e+00> : vector<8xf32>
    %487 = vector.multi_reduction <add>, %484, %cst_405 [1] : vector<8x32xf32> to vector<8xf32>
    %488 = vector.shape_cast %487 : vector<8xf32> to vector<8x1xf32>
    %cst_406 = arith.constant 3.200000e+01 : f32
    %489 = vector.broadcast %cst_406 : f32 to vector<8x1xf32>
    %490 = arith.divf %488, %489 : vector<8x1xf32>
    %491 = vector.broadcast %490 : vector<8x1xf32> to vector<8x32xf32>
    %492 = arith.subf %484, %491 : vector<8x32xf32>
    %493 = arith.mulf %492, %492 : vector<8x32xf32>
    %cst_407 = arith.constant dense<0.000000e+00> : vector<8xf32>
    %494 = vector.multi_reduction <add>, %493, %cst_407 [1] : vector<8x32xf32> to vector<8xf32>
    %495 = vector.shape_cast %494 : vector<8xf32> to vector<8x1xf32>
    %cst_408 = arith.constant 3.200000e+01 : f32
    %496 = vector.broadcast %cst_408 : f32 to vector<8x1xf32>
    %497 = arith.divf %495, %496 : vector<8x1xf32>
    %cst_409 = arith.constant 9.99999974E-6 : f32
    %498 = vector.broadcast %cst_409 : f32 to vector<8x1xf32>
    %499 = arith.addf %497, %498 : vector<8x1xf32>
    %500 = math.rsqrt %499 : vector<8x1xf32>
    %501 = vector.broadcast %500 : vector<8x1xf32> to vector<8x32xf32>
    %502 = arith.mulf %492, %501 : vector<8x32xf32>
    %503 = vector.broadcast %485 : vector<1x32xf32> to vector<8x32xf32>
    %504 = arith.mulf %502, %503 : vector<8x32xf32>
    %505 = vector.broadcast %486 : vector<1x32xf32> to vector<8x32xf32>
    %506 = arith.addf %504, %505 : vector<8x32xf32>
    %c0_410 = arith.constant 0 : index
    %c0_411 = arith.constant 0 : index
    %c0_412 = arith.constant 0 : index
    %507 = vector.load %arg25[%c0_410, %c0_411, %c0_412] : memref<1x8x32xf32, #tpu.memory_space<vmem>>, vector<1x8x32xf32>
    %508 = vector.shape_cast %507 : vector<1x8x32xf32> to vector<8x32xf32>
    %509 = vector.shape_cast %506 : vector<8x32xf32> to vector<1x8x32xf32>
    tpu.vector_store %arg25[%c0_410, %c0_411, %c0_412], %509 {strides = array<i32>} : memref<1x8x32xf32, #tpu.memory_space<vmem>>, vector<1x8x32xf32>,
    return
  }
  func.func @transform_0(%arg0: i32) -> (i32, i32, i32) {
    %c0_i32 = arith.constant 0 : i32
    %c0_i32_0 = arith.constant 0 : i32
    %c0_i32_1 = arith.constant 0 : i32
    return %arg0, %c0_i32, %c0_i32_0 : i32, i32, i32
  }
  func.func @transform_1(%arg0: i32) -> (i32, i32, i32) {
    %c0_i32 = arith.constant 0 : i32
    %c0_i32_0 = arith.constant 0 : i32
    %c0_i32_1 = arith.constant 0 : i32
    return %arg0, %c0_i32, %c0_i32_0 : i32, i32, i32
  }
  func.func @transform_2(%arg0: i32) -> (i32, i32, i32) {
    %c0_i32 = arith.constant 0 : i32
    %c0_i32_0 = arith.constant 0 : i32
    %c0_i32_1 = arith.constant 0 : i32
    return %arg0, %c0_i32, %c0_i32_0 : i32, i32, i32
  }
  func.func @transform_3(%arg0: i32) -> (i32, i32, i32) {
    %c0_i32 = arith.constant 0 : i32
    %c0_i32_0 = arith.constant 0 : i32
    %c0_i32_1 = arith.constant 0 : i32
    return %arg0, %c0_i32, %c0_i32_0 : i32, i32, i32
  }
  func.func @transform_4(%arg0: i32) -> (i32, i32) {
    %c0_i32 = arith.constant 0 : i32
    %c0_i32_0 = arith.constant 0 : i32
    %c0_i32_1 = arith.constant 0 : i32
    return %c0_i32, %c0_i32_0 : i32, i32
  }
  func.func @transform_5(%arg0: i32) -> (i32, i32) {
    %c0_i32 = arith.constant 0 : i32
    %c0_i32_0 = arith.constant 0 : i32
    %c0_i32_1 = arith.constant 0 : i32
    return %c0_i32, %c0_i32_0 : i32, i32
  }
  func.func @transform_6(%arg0: i32) -> (i32, i32) {
    %c0_i32 = arith.constant 0 : i32
    %c0_i32_0 = arith.constant 0 : i32
    %c0_i32_1 = arith.constant 0 : i32
    return %c0_i32, %c0_i32_0 : i32, i32
  }
  func.func @transform_7(%arg0: i32) -> (i32, i32) {
    %c0_i32 = arith.constant 0 : i32
    %c0_i32_0 = arith.constant 0 : i32
    %c0_i32_1 = arith.constant 0 : i32
    return %c0_i32, %c0_i32_0 : i32, i32
  }
  func.func @transform_8(%arg0: i32) -> (i32, i32) {
    %c0_i32 = arith.constant 0 : i32
    %c0_i32_0 = arith.constant 0 : i32
    %c0_i32_1 = arith.constant 0 : i32
    return %c0_i32, %c0_i32_0 : i32, i32
  }
  func.func @transform_9(%arg0: i32) -> (i32, i32) {
    %c0_i32 = arith.constant 0 : i32
    %c0_i32_0 = arith.constant 0 : i32
    %c0_i32_1 = arith.constant 0 : i32
    return %c0_i32, %c0_i32_0 : i32, i32
  }
  func.func @transform_10(%arg0: i32) -> (i32, i32) {
    %c0_i32 = arith.constant 0 : i32
    %c0_i32_0 = arith.constant 0 : i32
    %c0_i32_1 = arith.constant 0 : i32
    return %c0_i32, %c0_i32_0 : i32, i32
  }
  func.func @transform_11(%arg0: i32) -> (i32, i32) {
    %c0_i32 = arith.constant 0 : i32
    %c0_i32_0 = arith.constant 0 : i32
    %c0_i32_1 = arith.constant 0 : i32
    return %c0_i32, %c0_i32_0 : i32, i32
  }
  func.func @transform_12(%arg0: i32) -> (i32, i32) {
    %c0_i32 = arith.constant 0 : i32
    %c0_i32_0 = arith.constant 0 : i32
    %c0_i32_1 = arith.constant 0 : i32
    return %c0_i32, %c0_i32_0 : i32, i32
  }
  func.func @transform_13(%arg0: i32) -> (i32, i32) {
    %c0_i32 = arith.constant 0 : i32
    %c0_i32_0 = arith.constant 0 : i32
    %c0_i32_1 = arith.constant 0 : i32
    return %c0_i32, %c0_i32_0 : i32, i32
  }
  func.func @transform_14(%arg0: i32) -> (i32, i32) {
    %c0_i32 = arith.constant 0 : i32
    %c0_i32_0 = arith.constant 0 : i32
    %c0_i32_1 = arith.constant 0 : i32
    return %c0_i32, %c0_i32_0 : i32, i32
  }
  func.func @transform_15(%arg0: i32) -> (i32, i32) {
    %c0_i32 = arith.constant 0 : i32
    %c0_i32_0 = arith.constant 0 : i32
    %c0_i32_1 = arith.constant 0 : i32
    return %c0_i32, %c0_i32_0 : i32, i32
  }
  func.func @transform_16(%arg0: i32) -> (i32, i32) {
    %c0_i32 = arith.constant 0 : i32
    %c0_i32_0 = arith.constant 0 : i32
    %c0_i32_1 = arith.constant 0 : i32
    return %c0_i32, %c0_i32_0 : i32, i32
  }
  func.func @transform_17(%arg0: i32) -> (i32, i32) {
    %c0_i32 = arith.constant 0 : i32
    %c0_i32_0 = arith.constant 0 : i32
    %c0_i32_1 = arith.constant 0 : i32
    return %c0_i32, %c0_i32_0 : i32, i32
  }
  func.func @transform_18(%arg0: i32) -> (i32, i32) {
    %c0_i32 = arith.constant 0 : i32
    %c0_i32_0 = arith.constant 0 : i32
    %c0_i32_1 = arith.constant 0 : i32
    return %c0_i32, %c0_i32_0 : i32, i32
  }
  func.func @transform_19(%arg0: i32) -> (i32, i32) {
    %c0_i32 = arith.constant 0 : i32
    %c0_i32_0 = arith.constant 0 : i32
    %c0_i32_1 = arith.constant 0 : i32
    return %c0_i32, %c0_i32_0 : i32, i32
  }
  func.func @transform_20(%arg0: i32) -> (i32, i32) {
    %c0_i32 = arith.constant 0 : i32
    %c0_i32_0 = arith.constant 0 : i32
    %c0_i32_1 = arith.constant 0 : i32
    return %c0_i32, %c0_i32_0 : i32, i32
  }
  func.func @transform_21(%arg0: i32) -> (i32, i32) {
    %c0_i32 = arith.constant 0 : i32
    %c0_i32_0 = arith.constant 0 : i32
    %c0_i32_1 = arith.constant 0 : i32
    return %c0_i32, %c0_i32_0 : i32, i32
  }
  func.func @transform_22(%arg0: i32) -> (i32, i32) {
    %c0_i32 = arith.constant 0 : i32
    %c0_i32_0 = arith.constant 0 : i32
    %c0_i32_1 = arith.constant 0 : i32
    return %c0_i32, %c0_i32_0 : i32, i32
  }
  func.func @transform_23(%arg0: i32) -> (i32, i32) {
    %c0_i32 = arith.constant 0 : i32
    %c0_i32_0 = arith.constant 0 : i32
    %c0_i32_1 = arith.constant 0 : i32
    return %c0_i32, %c0_i32_0 : i32, i32
  }
  func.func @transform_24(%arg0: i32) -> (i32, i32, i32) {
    %c0_i32 = arith.constant 0 : i32
    %c0_i32_0 = arith.constant 0 : i32
    %c0_i32_1 = arith.constant 0 : i32
    return %arg0, %c0_i32, %c0_i32_0 : i32, i32, i32
  }
}

</mosaic_0001>

<bundles_post_ra>
// kernel: transformer_decoder_forward.5
= control target key start
LH: loop header
LB: loop body
LE: loop exit
PB: predicated region body
PF: predicated region fallthrough
CT: control target
= control target key end

     0   :  { %8 = vsyncpa [#allocation3], 0  ;;  %s700_s0 = inlined_call_operand.vmem [shape: f32[2,8,32], index: 0, kind: input, shape index: {}]   ;;  %s701_s1 = inlined_call_operand.vmem [shape: bf16[32,128], index: 1, kind: input, shape index: {}]   ;;  %s702_s2 = inlined_call_operand.vmem [shape: f32[1,128], index: 2, kind: input, shape index: {}]   ;;  %s703_s3 = inlined_call_operand.hbm [shape: f32[2,8,128], index: 3, kind: output, shape index: {}]  }
   0x1   :  { %10 = vsyncpa [#allocation3 + $0x1], 0  ;;  %s580_s12 = smov 0   ;;  %s582_s13 = smov 0  }
   0x2   :  { %s584_s14 = smov 0   ;;  %s586_s15 = smov 0  }
   0x3   :  { %s588_s16 = smov 0   ;;  %s590_s17 = smov 0  }
   0x4 LB: > { %s392_s18 = sadd.s32 4294967295, %s555_s17   ;;  %s393_s19 = sadd.s32 4294967294, %s555_s17   ;;  %s555_s17 = sphi %s590_s17, %s16_s17   ;;  %s551_s16 = sphi %s588_s16, %s710_s16   ;;  %s547_s15 = sphi %s586_s15, %s709_s15   ;;  %s543_s14 = sphi %s584_s14, %s708_s14   ;;  %s539_s13 = sphi %s582_s13, %s707_s13   ;;  %s535_s12 = sphi %s580_s12, %s706_s12  }
   0x5   : > { %s28_s20 = sadd.s32 1, %s551_s16  ;;  %s115_s21 = sadd.s32 1, %s543_s14 }
   0x6   : > { %p30_p0 = scmp.ge.s32.totalorder %s28_s20, 2  ;;  %p125_p1 = scmp.ne.s32.totalorder %s543_s14, %s539_s13 }
   0x7   : > { %p126_p2 = scmp.eq.s32.totalorder %s392_s18, 1  ;;  %p131_p3 = scmp.ne.s32.totalorder %s539_s13, %s535_s12 }
   0x8   : > { %s712_s20 = smov (%p30_p0, %s28_s20), 0  ;;  %p132_p5 = scmp.eq.s32.totalorder %s393_s19, 1 }
   0x9   : > { %p620_p4 = por %p126_p2, %p125_p1  ;;  %s110_s23 = ssub.s32 %s551_s16, %s712_s20 }
   0xa   : > { %p398_p6 = scmp.ge.s32.totalorder %s555_s17, 1  ;;  %p113_p7 = scmp.eq.s32.totalorder %s110_s23, 0 }
   0xb   : > { %p627_p8 = por %p132_p5, %p131_p3  ;;  %p170_p9 = scmp.lt.s32.totalorder %s555_s17, 3 }
   0xc   : > { %s633_s25 = scalar_select %p113_p7, %s543_s14, %s115_s21  }
   0xd   : > { %p171_p10 = pnand %p398_p6, %p170_p9 }
   0xe   : > { %p200_p11 = scmp.lt.s32.totalorder (!%p171_p10), %s547_s15, 1  ;;  %s197_s8 = sand.u32 (!%p171_p10), 1, %s539_s13  }
   0xf   : > { %174 = sbr.rel (%p171_p10) target bundleno = 238 (0xee), region = 32  ;;  %s399_s9 = sshll.u32 (!%p171_p10), %s197_s8, 3 }
  0x10   : > { %s406_s18 = sshll.u32 (!%p171_p10), %s547_s15, 7  ;;  %s199_s19 = scalar_lea.vmem (!%p171_p10), [#allocation2], %s399_s9 }
  0x11   : > { %s297_s21 = sshll.u32 (!%p171_p10), %s199_s19, 4  ;;  %s654_s27 = scalar_lea.hbm (!%p171_p10), %s703_s3, %s406_s18  ;;  %s656_s21 = int_to_ptr.vmem [resolvable:$true] %s297_s21 }
  0x12   : > { %s283_s28 = scalar_lea.sflag (!%p171_p10), [#allocation3], %s197_s8  ;;  %s479_s29 = scalar_lea.vmem (!%p171_p10), %s656_s21, 128 }
  0x13   : > { %p480_p12 = scmp.ne.s32.totalorder (!%p171_p10), %s656_s21, %s479_s29 }
  0x14   : > { %v477_v0 = vld [vmem:[%s701_s1 + $0x8] sm:$0xff]   ;;  %v557_v1 = vmov 0.0   ;;  %v478_v2 = vld [vmem:[%s701_s1] sm:$0xff]   ;;  %vm558_vm0 = vmmov 0   ;;  %s201_s30 = scalar_select %p200_p11, %s547_s15, 1  ;;  %vm237_vm1 = vcmask 261120  }
  0x15   : > { %412 = vmatprep.subr.bf16.mxu0 %v557_v1  ;;  %416 = vmatprep.mubr.msk.bf16.mxu0 %vm558_vm0, %v557_v1  ;;  %v401_v5 = vld [vmem:[%s702_s2] ss:$0 sm:$0xff]  ;;  %p481_p13 = pnand %p480_p12, %p620_p4  ;;  %s559_s15 = smov [#allocation2]  }
  0x16   : > { %413 = vmatpush3.bf16.msra.mxu0 %v477_v0  ;;  %s400_s4 = sshll.u32 %s201_s30, 3  ;;  %s483_s30 = sshll.u32 %s559_s15, 4  ;;  %s484_s30 = int_to_ptr.vmem [resolvable:$false] %s483_s30 }
  0x17   : > { %414 = vmatprep.subr.bf16.mxu0 %v557_v1  ;;  %s203_s7 = scalar_lea.vmem %s700_s0, %s400_s4  ;;  %p482_p0 = pneg %p481_p13 }
  0x18   : > { %v212_v3 = vld [vmem:[%s203_s7] sm:$0xff]  ;;  %s485_s4 = scalar_lea.vmem %s484_s30, 256  ;;  %p486_p1 = scmp.lt.s32.totalorder %s656_s21, %s484_s30 }
  0x19   : > { %v213_v4 = vpack.c.bf16 %v212_v3, %v212_v3  ;;  %p487_p2 = scmp.lt.s32.totalorder %s485_s4, %s479_s29 }
  0x1a   : > { %415 = vmatpush3.bf16.msra.mxu0 %v478_v2 }
  0x1b   : > { %p488_p3 = por %p487_p2, %p486_p1 }
  0x1d   : > { %417 = vmatmul.mubr.msk.bf16.vlgmr.msra.gmra.mxu0 %vm237_vm1, %v213_v4  ;;  %p489_p5 = pnand %p488_p3, %p482_p0 }
  0xdd   : > { %v275_v6 = vpop.f32.mrf.mxu0 }
  0xde   : > { %v276_v7 = vadd.f32 %v401_v5, %v275_v6 }
  0xdf   : > { %v418_v8 = vpop.f32.mrf.mxu0 }
  0xe0   : > { %281 = vst [vmem:[%s199_s19] sm:$0xff] %v276_v7 }
  0xe1   : > { %v278_v9 = vpop.f32.mrf.mxu0 }
  0xe2   : > { %492 = shalt.err (!%p489_p5)
}
  0xe3   : > { %s493_s5 = scalar_lea.hbm %s654_s27, 128  ;;  %s497_s8 = scalar_lea.hbm %s703_s3, 256 }
  0xe4   : > { %p494_p6 = scmp.ne.s32.totalorder %s654_s27, %s493_s5  ;;  %p498_p10 = scmp.lt.s32.totalorder %s654_s27, %s703_s3 }
  0xe5   : > { %p499_p11 = scmp.lt.s32.totalorder %s497_s8, %s493_s5 }
  0xe6   : > { %p495_p7 = pnand %p494_p6, %p620_p4 }
  0xe7   : > { %p500_p12 = por %p499_p11, %p498_p10 }
  0xe8   : > { %p496_p9 = pneg %p495_p7 }
  0xea   : > { %p501_p13 = pnand %p500_p12, %p496_p9 }
  0xec   : > { %504 = shalt.err (!%p501_p13)
}
  0xed   : > { %420 = dma.vmem_to_hbm [thread:$0]  (%p620_p4), %s656_s21, 128, %s654_s27, %s283_s28   ;;  %v419_v10 = vpop.f32.mrf.mxu0 }
  0xee PF: > { %p426_p0 = scmp.ge.s32.totalorder %s555_s17, 2  ;;  %s309_s11 = sand.u32 1, %s535_s12  }
  0xef   : > { %s310_s18 = scalar_lea.sflag [#allocation3], %s309_s11 }
  0xf0   : > { %p423_p1 = pnand %p426_p0, %p627_p8 }
  0xf2   : > { %p424_p2 = pneg %p423_p1 }
  0xf4   : > { %530 = dma.done.wait (%p424_p2), %s310_s18, 128  }
  0xf5   : > { %532 = vsyncadd (%p424_p2), %s310_s18, 4294967168  ;;  %s16_s17 = sadd.s32 1, %s555_s17   ;;  %s706_s12 = smov %s539_s13 }
  0xf6   : > { %p13_p3 = scmp.ge.s32.totalorder %s16_s17, 4   ;;  %s707_s13 = smov %s543_s14 }
  0xf7   : > { %s708_s14 = smov %s633_s25  ;;  %s709_s15 = smov %s551_s16 }
  0xf8   : > { %s710_s16 = smov %s712_s20  ;;  %15 = sbr.rel (!%p13_p3) target bundleno = 4 (0x4), region = 73 }
  0xfd   :  { %315 = vsyncpa [#allocation3], 1 }
  0xfe   :  { %317 = vsyncpa [#allocation3 + $0x1], 1 }

// kernel: transformer_decoder_forward.4
= control target key start
LH: loop header
LB: loop body
LE: loop exit
PB: predicated region body
PF: predicated region fallthrough
CT: control target
= control target key end

     0   :  { %s4370_s0 = inlined_call_operand.vmem [shape: f32[2,8,32], index: 0, kind: input, shape index: {}]   ;;  %s4371_s1 = inlined_call_operand.vmem [shape: f32[2,8,32], index: 1, kind: input, shape index: {}]   ;;  %s4372_s2 = inlined_call_operand.vmem [shape: f32[2,8,8], index: 2, kind: input, shape index: {}]   ;;  %s4373_s3 = inlined_call_operand.vmem [shape: f32[2,8,8], index: 3, kind: input, shape index: {}]   ;;  %s4374_s4 = inlined_call_operand.vmem [shape: bf16[32,32], index: 4, kind: input, shape index: {}]   ;;  %s4375_s5 = inlined_call_operand.vmem [shape: bf16[32,32], index: 5, kind: input, shape index: {}]   ;;  %s4376_s6 = inlined_call_operand.vmem [shape: bf16[32,32], index: 6, kind: input, shape index: {}]   ;;  %s4377_s7 = inlined_call_operand.vmem [shape: bf16[32,32], index: 7, kind: input, shape index: {}]   ;;  %s4378_s8 = inlined_call_operand.vmem [shape: f32[1,32], index: 8, kind: input, shape index: {}]   ;;  %s4379_s9 = inlined_call_operand.vmem [shape: f32[1,32], index: 9, kind: input, shape index: {}]   ;;  %s4380_s10 = inlined_call_operand.vmem [shape: f32[1,32], index: 10, kind: input, shape index: {}]   ;;  %s4381_s11 = inlined_call_operand.vmem [shape: bf16[32,32], index: 11, kind: input, shape index: {}]   ;;  %s4382_s12 = inlined_call_operand.vmem [shape: bf16[32,32], index: 12, kind: input, shape index: {}]   ;;  %s4383_s13 = inlined_call_operand.vmem [shape: bf16[32,32], index: 13, kind: input, shape index: {}]   ;;  %s4384_s14 = inlined_call_operand.vmem [shape: bf16[32,32], index: 14, kind: input, shape index: {}]   ;;  %s4385_s15 = inlined_call_operand.vmem [shape: f32[1,32], index: 15, kind: input, shape index: {}]   ;;  %s4386_s16 = inlined_call_operand.vmem [shape: f32[1,32], index: 16, kind: input, shape index: {}]   ;;  %s4387_s17 = inlined_call_operand.vmem [shape: f32[1,32], index: 17, kind: input, shape index: {}]   ;;  %s4388_s18 = inlined_call_operand.vmem [shape: bf16[32,64], index: 18, kind: input, shape index: {}]   ;;  %s4389_s19 = inlined_call_operand.vmem [shape: f32[1,64], index: 19, kind: input, shape index: {}]   ;;  %s4390_s20 = inlined_call_operand.vmem [shape: bf16[64,32], index: 20, kind: input, shape index: {}]   ;;  %s4391_s21 = inlined_call_operand.vmem [shape: f32[1,32], index: 21, kind: input, shape index: {}]   ;;  %s4392_s22 = inlined_call_operand.hbm [shape: f32[1,32], index: 22, kind: input, shape index: {}]   ;;  %s4393_s23 = inlined_call_operand.hbm [shape: f32[1,32], index: 23, kind: input, shape index: {}]   ;;  %s4394_s24 = inlined_call_operand.vmem [shape: f32[2,8,32], index: 24, kind: output, shape index: {}]  }
   0x1   :  { %4412 = sst [smem:[#allocation12_spill]] %s4370_s0 }
   0x2   :  { %4413 = sst [smem:[#allocation13_spill]] %s4371_s1 }
   0x3   :  { %4414 = sst [smem:[#allocation14_spill]] %s4372_s2 }
   0x4   :  { %4415 = sst [smem:[#allocation15_spill]] %s4373_s3 }
   0x5   :  { %4416 = sst [smem:[#allocation16_spill]] %s4374_s4 }
   0x6   :  { %4417 = sst [smem:[#allocation17_spill]] %s4375_s5 }
   0x7   :  { %4418 = sst [smem:[#allocation18_spill]] %s4376_s6 }
   0x8   :  { %4419 = sst [smem:[#allocation19_spill]] %s4377_s7 }
   0x9   :  { %4420 = sst [smem:[#allocation20_spill]] %s4378_s8 }
   0xa   :  { %29 = vsyncpa [#allocation7], 0 }
   0xb   :  { %30 = vsyncpa [#allocation9], 0  ;;  %s3845_s5 = smov 0  }
   0xc LB: > { %s3851_s26 = sadd.s32 4294967295, %s3708_s5   ;;  %p3237_p0 = scmp.ge.s32.totalorder %s3708_s5, 1  ;;  %s3708_s5 = sphi %s3845_s5, %s36_s5  }
   0xd   : > { %p591_p1 = scmp.lt.s32.totalorder %s3708_s5, 3  ;;  %p4399_p2 = scmp.eq.s32.totalorder %s3851_s26, 0 }
   0xe   : > { %s3710_s28 = smov [#allocation6]   ;;  %s3711_s2 = smov [#allocation8]  }
   0xf   : > { %p3856_p3 = pnand %p3237_p0, %p591_p1  ;;  %s658_s6 = sshll.u32 %s3710_s28, 4  ;;  %s659_s6 = int_to_ptr.vmem [resolvable:$true] %s658_s6 }
  0x10   : > { %s669_s29 = sshll.u32 %s3711_s2, 4  ;;  %s3653_s7 = scalar_lea.vmem %s659_s6, 16  ;;  %s670_s29 = int_to_ptr.vmem [resolvable:$true] %s669_s29 }
  0x11   : > { %p3553_p4 = pneg %p3856_p3  ;;  %p3654_p7 = scmp.ne.s32.totalorder %s659_s6, %s3653_s7 }
  0x12   : > { %s3660_s30 = scalar_lea.vmem %s659_s6, 32  ;;  %p3661_p10 = scmp.lt.s32.totalorder %s659_s6, %s659_s6 }
  0x13   : > { %p3864_p5 = pnand %p4399_p2, %p3553_p4  ;;  %p3662_p11 = scmp.lt.s32.totalorder %s3660_s30, %s3653_s7 }
  0x15   : > { %p3644_p6 = pneg %p3864_p5  ;;  %p3663_p12 = por %p3662_p11, %p3661_p10 }
  0x17   : > { %p3656_p8 = pnand %p3654_p7, %p3644_p6 }
  0x19   : > { %p3657_p9 = pneg %p3656_p8 }
  0x1b   : > { %p3664_p13 = pnand %p3663_p12, %p3657_p9 }
  0x1d   : > { %3667 = shalt.err (!%p3664_p13)
}
  0x1e   : > { %3556 = dma.hbm_to_vmem [thread:$0]  (!%p3864_p5), %s4392_s22, 16, %s659_s6, [#allocation7]  }
  0x1f   : > { %s3679_s8 = scalar_lea.vmem %s670_s29, 16  ;;  %s3686_s4 = scalar_lea.vmem %s670_s29, 32 }
  0x20   : > { %p3680_p0 = scmp.ne.s32.totalorder %s670_s29, %s3679_s8  ;;  %p3687_p7 = scmp.lt.s32.totalorder %s670_s29, %s670_s29 }
  0x21   : > { %p3688_p8 = scmp.lt.s32.totalorder %s3686_s4, %s3679_s8 }
  0x22   : > { %p3682_p1 = pnand %p3680_p0, %p3644_p6 }
  0x23   : > { %p3689_p2 = por %p3688_p8, %p3687_p7 }
  0x24   : > { %p3683_p4 = pneg %p3682_p1 }
  0x26   : > { %p3690_p10 = pnand %p3689_p2, %p3683_p4 }
  0x28   : > { %3693 = shalt.err (!%p3690_p10)
}
  0x29   : > { %3559 = dma.hbm_to_vmem [thread:$0]  (!%p3864_p5), %s4393_s23, 16, %s670_s29, [#allocation9]  }
  0x2a   : > { %710 = sbr.rel (%p3856_p3) target bundleno = 4228 (0x1084), region = 116  ;;  %p4423_p9 = scmp.eq.s32.totalorder (!%p3856_p3), %s3851_s26, 0 }
  0x2f   : > { %3699 = dma.done.wait (%p4423_p9), [#allocation7], 16   ;;  %p4424_p6 = pmov %p4423_p9 }
  0x31   : > { %3701 = vsyncadd (%p4424_p6), [#allocation7], 4294967280  ;;  %p4425_p11 = pmov %p4424_p6 }
  0x32   : > { %p4426_p2 = pmov %p4424_p6 }
  0x33   : > { %3703 = dma.done.wait (%p4425_p11), [#allocation9], 16  }
  0x34   : > { %3705 = vsyncadd (%p4426_p2), [#allocation9], 4294967280  ;;  %p790_p12 = scmp.lt.s32.totalorder %s3851_s26, 1  ;;  %v3712_v0 = vmov 0.0   ;;  %vm3713_vm0 = vmmov 0   ;;  %s4427_s29 = sld [smem:[#allocation12_spill]] }
  0x35   : > { %3381 = vmatprep.subr.bf16.mxu1 %v3712_v0  ;;  %3385 = vmatprep.mubr.msk.bf16.mxu1 %vm3713_vm0, %v3712_v0  ;;  %s4428_s3 = sld [smem:[#allocation16_spill]]  ;;  %vm831_vm1 = vcmask 261120   ;;  %vm987_vm2 = vcmask 58368   ;;  %s4408_s7 = smov 120   ;;  %vm1211_vm3 = vcmask 60418   ;;  %vm1033_vm4 = vcmask 64512  }
  0x36   : > { %s4443_s26 = smov (!%p790_p12, %s3851_s26), 1  ;;  %3397 = vmatprep.subr.bf16.mxu0 %v3712_v0  ;;  %3401 = vmatprep.mubr.msk.bf16.mxu0 %vm3713_vm0, %v3712_v0  ;;  %s4429_s1 = sld [smem:[#allocation17_spill]]  ;;  %vm1401_vm5 = vcmask 62468   ;;  %vm1591_vm6 = vcmask 64518   ;;  %vm1199_vm7 = vcmask 126018   ;;  %vm1204_vm8 = vcmask 193668  }
  0x37   : > { %s3904_s27 = sshll.u32 %s4443_s26, 3  ;;  %s4400_s8 = smov 104   ;;  %vm1209_vm9 = vcmask 261318   ;;  %vm3049_vm10 = vcmask 523264  }
  0x38   : > { %s4410_s26 = smov 112   ;;  %s4431_s6 = sld [smem:[#allocation14_spill]] }
  0x39   : > { %s4406_s30 = smov 8   ;;  %s4402_s25 = smov 24  }
  0x3a   : > { %s793_s0 = scalar_lea.vmem %s4427_s29, %s3904_s27  ;;  %s4404_s29 = smov 16  }
  0x3b   : > { %v3582_v1 = vld [vmem:[%s4428_s3 + $0x8] sm:$0xff]   ;;  %v3583_v2 = vld [vmem:[%s4428_s3] sm:$0xff]   ;;  %s4433_s28 = sld [smem:[#allocation20_spill]]  ;;  %s809_s4 = scalar_lea.vmem %s4394_s24, %s3904_s27 }
  0x3c   : > { %3382 = vmatpush3.bf16.msra.mxu1 %v3582_v1  ;;  %v3916_v3 = vld [vmem:[%s793_s0] sm:$0xff]  ;;  %v3584_v4 = vld [vmem:[%s4429_s1 + $0x8] sm:$0xff]   ;;  %s4430_s0 = sld [smem:[#allocation18_spill]] }
  0x3d   : > { %3383 = vmatprep.subr.bf16.mxu1 %v3712_v0  ;;  %v814_v5 = vpack.c.bf16 %v3916_v3, %v3916_v3  ;;  %v3585_v6 = vld [vmem:[%s4429_s1] sm:$0xff]  }
  0x3e   : > { %s801_s2 = scalar_lea.vmem %s4431_s6, %s3904_s27  ;;  %s4432_s6 = sld [smem:[#allocation19_spill]] }
  0x3f   : > { %v813_v35 = vld [vmem:[%s801_s2] sm:$0xff]  ;;  %s4437_s2 = smov 104  }
  0x40   : > { %3384 = vmatpush3.bf16.msra.mxu1 %v3583_v2 }
  0x41   : > { %3389 = vmatprep.subr.bf16.mxu1 %v3712_v0 }
  0x42   : > { %v3586_v7 = vld [vmem:[%s4430_s0 + $0x8] sm:$0xff]   ;;  %v3587_v9 = vld [vmem:[%s4430_s0] sm:$0xff]  }
  0x43   : > { %3386 = vmatmul.mubr.msk.bf16.vlgmr.msra.gmra.mxu1 %vm831_vm1, %v814_v5  ;;  %3398 = vmatpush3.bf16.msra.mxu0 %v3586_v7 }
  0x44   : > { %3390 = vmatpush3.bf16.msra.mxu1 %v3584_v4  ;;  %3393 = vmatprep.mubr.msk.bf16.mxu1 %vm3713_vm0, %v3712_v0 }
  0x45   : > { %3391 = vmatprep.subr.bf16.mxu1 %v3712_v0  ;;  %3399 = vmatprep.subr.bf16.mxu0 %v3712_v0 }
  0x47   : > { %3400 = vmatpush3.bf16.msra.mxu0 %v3587_v9 }
  0x48   : > { %3392 = vmatpush3.bf16.msra.mxu1 %v3585_v6  ;;  %3415 = vmatprep.subr.mxu0 %v3712_v0 }
  0x49   : > { %3405 = vmatprep.subr.mxu1 %v3712_v0 }
  0x4a   : > { %3402 = vmatmul.mubr.msk.bf16.vlgmr.msra.gmra.mxu0 %vm831_vm1, %v814_v5 }
  0x4b   : > { %3394 = vmatmul.mubr.msk.bf16.vlgmr.msra.gmra.mxu1 %vm831_vm1, %v814_v5  ;;  %3417 = vmatprep.mubr.msk.f32.mxu0 %vm3713_vm0, %v3712_v0 }
  0x4c   : > { %3407 = vmatprep.mubr.msk.f32.mxu1 %vm3713_vm0, %v3712_v0 }
 0x103   : > { %v3939_v8 = vpop.f32.mrf.mxu1 }
 0x104   : > { %988 = vst.msk [vmem:[#allocation2] sm:$0x3] %vm987_vm2, %v3939_v8  ;;  %992 = vrot.lane.b32.xlu1 %v3939_v8, %s4408_s7 }
 0x105   : > { %v3387_v10 = vpop.f32.mrf.mxu1 }
 0x107   : > { %v872_v11 = vpop.f32.mrf.mxu1 }
 0x109   : > { %v3388_v12 = vpop.f32.mrf.mxu1 }
 0x10a   : > { %v4014_v31 = vpop.f32.mrf.mxu0 }
 0x10b   : > { %v925_v13 = vpop.f32.mrf.mxu1  ;;  %990 = vst.msk [vmem:[#allocation4] sm:$0x3] %vm987_vm2, %v4014_v31 }
 0x10c   : > { %989 = vst.msk [vmem:[#allocation3] sm:$0x3] %vm987_vm2, %v925_v13  ;;  %1022 = vrot.lane.b32.xlu1 %v925_v13, %s4400_s8  ;;  %997 = vrot.lane.b32.xlu0 %v925_v13, %s4408_s7  ;;  %v3403_v32 = vpop.f32.mrf.mxu0 }
 0x10d   : > { %v3395_v14 = vpop.f32.mrf.mxu1 }
 0x10e   : > { %v984_v33 = vpop.f32.mrf.mxu0 }
 0x10f   : > { %v928_v15 = vpop.f32.mrf.mxu1 }
 0x110   : > { %1018 = vrot.lane.b32.xlu1 %v3939_v8, %s4400_s8  ;;  %1010 = vrot.lane.b32.xlu0 %v925_v13, %s4410_s26  ;;  %v3404_v34 = vpop.f32.mrf.mxu0 }
 0x111   : > { %v3396_v16 = vpop.f32.mrf.mxu1 }
 0x114   : > { %1006 = vrot.lane.b32.xlu0 %v3939_v8, %s4410_s26 }
 0x176   : > { %v993_v17 = vpop.permute.xlu1 %992 }
 0x177   : > { %995 = vst.msk [vmem:[#allocation2 + $0x2] sm:$0x3] %vm987_vm2, %v993_v17 }
 0x17e   : > { %v1023_v18 = vpop.permute.xlu1 %1022  ;;  %v998_v19 = vpop.permute.xlu0 %997 }
 0x17f   : > { %1025 = vst.msk [vmem:[#allocation3 + $0x6] sm:$0x3] %vm987_vm2, %v1023_v18  ;;  %1000 = vst.msk [vmem:[#allocation3 + $0x2] sm:$0x3] %vm987_vm2, %v998_v19 }
 0x182   : > { %v1019_v20 = vpop.permute.xlu1 %1018  ;;  %v1011_v21 = vpop.permute.xlu0 %1010 }
 0x183   : > { %1021 = vst.msk [vmem:[#allocation2 + $0x6] sm:$0x3] %vm987_vm2, %v1019_v20  ;;  %1013 = vst.msk [vmem:[#allocation3 + $0x4] sm:$0x3] %vm987_vm2, %v1011_v21 }
 0x186   : > { %v1007_v22 = vpop.permute.xlu0 %1006 }
 0x187   : > { %1009 = vst.msk [vmem:[#allocation2 + $0x4] sm:$0x3] %vm987_vm2, %v1007_v22 }
 0x18a   : > { %v1031_v23 = vld [vmem:[#allocation3] sm:$0xff] }
 0x18b   : > { %1213 = vst.msk [vmem:[#allocation3 - $0x2] sm:$0xc] %vm1211_vm3, %v925_v13  ;;  %1216 = vst.msk [vmem:[#allocation3] sm:$0xc] %vm1211_vm3, %v998_v19  ;;  %3406 = vmatpush3.xpose.msk.msra.mxu1 %vm1033_vm4, %v1031_v23 }
 0x18c   : > { %1219 = vst.msk [vmem:[#allocation3 + $0x2] sm:$0xc] %vm1211_vm3, %v1011_v21  ;;  %1222 = vst.msk [vmem:[#allocation3 + $0x4] sm:$0xc] %vm1211_vm3, %v1023_v18  ;;  %3410 = vmatprep.subr.mxu1 %v3712_v0 }
 0x18e   : > { %v1030_v24 = vld [vmem:[#allocation2] sm:$0xff] }
 0x18f   : > { %1212 = vst.msk [vmem:[#allocation2 - $0x2] sm:$0xc] %vm1211_vm3, %v3939_v8  ;;  %1215 = vst.msk [vmem:[#allocation2] sm:$0xc] %vm1211_vm3, %v993_v17  ;;  %3408 = vmatmul.mubr.msk.f32.vlgmr.msra.gmra.mxu1 %vm1033_vm4, %v1030_v24 }
 0x190   : > { %1218 = vst.msk [vmem:[#allocation2 + $0x2] sm:$0xc] %vm1211_vm3, %v1007_v22  ;;  %1221 = vst.msk [vmem:[#allocation2 + $0x4] sm:$0xc] %vm1211_vm3, %v1019_v20  ;;  %3412 = vmatprep.mubr.msk.f32.mxu1 %vm3713_vm0, %v3712_v0 }
 0x193   : > { %v1225_v25 = vld [vmem:[#allocation3] sm:$0xff] }
 0x194   : > { %1403 = vst.msk [vmem:[#allocation3 - $0x4] sm:$0x30] %vm1401_vm5, %v925_v13  ;;  %1406 = vst.msk [vmem:[#allocation3 - $0x2] sm:$0x30] %vm1401_vm5, %v998_v19  ;;  %3416 = vmatpush3.xpose.msk.msra.mxu0 %vm1033_vm4, %v1225_v25 }
 0x195   : > { %1409 = vst.msk [vmem:[#allocation3] sm:$0x30] %vm1401_vm5, %v1011_v21  ;;  %1412 = vst.msk [vmem:[#allocation3 + $0x2] sm:$0x30] %vm1401_vm5, %v1023_v18  ;;  %3425 = vmatprep.subr.mxu0 %v3712_v0 }
 0x197   : > { %v1224_v26 = vld [vmem:[#allocation2] sm:$0xff] }
 0x198   : > { %1402 = vst.msk [vmem:[#allocation2 - $0x4] sm:$0x30] %vm1401_vm5, %v3939_v8  ;;  %1405 = vst.msk [vmem:[#allocation2 - $0x2] sm:$0x30] %vm1401_vm5, %v993_v17  ;;  %3418 = vmatmul.mubr.msk.f32.vlgmr.msra.gmra.mxu0 %vm1033_vm4, %v1224_v26 }
 0x199   : > { %1408 = vst.msk [vmem:[#allocation2] sm:$0x30] %vm1401_vm5, %v1007_v22  ;;  %1411 = vst.msk [vmem:[#allocation2 + $0x2] sm:$0x30] %vm1401_vm5, %v1019_v20  ;;  %3427 = vmatprep.mubr.msk.f32.mxu0 %vm3713_vm0, %v3712_v0 }
 0x19c   : > { %v1415_v27 = vld [vmem:[#allocation3] sm:$0xff] }
 0x19d   : > { %1593 = vst.msk [vmem:[#allocation3 - $0x6] sm:$0xc0] %vm1591_vm6, %v925_v13  ;;  %1596 = vst.msk [vmem:[#allocation3 - $0x4] sm:$0xc0] %vm1591_vm6, %v998_v19  ;;  %3426 = vmatpush3.xpose.msk.msra.mxu0 %vm1033_vm4, %v1415_v27 }
 0x19e   : > { %1599 = vst.msk [vmem:[#allocation3 - $0x2] sm:$0xc0] %vm1591_vm6, %v1011_v21  ;;  %1602 = vst.msk [vmem:[#allocation3] sm:$0xc0] %vm1591_vm6, %v1023_v18  ;;  %3435 = vmatprep.subr.mxu0 %v3712_v0 }
 0x1a0   : > { %v1414_v28 = vld [vmem:[#allocation2] sm:$0xff] }
 0x1a1   : > { %1592 = vst.msk [vmem:[#allocation2 - $0x6] sm:$0xc0] %vm1591_vm6, %v3939_v8  ;;  %1595 = vst.msk [vmem:[#allocation2 - $0x4] sm:$0xc0] %vm1591_vm6, %v993_v17  ;;  %3428 = vmatmul.mubr.msk.f32.vlgmr.msra.gmra.mxu0 %vm1033_vm4, %v1414_v28 }
 0x1a2   : > { %1598 = vst.msk [vmem:[#allocation2 - $0x2] sm:$0xc0] %vm1591_vm6, %v1007_v22  ;;  %1601 = vst.msk [vmem:[#allocation2] sm:$0xc0] %vm1591_vm6, %v1019_v20  ;;  %3437 = vmatprep.mubr.msk.f32.mxu0 %vm3713_vm0, %v3712_v0 }
 0x1a5   : > { %v1605_v29 = vld [vmem:[#allocation3] sm:$0xff] }
 0x1a6   : > { %3436 = vmatpush3.xpose.msk.msra.mxu0 %vm1033_vm4, %v1605_v29 }
 0x1a7   : > { %3445 = vmatprep.subr.bf16.mxu0 %v3712_v0 }
 0x1a9   : > { %v1604_v30 = vld [vmem:[#allocation2] sm:$0xff] }
 0x1aa   : > { %3438 = vmatmul.mubr.msk.f32.vlgmr.msra.gmra.mxu0 %vm1033_vm4, %v1604_v30 }
 0x1ab   : > { %3449 = vmatprep.mubr.msk.bf16.mxu0 %vm3713_vm0, %v3712_v0 }
 0x24f   : > { %v1106_v36 = vpop.f32.mrf.mxu1 }
 0x250   : > { %v1107_v37 = vadd.f32 %v1106_v36, %v813_v35 }
 0x251   : > { %v3409_v38 = vpop.f32.mrf.mxu1 }
 0x252   : > { %v1110_v39 = vsel %vm1033_vm4, %v1107_v37, -inf  ;;  %v3589_v38 = vld [vmem:[%s4432_s6] sm:$0xff]  }
 0x253   : > { %1111 = vmax.xlane.f32.xlu0 %v1110_v39 }
 0x258   : > { %v1299_v40 = vpop.f32.mrf.mxu0 }
 0x259   : > { %v1300_v41 = vadd.f32 %v1299_v40, %v813_v35 }
 0x25a   : > { %v3419_v42 = vpop.f32.mrf.mxu0 }
 0x25b   : > { %v1303_v43 = vsel %vm1033_vm4, %v1300_v41, -inf }
 0x25c   : > { %1304 = vmax.xlane.f32.xlu1 %v1303_v43 }
 0x261   : > { %v1489_v44 = vpop.f32.mrf.mxu0 }
 0x262   : > { %v1490_v45 = vadd.f32 %v1489_v44, %v813_v35 }
 0x263   : > { %v3429_v46 = vpop.f32.mrf.mxu0 }
 0x264   : > { %v1493_v47 = vsel %vm1033_vm4, %v1490_v45, -inf }
 0x265   : > { %1494 = vmax.xlane.f32.xlu0 %v1493_v47 }
 0x26a   : > { %v1679_v48 = vpop.f32.mrf.mxu0 }
 0x26b   : > { %v1680_v49 = vadd.f32 %v1679_v48, %v813_v35  ;;  %v3588_v35 = vld [vmem:[%s4432_s6 + $0x8] sm:$0xff]  }
 0x26c   : > { %v3439_v50 = vpop.f32.mrf.mxu0  ;;  %3446 = vmatpush3.bf16.msra.mxu0 %v3588_v35 }
 0x26d   : > { %v1683_v51 = vsel %vm1033_vm4, %v1680_v49, -inf  ;;  %1002 = vrot.lane.b32.xlu1 %v4014_v31, %s4408_s7  ;;  %3447 = vmatprep.subr.bf16.mxu0 %v3712_v0  ;;  %s4434_s7 = sld [smem:[#allocation13_spill]] }
 0x26e   : > { %1684 = vmax.xlane.f32.xlu0 %v1683_v51 }
 0x270   : > { %3448 = vmatpush3.bf16.msra.mxu0 %v3589_v38 }
 0x271   : > { %3461 = vmatprep.subr.bf16.mxu0 %v3712_v0 }
 0x2dc   : > { %v1112_v52 = vpop.xlane.xlu0 %1111 }
 0x2dd   : > { %v1113_v53 = vsub.f32 %v1107_v37, %v1112_v52 }
 0x2df   : > { %v1114_v54 = vmul.f32 1.442695, %v1113_v53  ;;  %v3270_v53 = vld [vmem:[%s4433_s28] ss:$0 sm:$0xff]  ;;  %s4436_s28 = smov 120  }
 0x2e1   : > { %3604 = vpow2.f32 %v1114_v54 }
 0x2e5   : > { %v1305_v55 = vpop.xlane.xlu1 %1304 }
 0x2e6   : > { %v1306_v56 = vsub.f32 %v1300_v41, %v1305_v55 }
 0x2e8   : > { %v1307_v57 = vmul.f32 1.442695, %v1306_v56 }
 0x2e9   : > { %v1003_v58 = vpop.permute.xlu1 %1002 }
 0x2ea   : > { %3606 = vpow2.f32 %v1307_v57  ;;  %1005 = vst.msk [vmem:[#allocation4 + $0x2] sm:$0x3] %vm987_vm2, %v1003_v58 }
 0x2ee   : > { %v3605_v59 = vpop.eup %3604  ;;  %v1495_v63 = vpop.xlane.xlu0 %1494 }
 0x2ef   : > { %v1116_v60 = vsel %vm1033_vm4, %v3605_v59, 0.0  ;;  %v1496_v1 = vsub.f32 %v1490_v45, %v1495_v63 }
 0x2f0   : > { %1117 = vadd.xlane.f32.xlu1 %v1116_v60 }
 0x2f1   : > { %v1497_v2 = vmul.f32 1.442695, %v1496_v1 }
 0x2f3   : > { %3608 = vpow2.f32 %v1497_v2 }
 0x2f7   : > { %v3607_v61 = vpop.eup %3606  ;;  %v1685_v4 = vpop.xlane.xlu0 %1684 }
 0x2f8   : > { %v1309_v62 = vsel %vm1033_vm4, %v3607_v61, 0.0  ;;  %v1686_v5 = vsub.f32 %v1680_v49, %v1685_v4 }
 0x2f9   : > { %1310 = vadd.xlane.f32.xlu0 %v1309_v62  ;;  %v3591_v62 = vld [vmem:[%s4382_s12] sm:$0xff]  }
 0x2fa   : > { %v1687_v6 = vmul.f32 1.442695, %v1686_v5 }
 0x2fc   : > { %3610 = vpow2.f32 %v1687_v6 }
 0x300   : > { %v3609_v7 = vpop.eup %3608 }
 0x301   : > { %1026 = vrot.lane.b32.xlu1 %v4014_v31, %s4400_s8  ;;  %v1499_v8 = vsel %vm1033_vm4, %v3609_v7, 0.0 }
 0x309   : > { %v3611_v9 = vpop.eup %3610 }
 0x30a   : > { %v1689_v10 = vsel %vm1033_vm4, %v3611_v9, 0.0 }
 0x30f   : > { %1014 = vrot.lane.b32.xlu0 %v4014_v31, %s4410_s26  ;;  %s797_s26 = scalar_lea.vmem %s4434_s7, %s3904_s27 }
 0x310   : > { %v812_v63 = vld [vmem:[%s797_s26] sm:$0xff] }
 0x325   : > { %1500 = vadd.xlane.f32.xlu1 %v1499_v8  ;;  %v3593_v8 = vld [vmem:[%s4381_s11] sm:$0xff]  }
 0x32e   : > { %1690 = vadd.xlane.f32.xlu0 %v1689_v10 }
 0x379   : > { %v1118_v11 = vpop.xlane.xlu1 %1117 }
 0x37a   : > { %3612 = vrcp.f32 %v1118_v11 }
 0x37d   : > { %v1027_v12 = vpop.permute.xlu1 %1026 }
 0x37e   : > { %1029 = vst.msk [vmem:[#allocation4 + $0x6] sm:$0x3] %vm987_vm2, %v1027_v12 }
 0x382   : > { %v1311_v13 = vpop.xlane.xlu0 %1310 }
 0x383   : > { %3614 = vrcp.f32 %v1311_v13 }
 0x386   : > { %v1015_v14 = vpop.permute.xlu0 %1014 }
 0x387   : > { %1017 = vst.msk [vmem:[#allocation4 + $0x4] sm:$0x3] %vm987_vm2, %v1015_v14  ;;  %v3613_v15 = vpop.eup %3612 }
 0x388   : > { %v1120_v17 = vmul.f32 %v3613_v15, %v3605_v59 }
 0x38e   : > { %v1032_v16 = vld [vmem:[#allocation4] sm:$0xff] }
 0x38f   : > { %1214 = vst.msk [vmem:[#allocation4 - $0x2] sm:$0xc] %vm1211_vm3, %v4014_v31  ;;  %1217 = vst.msk [vmem:[#allocation4] sm:$0xc] %vm1211_vm3, %v1003_v58  ;;  %3411 = vmatpush3.msra.mxu1 %v1032_v16 }
 0x390   : > { %1220 = vst.msk [vmem:[#allocation4 + $0x2] sm:$0xc] %vm1211_vm3, %v1015_v14  ;;  %1223 = vst.msk [vmem:[#allocation4 + $0x4] sm:$0xc] %vm1211_vm3, %v1027_v12  ;;  %3413 = vmatmul.mubr.msk.f32.vlgmr.msra.gmra.mxu1 %vm1033_vm4, %v1120_v17  ;;  %3420 = vmatprep.subr.mxu1 %v3712_v0  ;;  %v3615_v18 = vpop.eup %3614  ;;  %v3274_v17 = vld [vmem:[%s4379_s9] ss:$0 sm:$0xff] }
 0x391   : > { %3422 = vmatprep.mubr.msk.f32.mxu1 %vm3713_vm0, %v3712_v0  ;;  %v1313_v20 = vmul.f32 %v3615_v18, %v3607_v61  ;;  %v3590_v61 = vld [vmem:[%s4382_s12 + $0x8] sm:$0xff]  }
 0x397   : > { %v1226_v19 = vld [vmem:[#allocation4] sm:$0xff] }
 0x398   : > { %1404 = vst.msk [vmem:[#allocation4 - $0x4] sm:$0x30] %vm1401_vm5, %v4014_v31  ;;  %1407 = vst.msk [vmem:[#allocation4 - $0x2] sm:$0x30] %vm1401_vm5, %v1003_v58  ;;  %3421 = vmatpush3.msra.mxu1 %v1226_v19  ;;  %v3275_v19 = vld [vmem:[%s4380_s10] ss:$0 sm:$0xff] }
 0x399   : > { %1410 = vst.msk [vmem:[#allocation4] sm:$0x30] %vm1401_vm5, %v1015_v14  ;;  %1413 = vst.msk [vmem:[#allocation4 + $0x2] sm:$0x30] %vm1401_vm5, %v1027_v12  ;;  %3423 = vmatmul.mubr.msk.f32.vlgmr.msra.gmra.mxu1 %vm1033_vm4, %v1313_v20  ;;  %3430 = vmatprep.subr.mxu1 %v3712_v0 }
 0x39a   : > { %3432 = vmatprep.mubr.msk.f32.mxu1 %vm3713_vm0, %v3712_v0 }
 0x3a0   : > { %v1416_v21 = vld [vmem:[#allocation4] sm:$0xff] }
 0x3a1   : > { %1594 = vst.msk [vmem:[#allocation4 - $0x6] sm:$0xc0] %vm1591_vm6, %v4014_v31  ;;  %1597 = vst.msk [vmem:[#allocation4 - $0x4] sm:$0xc0] %vm1591_vm6, %v1003_v58  ;;  %3431 = vmatpush3.msra.mxu1 %v1416_v21 }
 0x3a2   : > { %1600 = vst.msk [vmem:[#allocation4 - $0x2] sm:$0xc0] %vm1591_vm6, %v1015_v14  ;;  %1603 = vst.msk [vmem:[#allocation4] sm:$0xc0] %vm1591_vm6, %v1027_v12  ;;  %3440 = vmatprep.subr.mxu1 %v3712_v0 }
 0x3a9   : > { %v1606_v26 = vld [vmem:[#allocation4] sm:$0xff] }
 0x3ae   : > { %v1501_v22 = vpop.xlane.xlu1 %1500 }
 0x3af   : > { %3616 = vrcp.f32 %v1501_v22 }
 0x3b7   : > { %v1691_v23 = vpop.xlane.xlu0 %1690 }
 0x3b8   : > { %3618 = vrcp.f32 %v1691_v23 }
 0x3bc   : > { %v3617_v24 = vpop.eup %3616 }
 0x3bd   : > { %v1503_v25 = vmul.f32 %v3617_v24, %v3609_v7  ;;  %v3592_v7 = vld [vmem:[%s4381_s11 + $0x8] sm:$0xff]  }
 0x3bf   : > { %3433 = vmatmul.mubr.msk.f32.vlgmr.msra.gmra.mxu1 %vm1033_vm4, %v1503_v25 }
 0x3c0   : > { %3441 = vmatpush3.msra.mxu1 %v1606_v26  ;;  %3442 = vmatprep.mubr.msk.f32.mxu1 %vm3713_vm0, %v3712_v0 }
 0x3c1   : > { %3453 = vmatprep.subr.bf16.mxu1 %v3712_v0 }
 0x3c5   : > { %v3619_v27 = vpop.eup %3618 }
 0x3c6   : > { %v1693_v28 = vmul.f32 %v3619_v27, %v3611_v9 }
 0x3c8   : > { %3443 = vmatmul.mubr.msk.f32.vlgmr.msra.gmra.mxu1 %vm1033_vm4, %v1693_v28 }
 0x3c9   : > { %3457 = vmatprep.mubr.msk.bf16.mxu1 %vm3713_vm0, %v3712_v0  ;;  %3454 = vmatpush3.bf16.msra.mxu1 %v3592_v7 }
 0x3ca   : > { %3455 = vmatprep.subr.bf16.mxu1 %v3712_v0 }
 0x3cd   : > { %3456 = vmatpush3.bf16.msra.mxu1 %v3593_v8 }
 0x3ce   : > { %3469 = vmatprep.subr.bf16.mxu1 %v3712_v0 }
 0x450   : > { %v1190_v29 = vpop.f32.mrf.mxu1 }
 0x451   : > { %1194 = vst.msk [vmem:[#allocation5] sm:$0x3] %vm987_vm2, %v1190_v29  ;;  %1201 = vrot.lane.b32.xlu1 %v1190_v29, %s4404_s29  ;;  %1196 = vrot.lane.b32.xlu0 %v1190_v29, %s4406_s30 }
 0x452   : > { %v3414_v30 = vpop.f32.mrf.mxu1 }
 0x455   : > { %1206 = vrot.lane.b32.xlu1 %v1190_v29, %s4402_s25 }
 0x459   : > { %v1383_v31 = vpop.f32.mrf.mxu1 }
 0x45a   : > { %1387 = vst.msk [vmem:[#allocation5 + $0x2] sm:$0x3] %vm987_vm2, %v1383_v31  ;;  %1393 = vrot.lane.b32.xlu0 %v1383_v31, %s4404_s29  ;;  %1389 = vrot.lane.b32.xlu1 %v1383_v31, %s4406_s30 }
 0x45b   : > { %v3424_v32 = vpop.f32.mrf.mxu1 }
 0x45e   : > { %1397 = vrot.lane.b32.xlu0 %v1383_v31, %s4402_s25 }
 0x47f   : > { %v1573_v33 = vpop.f32.mrf.mxu1 }
 0x480   : > { %1577 = vst.msk [vmem:[#allocation5 + $0x4] sm:$0x3] %vm987_vm2, %v1573_v33  ;;  %1579 = vrot.lane.b32.xlu1 %v1573_v33, %s4406_s30 }
 0x481   : > { %v3434_v34 = vpop.f32.mrf.mxu1 }
 0x482   : > { %v3595_v34 = vld [vmem:[%s4383_s13] sm:$0xff]  }
 0x484   : > { %1583 = vrot.lane.b32.xlu1 %v1573_v33, %s4404_s29 }
 0x488   : > { %v1763_v36 = vpop.f32.mrf.mxu1  ;;  %1587 = vrot.lane.b32.xlu1 %v1573_v33, %s4402_s25  ;;  %v3594_v33 = vld [vmem:[%s4383_s13 + $0x8] sm:$0xff]  }
 0x489   : > { %1767 = vst.msk [vmem:[#allocation5 + $0x6] sm:$0x3] %vm987_vm2, %v1763_v36  ;;  %1769 = vrot.lane.b32.xlu0 %v1763_v36, %s4406_s30 }
 0x48a   : > { %v3444_v37 = vpop.f32.mrf.mxu1 }
 0x48d   : > { %1773 = vrot.lane.b32.xlu0 %v1763_v36, %s4404_s29  ;;  %s4438_s29 = sld [smem:[#allocation15_spill]] }
 0x491   : > { %1777 = vrot.lane.b32.xlu0 %v1763_v36, %s4402_s25  ;;  %s4435_s25 = smov 112  }
 0x493   : > { %s805_s30 = scalar_lea.vmem %s4438_s29, %s3904_s27 }
 0x4c3   : > { %v1202_v39 = vpop.permute.xlu1 %1201  ;;  %v1197_v40 = vpop.permute.xlu0 %1196 }
 0x4c4   : > { %1200 = vst.msk [vmem:[#allocation5 - $0x2] sm:$0xc] %vm1199_vm7, %v1197_v40 }
 0x4c5   : > { %1205 = vst.msk [vmem:[#allocation5 - $0x4] sm:$0x30] %vm1204_vm8, %v1202_v39 }
 0x4c7   : > { %v1207_v41 = vpop.permute.xlu1 %1206 }
 0x4c8   : > { %1210 = vst.msk [vmem:[#allocation5 - $0x6] sm:$0xc0] %vm1209_vm9, %v1207_v41 }
 0x4cc   : > { %v1394_v42 = vpop.permute.xlu0 %1393  ;;  %v1390_v43 = vpop.permute.xlu1 %1389 }
 0x4cd   : > { %1392 = vst.msk [vmem:[#allocation5] sm:$0xc] %vm1199_vm7, %v1390_v43 }
 0x4ce   : > { %1396 = vst.msk [vmem:[#allocation5 - $0x2] sm:$0x30] %vm1204_vm8, %v1394_v42 }
 0x4d0   : > { %v1398_v44 = vpop.permute.xlu0 %1397 }
 0x4d1   : > { %1400 = vst.msk [vmem:[#allocation5 - $0x4] sm:$0xc0] %vm1209_vm9, %v1398_v44 }
 0x4f2   : > { %v1580_v45 = vpop.permute.xlu1 %1579 }
 0x4f3   : > { %1582 = vst.msk [vmem:[#allocation5 + $0x2] sm:$0xc] %vm1199_vm7, %v1580_v45 }
 0x4f6   : > { %v1584_v46 = vpop.permute.xlu1 %1583 }
 0x4f7   : > { %1586 = vst.msk [vmem:[#allocation5] sm:$0x30] %vm1204_vm8, %v1584_v46 }
 0x4fa   : > { %v1588_v47 = vpop.permute.xlu1 %1587 }
 0x4fb   : > { %v1770_v48 = vpop.permute.xlu0 %1769  ;;  %1590 = vst.msk [vmem:[#allocation5 - $0x2] sm:$0xc0] %vm1209_vm9, %v1588_v47  ;;  %v1880_v47 = vld [vmem:[%s805_s30] sm:$0xff] }
 0x4fc   : > { %1772 = vst.msk [vmem:[#allocation5 + $0x4] sm:$0xc] %vm1199_vm7, %v1770_v48 }
 0x4ff   : > { %v1774_v49 = vpop.permute.xlu0 %1773 }
 0x500   : > { %1776 = vst.msk [vmem:[#allocation5 + $0x2] sm:$0x30] %vm1204_vm8, %v1774_v49 }
 0x503   : > { %v1778_v50 = vpop.permute.xlu0 %1777 }
 0x504   : > { %1780 = vst.msk [vmem:[#allocation5] sm:$0xc0] %vm1209_vm9, %v1778_v50 }
 0x50b   : > { %v1781_v51 = vld [vmem:[#allocation5] sm:$0xff] }
 0x50c   : > { %v1782_v52 = vpack.c.bf16 %v1781_v51, %v1781_v51 }
 0x50e   : > { %3450 = vmatmul.mubr.msk.bf16.vlgmr.msra.gmra.mxu0 %vm831_vm1, %v1782_v52 }
 0x50f   : > { %3465 = vmatprep.mubr.msk.bf16.mxu0 %vm3713_vm0, %v3712_v0  ;;  %3462 = vmatpush3.bf16.msra.mxu0 %v3590_v61 }
 0x510   : > { %3463 = vmatprep.subr.bf16.mxu0 %v3712_v0 }
 0x513   : > { %3464 = vmatpush3.bf16.msra.mxu0 %v3591_v62 }
 0x514   : > { %3477 = vmatprep.subr.mxu0 %v3712_v0 }
 0x5ce   : > { %v1843_v54 = vpop.f32.mrf.mxu0 }
 0x5cf   : > { %v1844_v55 = vadd.f32 %v3270_v53, %v1843_v54 }
 0x5d0   : > { %v3451_v56 = vpop.f32.mrf.mxu0 }
 0x5d1   : > { %v1849_v57 = vadd.f32 %v1844_v55, %v3916_v3  ;;  %v4125_v3 = vpack.c.bf16 %v812_v63, %v812_v63 }
 0x5d2   : > { %v1846_v58 = vpop.f32.mrf.mxu0 }
 0x5d3   : > { %v1852_v59 = vsel %vm831_vm1, %v1849_v57, 0.0  ;;  %3466 = vmatmul.mubr.msk.bf16.vlgmr.msra.gmra.mxu0 %vm831_vm1, %v4125_v3 }
 0x5d4   : > { %1853 = vadd.xlane.f32.xlu1 %v1852_v59  ;;  %v3452_v60 = vpop.f32.mrf.mxu0  ;;  %3479 = vmatprep.mubr.msk.f32.mxu0 %vm3713_vm0, %v3712_v0 }
 0x65d   : > { %v1854_v1 = vpop.xlane.xlu1 %1853 }
 0x65e   : > { %v1856_v2 = vmul.f32 0.03125, %v1854_v1 }
 0x660   : > { %v1857_v4 = vsub.f32 %v1849_v57, %v1856_v2 }
 0x662   : > { %v1858_v5 = vmul.f32 %v1857_v4, %v1857_v4 }
 0x664   : > { %v1859_v6 = vsel %vm831_vm1, %v1858_v5, 0.0 }
 0x665   : > { %1860 = vadd.xlane.f32.xlu0 %v1859_v6 }
 0x693   : > { %v1995_v9 = vpop.f32.mrf.mxu0 }
 0x694   : > { %2058 = vst.msk [vmem:[#allocation3] sm:$0x3] %vm987_vm2, %v1995_v9  ;;  %2079 = vrot.lane.b32.xlu1 %v1995_v9, %s4435_s25  ;;  %2066 = vrot.lane.b32.xlu0 %v1995_v9, %s4436_s28 }
 0x695   : > { %v3467_v10 = vpop.f32.mrf.mxu0 }
 0x697   : > { %v1998_v11 = vpop.f32.mrf.mxu0 }
 0x698   : > { %2091 = vrot.lane.b32.xlu1 %v1995_v9, %s4437_s2 }
 0x699   : > { %v3468_v12 = vpop.f32.mrf.mxu0 }
 0x6ee   : > { %v1861_v13 = vpop.xlane.xlu0 %1860 }
 0x6ef   : > { %v1862_v14 = vmul.f32 0.03125, %v1861_v13 }
 0x6f1   : > { %v1863_v15 = vadd.f32 1e-05, %v1862_v14 }
 0x6f3   : > { %3620 = vrsqrt.f32 %v1863_v15 }
 0x700   : > { %v3621_v16 = vpop.eup %3620 }
 0x701   : > { %v1865_v18 = vmul.f32 %v3621_v16, %v1857_v4 }
 0x703   : > { %v1872_v20 = vmul.f32 %v3274_v17, %v1865_v18 }
 0x705   : > { %v4151_v21 = vadd.f32 %v3275_v19, %v1872_v20 }
 0x706   : > { %v2080_v23 = vpop.permute.xlu1 %2079  ;;  %v2067_v24 = vpop.permute.xlu0 %2066 }
 0x707   : > { %v1881_v22 = vpack.c.bf16 %v4151_v21, %v4151_v21  ;;  %2082 = vst.msk [vmem:[#allocation3 + $0x4] sm:$0x3] %vm987_vm2, %v2080_v23  ;;  %2069 = vst.msk [vmem:[#allocation3 + $0x2] sm:$0x3] %vm987_vm2, %v2067_v24 }
 0x709   : > { %3458 = vmatmul.mubr.msk.bf16.vlgmr.msra.gmra.mxu1 %vm831_vm1, %v1881_v22 }
 0x70a   : > { %3473 = vmatprep.mubr.msk.bf16.mxu1 %vm3713_vm0, %v3712_v0  ;;  %v2092_v25 = vpop.permute.xlu1 %2091  ;;  %3470 = vmatpush3.bf16.msra.mxu1 %v3594_v33 }
 0x70b   : > { %2094 = vst.msk [vmem:[#allocation3 + $0x6] sm:$0x3] %vm987_vm2, %v2092_v25  ;;  %3471 = vmatprep.subr.bf16.mxu1 %v3712_v0 }
 0x70e   : > { %3472 = vmatpush3.bf16.msra.mxu1 %v3595_v34 }
 0x70f   : > { %3482 = vmatprep.subr.mxu1 %v3712_v0 }
 0x711   : > { %3474 = vmatmul.mubr.msk.bf16.vlgmr.msra.gmra.mxu1 %vm831_vm1, %v4125_v3 }
 0x712   : > { %v2100_v26 = vld [vmem:[#allocation3] sm:$0xff]  ;;  %3484 = vmatprep.mubr.msk.f32.mxu1 %vm3713_vm0, %v3712_v0 }
 0x713   : > { %2280 = vst.msk [vmem:[#allocation3] sm:$0xc] %vm1211_vm3, %v2067_v24  ;;  %2277 = vst.msk [vmem:[#allocation3 - $0x2] sm:$0xc] %vm1211_vm3, %v1995_v9  ;;  %3478 = vmatpush3.xpose.msk.msra.mxu0 %vm1033_vm4, %v2100_v26 }
 0x714   : > { %2283 = vst.msk [vmem:[#allocation3 + $0x2] sm:$0xc] %vm1211_vm3, %v2080_v23  ;;  %2286 = vst.msk [vmem:[#allocation3 + $0x4] sm:$0xc] %vm1211_vm3, %v2092_v25  ;;  %3487 = vmatprep.subr.mxu0 %v3712_v0 }
 0x71b   : > { %v2289_v27 = vld [vmem:[#allocation3] sm:$0xff] }
 0x71c   : > { %2466 = vst.msk [vmem:[#allocation3 - $0x4] sm:$0x30] %vm1401_vm5, %v1995_v9  ;;  %2469 = vst.msk [vmem:[#allocation3 - $0x2] sm:$0x30] %vm1401_vm5, %v2067_v24 }
 0x71d   : > { %2472 = vst.msk [vmem:[#allocation3] sm:$0x30] %vm1401_vm5, %v2080_v23  ;;  %2475 = vst.msk [vmem:[#allocation3 + $0x2] sm:$0x30] %vm1401_vm5, %v2092_v25 }
 0x724   : > { %v2478_v28 = vld [vmem:[#allocation3] sm:$0xff] }
 0x725   : > { %2655 = vst.msk [vmem:[#allocation3 - $0x6] sm:$0xc0] %vm1591_vm6, %v1995_v9  ;;  %2658 = vst.msk [vmem:[#allocation3 - $0x4] sm:$0xc0] %vm1591_vm6, %v2067_v24 }
 0x726   : > { %2661 = vst.msk [vmem:[#allocation3 - $0x2] sm:$0xc0] %vm1591_vm6, %v2080_v23  ;;  %2664 = vst.msk [vmem:[#allocation3] sm:$0xc0] %vm1591_vm6, %v2092_v25 }
 0x72d   : > { %v2667_v41 = vld [vmem:[#allocation3] sm:$0xff] }
 0x7c9   : > { %v1935_v29 = vpop.f32.mrf.mxu1 }
 0x7ca   : > { %2057 = vst.msk [vmem:[#allocation2] sm:$0x3] %vm987_vm2, %v1935_v29  ;;  %2075 = vrot.lane.b32.xlu1 %v1935_v29, %s4435_s25  ;;  %2061 = vrot.lane.b32.xlu0 %v1935_v29, %s4436_s28 }
 0x7cb   : > { %v3459_v30 = vpop.f32.mrf.mxu1 }
 0x7cd   : > { %v1938_v31 = vpop.f32.mrf.mxu1 }
 0x7ce   : > { %2087 = vrot.lane.b32.xlu0 %v1935_v29, %s4437_s2 }
 0x7cf   : > { %v3460_v32 = vpop.f32.mrf.mxu1 }
 0x7d1   : > { %v4224_v43 = vpop.f32.mrf.mxu1 }
 0x7d2   : > { %2059 = vst.msk [vmem:[#allocation4] sm:$0x3] %vm987_vm2, %v4224_v43 }
 0x7d3   : > { %v3475_v44 = vpop.f32.mrf.mxu1 }
 0x7d5   : > { %v2054_v45 = vpop.f32.mrf.mxu1 }
 0x7d7   : > { %v3476_v46 = vpop.f32.mrf.mxu1 }
 0x83c   : > { %v2076_v35 = vpop.permute.xlu1 %2075  ;;  %v2062_v36 = vpop.permute.xlu0 %2061 }
 0x83d   : > { %2078 = vst.msk [vmem:[#allocation2 + $0x4] sm:$0x3] %vm987_vm2, %v2076_v35  ;;  %2064 = vst.msk [vmem:[#allocation2 + $0x2] sm:$0x3] %vm987_vm2, %v2062_v36 }
 0x840   : > { %v2088_v37 = vpop.permute.xlu0 %2087 }
 0x841   : > { %2090 = vst.msk [vmem:[#allocation2 + $0x6] sm:$0x3] %vm987_vm2, %v2088_v37 }
 0x848   : > { %v2099_v38 = vld [vmem:[#allocation2] sm:$0xff] }
 0x849   : > { %2285 = vst.msk [vmem:[#allocation2 + $0x4] sm:$0xc] %vm1211_vm3, %v2088_v37  ;;  %2276 = vst.msk [vmem:[#allocation2 - $0x2] sm:$0xc] %vm1211_vm3, %v1935_v29  ;;  %3480 = vmatmul.mubr.msk.f32.vlgmr.msra.gmra.mxu0 %vm1033_vm4, %v2099_v38 }
 0x84a   : > { %2279 = vst.msk [vmem:[#allocation2] sm:$0xc] %vm1211_vm3, %v2062_v36  ;;  %2282 = vst.msk [vmem:[#allocation2 + $0x2] sm:$0xc] %vm1211_vm3, %v2076_v35  ;;  %3488 = vmatpush3.xpose.msk.msra.mxu0 %vm1033_vm4, %v2289_v27  ;;  %3489 = vmatprep.mubr.msk.f32.mxu0 %vm3713_vm0, %v3712_v0 }
 0x84b   : > { %3497 = vmatprep.subr.mxu0 %v3712_v0 }
 0x851   : > { %v2288_v39 = vld [vmem:[#allocation2] sm:$0xff] }
 0x852   : > { %3490 = vmatmul.mubr.msk.f32.vlgmr.msra.gmra.mxu0 %vm1033_vm4, %v2288_v39  ;;  %2465 = vst.msk [vmem:[#allocation2 - $0x4] sm:$0x30] %vm1401_vm5, %v1935_v29  ;;  %2468 = vst.msk [vmem:[#allocation2 - $0x2] sm:$0x30] %vm1401_vm5, %v2062_v36 }
 0x853   : > { %2471 = vst.msk [vmem:[#allocation2] sm:$0x30] %vm1401_vm5, %v2076_v35  ;;  %2474 = vst.msk [vmem:[#allocation2 + $0x2] sm:$0x30] %vm1401_vm5, %v2088_v37  ;;  %3498 = vmatpush3.xpose.msk.msra.mxu0 %vm1033_vm4, %v2478_v28  ;;  %3499 = vmatprep.mubr.msk.f32.mxu0 %vm3713_vm0, %v3712_v0 }
 0x854   : > { %3507 = vmatprep.subr.mxu0 %v3712_v0 }
 0x85a   : > { %v2477_v40 = vld [vmem:[#allocation2] sm:$0xff] }
 0x85b   : > { %3500 = vmatmul.mubr.msk.f32.vlgmr.msra.gmra.mxu0 %vm1033_vm4, %v2477_v40  ;;  %2654 = vst.msk [vmem:[#allocation2 - $0x6] sm:$0xc0] %vm1591_vm6, %v1935_v29  ;;  %2657 = vst.msk [vmem:[#allocation2 - $0x4] sm:$0xc0] %vm1591_vm6, %v2062_v36 }
 0x85c   : > { %2660 = vst.msk [vmem:[#allocation2 - $0x2] sm:$0xc0] %vm1591_vm6, %v2076_v35  ;;  %2663 = vst.msk [vmem:[#allocation2] sm:$0xc0] %vm1591_vm6, %v2088_v37  ;;  %3508 = vmatpush3.xpose.msk.msra.mxu0 %vm1033_vm4, %v2667_v41  ;;  %3509 = vmatprep.mubr.msk.f32.mxu0 %vm3713_vm0, %v3712_v0 }
 0x85d   : > { %3517 = vmatprep.subr.bf16.mxu0 %v3712_v0 }
 0x863   : > { %v2666_v42 = vld [vmem:[#allocation2] sm:$0xff] }
 0x864   : > { %3510 = vmatmul.mubr.msk.f32.vlgmr.msra.gmra.mxu0 %vm1033_vm4, %v2666_v42 }
 0x865   : > { %3521 = vmatprep.mubr.msk.bf16.mxu0 %vm3713_vm0, %v3712_v0 }
 0x909   : > { %v2174_v48 = vpop.f32.mrf.mxu0 }
 0x90a   : > { %v2175_v49 = vadd.f32 %v2174_v48, %v1880_v47  ;;  %v3597_v48 = vld [vmem:[%s4384_s14] sm:$0xff]  }
 0x90b   : > { %v3481_v50 = vpop.f32.mrf.mxu0 }
 0x90c   : > { %v2178_v51 = vsel %vm1033_vm4, %v2175_v49, -inf }
 0x90d   : > { %2179 = vmax.xlane.f32.xlu1 %v2178_v51 }
 0x912   : > { %v2363_v52 = vpop.f32.mrf.mxu0 }
 0x913   : > { %v2364_v53 = vadd.f32 %v2363_v52, %v1880_v47 }
 0x914   : > { %v3491_v54 = vpop.f32.mrf.mxu0 }
 0x915   : > { %v2367_v55 = vsel %vm1033_vm4, %v2364_v53, -inf }
 0x916   : > { %2368 = vmax.xlane.f32.xlu0 %v2367_v55 }
 0x91b   : > { %v2552_v56 = vpop.f32.mrf.mxu0 }
 0x91c   : > { %v2553_v57 = vadd.f32 %v2552_v56, %v1880_v47 }
 0x91d   : > { %v3501_v58 = vpop.f32.mrf.mxu0 }
 0x91e   : > { %v2556_v59 = vsel %vm1033_vm4, %v2553_v57, -inf }
 0x91f   : > { %2557 = vmax.xlane.f32.xlu0 %v2556_v59 }
 0x924   : > { %v2741_v60 = vpop.f32.mrf.mxu0 }
 0x925   : > { %v2742_v61 = vadd.f32 %v2741_v60, %v1880_v47  ;;  %v3596_v47 = vld [vmem:[%s4384_s14 + $0x8] sm:$0xff]  }
 0x926   : > { %v3511_v62 = vpop.f32.mrf.mxu0  ;;  %3518 = vmatpush3.bf16.msra.mxu0 %v3596_v47 }
 0x927   : > { %v2745_v63 = vsel %vm1033_vm4, %v2742_v61, -inf  ;;  %3519 = vmatprep.subr.bf16.mxu0 %v3712_v0 }
 0x928   : > { %2746 = vmax.xlane.f32.xlu1 %v2745_v63 }
 0x92a   : > { %3520 = vmatpush3.bf16.msra.mxu0 %v3597_v48 }
 0x92b   : > { %3533 = vmatprep.subr.bf16.mxu0 %v3712_v0 }
 0x939   : > { %2083 = vrot.lane.b32.xlu1 %v4224_v43, %s4435_s25  ;;  %s4439_s25 = smov 8  }
 0x996   : > { %v2180_v3 = vpop.xlane.xlu1 %2179 }
 0x997   : > { %v2181_v1 = vsub.f32 %v2175_v49, %v2180_v3 }
 0x999   : > { %v2182_v2 = vmul.f32 1.442695, %v2181_v1  ;;  %v3297_v1 = vld [vmem:[%s4385_s15] ss:$0 sm:$0xff] }
 0x99b   : > { %3622 = vpow2.f32 %v2182_v2 }
 0x99f   : > { %v2369_v4 = vpop.xlane.xlu0 %2368 }
 0x9a0   : > { %v2370_v5 = vsub.f32 %v2364_v53, %v2369_v4 }
 0x9a2   : > { %v2371_v6 = vmul.f32 1.442695, %v2370_v5 }
 0x9a4   : > { %3624 = vpow2.f32 %v2371_v6 }
 0x9a8   : > { %v3623_v7 = vpop.eup %3622  ;;  %v2558_v13 = vpop.xlane.xlu0 %2557 }
 0x9a9   : > { %v2184_v8 = vsel %vm1033_vm4, %v3623_v7, 0.0  ;;  %v2559_v14 = vsub.f32 %v2553_v57, %v2558_v13 }
 0x9aa   : > { %2185 = vadd.xlane.f32.xlu0 %v2184_v8 }
 0x9ab   : > { %v2560_v15 = vmul.f32 1.442695, %v2559_v14 }
 0x9ad   : > { %3626 = vpow2.f32 %v2560_v15  ;;  %v3598_v15 = vld [vmem:[%s4388_s18 + $0x8] sm:$0xff]  }
 0x9b1   : > { %v2747_v9 = vpop.xlane.xlu1 %2746  ;;  %v3625_v10 = vpop.eup %3624 }
 0x9b2   : > { %v2373_v11 = vsel %vm1033_vm4, %v3625_v10, 0.0  ;;  %v2748_v16 = vsub.f32 %v2742_v61, %v2747_v9 }
 0x9b3   : > { %2374 = vadd.xlane.f32.xlu1 %v2373_v11 }
 0x9b4   : > { %v2749_v17 = vmul.f32 1.442695, %v2748_v16  ;;  %v3600_v16 = vld [vmem:[%s4390_s20 + $0x18] sm:$0xff]  }
 0x9b5   : > { %v2084_v12 = vpop.permute.xlu1 %2083 }
 0x9b6   : > { %2086 = vst.msk [vmem:[#allocation4 + $0x4] sm:$0x3] %vm987_vm2, %v2084_v12  ;;  %3628 = vpow2.f32 %v2749_v17  ;;  %v3601_v17 = vld [vmem:[%s4390_s20 + $0x10] sm:$0xff]  }
 0x9ba   : > { %v3627_v18 = vpop.eup %3626 }
 0x9bb   : > { %v2562_v19 = vsel %vm1033_vm4, %v3627_v18, 0.0 }
 0x9c0   : > { %2071 = vrot.lane.b32.xlu0 %v4224_v43, %s4436_s28  ;;  %s4440_s28 = smov 16  }
 0x9c3   : > { %v3629_v20 = vpop.eup %3628 }
 0x9c4   : > { %2095 = vrot.lane.b32.xlu1 %v4224_v43, %s4437_s2  ;;  %v2751_v22 = vsel %vm1033_vm4, %v3629_v20, 0.0  ;;  %s4441_s2 = smov 24  }
 0x9df   : > { %2563 = vadd.xlane.f32.xlu0 %v2562_v19 }
 0x9e8   : > { %2752 = vadd.xlane.f32.xlu1 %v2751_v22 }
 0xa33   : > { %v2186_v23 = vpop.xlane.xlu0 %2185 }
 0xa34   : > { %3630 = vrcp.f32 %v2186_v23  ;;  %v3301_v23 = vld [vmem:[%s4386_s16] ss:$0 sm:$0xff] }
 0xa37   : > { %v2072_v24 = vpop.permute.xlu0 %2071 }
 0xa38   : > { %2074 = vst.msk [vmem:[#allocation4 + $0x2] sm:$0x3] %vm987_vm2, %v2072_v24 }
 0xa3c   : > { %v2375_v25 = vpop.xlane.xlu1 %2374 }
 0xa3d   : > { %3632 = vrcp.f32 %v2375_v25  ;;  %v3302_v25 = vld [vmem:[%s4387_s17] ss:$0 sm:$0xff] }
 0xa40   : > { %v2096_v26 = vpop.permute.xlu1 %2095 }
 0xa41   : > { %2098 = vst.msk [vmem:[#allocation4 + $0x6] sm:$0x3] %vm987_vm2, %v2096_v26  ;;  %v3631_v27 = vpop.eup %3630 }
 0xa42   : > { %v2188_v29 = vmul.f32 %v3631_v27, %v3623_v7 }
 0xa48   : > { %v2101_v28 = vld [vmem:[#allocation4] sm:$0xff] }
 0xa49   : > { %2287 = vst.msk [vmem:[#allocation4 + $0x4] sm:$0xc] %vm1211_vm3, %v2096_v26  ;;  %2278 = vst.msk [vmem:[#allocation4 - $0x2] sm:$0xc] %vm1211_vm3, %v4224_v43  ;;  %3483 = vmatpush3.msra.mxu1 %v2101_v28 }
 0xa4a   : > { %2281 = vst.msk [vmem:[#allocation4] sm:$0xc] %vm1211_vm3, %v2072_v24  ;;  %2284 = vst.msk [vmem:[#allocation4 + $0x2] sm:$0xc] %vm1211_vm3, %v2084_v12  ;;  %3485 = vmatmul.mubr.msk.f32.vlgmr.msra.gmra.mxu1 %vm1033_vm4, %v2188_v29  ;;  %3492 = vmatprep.subr.mxu1 %v3712_v0  ;;  %v3633_v30 = vpop.eup %3632  ;;  %v3602_v29 = vld [vmem:[%s4390_s20 + $0x8] sm:$0xff]  }
 0xa4b   : > { %3494 = vmatprep.mubr.msk.f32.mxu1 %vm3713_vm0, %v3712_v0  ;;  %v2377_v32 = vmul.f32 %v3633_v30, %v3625_v10  ;;  %v3603_v30 = vld [vmem:[%s4390_s20] sm:$0xff]  }
 0xa51   : > { %v2290_v31 = vld [vmem:[#allocation4] sm:$0xff] }
 0xa52   : > { %3493 = vmatpush3.msra.mxu1 %v2290_v31  ;;  %2467 = vst.msk [vmem:[#allocation4 - $0x4] sm:$0x30] %vm1401_vm5, %v4224_v43  ;;  %2470 = vst.msk [vmem:[#allocation4 - $0x2] sm:$0x30] %vm1401_vm5, %v2072_v24  ;;  %v3303_v31 = vld [vmem:[%s4389_s19] ss:$0 sm:$0xff] }
 0xa53   : > { %2473 = vst.msk [vmem:[#allocation4] sm:$0x30] %vm1401_vm5, %v2084_v12  ;;  %2476 = vst.msk [vmem:[#allocation4 + $0x2] sm:$0x30] %vm1401_vm5, %v2096_v26  ;;  %3495 = vmatmul.mubr.msk.f32.vlgmr.msra.gmra.mxu1 %vm1033_vm4, %v2377_v32  ;;  %3502 = vmatprep.subr.mxu1 %v3712_v0 }
 0xa54   : > { %3504 = vmatprep.mubr.msk.f32.mxu1 %vm3713_vm0, %v3712_v0 }
 0xa5a   : > { %v2479_v33 = vld [vmem:[#allocation4] sm:$0xff] }
 0xa5b   : > { %3503 = vmatpush3.msra.mxu1 %v2479_v33  ;;  %2656 = vst.msk [vmem:[#allocation4 - $0x6] sm:$0xc0] %vm1591_vm6, %v4224_v43  ;;  %2659 = vst.msk [vmem:[#allocation4 - $0x4] sm:$0xc0] %vm1591_vm6, %v2072_v24 }
 0xa5c   : > { %2662 = vst.msk [vmem:[#allocation4 - $0x2] sm:$0xc0] %vm1591_vm6, %v2084_v12  ;;  %2665 = vst.msk [vmem:[#allocation4] sm:$0xc0] %vm1591_vm6, %v2096_v26  ;;  %3512 = vmatprep.subr.mxu1 %v3712_v0 }
 0xa63   : > { %v2668_v38 = vld [vmem:[#allocation4] sm:$0xff] }
 0xa68   : > { %v2564_v34 = vpop.xlane.xlu0 %2563 }
 0xa69   : > { %3634 = vrcp.f32 %v2564_v34 }
 0xa71   : > { %v2753_v35 = vpop.xlane.xlu1 %2752 }
 0xa72   : > { %3636 = vrcp.f32 %v2753_v35 }
 0xa76   : > { %v3635_v36 = vpop.eup %3634 }
 0xa77   : > { %v2566_v37 = vmul.f32 %v3635_v36, %v3627_v18 }
 0xa79   : > { %3505 = vmatmul.mubr.msk.f32.vlgmr.msra.gmra.mxu1 %vm1033_vm4, %v2566_v37 }
 0xa7a   : > { %3513 = vmatpush3.msra.mxu1 %v2668_v38  ;;  %3514 = vmatprep.mubr.msk.f32.mxu1 %vm3713_vm0, %v3712_v0 }
 0xa7b   : > { %3525 = vmatprep.subr.bf16.mxu1 %v3712_v0 }
 0xa7f   : > { %v3637_v39 = vpop.eup %3636 }
 0xa80   : > { %v2755_v40 = vmul.f32 %v3637_v39, %v3629_v20 }
 0xa82   : > { %3515 = vmatmul.mubr.msk.f32.vlgmr.msra.gmra.mxu1 %vm1033_vm4, %v2755_v40 }
 0xa83   : > { %3529 = vmatprep.mubr.msk.bf16.mxu1 %vm3713_vm0, %v3712_v0  ;;  %3526 = vmatpush3.bf16.msra.mxu1 %v3598_v15 }
 0xa84   : > { %3527 = vmatprep.subr.bf16.mxu1 %v3712_v0 }
 0xb0a   : > { %v2258_v41 = vpop.f32.mrf.mxu1 }
 0xb0b   : > { %2262 = vst.msk [vmem:[#allocation5] sm:$0x3] %vm987_vm2, %v2258_v41  ;;  %2264 = vrot.lane.b32.xlu0 %v2258_v41, %s4439_s25 }
 0xb0c   : > { %v3486_v42 = vpop.f32.mrf.mxu1 }
 0xb0f   : > { %2268 = vrot.lane.b32.xlu0 %v2258_v41, %s4440_s28 }
 0xb13   : > { %v2447_v43 = vpop.f32.mrf.mxu1  ;;  %2272 = vrot.lane.b32.xlu0 %v2258_v41, %s4441_s2 }
 0xb14   : > { %2451 = vst.msk [vmem:[#allocation5 + $0x2] sm:$0x3] %vm987_vm2, %v2447_v43  ;;  %2453 = vrot.lane.b32.xlu1 %v2447_v43, %s4439_s25 }
 0xb15   : > { %v3496_v44 = vpop.f32.mrf.mxu1 }
 0xb18   : > { %2457 = vrot.lane.b32.xlu1 %v2447_v43, %s4440_s28 }
 0xb1c   : > { %2461 = vrot.lane.b32.xlu1 %v2447_v43, %s4441_s2 }
 0xb39   : > { %v2636_v45 = vpop.f32.mrf.mxu1 }
 0xb3a   : > { %2640 = vst.msk [vmem:[#allocation5 + $0x4] sm:$0x3] %vm987_vm2, %v2636_v45  ;;  %2642 = vrot.lane.b32.xlu0 %v2636_v45, %s4439_s25 }
 0xb3b   : > { %v3506_v46 = vpop.f32.mrf.mxu1 }
 0xb3e   : > { %2646 = vrot.lane.b32.xlu0 %v2636_v45, %s4440_s28 }
 0xb42   : > { %v2825_v49 = vpop.f32.mrf.mxu1  ;;  %2650 = vrot.lane.b32.xlu0 %v2636_v45, %s4441_s2 }
 0xb43   : > { %2829 = vst.msk [vmem:[#allocation5 + $0x6] sm:$0x3] %vm987_vm2, %v2825_v49  ;;  %2831 = vrot.lane.b32.xlu1 %v2825_v49, %s4439_s25 }
 0xb44   : > { %v3516_v50 = vpop.f32.mrf.mxu1 }
 0xb47   : > { %2835 = vrot.lane.b32.xlu1 %v2825_v49, %s4440_s28 }
 0xb4b   : > { %2839 = vrot.lane.b32.xlu1 %v2825_v49, %s4441_s2 }
 0xb7d   : > { %v2265_v51 = vpop.permute.xlu0 %2264 }
 0xb7e   : > { %2267 = vst.msk [vmem:[#allocation5 - $0x2] sm:$0xc] %vm1199_vm7, %v2265_v51 }
 0xb81   : > { %v2269_v52 = vpop.permute.xlu0 %2268 }
 0xb82   : > { %2271 = vst.msk [vmem:[#allocation5 - $0x4] sm:$0x30] %vm1204_vm8, %v2269_v52 }
 0xb85   : > { %v2273_v53 = vpop.permute.xlu0 %2272 }
 0xb86   : > { %v2454_v54 = vpop.permute.xlu1 %2453  ;;  %2275 = vst.msk [vmem:[#allocation5 - $0x6] sm:$0xc0] %vm1209_vm9, %v2273_v53 }
 0xb87   : > { %2456 = vst.msk [vmem:[#allocation5] sm:$0xc] %vm1199_vm7, %v2454_v54 }
 0xb8a   : > { %v2458_v55 = vpop.permute.xlu1 %2457 }
 0xb8b   : > { %2460 = vst.msk [vmem:[#allocation5 - $0x2] sm:$0x30] %vm1204_vm8, %v2458_v55  ;;  %v3313_v55 = vld [vmem:[#allocation6] ss:$0 sm:$0xff] }
 0xb8e   : > { %v2462_v56 = vpop.permute.xlu1 %2461 }
 0xb8f   : > { %2464 = vst.msk [vmem:[#allocation5 - $0x4] sm:$0xc0] %vm1209_vm9, %v2462_v56 }
 0xbac   : > { %v2643_v57 = vpop.permute.xlu0 %2642 }
 0xbad   : > { %2645 = vst.msk [vmem:[#allocation5 + $0x2] sm:$0xc] %vm1199_vm7, %v2643_v57  ;;  %v3314_v57 = vld [vmem:[#allocation8] ss:$0 sm:$0xff] }
 0xbb0   : > { %v2647_v58 = vpop.permute.xlu0 %2646 }
 0xbb1   : > { %2649 = vst.msk [vmem:[#allocation5] sm:$0x30] %vm1204_vm8, %v2647_v58 }
 0xbb4   : > { %v2651_v59 = vpop.permute.xlu0 %2650 }
 0xbb5   : > { %v2832_v60 = vpop.permute.xlu1 %2831  ;;  %2653 = vst.msk [vmem:[#allocation5 - $0x2] sm:$0xc0] %vm1209_vm9, %v2651_v59 }
 0xbb6   : > { %2834 = vst.msk [vmem:[#allocation5 + $0x4] sm:$0xc] %vm1199_vm7, %v2832_v60 }
 0xbb9   : > { %v2836_v61 = vpop.permute.xlu1 %2835 }
 0xbba   : > { %2838 = vst.msk [vmem:[#allocation5 + $0x2] sm:$0x30] %vm1204_vm8, %v2836_v61 }
 0xbbd   : > { %v2840_v62 = vpop.permute.xlu1 %2839 }
 0xbbe   : > { %2842 = vst.msk [vmem:[#allocation5] sm:$0xc0] %vm1209_vm9, %v2840_v62 }
 0xbc5   : > { %v2843_v63 = vld [vmem:[#allocation5] sm:$0xff] }
 0xbc6   : > { %v2844_v3 = vpack.c.bf16 %v2843_v63, %v2843_v63 }
 0xbc8   : > { %3522 = vmatmul.mubr.msk.bf16.vlgmr.msra.gmra.mxu0 %vm831_vm1, %v2844_v3 }
 0xbc9   : > { %3541 = vmatprep.mubr.msk.bf16.mxu0 %vm3713_vm0, %v3712_v0  ;;  %3534 = vmatpush3.bf16.msra.mxu0 %v3600_v16 }
 0xbca   : > { %3535 = vmatprep.subr.bf16.mxu0 %v3712_v0 }
 0xbcd   : > { %3536 = vmatpush3.bf16.msra.mxu0 %v3601_v17 }
 0xbce   : > { %3537 = vmatprep.subr.bf16.mxu0 %v3712_v0 }
 0xbd1   : > { %3538 = vmatpush3.bf16.msra.mxu0 %v3602_v29 }
 0xbd2   : > { %3539 = vmatprep.subr.bf16.mxu0 %v3712_v0  ;;  %v3307_v0 = vld [vmem:[%s4391_s21] ss:$0 sm:$0xff] }
 0xbd5   : > { %3540 = vmatpush3.bf16.msra.mxu0 %v3603_v30 }
 0xc88   : > { %v2905_v2 = vpop.f32.mrf.mxu0 }
 0xc89   : > { %v2906_v4 = vadd.f32 %v3297_v1, %v2905_v2 }
 0xc8a   : > { %v3523_v5 = vpop.f32.mrf.mxu0 }
 0xc8b   : > { %v2911_v6 = vadd.f32 %v2906_v4, %v4151_v21  ;;  %v3599_v21 = vld [vmem:[%s4388_s18] sm:$0xff]  }
 0xc8c   : > { %v2908_v7 = vpop.f32.mrf.mxu0  ;;  %3528 = vmatpush3.bf16.msra.mxu1 %v3599_v21 }
 0xc8d   : > { %v2914_v8 = vsel %vm831_vm1, %v2911_v6, 0.0 }
 0xc8e   : > { %2915 = vadd.xlane.f32.xlu0 %v2914_v8  ;;  %v3524_v9 = vpop.f32.mrf.mxu0 }
 0xd17   : > { %v2916_v10 = vpop.xlane.xlu0 %2915 }
 0xd18   : > { %v2917_v11 = vmul.f32 0.03125, %v2916_v10 }
 0xd1a   : > { %v2918_v12 = vsub.f32 %v2911_v6, %v2917_v11 }
 0xd1c   : > { %v2919_v13 = vmul.f32 %v2918_v12, %v2918_v12 }
 0xd1e   : > { %v2920_v14 = vsel %vm831_vm1, %v2919_v13, 0.0 }
 0xd1f   : > { %2921 = vadd.xlane.f32.xlu1 %v2920_v14 }
 0xda8   : > { %v2922_v18 = vpop.xlane.xlu1 %2921 }
 0xda9   : > { %v2923_v19 = vmul.f32 0.03125, %v2922_v18 }
 0xdab   : > { %v2924_v20 = vadd.f32 1e-05, %v2923_v19 }
 0xdad   : > { %3638 = vrsqrt.f32 %v2924_v20 }
 0xdba   : > { %v3639_v22 = vpop.eup %3638 }
 0xdbb   : > { %v2926_v24 = vmul.f32 %v3639_v22, %v2918_v12 }
 0xdbd   : > { %v2933_v26 = vmul.f32 %v3301_v23, %v2926_v24 }
 0xdbf   : > { %v2940_v27 = vadd.f32 %v3302_v25, %v2933_v26 }
 0xdc1   : > { %v2941_v28 = vpack.c.bf16 %v2940_v27, %v2940_v27 }
 0xdc3   : > { %3530 = vmatmul.mubr.msk.bf16.vlgmr.msra.gmra.mxu1 %vm831_vm1, %v2941_v28 }
 0xe83   : > { %v3002_v32 = vpop.f32.mrf.mxu1 }
 0xe84   : > { %v3003_v33 = vadd.f32 %v3303_v31, %v3002_v32 }
 0xe85   : > { %v3531_v34 = vpop.f32.mrf.mxu1 }
 0xe86   : > { %v3008_v35 = vmax.f32 %v3003_v33, 0.0 }
 0xe87   : > { %v3005_v36 = vpop.f32.mrf.mxu1 }
 0xe88   : > { %v3009_v37 = vpack.c.bf16 %v3008_v35, %v3008_v35 }
 0xe89   : > { %v3532_v38 = vpop.f32.mrf.mxu1 }
 0xe8a   : > { %3542 = vmatmul.mubr.msk.bf16.vlgmr.msra.gmra.mxu0 %vm3049_vm10, %v3009_v37 }
 0xf4a   : > { %v3087_v39 = vpop.f32.mrf.mxu0 }
 0xf4b   : > { %v3088_v40 = vadd.f32 %v3307_v0, %v3087_v39 }
 0xf4c   : > { %v3543_v41 = vpop.f32.mrf.mxu0 }
 0xf4d   : > { %v3093_v42 = vadd.f32 %v3088_v40, %v2940_v27 }
 0xf4e   : > { %v3090_v43 = vpop.f32.mrf.mxu0 }
 0xf4f   : > { %v3096_v44 = vsel %vm831_vm1, %v3093_v42, 0.0 }
 0xf50   : > { %3097 = vadd.xlane.f32.xlu0 %v3096_v44  ;;  %v3544_v45 = vpop.f32.mrf.mxu0 }
 0xfd9   : > { %v3098_v46 = vpop.xlane.xlu0 %3097 }
 0xfda   : > { %v3099_v47 = vmul.f32 0.03125, %v3098_v46 }
 0xfdc   : > { %v3100_v48 = vsub.f32 %v3093_v42, %v3099_v47 }
 0xfde   : > { %v3101_v49 = vmul.f32 %v3100_v48, %v3100_v48 }
 0xfe0   : > { %v3102_v50 = vsel %vm831_vm1, %v3101_v49, 0.0 }
 0xfe1   : > { %3103 = vadd.xlane.f32.xlu0 %v3102_v50 }
0x106a   : > { %v3104_v51 = vpop.xlane.xlu0 %3103 }
0x106b   : > { %v3105_v52 = vmul.f32 0.03125, %v3104_v51 }
0x106d   : > { %v3106_v53 = vadd.f32 1e-05, %v3105_v52 }
0x106f   : > { %3640 = vrsqrt.f32 %v3106_v53 }
0x107c   : > { %v3641_v54 = vpop.eup %3640 }
0x107d   : > { %v3108_v56 = vmul.f32 %v3641_v54, %v3100_v48 }
0x107f   : > { %v3115_v58 = vmul.f32 %v3313_v55, %v3108_v56 }
0x1081   : > { %v3122_v59 = vadd.f32 %v3314_v57, %v3115_v58 }
0x1083   : > { %3123 = vst.msk [vmem:[%s809_s4] sm:$0xff] %vm831_vm1, %v3122_v59 }
0x1084 PF: > { %s36_s5 = sadd.s32 1, %s3708_s5  }
0x1085   : > { %p33_p3 = scmp.ge.s32.totalorder %s36_s5, 4  }
0x1087   :  { %35 = sbr.rel (!%p33_p3) target bundleno = 12 (0xc), region = 164 }
0x108c   :  { %3143 = vsyncpa [#allocation7], 1 }
0x108d   :  { %3145 = vsyncpa [#allocation7 + $0x1], 1 }
0x108e   :  { %3146 = vsyncpa [#allocation9], 1 }

// kernel: transformer_decoder_forward.3
= control target key start
LH: loop header
LB: loop body
LE: loop exit
PB: predicated region body
PF: predicated region fallthrough
CT: control target
= control target key end

     0   :  { %s4196_s0 = inlined_call_operand.vmem [shape: f32[2,8,32], index: 0, kind: input, shape index: {}]   ;;  %s4197_s1 = inlined_call_operand.vmem [shape: f32[2,8,32], index: 1, kind: input, shape index: {}]   ;;  %s4198_s2 = inlined_call_operand.vmem [shape: f32[2,8,8], index: 2, kind: input, shape index: {}]   ;;  %s4199_s3 = inlined_call_operand.vmem [shape: f32[2,8,8], index: 3, kind: input, shape index: {}]   ;;  %s4200_s4 = inlined_call_operand.vmem [shape: bf16[32,32], index: 4, kind: input, shape index: {}]   ;;  %s4201_s5 = inlined_call_operand.vmem [shape: bf16[32,32], index: 5, kind: input, shape index: {}]   ;;  %s4202_s6 = inlined_call_operand.vmem [shape: bf16[32,32], index: 6, kind: input, shape index: {}]   ;;  %s4203_s7 = inlined_call_operand.vmem [shape: bf16[32,32], index: 7, kind: input, shape index: {}]   ;;  %s4204_s8 = inlined_call_operand.vmem [shape: f32[1,32], index: 8, kind: input, shape index: {}]   ;;  %s4205_s9 = inlined_call_operand.vmem [shape: f32[1,32], index: 9, kind: input, shape index: {}]   ;;  %s4206_s10 = inlined_call_operand.vmem [shape: f32[1,32], index: 10, kind: input, shape index: {}]   ;;  %s4207_s11 = inlined_call_operand.vmem [shape: bf16[32,32], index: 11, kind: input, shape index: {}]   ;;  %s4208_s12 = inlined_call_operand.vmem [shape: bf16[32,32], index: 12, kind: input, shape index: {}]   ;;  %s4209_s13 = inlined_call_operand.vmem [shape: bf16[32,32], index: 13, kind: input, shape index: {}]   ;;  %s4210_s14 = inlined_call_operand.vmem [shape: bf16[32,32], index: 14, kind: input, shape index: {}]   ;;  %s4211_s15 = inlined_call_operand.vmem [shape: f32[1,32], index: 15, kind: input, shape index: {}]   ;;  %s4212_s16 = inlined_call_operand.vmem [shape: f32[1,32], index: 16, kind: input, shape index: {}]   ;;  %s4213_s17 = inlined_call_operand.vmem [shape: f32[1,32], index: 17, kind: input, shape index: {}]   ;;  %s4214_s18 = inlined_call_operand.vmem [shape: bf16[32,64], index: 18, kind: input, shape index: {}]   ;;  %s4215_s19 = inlined_call_operand.vmem [shape: f32[1,64], index: 19, kind: input, shape index: {}]   ;;  %s4216_s20 = inlined_call_operand.vmem [shape: bf16[64,32], index: 20, kind: input, shape index: {}]   ;;  %s4217_s21 = inlined_call_operand.vmem [shape: f32[1,32], index: 21, kind: input, shape index: {}]   ;;  %s4218_s22 = inlined_call_operand.vmem [shape: f32[1,32], index: 22, kind: input, shape index: {}]   ;;  %s4219_s23 = inlined_call_operand.vmem [shape: f32[1,32], index: 23, kind: input, shape index: {}]   ;;  %s4220_s24 = inlined_call_operand.vmem [shape: f32[2,8,32], index: 24, kind: output, shape index: {}]  }
   0x1   :  { %4237 = sst [smem:[#allocation6_spill]] %s4196_s0 }
   0x2   :  { %4238 = sst [smem:[#allocation7_spill]] %s4197_s1 }
   0x3   :  { %4239 = sst [smem:[#allocation8_spill]] %s4198_s2 }
   0x4   :  { %4240 = sst [smem:[#allocation9_spill]] %s4199_s3 }
   0x5   :  { %4241 = sst [smem:[#allocation10_spill]] %s4200_s4 }
   0x6   :  { %4242 = sst [smem:[#allocation11_spill]] %s4201_s5  ;;  %s3710_s5 = smov 0  }
   0x7   :  { %4243 = sst [smem:[#allocation12_spill]] %s4202_s6 }
   0x8   :  { %4244 = sst [smem:[#allocation13_spill]] %s4203_s7 }
   0x9   :  { %4245 = sst [smem:[#allocation14_spill]] %s4204_s8 }
   0xa LB: > { %s3187_s26 = sadd.s32 4294967295, %s3575_s5   ;;  %p3191_p0 = scmp.ge.s32.totalorder %s3575_s5, 1  ;;  %s3575_s5 = sphi %s3710_s5, %s34_s5  }
   0xb   : > { %p688_p1 = scmp.lt.s32.totalorder %s3575_s5, 3 }
   0xd   : > { %p689_p2 = pnand %p3191_p0, %p688_p1 }
   0xe   : > { %s4246_s6 = sld [smem:[#allocation10_spill]] (!%p689_p2)  ;;  %p764_p3 = scmp.lt.s32.totalorder (!%p689_p2), %s3187_s26, 1 }
   0xf   : > { %692 = sbr.rel (%p689_p2) target bundleno = 4190 (0x105e), region = 116  ;;  %s4247_s3 = sld [smem:[#allocation11_spill]] (!%p689_p2) }
  0x10   : > { %s4248_s4 = sld [smem:[#allocation6_spill]] (!%p689_p2)  ;;  %s4233_s7 = smov (!%p689_p2), 120  }
  0x11   : > { %s4249_s29 = sld [smem:[#allocation12_spill]] (!%p689_p2)  ;;  %s4225_s8 = smov (!%p689_p2), 104  }
  0x12   : > { %s4229_s2 = smov (!%p689_p2), 16   ;;  %s4231_s30 = smov (!%p689_p2), 8  }
  0x13   : > { %s4227_s25 = smov (!%p689_p2), 24   ;;  %s4252_s27 = sld [smem:[#allocation14_spill]] (!%p689_p2) }
  0x14   : > { %v3509_v0 = vld [vmem:[%s4246_s6 + $0x8] sm:$0xff]   ;;  %v3577_v1 = vmov 0.0   ;;  %v3510_v2 = vld [vmem:[%s4246_s6] sm:$0xff]   ;;  %vm3578_vm0 = vmmov 0   ;;  %s4262_s26 = smov (!%p764_p3, %s3187_s26), 1  ;;  %vm805_vm1 = vcmask 261120  }
  0x15   : > { %3329 = vmatprep.subr.bf16.mxu1 %v3577_v1  ;;  %3345 = vmatprep.subr.bf16.mxu0 %v3577_v1  ;;  %s3731_s0 = sshll.u32 %s4262_s26, 3  ;;  %v3511_v3 = vld [vmem:[%s4247_s3 + $0x8] sm:$0xff]   ;;  %v3512_v6 = vld [vmem:[%s4247_s3] sm:$0xff]   ;;  %vm961_vm2 = vcmask 58368   ;;  %vm1185_vm3 = vcmask 60418   ;;  %vm1007_vm4 = vcmask 64512  }
  0x16   : > { %3330 = vmatpush3.bf16.msra.mxu1 %v3509_v0  ;;  %3333 = vmatprep.mubr.msk.bf16.mxu1 %vm3578_vm0, %v3577_v1  ;;  %s767_s1 = scalar_lea.vmem %s4248_s4, %s3731_s0  ;;  %s4235_s4 = smov 112   ;;  %vm1375_vm5 = vcmask 62468   ;;  %vm1565_vm6 = vcmask 64518   ;;  %vm1173_vm7 = vcmask 126018   ;;  %vm1178_vm8 = vcmask 193668  }
  0x17   : > { %3331 = vmatprep.subr.bf16.mxu1 %v3577_v1  ;;  %3349 = vmatprep.mubr.msk.bf16.mxu0 %vm3578_vm0, %v3577_v1  ;;  %v3741_v4 = vld [vmem:[%s767_s1] sm:$0xff]  ;;  %v3513_v7 = vld [vmem:[%s4249_s29 + $0x8] sm:$0xff]   ;;  %s4250_s26 = sld [smem:[#allocation8_spill]]  ;;  %vm1183_vm9 = vcmask 261318   ;;  %vm3023_vm10 = vcmask 523264  }
  0x18   : > { %v788_v5 = vpack.c.bf16 %v3741_v4, %v3741_v4  ;;  %3346 = vmatpush3.bf16.msra.mxu0 %v3513_v7  ;;  %v3514_v9 = vld [vmem:[%s4249_s29] sm:$0xff]  }
  0x19   : > { %3347 = vmatprep.subr.bf16.mxu0 %v3577_v1 }
  0x1a   : > { %3332 = vmatpush3.bf16.msra.mxu1 %v3510_v2 }
  0x1b   : > { %3337 = vmatprep.subr.bf16.mxu1 %v3577_v1 }
  0x1c   : > { %3348 = vmatpush3.bf16.msra.mxu0 %v3514_v9 }
  0x1d   : > { %3334 = vmatmul.mubr.msk.bf16.vlgmr.msra.gmra.mxu1 %vm805_vm1, %v788_v5  ;;  %3363 = vmatprep.subr.mxu0 %v3577_v1  ;;  %s775_s28 = scalar_lea.vmem %s4250_s26, %s3731_s0  ;;  %s4251_s26 = sld [smem:[#allocation13_spill]] }
  0x1e   : > { %3338 = vmatpush3.bf16.msra.mxu1 %v3511_v3  ;;  %3341 = vmatprep.mubr.msk.bf16.mxu1 %vm3578_vm0, %v3577_v1  ;;  %v787_v35 = vld [vmem:[%s775_s28] sm:$0xff]  ;;  %s4256_s28 = smov 104  }
  0x1f   : > { %3339 = vmatprep.subr.bf16.mxu1 %v3577_v1  ;;  %3350 = vmatmul.mubr.msk.bf16.vlgmr.msra.gmra.mxu0 %vm805_vm1, %v788_v5 }
  0x20   : > { %3365 = vmatprep.mubr.msk.f32.mxu0 %vm3578_vm0, %v3577_v1 }
  0x22   : > { %3340 = vmatpush3.bf16.msra.mxu1 %v3512_v6 }
  0x23   : > { %3353 = vmatprep.subr.mxu1 %v3577_v1 }
  0x25   : > { %3342 = vmatmul.mubr.msk.bf16.vlgmr.msra.gmra.mxu1 %vm805_vm1, %v788_v5 }
  0x26   : > { %3355 = vmatprep.mubr.msk.f32.mxu1 %vm3578_vm0, %v3577_v1 }
  0xdd   : > { %v3759_v8 = vpop.f32.mrf.mxu1 }
  0xde   : > { %962 = vst.msk [vmem:[#allocation2] sm:$0x3] %vm961_vm2, %v3759_v8  ;;  %966 = vrot.lane.b32.xlu1 %v3759_v8, %s4233_s7 }
  0xdf   : > { %v3335_v10 = vpop.f32.mrf.mxu1  ;;  %v3834_v31 = vpop.f32.mrf.mxu0 }
  0xe0   : > { %964 = vst.msk [vmem:[#allocation4] sm:$0x3] %vm961_vm2, %v3834_v31 }
  0xe1   : > { %v846_v11 = vpop.f32.mrf.mxu1  ;;  %v3351_v32 = vpop.f32.mrf.mxu0 }
  0xe3   : > { %v3336_v12 = vpop.f32.mrf.mxu1  ;;  %v958_v33 = vpop.f32.mrf.mxu0 }
  0xe5   : > { %v899_v13 = vpop.f32.mrf.mxu1  ;;  %v3352_v34 = vpop.f32.mrf.mxu0 }
  0xe6   : > { %963 = vst.msk [vmem:[#allocation3] sm:$0x3] %vm961_vm2, %v899_v13  ;;  %996 = vrot.lane.b32.xlu1 %v899_v13, %s4225_s8  ;;  %971 = vrot.lane.b32.xlu0 %v899_v13, %s4233_s7 }
  0xe7   : > { %v3343_v14 = vpop.f32.mrf.mxu1 }
  0xe9   : > { %v902_v15 = vpop.f32.mrf.mxu1 }
  0xea   : > { %992 = vrot.lane.b32.xlu1 %v3759_v8, %s4225_s8  ;;  %984 = vrot.lane.b32.xlu0 %v899_v13, %s4235_s4 }
  0xeb   : > { %v3344_v16 = vpop.f32.mrf.mxu1 }
  0xee   : > { %980 = vrot.lane.b32.xlu0 %v3759_v8, %s4235_s4 }
 0x150   : > { %v967_v17 = vpop.permute.xlu1 %966 }
 0x151   : > { %969 = vst.msk [vmem:[#allocation2 + $0x2] sm:$0x3] %vm961_vm2, %v967_v17 }
 0x158   : > { %v997_v18 = vpop.permute.xlu1 %996  ;;  %v972_v19 = vpop.permute.xlu0 %971 }
 0x159   : > { %999 = vst.msk [vmem:[#allocation3 + $0x6] sm:$0x3] %vm961_vm2, %v997_v18  ;;  %974 = vst.msk [vmem:[#allocation3 + $0x2] sm:$0x3] %vm961_vm2, %v972_v19 }
 0x15c   : > { %v993_v20 = vpop.permute.xlu1 %992  ;;  %v985_v21 = vpop.permute.xlu0 %984 }
 0x15d   : > { %995 = vst.msk [vmem:[#allocation2 + $0x6] sm:$0x3] %vm961_vm2, %v993_v20  ;;  %987 = vst.msk [vmem:[#allocation3 + $0x4] sm:$0x3] %vm961_vm2, %v985_v21 }
 0x160   : > { %v981_v22 = vpop.permute.xlu0 %980 }
 0x161   : > { %983 = vst.msk [vmem:[#allocation2 + $0x4] sm:$0x3] %vm961_vm2, %v981_v22 }
 0x164   : > { %v1005_v23 = vld [vmem:[#allocation3] sm:$0xff] }
 0x165   : > { %1187 = vst.msk [vmem:[#allocation3 - $0x2] sm:$0xc] %vm1185_vm3, %v899_v13  ;;  %1190 = vst.msk [vmem:[#allocation3] sm:$0xc] %vm1185_vm3, %v972_v19  ;;  %3354 = vmatpush3.xpose.msk.msra.mxu1 %vm1007_vm4, %v1005_v23 }
 0x166   : > { %1193 = vst.msk [vmem:[#allocation3 + $0x2] sm:$0xc] %vm1185_vm3, %v985_v21  ;;  %1196 = vst.msk [vmem:[#allocation3 + $0x4] sm:$0xc] %vm1185_vm3, %v997_v18  ;;  %3358 = vmatprep.subr.mxu1 %v3577_v1 }
 0x168   : > { %v1004_v24 = vld [vmem:[#allocation2] sm:$0xff] }
 0x169   : > { %1186 = vst.msk [vmem:[#allocation2 - $0x2] sm:$0xc] %vm1185_vm3, %v3759_v8  ;;  %1189 = vst.msk [vmem:[#allocation2] sm:$0xc] %vm1185_vm3, %v967_v17  ;;  %3356 = vmatmul.mubr.msk.f32.vlgmr.msra.gmra.mxu1 %vm1007_vm4, %v1004_v24 }
 0x16a   : > { %1192 = vst.msk [vmem:[#allocation2 + $0x2] sm:$0xc] %vm1185_vm3, %v981_v22  ;;  %1195 = vst.msk [vmem:[#allocation2 + $0x4] sm:$0xc] %vm1185_vm3, %v993_v20  ;;  %3360 = vmatprep.mubr.msk.f32.mxu1 %vm3578_vm0, %v3577_v1 }
 0x16d   : > { %v1199_v25 = vld [vmem:[#allocation3] sm:$0xff] }
 0x16e   : > { %1377 = vst.msk [vmem:[#allocation3 - $0x4] sm:$0x30] %vm1375_vm5, %v899_v13  ;;  %1380 = vst.msk [vmem:[#allocation3 - $0x2] sm:$0x30] %vm1375_vm5, %v972_v19  ;;  %3364 = vmatpush3.xpose.msk.msra.mxu0 %vm1007_vm4, %v1199_v25 }
 0x16f   : > { %1383 = vst.msk [vmem:[#allocation3] sm:$0x30] %vm1375_vm5, %v985_v21  ;;  %1386 = vst.msk [vmem:[#allocation3 + $0x2] sm:$0x30] %vm1375_vm5, %v997_v18  ;;  %3373 = vmatprep.subr.mxu0 %v3577_v1 }
 0x171   : > { %v1198_v26 = vld [vmem:[#allocation2] sm:$0xff] }
 0x172   : > { %1376 = vst.msk [vmem:[#allocation2 - $0x4] sm:$0x30] %vm1375_vm5, %v3759_v8  ;;  %1379 = vst.msk [vmem:[#allocation2 - $0x2] sm:$0x30] %vm1375_vm5, %v967_v17  ;;  %3366 = vmatmul.mubr.msk.f32.vlgmr.msra.gmra.mxu0 %vm1007_vm4, %v1198_v26 }
 0x173   : > { %1382 = vst.msk [vmem:[#allocation2] sm:$0x30] %vm1375_vm5, %v981_v22  ;;  %1385 = vst.msk [vmem:[#allocation2 + $0x2] sm:$0x30] %vm1375_vm5, %v993_v20  ;;  %3375 = vmatprep.mubr.msk.f32.mxu0 %vm3578_vm0, %v3577_v1 }
 0x176   : > { %v1389_v27 = vld [vmem:[#allocation3] sm:$0xff] }
 0x177   : > { %1567 = vst.msk [vmem:[#allocation3 - $0x6] sm:$0xc0] %vm1565_vm6, %v899_v13  ;;  %1570 = vst.msk [vmem:[#allocation3 - $0x4] sm:$0xc0] %vm1565_vm6, %v972_v19  ;;  %3374 = vmatpush3.xpose.msk.msra.mxu0 %vm1007_vm4, %v1389_v27 }
 0x178   : > { %1573 = vst.msk [vmem:[#allocation3 - $0x2] sm:$0xc0] %vm1565_vm6, %v985_v21  ;;  %1576 = vst.msk [vmem:[#allocation3] sm:$0xc0] %vm1565_vm6, %v997_v18  ;;  %3383 = vmatprep.subr.mxu0 %v3577_v1 }
 0x17a   : > { %v1388_v28 = vld [vmem:[#allocation2] sm:$0xff] }
 0x17b   : > { %1566 = vst.msk [vmem:[#allocation2 - $0x6] sm:$0xc0] %vm1565_vm6, %v3759_v8  ;;  %1569 = vst.msk [vmem:[#allocation2 - $0x4] sm:$0xc0] %vm1565_vm6, %v967_v17  ;;  %3376 = vmatmul.mubr.msk.f32.vlgmr.msra.gmra.mxu0 %vm1007_vm4, %v1388_v28 }
 0x17c   : > { %1572 = vst.msk [vmem:[#allocation2 - $0x2] sm:$0xc0] %vm1565_vm6, %v981_v22  ;;  %1575 = vst.msk [vmem:[#allocation2] sm:$0xc0] %vm1565_vm6, %v993_v20  ;;  %3385 = vmatprep.mubr.msk.f32.mxu0 %vm3578_vm0, %v3577_v1 }
 0x17f   : > { %v1579_v29 = vld [vmem:[#allocation3] sm:$0xff] }
 0x180   : > { %3384 = vmatpush3.xpose.msk.msra.mxu0 %vm1007_vm4, %v1579_v29 }
 0x181   : > { %3393 = vmatprep.subr.bf16.mxu0 %v3577_v1 }
 0x183   : > { %v1578_v30 = vld [vmem:[#allocation2] sm:$0xff] }
 0x184   : > { %3386 = vmatmul.mubr.msk.f32.vlgmr.msra.gmra.mxu0 %vm1007_vm4, %v1578_v30 }
 0x185   : > { %3397 = vmatprep.mubr.msk.bf16.mxu0 %vm3578_vm0, %v3577_v1 }
 0x229   : > { %v1080_v36 = vpop.f32.mrf.mxu1 }
 0x22a   : > { %v1081_v37 = vadd.f32 %v1080_v36, %v787_v35 }
 0x22b   : > { %v3357_v38 = vpop.f32.mrf.mxu1 }
 0x22c   : > { %v1084_v39 = vsel %vm1007_vm4, %v1081_v37, -inf  ;;  %v3516_v38 = vld [vmem:[%s4251_s26] sm:$0xff]  }
 0x22d   : > { %1085 = vmax.xlane.f32.xlu0 %v1084_v39 }
 0x232   : > { %v1273_v40 = vpop.f32.mrf.mxu0 }
 0x233   : > { %v1274_v41 = vadd.f32 %v1273_v40, %v787_v35 }
 0x234   : > { %v3367_v42 = vpop.f32.mrf.mxu0 }
 0x235   : > { %v1277_v43 = vsel %vm1007_vm4, %v1274_v41, -inf }
 0x236   : > { %1278 = vmax.xlane.f32.xlu1 %v1277_v43 }
 0x23b   : > { %v1463_v44 = vpop.f32.mrf.mxu0 }
 0x23c   : > { %v1464_v45 = vadd.f32 %v1463_v44, %v787_v35 }
 0x23d   : > { %v3377_v46 = vpop.f32.mrf.mxu0 }
 0x23e   : > { %v1467_v47 = vsel %vm1007_vm4, %v1464_v45, -inf }
 0x23f   : > { %1468 = vmax.xlane.f32.xlu0 %v1467_v47 }
 0x244   : > { %v1653_v48 = vpop.f32.mrf.mxu0 }
 0x245   : > { %v1654_v49 = vadd.f32 %v1653_v48, %v787_v35  ;;  %v3515_v35 = vld [vmem:[%s4251_s26 + $0x8] sm:$0xff]  }
 0x246   : > { %v3387_v50 = vpop.f32.mrf.mxu0  ;;  %3394 = vmatpush3.bf16.msra.mxu0 %v3515_v35 }
 0x247   : > { %v1657_v51 = vsel %vm1007_vm4, %v1654_v49, -inf  ;;  %976 = vrot.lane.b32.xlu1 %v3834_v31, %s4233_s7  ;;  %3395 = vmatprep.subr.bf16.mxu0 %v3577_v1  ;;  %s4253_s7 = sld [smem:[#allocation7_spill]] }
 0x248   : > { %1658 = vmax.xlane.f32.xlu0 %v1657_v51 }
 0x24a   : > { %3396 = vmatpush3.bf16.msra.mxu0 %v3516_v38 }
 0x24b   : > { %3409 = vmatprep.subr.bf16.mxu0 %v3577_v1 }
 0x2b6   : > { %v1086_v52 = vpop.xlane.xlu0 %1085 }
 0x2b7   : > { %v1087_v53 = vsub.f32 %v1081_v37, %v1086_v52 }
 0x2b9   : > { %v1088_v54 = vmul.f32 1.442695, %v1087_v53  ;;  %v3218_v53 = vld [vmem:[%s4252_s27] ss:$0 sm:$0xff]  ;;  %s4255_s27 = smov 120  }
 0x2bb   : > { %3531 = vpow2.f32 %v1088_v54 }
 0x2bf   : > { %v1279_v55 = vpop.xlane.xlu1 %1278 }
 0x2c0   : > { %v1280_v56 = vsub.f32 %v1274_v41, %v1279_v55 }
 0x2c2   : > { %v1281_v57 = vmul.f32 1.442695, %v1280_v56 }
 0x2c3   : > { %v977_v58 = vpop.permute.xlu1 %976 }
 0x2c4   : > { %3533 = vpow2.f32 %v1281_v57  ;;  %979 = vst.msk [vmem:[#allocation4 + $0x2] sm:$0x3] %vm961_vm2, %v977_v58 }
 0x2c8   : > { %v3532_v59 = vpop.eup %3531  ;;  %v1469_v63 = vpop.xlane.xlu0 %1468 }
 0x2c9   : > { %v1090_v60 = vsel %vm1007_vm4, %v3532_v59, 0.0  ;;  %v1470_v0 = vsub.f32 %v1464_v45, %v1469_v63 }
 0x2ca   : > { %1091 = vadd.xlane.f32.xlu1 %v1090_v60 }
 0x2cb   : > { %v1471_v2 = vmul.f32 1.442695, %v1470_v0 }
 0x2cd   : > { %3535 = vpow2.f32 %v1471_v2 }
 0x2d1   : > { %v3534_v61 = vpop.eup %3533  ;;  %v1659_v3 = vpop.xlane.xlu0 %1658 }
 0x2d2   : > { %v1283_v62 = vsel %vm1007_vm4, %v3534_v61, 0.0  ;;  %v1660_v5 = vsub.f32 %v1654_v49, %v1659_v3 }
 0x2d3   : > { %1284 = vadd.xlane.f32.xlu0 %v1283_v62  ;;  %v3518_v62 = vld [vmem:[%s4208_s12] sm:$0xff]  }
 0x2d4   : > { %v1661_v6 = vmul.f32 1.442695, %v1660_v5 }
 0x2d6   : > { %3537 = vpow2.f32 %v1661_v6 }
 0x2da   : > { %v3536_v7 = vpop.eup %3535 }
 0x2db   : > { %1000 = vrot.lane.b32.xlu1 %v3834_v31, %s4225_s8  ;;  %v1473_v8 = vsel %vm1007_vm4, %v3536_v7, 0.0 }
 0x2e3   : > { %v3538_v9 = vpop.eup %3537 }
 0x2e4   : > { %v1663_v10 = vsel %vm1007_vm4, %v3538_v9, 0.0 }
 0x2e9   : > { %988 = vrot.lane.b32.xlu0 %v3834_v31, %s4235_s4  ;;  %s771_s4 = scalar_lea.vmem %s4253_s7, %s3731_s0 }
 0x2ea   : > { %v786_v63 = vld [vmem:[%s771_s4] sm:$0xff] }
 0x2ff   : > { %1474 = vadd.xlane.f32.xlu1 %v1473_v8  ;;  %v3520_v8 = vld [vmem:[%s4207_s11] sm:$0xff]  }
 0x308   : > { %1664 = vadd.xlane.f32.xlu0 %v1663_v10 }
 0x353   : > { %v1092_v11 = vpop.xlane.xlu1 %1091 }
 0x354   : > { %3539 = vrcp.f32 %v1092_v11 }
 0x357   : > { %v1001_v12 = vpop.permute.xlu1 %1000 }
 0x358   : > { %1003 = vst.msk [vmem:[#allocation4 + $0x6] sm:$0x3] %vm961_vm2, %v1001_v12 }
 0x35c   : > { %v1285_v13 = vpop.xlane.xlu0 %1284 }
 0x35d   : > { %3541 = vrcp.f32 %v1285_v13 }
 0x360   : > { %v989_v14 = vpop.permute.xlu0 %988 }
 0x361   : > { %991 = vst.msk [vmem:[#allocation4 + $0x4] sm:$0x3] %vm961_vm2, %v989_v14  ;;  %v3540_v15 = vpop.eup %3539 }
 0x362   : > { %v1094_v17 = vmul.f32 %v3540_v15, %v3532_v59 }
 0x368   : > { %v1006_v16 = vld [vmem:[#allocation4] sm:$0xff] }
 0x369   : > { %1188 = vst.msk [vmem:[#allocation4 - $0x2] sm:$0xc] %vm1185_vm3, %v3834_v31  ;;  %1191 = vst.msk [vmem:[#allocation4] sm:$0xc] %vm1185_vm3, %v977_v58  ;;  %3359 = vmatpush3.msra.mxu1 %v1006_v16 }
 0x36a   : > { %1194 = vst.msk [vmem:[#allocation4 + $0x2] sm:$0xc] %vm1185_vm3, %v989_v14  ;;  %1197 = vst.msk [vmem:[#allocation4 + $0x4] sm:$0xc] %vm1185_vm3, %v1001_v12  ;;  %3361 = vmatmul.mubr.msk.f32.vlgmr.msra.gmra.mxu1 %vm1007_vm4, %v1094_v17  ;;  %3368 = vmatprep.subr.mxu1 %v3577_v1  ;;  %v3542_v18 = vpop.eup %3541  ;;  %v3222_v17 = vld [vmem:[%s4205_s9] ss:$0 sm:$0xff] }
 0x36b   : > { %3370 = vmatprep.mubr.msk.f32.mxu1 %vm3578_vm0, %v3577_v1  ;;  %v1287_v20 = vmul.f32 %v3542_v18, %v3534_v61  ;;  %v3517_v61 = vld [vmem:[%s4208_s12 + $0x8] sm:$0xff]  }
 0x371   : > { %v1200_v19 = vld [vmem:[#allocation4] sm:$0xff] }
 0x372   : > { %1378 = vst.msk [vmem:[#allocation4 - $0x4] sm:$0x30] %vm1375_vm5, %v3834_v31  ;;  %1381 = vst.msk [vmem:[#allocation4 - $0x2] sm:$0x30] %vm1375_vm5, %v977_v58  ;;  %3369 = vmatpush3.msra.mxu1 %v1200_v19  ;;  %v3223_v19 = vld [vmem:[%s4206_s10] ss:$0 sm:$0xff] }
 0x373   : > { %1384 = vst.msk [vmem:[#allocation4] sm:$0x30] %vm1375_vm5, %v989_v14  ;;  %1387 = vst.msk [vmem:[#allocation4 + $0x2] sm:$0x30] %vm1375_vm5, %v1001_v12  ;;  %3371 = vmatmul.mubr.msk.f32.vlgmr.msra.gmra.mxu1 %vm1007_vm4, %v1287_v20  ;;  %3378 = vmatprep.subr.mxu1 %v3577_v1 }
 0x374   : > { %3380 = vmatprep.mubr.msk.f32.mxu1 %vm3578_vm0, %v3577_v1 }
 0x37a   : > { %v1390_v21 = vld [vmem:[#allocation4] sm:$0xff] }
 0x37b   : > { %1568 = vst.msk [vmem:[#allocation4 - $0x6] sm:$0xc0] %vm1565_vm6, %v3834_v31  ;;  %1571 = vst.msk [vmem:[#allocation4 - $0x4] sm:$0xc0] %vm1565_vm6, %v977_v58  ;;  %3379 = vmatpush3.msra.mxu1 %v1390_v21 }
 0x37c   : > { %1574 = vst.msk [vmem:[#allocation4 - $0x2] sm:$0xc0] %vm1565_vm6, %v989_v14  ;;  %1577 = vst.msk [vmem:[#allocation4] sm:$0xc0] %vm1565_vm6, %v1001_v12  ;;  %3388 = vmatprep.subr.mxu1 %v3577_v1 }
 0x383   : > { %v1580_v26 = vld [vmem:[#allocation4] sm:$0xff] }
 0x388   : > { %v1475_v22 = vpop.xlane.xlu1 %1474 }
 0x389   : > { %3543 = vrcp.f32 %v1475_v22 }
 0x391   : > { %v1665_v23 = vpop.xlane.xlu0 %1664 }
 0x392   : > { %3545 = vrcp.f32 %v1665_v23 }
 0x396   : > { %v3544_v24 = vpop.eup %3543 }
 0x397   : > { %v1477_v25 = vmul.f32 %v3544_v24, %v3536_v7  ;;  %v3519_v7 = vld [vmem:[%s4207_s11 + $0x8] sm:$0xff]  }
 0x399   : > { %3381 = vmatmul.mubr.msk.f32.vlgmr.msra.gmra.mxu1 %vm1007_vm4, %v1477_v25 }
 0x39a   : > { %3389 = vmatpush3.msra.mxu1 %v1580_v26  ;;  %3390 = vmatprep.mubr.msk.f32.mxu1 %vm3578_vm0, %v3577_v1 }
 0x39b   : > { %3401 = vmatprep.subr.bf16.mxu1 %v3577_v1 }
 0x39f   : > { %v3546_v27 = vpop.eup %3545 }
 0x3a0   : > { %v1667_v28 = vmul.f32 %v3546_v27, %v3538_v9 }
 0x3a2   : > { %3391 = vmatmul.mubr.msk.f32.vlgmr.msra.gmra.mxu1 %vm1007_vm4, %v1667_v28 }
 0x3a3   : > { %3405 = vmatprep.mubr.msk.bf16.mxu1 %vm3578_vm0, %v3577_v1  ;;  %3402 = vmatpush3.bf16.msra.mxu1 %v3519_v7 }
 0x3a4   : > { %3403 = vmatprep.subr.bf16.mxu1 %v3577_v1 }
 0x3a7   : > { %3404 = vmatpush3.bf16.msra.mxu1 %v3520_v8 }
 0x3a8   : > { %3417 = vmatprep.subr.bf16.mxu1 %v3577_v1 }
 0x42a   : > { %v1164_v29 = vpop.f32.mrf.mxu1 }
 0x42b   : > { %1168 = vst.msk [vmem:[#allocation5] sm:$0x3] %vm961_vm2, %v1164_v29  ;;  %1175 = vrot.lane.b32.xlu1 %v1164_v29, %s4229_s2  ;;  %1170 = vrot.lane.b32.xlu0 %v1164_v29, %s4231_s30 }
 0x42c   : > { %v3362_v30 = vpop.f32.mrf.mxu1 }
 0x42f   : > { %1180 = vrot.lane.b32.xlu1 %v1164_v29, %s4227_s25 }
 0x433   : > { %v1357_v31 = vpop.f32.mrf.mxu1 }
 0x434   : > { %1361 = vst.msk [vmem:[#allocation5 + $0x2] sm:$0x3] %vm961_vm2, %v1357_v31  ;;  %1367 = vrot.lane.b32.xlu0 %v1357_v31, %s4229_s2  ;;  %1363 = vrot.lane.b32.xlu1 %v1357_v31, %s4231_s30 }
 0x435   : > { %v3372_v32 = vpop.f32.mrf.mxu1 }
 0x438   : > { %1371 = vrot.lane.b32.xlu0 %v1357_v31, %s4227_s25 }
 0x459   : > { %v1547_v33 = vpop.f32.mrf.mxu1 }
 0x45a   : > { %1551 = vst.msk [vmem:[#allocation5 + $0x4] sm:$0x3] %vm961_vm2, %v1547_v33  ;;  %1553 = vrot.lane.b32.xlu1 %v1547_v33, %s4231_s30 }
 0x45b   : > { %v3382_v34 = vpop.f32.mrf.mxu1 }
 0x45c   : > { %v3522_v34 = vld [vmem:[%s4209_s13] sm:$0xff]  }
 0x45e   : > { %1557 = vrot.lane.b32.xlu1 %v1547_v33, %s4229_s2 }
 0x462   : > { %v1737_v36 = vpop.f32.mrf.mxu1  ;;  %1561 = vrot.lane.b32.xlu1 %v1547_v33, %s4227_s25  ;;  %v3521_v33 = vld [vmem:[%s4209_s13 + $0x8] sm:$0xff]  }
 0x463   : > { %1741 = vst.msk [vmem:[#allocation5 + $0x6] sm:$0x3] %vm961_vm2, %v1737_v36  ;;  %1743 = vrot.lane.b32.xlu0 %v1737_v36, %s4231_s30 }
 0x464   : > { %v3392_v37 = vpop.f32.mrf.mxu1 }
 0x467   : > { %1747 = vrot.lane.b32.xlu0 %v1737_v36, %s4229_s2  ;;  %s4257_s2 = sld [smem:[#allocation9_spill]] }
 0x46b   : > { %1751 = vrot.lane.b32.xlu0 %v1737_v36, %s4227_s25  ;;  %s4254_s25 = smov 112  }
 0x46d   : > { %s779_s30 = scalar_lea.vmem %s4257_s2, %s3731_s0 }
 0x49d   : > { %v1176_v39 = vpop.permute.xlu1 %1175  ;;  %v1171_v40 = vpop.permute.xlu0 %1170 }
 0x49e   : > { %1174 = vst.msk [vmem:[#allocation5 - $0x2] sm:$0xc] %vm1173_vm7, %v1171_v40 }
 0x49f   : > { %1179 = vst.msk [vmem:[#allocation5 - $0x4] sm:$0x30] %vm1178_vm8, %v1176_v39 }
 0x4a1   : > { %v1181_v41 = vpop.permute.xlu1 %1180 }
 0x4a2   : > { %1184 = vst.msk [vmem:[#allocation5 - $0x6] sm:$0xc0] %vm1183_vm9, %v1181_v41 }
 0x4a6   : > { %v1368_v42 = vpop.permute.xlu0 %1367  ;;  %v1364_v43 = vpop.permute.xlu1 %1363 }
 0x4a7   : > { %1366 = vst.msk [vmem:[#allocation5] sm:$0xc] %vm1173_vm7, %v1364_v43 }
 0x4a8   : > { %1370 = vst.msk [vmem:[#allocation5 - $0x2] sm:$0x30] %vm1178_vm8, %v1368_v42 }
 0x4aa   : > { %v1372_v44 = vpop.permute.xlu0 %1371 }
 0x4ab   : > { %1374 = vst.msk [vmem:[#allocation5 - $0x4] sm:$0xc0] %vm1183_vm9, %v1372_v44 }
 0x4cc   : > { %v1554_v45 = vpop.permute.xlu1 %1553 }
 0x4cd   : > { %1556 = vst.msk [vmem:[#allocation5 + $0x2] sm:$0xc] %vm1173_vm7, %v1554_v45 }
 0x4d0   : > { %v1558_v46 = vpop.permute.xlu1 %1557 }
 0x4d1   : > { %1560 = vst.msk [vmem:[#allocation5] sm:$0x30] %vm1178_vm8, %v1558_v46 }
 0x4d4   : > { %v1562_v47 = vpop.permute.xlu1 %1561 }
 0x4d5   : > { %v1744_v48 = vpop.permute.xlu0 %1743  ;;  %1564 = vst.msk [vmem:[#allocation5 - $0x2] sm:$0xc0] %vm1183_vm9, %v1562_v47  ;;  %v1854_v47 = vld [vmem:[%s779_s30] sm:$0xff]  ;;  %s783_s30 = scalar_lea.vmem %s4220_s24, %s3731_s0 }
 0x4d6   : > { %1746 = vst.msk [vmem:[#allocation5 + $0x4] sm:$0xc] %vm1173_vm7, %v1744_v48 }
 0x4d9   : > { %v1748_v49 = vpop.permute.xlu0 %1747 }
 0x4da   : > { %1750 = vst.msk [vmem:[#allocation5 + $0x2] sm:$0x30] %vm1178_vm8, %v1748_v49 }
 0x4dd   : > { %v1752_v50 = vpop.permute.xlu0 %1751 }
 0x4de   : > { %1754 = vst.msk [vmem:[#allocation5] sm:$0xc0] %vm1183_vm9, %v1752_v50 }
 0x4e5   : > { %v1755_v51 = vld [vmem:[#allocation5] sm:$0xff] }
 0x4e6   : > { %v1756_v52 = vpack.c.bf16 %v1755_v51, %v1755_v51 }
 0x4e8   : > { %3398 = vmatmul.mubr.msk.bf16.vlgmr.msra.gmra.mxu0 %vm805_vm1, %v1756_v52 }
 0x4e9   : > { %3413 = vmatprep.mubr.msk.bf16.mxu0 %vm3578_vm0, %v3577_v1  ;;  %3410 = vmatpush3.bf16.msra.mxu0 %v3517_v61 }
 0x4ea   : > { %3411 = vmatprep.subr.bf16.mxu0 %v3577_v1 }
 0x4ed   : > { %3412 = vmatpush3.bf16.msra.mxu0 %v3518_v62 }
 0x4ee   : > { %3425 = vmatprep.subr.mxu0 %v3577_v1 }
 0x5a8   : > { %v1817_v54 = vpop.f32.mrf.mxu0 }
 0x5a9   : > { %v1818_v55 = vadd.f32 %v3218_v53, %v1817_v54 }
 0x5aa   : > { %v3399_v56 = vpop.f32.mrf.mxu0 }
 0x5ab   : > { %v1823_v57 = vadd.f32 %v1818_v55, %v3741_v4  ;;  %v3945_v4 = vpack.c.bf16 %v786_v63, %v786_v63 }
 0x5ac   : > { %v1820_v58 = vpop.f32.mrf.mxu0 }
 0x5ad   : > { %v1826_v59 = vsel %vm805_vm1, %v1823_v57, 0.0  ;;  %3414 = vmatmul.mubr.msk.bf16.vlgmr.msra.gmra.mxu0 %vm805_vm1, %v3945_v4 }
 0x5ae   : > { %1827 = vadd.xlane.f32.xlu1 %v1826_v59  ;;  %v3400_v60 = vpop.f32.mrf.mxu0  ;;  %3427 = vmatprep.mubr.msk.f32.mxu0 %vm3578_vm0, %v3577_v1 }
 0x637   : > { %v1828_v0 = vpop.xlane.xlu1 %1827 }
 0x638   : > { %v1830_v2 = vmul.f32 0.03125, %v1828_v0 }
 0x63a   : > { %v1831_v3 = vsub.f32 %v1823_v57, %v1830_v2 }
 0x63c   : > { %v1832_v5 = vmul.f32 %v1831_v3, %v1831_v3 }
 0x63e   : > { %v1833_v6 = vsel %vm805_vm1, %v1832_v5, 0.0 }
 0x63f   : > { %1834 = vadd.xlane.f32.xlu0 %v1833_v6 }
 0x66d   : > { %v1969_v9 = vpop.f32.mrf.mxu0 }
 0x66e   : > { %2032 = vst.msk [vmem:[#allocation3] sm:$0x3] %vm961_vm2, %v1969_v9  ;;  %2053 = vrot.lane.b32.xlu1 %v1969_v9, %s4254_s25  ;;  %2040 = vrot.lane.b32.xlu0 %v1969_v9, %s4255_s27 }
 0x66f   : > { %v3415_v10 = vpop.f32.mrf.mxu0 }
 0x671   : > { %v1972_v11 = vpop.f32.mrf.mxu0 }
 0x672   : > { %2065 = vrot.lane.b32.xlu1 %v1969_v9, %s4256_s28 }
 0x673   : > { %v3416_v12 = vpop.f32.mrf.mxu0 }
 0x6c8   : > { %v1835_v13 = vpop.xlane.xlu0 %1834 }
 0x6c9   : > { %v1836_v14 = vmul.f32 0.03125, %v1835_v13 }
 0x6cb   : > { %v1837_v15 = vadd.f32 1e-05, %v1836_v14 }
 0x6cd   : > { %3547 = vrsqrt.f32 %v1837_v15 }
 0x6da   : > { %v3548_v16 = vpop.eup %3547 }
 0x6db   : > { %v1839_v18 = vmul.f32 %v3548_v16, %v1831_v3 }
 0x6dd   : > { %v1846_v20 = vmul.f32 %v3222_v17, %v1839_v18 }
 0x6df   : > { %v3971_v21 = vadd.f32 %v3223_v19, %v1846_v20 }
 0x6e0   : > { %v2054_v23 = vpop.permute.xlu1 %2053  ;;  %v2041_v24 = vpop.permute.xlu0 %2040 }
 0x6e1   : > { %v1855_v22 = vpack.c.bf16 %v3971_v21, %v3971_v21  ;;  %2056 = vst.msk [vmem:[#allocation3 + $0x4] sm:$0x3] %vm961_vm2, %v2054_v23  ;;  %2043 = vst.msk [vmem:[#allocation3 + $0x2] sm:$0x3] %vm961_vm2, %v2041_v24 }
 0x6e3   : > { %3406 = vmatmul.mubr.msk.bf16.vlgmr.msra.gmra.mxu1 %vm805_vm1, %v1855_v22 }
 0x6e4   : > { %3421 = vmatprep.mubr.msk.bf16.mxu1 %vm3578_vm0, %v3577_v1  ;;  %v2066_v25 = vpop.permute.xlu1 %2065  ;;  %3418 = vmatpush3.bf16.msra.mxu1 %v3521_v33 }
 0x6e5   : > { %2068 = vst.msk [vmem:[#allocation3 + $0x6] sm:$0x3] %vm961_vm2, %v2066_v25  ;;  %3419 = vmatprep.subr.bf16.mxu1 %v3577_v1 }
 0x6e8   : > { %3420 = vmatpush3.bf16.msra.mxu1 %v3522_v34 }
 0x6e9   : > { %3430 = vmatprep.subr.mxu1 %v3577_v1 }
 0x6eb   : > { %3422 = vmatmul.mubr.msk.bf16.vlgmr.msra.gmra.mxu1 %vm805_vm1, %v3945_v4 }
 0x6ec   : > { %v2074_v26 = vld [vmem:[#allocation3] sm:$0xff]  ;;  %3432 = vmatprep.mubr.msk.f32.mxu1 %vm3578_vm0, %v3577_v1 }
 0x6ed   : > { %2251 = vst.msk [vmem:[#allocation3 - $0x2] sm:$0xc] %vm1185_vm3, %v1969_v9  ;;  %2254 = vst.msk [vmem:[#allocation3] sm:$0xc] %vm1185_vm3, %v2041_v24  ;;  %3426 = vmatpush3.xpose.msk.msra.mxu0 %vm1007_vm4, %v2074_v26 }
 0x6ee   : > { %2257 = vst.msk [vmem:[#allocation3 + $0x2] sm:$0xc] %vm1185_vm3, %v2054_v23  ;;  %2260 = vst.msk [vmem:[#allocation3 + $0x4] sm:$0xc] %vm1185_vm3, %v2066_v25  ;;  %3435 = vmatprep.subr.mxu0 %v3577_v1 }
 0x6f5   : > { %v2263_v27 = vld [vmem:[#allocation3] sm:$0xff] }
 0x6f6   : > { %2443 = vst.msk [vmem:[#allocation3 - $0x2] sm:$0x30] %vm1375_vm5, %v2041_v24  ;;  %2440 = vst.msk [vmem:[#allocation3 - $0x4] sm:$0x30] %vm1375_vm5, %v1969_v9 }
 0x6f7   : > { %2446 = vst.msk [vmem:[#allocation3] sm:$0x30] %vm1375_vm5, %v2054_v23  ;;  %2449 = vst.msk [vmem:[#allocation3 + $0x2] sm:$0x30] %vm1375_vm5, %v2066_v25 }
 0x6fe   : > { %v2452_v28 = vld [vmem:[#allocation3] sm:$0xff] }
 0x6ff   : > { %2629 = vst.msk [vmem:[#allocation3 - $0x6] sm:$0xc0] %vm1565_vm6, %v1969_v9  ;;  %2632 = vst.msk [vmem:[#allocation3 - $0x4] sm:$0xc0] %vm1565_vm6, %v2041_v24 }
 0x700   : > { %2635 = vst.msk [vmem:[#allocation3 - $0x2] sm:$0xc0] %vm1565_vm6, %v2054_v23  ;;  %2638 = vst.msk [vmem:[#allocation3] sm:$0xc0] %vm1565_vm6, %v2066_v25 }
 0x707   : > { %v2641_v41 = vld [vmem:[#allocation3] sm:$0xff] }
 0x7a3   : > { %v1909_v29 = vpop.f32.mrf.mxu1 }
 0x7a4   : > { %2031 = vst.msk [vmem:[#allocation2] sm:$0x3] %vm961_vm2, %v1909_v29  ;;  %2049 = vrot.lane.b32.xlu1 %v1909_v29, %s4254_s25  ;;  %2035 = vrot.lane.b32.xlu0 %v1909_v29, %s4255_s27 }
 0x7a5   : > { %v3407_v30 = vpop.f32.mrf.mxu1 }
 0x7a7   : > { %v1912_v31 = vpop.f32.mrf.mxu1 }
 0x7a8   : > { %2061 = vrot.lane.b32.xlu0 %v1909_v29, %s4256_s28 }
 0x7a9   : > { %v3408_v32 = vpop.f32.mrf.mxu1 }
 0x7ab   : > { %v4044_v43 = vpop.f32.mrf.mxu1 }
 0x7ac   : > { %2033 = vst.msk [vmem:[#allocation4] sm:$0x3] %vm961_vm2, %v4044_v43 }
 0x7ad   : > { %v3423_v44 = vpop.f32.mrf.mxu1 }
 0x7af   : > { %v2028_v45 = vpop.f32.mrf.mxu1 }
 0x7b1   : > { %v3424_v46 = vpop.f32.mrf.mxu1 }
 0x816   : > { %v2050_v35 = vpop.permute.xlu1 %2049  ;;  %v2036_v36 = vpop.permute.xlu0 %2035 }
 0x817   : > { %2052 = vst.msk [vmem:[#allocation2 + $0x4] sm:$0x3] %vm961_vm2, %v2050_v35  ;;  %2038 = vst.msk [vmem:[#allocation2 + $0x2] sm:$0x3] %vm961_vm2, %v2036_v36 }
 0x81a   : > { %v2062_v37 = vpop.permute.xlu0 %2061 }
 0x81b   : > { %2064 = vst.msk [vmem:[#allocation2 + $0x6] sm:$0x3] %vm961_vm2, %v2062_v37 }
 0x822   : > { %v2073_v38 = vld [vmem:[#allocation2] sm:$0xff] }
 0x823   : > { %2250 = vst.msk [vmem:[#allocation2 - $0x2] sm:$0xc] %vm1185_vm3, %v1909_v29  ;;  %2253 = vst.msk [vmem:[#allocation2] sm:$0xc] %vm1185_vm3, %v2036_v36  ;;  %3428 = vmatmul.mubr.msk.f32.vlgmr.msra.gmra.mxu0 %vm1007_vm4, %v2073_v38 }
 0x824   : > { %2256 = vst.msk [vmem:[#allocation2 + $0x2] sm:$0xc] %vm1185_vm3, %v2050_v35  ;;  %2259 = vst.msk [vmem:[#allocation2 + $0x4] sm:$0xc] %vm1185_vm3, %v2062_v37  ;;  %3436 = vmatpush3.xpose.msk.msra.mxu0 %vm1007_vm4, %v2263_v27  ;;  %3437 = vmatprep.mubr.msk.f32.mxu0 %vm3578_vm0, %v3577_v1 }
 0x825   : > { %3445 = vmatprep.subr.mxu0 %v3577_v1 }
 0x82b   : > { %v2262_v39 = vld [vmem:[#allocation2] sm:$0xff] }
 0x82c   : > { %2448 = vst.msk [vmem:[#allocation2 + $0x2] sm:$0x30] %vm1375_vm5, %v2062_v37  ;;  %2439 = vst.msk [vmem:[#allocation2 - $0x4] sm:$0x30] %vm1375_vm5, %v1909_v29  ;;  %3438 = vmatmul.mubr.msk.f32.vlgmr.msra.gmra.mxu0 %vm1007_vm4, %v2262_v39 }
 0x82d   : > { %2442 = vst.msk [vmem:[#allocation2 - $0x2] sm:$0x30] %vm1375_vm5, %v2036_v36  ;;  %2445 = vst.msk [vmem:[#allocation2] sm:$0x30] %vm1375_vm5, %v2050_v35  ;;  %3446 = vmatpush3.xpose.msk.msra.mxu0 %vm1007_vm4, %v2452_v28  ;;  %3447 = vmatprep.mubr.msk.f32.mxu0 %vm3578_vm0, %v3577_v1 }
 0x82e   : > { %3455 = vmatprep.subr.mxu0 %v3577_v1 }
 0x834   : > { %v2451_v40 = vld [vmem:[#allocation2] sm:$0xff] }
 0x835   : > { %3448 = vmatmul.mubr.msk.f32.vlgmr.msra.gmra.mxu0 %vm1007_vm4, %v2451_v40  ;;  %2628 = vst.msk [vmem:[#allocation2 - $0x6] sm:$0xc0] %vm1565_vm6, %v1909_v29  ;;  %2631 = vst.msk [vmem:[#allocation2 - $0x4] sm:$0xc0] %vm1565_vm6, %v2036_v36 }
 0x836   : > { %2634 = vst.msk [vmem:[#allocation2 - $0x2] sm:$0xc0] %vm1565_vm6, %v2050_v35  ;;  %2637 = vst.msk [vmem:[#allocation2] sm:$0xc0] %vm1565_vm6, %v2062_v37  ;;  %3456 = vmatpush3.xpose.msk.msra.mxu0 %vm1007_vm4, %v2641_v41  ;;  %3457 = vmatprep.mubr.msk.f32.mxu0 %vm3578_vm0, %v3577_v1 }
 0x837   : > { %3465 = vmatprep.subr.bf16.mxu0 %v3577_v1 }
 0x83d   : > { %v2640_v42 = vld [vmem:[#allocation2] sm:$0xff] }
 0x83e   : > { %3458 = vmatmul.mubr.msk.f32.vlgmr.msra.gmra.mxu0 %vm1007_vm4, %v2640_v42 }
 0x83f   : > { %3469 = vmatprep.mubr.msk.bf16.mxu0 %vm3578_vm0, %v3577_v1 }
 0x8e3   : > { %v2148_v48 = vpop.f32.mrf.mxu0 }
 0x8e4   : > { %v2149_v49 = vadd.f32 %v2148_v48, %v1854_v47  ;;  %v3524_v48 = vld [vmem:[%s4210_s14] sm:$0xff]  }
 0x8e5   : > { %v3429_v50 = vpop.f32.mrf.mxu0 }
 0x8e6   : > { %v2152_v51 = vsel %vm1007_vm4, %v2149_v49, -inf }
 0x8e7   : > { %2153 = vmax.xlane.f32.xlu1 %v2152_v51 }
 0x8ec   : > { %v2337_v52 = vpop.f32.mrf.mxu0 }
 0x8ed   : > { %v2338_v53 = vadd.f32 %v2337_v52, %v1854_v47 }
 0x8ee   : > { %v3439_v54 = vpop.f32.mrf.mxu0 }
 0x8ef   : > { %v2341_v55 = vsel %vm1007_vm4, %v2338_v53, -inf }
 0x8f0   : > { %2342 = vmax.xlane.f32.xlu0 %v2341_v55 }
 0x8f5   : > { %v2526_v56 = vpop.f32.mrf.mxu0 }
 0x8f6   : > { %v2527_v57 = vadd.f32 %v2526_v56, %v1854_v47 }
 0x8f7   : > { %v3449_v58 = vpop.f32.mrf.mxu0 }
 0x8f8   : > { %v2530_v59 = vsel %vm1007_vm4, %v2527_v57, -inf }
 0x8f9   : > { %2531 = vmax.xlane.f32.xlu0 %v2530_v59 }
 0x8fe   : > { %v2715_v60 = vpop.f32.mrf.mxu0 }
 0x8ff   : > { %v2716_v61 = vadd.f32 %v2715_v60, %v1854_v47  ;;  %v3523_v47 = vld [vmem:[%s4210_s14 + $0x8] sm:$0xff]  }
 0x900   : > { %v3459_v62 = vpop.f32.mrf.mxu0  ;;  %3466 = vmatpush3.bf16.msra.mxu0 %v3523_v47 }
 0x901   : > { %v2719_v63 = vsel %vm1007_vm4, %v2716_v61, -inf  ;;  %3467 = vmatprep.subr.bf16.mxu0 %v3577_v1 }
 0x902   : > { %2720 = vmax.xlane.f32.xlu1 %v2719_v63 }
 0x904   : > { %3468 = vmatpush3.bf16.msra.mxu0 %v3524_v48 }
 0x905   : > { %3481 = vmatprep.subr.bf16.mxu0 %v3577_v1 }
 0x913   : > { %2057 = vrot.lane.b32.xlu1 %v4044_v43, %s4254_s25  ;;  %s4258_s25 = smov 8  }
 0x970   : > { %v2154_v4 = vpop.xlane.xlu1 %2153 }
 0x971   : > { %v2155_v0 = vsub.f32 %v2149_v49, %v2154_v4 }
 0x973   : > { %v2156_v2 = vmul.f32 1.442695, %v2155_v0  ;;  %v3245_v0 = vld [vmem:[%s4211_s15] ss:$0 sm:$0xff] }
 0x975   : > { %3549 = vpow2.f32 %v2156_v2 }
 0x979   : > { %v2343_v3 = vpop.xlane.xlu0 %2342 }
 0x97a   : > { %v2344_v5 = vsub.f32 %v2338_v53, %v2343_v3 }
 0x97c   : > { %v2345_v6 = vmul.f32 1.442695, %v2344_v5 }
 0x97e   : > { %3551 = vpow2.f32 %v2345_v6 }
 0x982   : > { %v3550_v7 = vpop.eup %3549  ;;  %v2532_v13 = vpop.xlane.xlu0 %2531 }
 0x983   : > { %v2158_v8 = vsel %vm1007_vm4, %v3550_v7, 0.0  ;;  %v2533_v14 = vsub.f32 %v2527_v57, %v2532_v13 }
 0x984   : > { %2159 = vadd.xlane.f32.xlu0 %v2158_v8 }
 0x985   : > { %v2534_v15 = vmul.f32 1.442695, %v2533_v14 }
 0x987   : > { %3553 = vpow2.f32 %v2534_v15  ;;  %v3525_v15 = vld [vmem:[%s4214_s18 + $0x8] sm:$0xff]  }
 0x98b   : > { %v2721_v9 = vpop.xlane.xlu1 %2720  ;;  %v3552_v10 = vpop.eup %3551 }
 0x98c   : > { %v2347_v11 = vsel %vm1007_vm4, %v3552_v10, 0.0  ;;  %v2722_v16 = vsub.f32 %v2716_v61, %v2721_v9 }
 0x98d   : > { %2348 = vadd.xlane.f32.xlu1 %v2347_v11 }
 0x98e   : > { %v2723_v17 = vmul.f32 1.442695, %v2722_v16  ;;  %v3527_v16 = vld [vmem:[%s4216_s20 + $0x18] sm:$0xff]  }
 0x98f   : > { %v2058_v12 = vpop.permute.xlu1 %2057 }
 0x990   : > { %2060 = vst.msk [vmem:[#allocation4 + $0x4] sm:$0x3] %vm961_vm2, %v2058_v12  ;;  %3555 = vpow2.f32 %v2723_v17  ;;  %v3528_v17 = vld [vmem:[%s4216_s20 + $0x10] sm:$0xff]  }
 0x994   : > { %v3554_v18 = vpop.eup %3553 }
 0x995   : > { %v2536_v19 = vsel %vm1007_vm4, %v3554_v18, 0.0 }
 0x99a   : > { %2045 = vrot.lane.b32.xlu0 %v4044_v43, %s4255_s27  ;;  %s4259_s27 = smov 16  }
 0x99d   : > { %v3556_v20 = vpop.eup %3555 }
 0x99e   : > { %2069 = vrot.lane.b32.xlu1 %v4044_v43, %s4256_s28  ;;  %v2725_v22 = vsel %vm1007_vm4, %v3556_v20, 0.0  ;;  %s4260_s28 = smov 24  }
 0x9b9   : > { %2537 = vadd.xlane.f32.xlu0 %v2536_v19 }
 0x9c2   : > { %2726 = vadd.xlane.f32.xlu1 %v2725_v22 }
 0xa0d   : > { %v2160_v23 = vpop.xlane.xlu0 %2159 }
 0xa0e   : > { %3557 = vrcp.f32 %v2160_v23  ;;  %v3249_v23 = vld [vmem:[%s4212_s16] ss:$0 sm:$0xff] }
 0xa11   : > { %v2046_v24 = vpop.permute.xlu0 %2045 }
 0xa12   : > { %2048 = vst.msk [vmem:[#allocation4 + $0x2] sm:$0x3] %vm961_vm2, %v2046_v24 }
 0xa16   : > { %v2349_v25 = vpop.xlane.xlu1 %2348 }
 0xa17   : > { %3559 = vrcp.f32 %v2349_v25  ;;  %v3250_v25 = vld [vmem:[%s4213_s17] ss:$0 sm:$0xff] }
 0xa1a   : > { %v2070_v26 = vpop.permute.xlu1 %2069 }
 0xa1b   : > { %2072 = vst.msk [vmem:[#allocation4 + $0x6] sm:$0x3] %vm961_vm2, %v2070_v26  ;;  %v3558_v27 = vpop.eup %3557 }
 0xa1c   : > { %v2162_v29 = vmul.f32 %v3558_v27, %v3550_v7 }
 0xa22   : > { %v2075_v28 = vld [vmem:[#allocation4] sm:$0xff] }
 0xa23   : > { %2252 = vst.msk [vmem:[#allocation4 - $0x2] sm:$0xc] %vm1185_vm3, %v4044_v43  ;;  %2255 = vst.msk [vmem:[#allocation4] sm:$0xc] %vm1185_vm3, %v2046_v24  ;;  %3431 = vmatpush3.msra.mxu1 %v2075_v28 }
 0xa24   : > { %2258 = vst.msk [vmem:[#allocation4 + $0x2] sm:$0xc] %vm1185_vm3, %v2058_v12  ;;  %2261 = vst.msk [vmem:[#allocation4 + $0x4] sm:$0xc] %vm1185_vm3, %v2070_v26  ;;  %3433 = vmatmul.mubr.msk.f32.vlgmr.msra.gmra.mxu1 %vm1007_vm4, %v2162_v29  ;;  %3440 = vmatprep.subr.mxu1 %v3577_v1  ;;  %v3560_v30 = vpop.eup %3559  ;;  %v3529_v29 = vld [vmem:[%s4216_s20 + $0x8] sm:$0xff]  }
 0xa25   : > { %3442 = vmatprep.mubr.msk.f32.mxu1 %vm3578_vm0, %v3577_v1  ;;  %v2351_v32 = vmul.f32 %v3560_v30, %v3552_v10  ;;  %v3530_v30 = vld [vmem:[%s4216_s20] sm:$0xff]  }
 0xa2b   : > { %v2264_v31 = vld [vmem:[#allocation4] sm:$0xff] }
 0xa2c   : > { %2450 = vst.msk [vmem:[#allocation4 + $0x2] sm:$0x30] %vm1375_vm5, %v2070_v26  ;;  %2441 = vst.msk [vmem:[#allocation4 - $0x4] sm:$0x30] %vm1375_vm5, %v4044_v43  ;;  %3441 = vmatpush3.msra.mxu1 %v2264_v31  ;;  %v3251_v31 = vld [vmem:[%s4215_s19] ss:$0 sm:$0xff] }
 0xa2d   : > { %2444 = vst.msk [vmem:[#allocation4 - $0x2] sm:$0x30] %vm1375_vm5, %v2046_v24  ;;  %2447 = vst.msk [vmem:[#allocation4] sm:$0x30] %vm1375_vm5, %v2058_v12  ;;  %3443 = vmatmul.mubr.msk.f32.vlgmr.msra.gmra.mxu1 %vm1007_vm4, %v2351_v32  ;;  %3450 = vmatprep.subr.mxu1 %v3577_v1 }
 0xa2e   : > { %3452 = vmatprep.mubr.msk.f32.mxu1 %vm3578_vm0, %v3577_v1 }
 0xa34   : > { %v2453_v33 = vld [vmem:[#allocation4] sm:$0xff] }
 0xa35   : > { %3451 = vmatpush3.msra.mxu1 %v2453_v33  ;;  %2630 = vst.msk [vmem:[#allocation4 - $0x6] sm:$0xc0] %vm1565_vm6, %v4044_v43  ;;  %2633 = vst.msk [vmem:[#allocation4 - $0x4] sm:$0xc0] %vm1565_vm6, %v2046_v24 }
 0xa36   : > { %2636 = vst.msk [vmem:[#allocation4 - $0x2] sm:$0xc0] %vm1565_vm6, %v2058_v12  ;;  %2639 = vst.msk [vmem:[#allocation4] sm:$0xc0] %vm1565_vm6, %v2070_v26  ;;  %3460 = vmatprep.subr.mxu1 %v3577_v1 }
 0xa3d   : > { %v2642_v38 = vld [vmem:[#allocation4] sm:$0xff] }
 0xa42   : > { %v2538_v34 = vpop.xlane.xlu0 %2537 }
 0xa43   : > { %3561 = vrcp.f32 %v2538_v34 }
 0xa4b   : > { %v2727_v35 = vpop.xlane.xlu1 %2726 }
 0xa4c   : > { %3563 = vrcp.f32 %v2727_v35 }
 0xa50   : > { %v3562_v36 = vpop.eup %3561 }
 0xa51   : > { %v2540_v37 = vmul.f32 %v3562_v36, %v3554_v18 }
 0xa53   : > { %3453 = vmatmul.mubr.msk.f32.vlgmr.msra.gmra.mxu1 %vm1007_vm4, %v2540_v37 }
 0xa54   : > { %3461 = vmatpush3.msra.mxu1 %v2642_v38  ;;  %3462 = vmatprep.mubr.msk.f32.mxu1 %vm3578_vm0, %v3577_v1 }
 0xa55   : > { %3473 = vmatprep.subr.bf16.mxu1 %v3577_v1 }
 0xa59   : > { %v3564_v39 = vpop.eup %3563 }
 0xa5a   : > { %v2729_v40 = vmul.f32 %v3564_v39, %v3556_v20 }
 0xa5c   : > { %3463 = vmatmul.mubr.msk.f32.vlgmr.msra.gmra.mxu1 %vm1007_vm4, %v2729_v40 }
 0xa5d   : > { %3477 = vmatprep.mubr.msk.bf16.mxu1 %vm3578_vm0, %v3577_v1  ;;  %3474 = vmatpush3.bf16.msra.mxu1 %v3525_v15 }
 0xa5e   : > { %3475 = vmatprep.subr.bf16.mxu1 %v3577_v1 }
 0xae4   : > { %v2232_v41 = vpop.f32.mrf.mxu1 }
 0xae5   : > { %2236 = vst.msk [vmem:[#allocation5] sm:$0x3] %vm961_vm2, %v2232_v41  ;;  %2238 = vrot.lane.b32.xlu0 %v2232_v41, %s4258_s25 }
 0xae6   : > { %v3434_v42 = vpop.f32.mrf.mxu1 }
 0xae9   : > { %2242 = vrot.lane.b32.xlu0 %v2232_v41, %s4259_s27 }
 0xaed   : > { %v2421_v43 = vpop.f32.mrf.mxu1  ;;  %2246 = vrot.lane.b32.xlu0 %v2232_v41, %s4260_s28 }
 0xaee   : > { %2425 = vst.msk [vmem:[#allocation5 + $0x2] sm:$0x3] %vm961_vm2, %v2421_v43  ;;  %2427 = vrot.lane.b32.xlu1 %v2421_v43, %s4258_s25 }
 0xaef   : > { %v3444_v44 = vpop.f32.mrf.mxu1 }
 0xaf2   : > { %2431 = vrot.lane.b32.xlu1 %v2421_v43, %s4259_s27 }
 0xaf6   : > { %2435 = vrot.lane.b32.xlu1 %v2421_v43, %s4260_s28 }
 0xb13   : > { %v2610_v45 = vpop.f32.mrf.mxu1 }
 0xb14   : > { %2614 = vst.msk [vmem:[#allocation5 + $0x4] sm:$0x3] %vm961_vm2, %v2610_v45  ;;  %2616 = vrot.lane.b32.xlu0 %v2610_v45, %s4258_s25 }
 0xb15   : > { %v3454_v46 = vpop.f32.mrf.mxu1 }
 0xb18   : > { %2620 = vrot.lane.b32.xlu0 %v2610_v45, %s4259_s27 }
 0xb1c   : > { %v2799_v49 = vpop.f32.mrf.mxu1  ;;  %2624 = vrot.lane.b32.xlu0 %v2610_v45, %s4260_s28 }
 0xb1d   : > { %2803 = vst.msk [vmem:[#allocation5 + $0x6] sm:$0x3] %vm961_vm2, %v2799_v49  ;;  %2805 = vrot.lane.b32.xlu1 %v2799_v49, %s4258_s25 }
 0xb1e   : > { %v3464_v50 = vpop.f32.mrf.mxu1 }
 0xb21   : > { %2809 = vrot.lane.b32.xlu1 %v2799_v49, %s4259_s27 }
 0xb25   : > { %2813 = vrot.lane.b32.xlu1 %v2799_v49, %s4260_s28 }
 0xb57   : > { %v2239_v51 = vpop.permute.xlu0 %2238 }
 0xb58   : > { %2241 = vst.msk [vmem:[#allocation5 - $0x2] sm:$0xc] %vm1173_vm7, %v2239_v51 }
 0xb5b   : > { %v2243_v52 = vpop.permute.xlu0 %2242 }
 0xb5c   : > { %2245 = vst.msk [vmem:[#allocation5 - $0x4] sm:$0x30] %vm1178_vm8, %v2243_v52 }
 0xb5f   : > { %v2247_v53 = vpop.permute.xlu0 %2246 }
 0xb60   : > { %v2428_v54 = vpop.permute.xlu1 %2427  ;;  %2249 = vst.msk [vmem:[#allocation5 - $0x6] sm:$0xc0] %vm1183_vm9, %v2247_v53 }
 0xb61   : > { %2430 = vst.msk [vmem:[#allocation5] sm:$0xc] %vm1173_vm7, %v2428_v54 }
 0xb64   : > { %v2432_v55 = vpop.permute.xlu1 %2431 }
 0xb65   : > { %2434 = vst.msk [vmem:[#allocation5 - $0x2] sm:$0x30] %vm1178_vm8, %v2432_v55  ;;  %v3261_v55 = vld [vmem:[%s4218_s22] ss:$0 sm:$0xff] }
 0xb68   : > { %v2436_v56 = vpop.permute.xlu1 %2435 }
 0xb69   : > { %2438 = vst.msk [vmem:[#allocation5 - $0x4] sm:$0xc0] %vm1183_vm9, %v2436_v56 }
 0xb86   : > { %v2617_v57 = vpop.permute.xlu0 %2616 }
 0xb87   : > { %2619 = vst.msk [vmem:[#allocation5 + $0x2] sm:$0xc] %vm1173_vm7, %v2617_v57  ;;  %v3262_v57 = vld [vmem:[%s4219_s23] ss:$0 sm:$0xff] }
 0xb8a   : > { %v2621_v58 = vpop.permute.xlu0 %2620 }
 0xb8b   : > { %2623 = vst.msk [vmem:[#allocation5] sm:$0x30] %vm1178_vm8, %v2621_v58 }
 0xb8e   : > { %v2625_v59 = vpop.permute.xlu0 %2624 }
 0xb8f   : > { %v2806_v60 = vpop.permute.xlu1 %2805  ;;  %2627 = vst.msk [vmem:[#allocation5 - $0x2] sm:$0xc0] %vm1183_vm9, %v2625_v59 }
 0xb90   : > { %2808 = vst.msk [vmem:[#allocation5 + $0x4] sm:$0xc] %vm1173_vm7, %v2806_v60 }
 0xb93   : > { %v2810_v61 = vpop.permute.xlu1 %2809 }
 0xb94   : > { %2812 = vst.msk [vmem:[#allocation5 + $0x2] sm:$0x30] %vm1178_vm8, %v2810_v61 }
 0xb97   : > { %v2814_v62 = vpop.permute.xlu1 %2813 }
 0xb98   : > { %2816 = vst.msk [vmem:[#allocation5] sm:$0xc0] %vm1183_vm9, %v2814_v62 }
 0xb9f   : > { %v2817_v63 = vld [vmem:[#allocation5] sm:$0xff] }
 0xba0   : > { %v2818_v4 = vpack.c.bf16 %v2817_v63, %v2817_v63 }
 0xba2   : > { %3470 = vmatmul.mubr.msk.bf16.vlgmr.msra.gmra.mxu0 %vm805_vm1, %v2818_v4 }
 0xba3   : > { %3489 = vmatprep.mubr.msk.bf16.mxu0 %vm3578_vm0, %v3577_v1  ;;  %3482 = vmatpush3.bf16.msra.mxu0 %v3527_v16 }
 0xba4   : > { %3483 = vmatprep.subr.bf16.mxu0 %v3577_v1 }
 0xba7   : > { %3484 = vmatpush3.bf16.msra.mxu0 %v3528_v17 }
 0xba8   : > { %3485 = vmatprep.subr.bf16.mxu0 %v3577_v1 }
 0xbab   : > { %3486 = vmatpush3.bf16.msra.mxu0 %v3529_v29 }
 0xbac   : > { %3487 = vmatprep.subr.bf16.mxu0 %v3577_v1  ;;  %v3255_v1 = vld [vmem:[%s4217_s21] ss:$0 sm:$0xff] }
 0xbaf   : > { %3488 = vmatpush3.bf16.msra.mxu0 %v3530_v30 }
 0xc62   : > { %v2879_v2 = vpop.f32.mrf.mxu0 }
 0xc63   : > { %v2880_v3 = vadd.f32 %v3245_v0, %v2879_v2 }
 0xc64   : > { %v3471_v5 = vpop.f32.mrf.mxu0 }
 0xc65   : > { %v2885_v6 = vadd.f32 %v2880_v3, %v3971_v21  ;;  %v3526_v21 = vld [vmem:[%s4214_s18] sm:$0xff]  }
 0xc66   : > { %v2882_v7 = vpop.f32.mrf.mxu0  ;;  %3476 = vmatpush3.bf16.msra.mxu1 %v3526_v21 }
 0xc67   : > { %v2888_v8 = vsel %vm805_vm1, %v2885_v6, 0.0 }
 0xc68   : > { %2889 = vadd.xlane.f32.xlu0 %v2888_v8  ;;  %v3472_v9 = vpop.f32.mrf.mxu0 }
 0xcf1   : > { %v2890_v10 = vpop.xlane.xlu0 %2889 }
 0xcf2   : > { %v2891_v11 = vmul.f32 0.03125, %v2890_v10 }
 0xcf4   : > { %v2892_v12 = vsub.f32 %v2885_v6, %v2891_v11 }
 0xcf6   : > { %v2893_v13 = vmul.f32 %v2892_v12, %v2892_v12 }
 0xcf8   : > { %v2894_v14 = vsel %vm805_vm1, %v2893_v13, 0.0 }
 0xcf9   : > { %2895 = vadd.xlane.f32.xlu1 %v2894_v14 }
 0xd82   : > { %v2896_v18 = vpop.xlane.xlu1 %2895 }
 0xd83   : > { %v2897_v19 = vmul.f32 0.03125, %v2896_v18 }
 0xd85   : > { %v2898_v20 = vadd.f32 1e-05, %v2897_v19 }
 0xd87   : > { %3565 = vrsqrt.f32 %v2898_v20 }
 0xd94   : > { %v3566_v22 = vpop.eup %3565 }
 0xd95   : > { %v2900_v24 = vmul.f32 %v3566_v22, %v2892_v12 }
 0xd97   : > { %v2907_v26 = vmul.f32 %v3249_v23, %v2900_v24 }
 0xd99   : > { %v2914_v27 = vadd.f32 %v3250_v25, %v2907_v26 }
 0xd9b   : > { %v2915_v28 = vpack.c.bf16 %v2914_v27, %v2914_v27 }
 0xd9d   : > { %3478 = vmatmul.mubr.msk.bf16.vlgmr.msra.gmra.mxu1 %vm805_vm1, %v2915_v28 }
 0xe5d   : > { %v2976_v32 = vpop.f32.mrf.mxu1 }
 0xe5e   : > { %v2977_v33 = vadd.f32 %v3251_v31, %v2976_v32 }
 0xe5f   : > { %v3479_v34 = vpop.f32.mrf.mxu1 }
 0xe60   : > { %v2982_v35 = vmax.f32 %v2977_v33, 0.0 }
 0xe61   : > { %v2979_v36 = vpop.f32.mrf.mxu1 }
 0xe62   : > { %v2983_v37 = vpack.c.bf16 %v2982_v35, %v2982_v35 }
 0xe63   : > { %v3480_v38 = vpop.f32.mrf.mxu1 }
 0xe64   : > { %3490 = vmatmul.mubr.msk.bf16.vlgmr.msra.gmra.mxu0 %vm3023_vm10, %v2983_v37 }
 0xf24   : > { %v3061_v39 = vpop.f32.mrf.mxu0 }
 0xf25   : > { %v3062_v40 = vadd.f32 %v3255_v1, %v3061_v39 }
 0xf26   : > { %v3491_v41 = vpop.f32.mrf.mxu0 }
 0xf27   : > { %v3067_v42 = vadd.f32 %v3062_v40, %v2914_v27 }
 0xf28   : > { %v3064_v43 = vpop.f32.mrf.mxu0 }
 0xf29   : > { %v3070_v44 = vsel %vm805_vm1, %v3067_v42, 0.0 }
 0xf2a   : > { %3071 = vadd.xlane.f32.xlu0 %v3070_v44  ;;  %v3492_v45 = vpop.f32.mrf.mxu0 }
 0xfb3   : > { %v3072_v46 = vpop.xlane.xlu0 %3071 }
 0xfb4   : > { %v3073_v47 = vmul.f32 0.03125, %v3072_v46 }
 0xfb6   : > { %v3074_v48 = vsub.f32 %v3067_v42, %v3073_v47 }
 0xfb8   : > { %v3075_v49 = vmul.f32 %v3074_v48, %v3074_v48 }
 0xfba   : > { %v3076_v50 = vsel %vm805_vm1, %v3075_v49, 0.0 }
 0xfbb   : > { %3077 = vadd.xlane.f32.xlu0 %v3076_v50 }
0x1044   : > { %v3078_v51 = vpop.xlane.xlu0 %3077 }
0x1045   : > { %v3079_v52 = vmul.f32 0.03125, %v3078_v51 }
0x1047   : > { %v3080_v53 = vadd.f32 1e-05, %v3079_v52 }
0x1049   : > { %3567 = vrsqrt.f32 %v3080_v53 }
0x1056   : > { %v3568_v54 = vpop.eup %3567 }
0x1057   : > { %v3082_v56 = vmul.f32 %v3568_v54, %v3074_v48 }
0x1059   : > { %v3089_v58 = vmul.f32 %v3261_v55, %v3082_v56 }
0x105b   : > { %v3096_v59 = vadd.f32 %v3262_v57, %v3089_v58 }
0x105d   : > { %3097 = vst.msk [vmem:[%s783_s30] sm:$0xff] %vm805_vm1, %v3096_v59 }
0x105e PF: > { %s34_s5 = sadd.s32 1, %s3575_s5  }
0x105f   : > { %p31_p4 = scmp.ge.s32.totalorder %s34_s5, 4  }
0x1061   :  { %33 = sbr.rel (!%p31_p4) target bundleno = 10 (0xa), region = 155 }

</bundles_post_ra>
